<compile_context>
chip_gen: v7x
topology: tpu7x:2x2x1
jax: 0.10.0
libtpu: 0.0.40
codegen_flags: <defaults>
</compile_context>

<pallas_src>
import jax
import jax.numpy as jnp
from jax.experimental import pallas as pl
from jax.experimental.pallas import tpu as pltpu

HIDDEN = 100            # hidden width n=100 inside every `fc` block (PyTorch spec)
HPAD = 128              # hidden width padded to a full lane tile
WEIGHT_DTYPE = jnp.bfloat16


# ----------------------------------------------------------------------------
# Device-generation helpers (defaults only; everything is overridable).
# ----------------------------------------------------------------------------
def _device_kind():
    try:
        return jax.devices()[0].device_kind.lower()
    except Exception:
        return ""


def _is_pre_v6(kind=None):
    kind = _device_kind() if kind is None else kind
    return any(t in kind for t in ("v2", "v3", "v4", "v5"))


def _is_v7(kind=None):
    kind = _device_kind() if kind is None else kind
    return ("v7" in kind) or ("7x" in kind)


def default_act_dtype(kind=None):
    # bf16 EUP/VPU exist on v6e/v7x; keep f32 activations on older parts.
    return jnp.float32 if _is_pre_v6(kind) else jnp.bfloat16


def _round_up(x, m):
    return ((x + m - 1) // m) * m


# ----------------------------------------------------------------------------
# Parameter init (matches PyTorch fc layer shapes; weights stored transposed,
# i.e. (in_features, out_features), biases as (1, out_features)).
# ----------------------------------------------------------------------------
def init_fc_params(key, in_dim, out_dim, num_layers):
    dims = [in_dim] + [HIDDEN] * (num_layers + 1) + [out_dim]
    params = []
    for i in range(len(dims) - 1):
        key, kw, kb = jax.random.split(key, 3)
        bound = 1.0 / (dims[i] ** 0.5)
        W = jax.random.uniform(kw, (dims[i], dims[i + 1]), jnp.float32, -bound, bound)
        b = jax.random.uniform(kb, (1, dims[i + 1]), jnp.float32, -bound, bound)
        params.append((W, b))
    return params


# ----------------------------------------------------------------------------
# Host-side packing: place `len(nets)` equal-depth fc nets into one
# block-diagonal chain of width len(nets)*HPAD, fed from the shared packed
# input x0 (B, xin).  cols_list[j] gives, in order, the x0 column index of
# each input feature of net j.
# ----------------------------------------------------------------------------
def _pack_nets(nets, cols_list, xin):
    L = len(nets[0])
    assert all(len(n) == L for n in nets)
    cw = len(nets) * HPAD

    w0 = jnp.zeros((xin, cw), jnp.float32)
    b_stack = jnp.zeros((L, 1, cw), jnp.float32)
    w_stack = jnp.zeros((L - 1, cw, cw), jnp.float32)

    for j, (net, cols) in enumerate(zip(nets, cols_list)):
        off = j * HPAD
        W0, b0 = net[0]
        assert W0.shape[0] == len(cols)
        for k, c in enumerate(cols):
            w0 = w0.at[c, off:off + W0.shape[1]].set(W0[k])
        b_stack = b_stack.at[0, 0, off:off + b0.shape[1]].set(b0[0])
        for l in range(1, L):                       # zero-padded 100 -> 128 blocks
            Wl, bl = net[l]
            w_stack = w_stack.at[l - 1, off:off + Wl.shape[0],
                                 off:off + Wl.shape[1]].set(Wl)
            b_stack = b_stack.at[l, 0, off:off + bl.shape[1]].set(bl[0])

    return (w0.astype(WEIGHT_DTYPE), w_stack.astype(WEIGHT_DTYPE), b_stack)


def pack_deeponet3(params, num_hot_spots, *, fuse_pairs=True):
    """params = [branch1, branch2, trunk1, trunk2, bias1, bias2] fc param lists.

    fuse_pairs=True  -> 3 block-diagonal 256-wide chains (v6e/v7x 256x256 MXUs).
    fuse_pairs=False -> 6 independent 128-wide chains    (<= v5 128x128 MXUs).
    """
    branch1, branch2, trunk1, trunk2, bias1, bias2 = params
    nh = num_hot_spots
    xin = max(8, _round_up(nh + 3, 8))          # lane-dense packed-input width
    cols_f = list(range(nh))
    cols_g = [nh, nh + 1]
    cols_y = [nh + 2]
    if fuse_pairs:
        chains = (
            _pack_nets([branch1, branch2], [cols_f, cols_g], xin),
            _pack_nets([trunk1, trunk2], [cols_y, cols_y], xin),
            _pack_nets([bias1, bias2], [cols_f + cols_y, cols_g + cols_y], xin),
        )
    else:
        chains = (
            _pack_nets([branch1], [cols_f], xin),
            _pack_nets([branch2], [cols_g], xin),
            _pack_nets([trunk1], [cols_y], xin),
            _pack_nets([trunk2], [cols_y], xin),
            _pack_nets([bias1], [cols_f + cols_y], xin),
            _pack_nets([bias2], [cols_g + cols_y], xin),
        )
    return xin, chains


def _build_x0(y, f, g1, xin):
    """Pack f, Re(g1), Im(g1), y into one lane-dense (B, xin) f32 tensor."""
    B = y.shape[0]
    nh = f.shape[1]
    assert nh + 3 <= xin
    g = jnp.stack([jnp.real(g1), jnp.imag(g1)], axis=1).astype(jnp.float32)
    x0 = jnp.zeros((B, xin), jnp.float32)
    x0 = x0.at[:, 0:nh].set(f.astype(jnp.float32))
    x0 = x0.at[:, nh:nh + 2].set(g)
    x0 = x0.at[:, nh + 2].set(y.astype(jnp.float32))
    return x0


# ----------------------------------------------------------------------------
# Fused kernel: block-diagonal matmul->tanh chains + DeepONet combine.
# ----------------------------------------------------------------------------
def _make_kernel(num_chains, act_dtype):
    fused = (num_chains == 3)

    def chain(xt, w0_ref, w_ref, b_ref):
        # fc semantics: s = layer(tanh(s)); f32 accumulation, f32 bias add.
        h = jnp.dot(xt, w0_ref[...], preferred_element_type=jnp.float32) + b_ref[0]
        for l in range(w_ref.shape[0]):                 # static, unrolled
            a = jnp.tanh(h.astype(act_dtype)).astype(WEIGHT_DTYPE)
            h = jnp.dot(a, w_ref[l], preferred_element_type=jnp.float32) + b_ref[l + 1]
        return h

    def kernel(x_ref, *refs):
        out_ref = refs[-1]
        w_refs = refs[:-1]
        # tanh commutes with the host-side column packing (elementwise,
        # tanh(0)=0 on the padded columns whose w0 rows are zero anyway).
        xt = jnp.tanh(x_ref[...]).astype(WEIGHT_DTYPE)
        z = [chain(xt, *w_refs[3 * c:3 * c + 3]) for c in range(num_chains)]

        if fused:
            zb, zt, zc = z                              # branches, trunks, biases
            zt = jnp.tanh(zt)                           # trunks: activation_last
            total = (zb[:, :HPAD] * zt[:, :HPAD]
                     + zb[:, HPAD:] * zt[:, HPAD:])
            r = (jnp.sum(total, axis=-1, keepdims=True)
                 + zc[:, 0:1] + zc[:, HPAD:HPAD + 1])
        else:
            zb1, zb2, zt1, zt2, zc1, zc2 = z
            total = zb1 * jnp.tanh(zt1) + zb2 * jnp.tanh(zt2)
            r = (jnp.sum(total, axis=-1, keepdims=True)
                 + zc1[:, 0:1] + zc2[:, 0:1])
        out_ref[...] = r.astype(out_ref.dtype)

    return kernel


def deeponet3_forward(y, f, g1, packed, *, tile_b=1024, act_dtype=None,
                      core_parallel=None):
    """Pallas-fused forward of deeponet3. packed = pack_deeponet3(params, nh, ...)."""
    xin, chains = packed
    num_chains = len(chains)
    B = y.shape[0]

    kind = _device_kind()
    if act_dtype is None:
        act_dtype = default_act_dtype(kind)
    if core_parallel is None:
        core_parallel = _is_v7(kind)

    x0 = _build_x0(y, f, g1, xin)

    # Tiling: (core_split, batch_tile) grid. Small batches run in one step;
    # on v7x the leading size-2 axis is CORE_PARALLEL with balanced tiles.
    tile_b = max(8, _round_up(tile_b, 8))
    num_splits = 2 if core_parallel else 1
    per_split = pl.cdiv(B, num_splits)
    n_per_split = max(1, pl.cdiv(per_split, tile_b))
    tile_b_eff = _round_up(pl.cdiv(per_split, n_per_split), 8)
    Bpad = num_splits * n_per_split * tile_b_eff
    if Bpad != B:
        x0 = jnp.pad(x0, ((0, Bpad - B), (0, 0)))

    x_spec = pl.BlockSpec((tile_b_eff, xin),
                          lambda c, j, _n=n_per_split: (c * _n + j, 0))
    o_spec = pl.BlockSpec((tile_b_eff, 1),
                          lambda c, j, _n=n_per_split: (c * _n + j, 0))

    def const_spec(arr):
        nd = arr.ndim
        return pl.BlockSpec(arr.shape, lambda c, j, _nd=nd: (0,) * _nd)

    flat_w = [a for ch in chains for a in ch]
    kernel = _make_kernel(num_chains, act_dtype)

    def run(sem0):
        return pl.pallas_call(
            kernel,
            out_shape=jax.ShapeDtypeStruct((Bpad, 1), jnp.float32),
            grid=(num_splits, n_per_split),
            in_specs=[x_spec] + [const_spec(a) for a in flat_w],
            out_specs=o_spec,
            compiler_params=pltpu.CompilerParams(
                dimension_semantics=(sem0, pltpu.PARALLEL),
                vmem_limit_bytes=32 * 1024 * 1024),
        )(x0, *flat_w)

    if core_parallel:
        try:
            out = run(pltpu.CORE_PARALLEL)
        except Exception:
            # Fallback if this target rejects CORE_PARALLEL on the split axis.
            out = run(pltpu.PARALLEL)
    else:
        out = run(pltpu.PARALLEL)
    return out[:B, 0]


# ----------------------------------------------------------------------------
# References.
# ----------------------------------------------------------------------------
def _mlp(x, params, act_last):
    for W, b in params:
        x = jnp.tanh(x)
        x = jnp.dot(x, W) + b
    if act_last:
        x = jnp.tanh(x)
    return x


def deeponet3_reference(y, f, g1, params):
    """Pure-JAX f32 reference with the original (unfused, unpadded) math."""
    B = y.shape[0]
    g = jnp.stack([jnp.real(g1), jnp.imag(g1)], axis=1).astype(jnp.float32)
    y2 = y.reshape(B, 1).astype(jnp.float32)
    f = f.astype(jnp.float32)
    fy = jnp.concatenate([f, y2], axis=1)
    gy = jnp.concatenate([g, y2], axis=1)
    branch1 = _mlp(f, params[0], False)
    branch2 = _mlp(g, params[1], False)
    trunk1 = _mlp(y2, params[2], True)
    trunk2 = _mlp(y2, params[3], True)
    bias1 = _mlp(fy, params[4], False)[:, 0]
    bias2 = _mlp(gy, params[5], False)[:, 0]
    return (jnp.sum(branch1 * trunk1, axis=-1) + bias1
            + jnp.sum(branch2 * trunk2, axis=-1) + bias2)


def _chain_ref(xt, w0, w, b, act_dtype):
    h = jnp.dot(xt, w0, preferred_element_type=jnp.float32) + b[0]
    for l in range(w.shape[0]):
        a = jnp.tanh(h.astype(act_dtype)).astype(WEIGHT_DTYPE)
        h = jnp.dot(a, w[l], preferred_element_type=jnp.float32) + b[l + 1]
    return h


def deeponet3_packed_reference(y, f, g1, packed, act_dtype=jnp.float32):
    """Pure-JAX reference doing the same packed bf16-weight math as the kernel."""
    xin, chains = packed
    xt = jnp.tanh(_build_x0(y, f, g1, xin)).astype(WEIGHT_DTYPE)
    z = [_chain_ref(xt, *c, act_dtype) for c in chains]
    if len(chains) == 3:
        zb, zt, zc = z
        zt = jnp.tanh(zt)
        total = zb[:, :HPAD] * zt[:, :HPAD] + zb[:, HPAD:] * zt[:, HPAD:]
        return jnp.sum(total, axis=-1) + zc[:, 0] + zc[:, HPAD]
    zb1, zb2, zt1, zt2, zc1, zc2 = z
    total = zb1 * jnp.tanh(zt1) + zb2 * jnp.tanh(zt2)
    return jnp.sum(total, axis=-1) + zc1[:, 0] + zc2[:, 0]


# ----------------------------------------------------------------------------
if __name__ == "__main__":
    # Small shapes consistent with the module: y is a 1-D batch of scalar
    # coordinates (dim=1), g1 is complex, p <= 128.
    B = 200
    num_hot_spots = 4
    p = 32
    dim = 1
    assert p <= HPAD

    key = jax.random.PRNGKey(0)
    k1, k2, k3, k4, kp = jax.random.split(key, 5)
    y = jax.random.normal(k1, (B,), jnp.float32)
    f = jax.random.normal(k2, (B, num_hot_spots), jnp.float32)
    g1 = (jax.random.normal(k3, (B,), jnp.float32)
          + 1j * jax.random.normal(k4, (B,), jnp.float32))  # complex64

    pkeys = jax.random.split(kp, 6)
    params = [
        init_fc_params(pkeys[0], num_hot_spots, p, 4),       # branch1
        init_fc_params(pkeys[1], 2, p, 4),                   # branch2
        init_fc_params(pkeys[2], dim, p, 4),                 # trunk1
        init_fc_params(pkeys[3], dim, p, 4),                 # trunk2
        init_fc_params(pkeys[4], num_hot_spots + 1, 1, 3),   # bias1
        init_fc_params(pkeys[5], 2 + 1, 1, 3),               # bias2
    ]

    ref_f32 = deeponet3_reference(y, f, g1, params)

    # Structural correctness: both packings (256-wide fused pairs and 128-wide
    # unfused chains) with f32 activations, where the ONLY deviation from the
    # original module math is the bf16 weight storage.
    for fuse_pairs in (True, False):
        packed = pack_deeponet3(params, num_hot_spots, fuse_pairs=fuse_pairs)
        out32 = deeponet3_forward(y, f, g1, packed, act_dtype=jnp.float32)
        out32 = jax.block_until_ready(out32)
        assert out32.shape == (B,), out32.shape
        ref_p32 = deeponet3_packed_reference(y, f, g1, packed, jnp.float32)
        assert jnp.allclose(out32, ref_p32, rtol=2e-3, atol=2e-3), (
            fuse_pairs, float(jnp.max(jnp.abs(out32 - ref_p32))))
        assert jnp.allclose(out32, ref_f32, rtol=5e-2, atol=5e-2), (
            fuse_pairs, float(jnp.max(jnp.abs(out32 - ref_f32))))

    # Device-default fast path: generation-appropriate pairing + activation
    # dtype (+ CORE_PARALLEL batch split on v7x).  Only extra deviation vs the
    # matching packed reference is bf16 tanh rounding, hence the 2e-2 bound.
    act = default_act_dtype()
    packed = pack_deeponet3(params, num_hot_spots, fuse_pairs=not _is_pre_v6())
    out = jax.block_until_ready(deeponet3_forward(y, f, g1, packed))
    assert out.shape == (B,), out.shape
    ref_p = deeponet3_packed_reference(y, f, g1, packed, act)
    assert jnp.allclose(out, ref_p, rtol=2e-2, atol=2e-2), (
        float(jnp.max(jnp.abs(out - ref_p))))
    assert jnp.allclose(out, ref_f32, rtol=8e-2, atol=8e-2), (
        float(jnp.max(jnp.abs(out - ref_f32))))

    print("KERNEL_OK")
</pallas_src>

<mosaic_0001>
module attributes {stable_mosaic.version = 11 : i64} {
  func.func @kernel(%arg0: i32, %arg1: i32, %arg2: memref<200x8xf32, #tpu.memory_space<vmem>>, %arg3: memref<8x256xbf16, #tpu.memory_space<vmem>>, %arg4: memref<5x256x256xbf16, #tpu.memory_space<vmem>>, %arg5: memref<6x1x256xf32, #tpu.memory_space<vmem>>, %arg6: memref<8x256xbf16, #tpu.memory_space<vmem>>, %arg7: memref<5x256x256xbf16, #tpu.memory_space<vmem>>, %arg8: memref<6x1x256xf32, #tpu.memory_space<vmem>>, %arg9: memref<8x256xbf16, #tpu.memory_space<vmem>>, %arg10: memref<4x256x256xbf16, #tpu.memory_space<vmem>>, %arg11: memref<5x1x256xf32, #tpu.memory_space<vmem>>, %arg12: memref<200x1xf32, #tpu.memory_space<vmem>>) attributes {dimension_semantics = [#tpu.dimension_semantics<parallel>, #tpu.dimension_semantics<parallel>], iteration_bounds = array<i64: 1, 1>, scalar_prefetch = 0 : i64, scratch_operands = 0 : i64, tpu.core_type = #tpu.core_type<tc>, window_params = [{transform_indices = @transform_0, window_bounds = array<i64: 200, 8>}, {pipeline_mode = #tpu.pipeline_mode<synchronous>, transform_indices = @transform_1, window_bounds = array<i64: 8, 256>}, {pipeline_mode = #tpu.pipeline_mode<synchronous>, transform_indices = @transform_2, window_bounds = array<i64: 5, 256, 256>}, {pipeline_mode = #tpu.pipeline_mode<synchronous>, transform_indices = @transform_3, window_bounds = array<i64: 6, 1, 256>}, {pipeline_mode = #tpu.pipeline_mode<synchronous>, transform_indices = @transform_4, window_bounds = array<i64: 8, 256>}, {pipeline_mode = #tpu.pipeline_mode<synchronous>, transform_indices = @transform_5, window_bounds = array<i64: 5, 256, 256>}, {pipeline_mode = #tpu.pipeline_mode<synchronous>, transform_indices = @transform_6, window_bounds = array<i64: 6, 1, 256>}, {pipeline_mode = #tpu.pipeline_mode<synchronous>, transform_indices = @transform_7, window_bounds = array<i64: 8, 256>}, {pipeline_mode = #tpu.pipeline_mode<synchronous>, transform_indices = @transform_8, window_bounds = array<i64: 4, 256, 256>}, {pipeline_mode = #tpu.pipeline_mode<synchronous>, transform_indices = @transform_9, window_bounds = array<i64: 5, 1, 256>}, {transform_indices = @transform_10, window_bounds = array<i64: 200, 1>}]} {
    %c0 = arith.constant 0 : index
    %c0_0 = arith.constant 0 : index
    %0 = vector.load %arg2[%c0, %c0_0] : memref<200x8xf32, #tpu.memory_space<vmem>>, vector<200x8xf32>
    %1 = math.tanh %0 : vector<200x8xf32>
    %2 = arith.truncf %1 : vector<200x8xf32> to vector<200x8xbf16>
    %c0_1 = arith.constant 0 : index
    %c0_2 = arith.constant 0 : index
    %3 = vector.load %arg3[%c0_1, %c0_2] : memref<8x256xbf16, #tpu.memory_space<vmem>>, vector<8x256xbf16>
    %cst = arith.constant dense<0.000000e+00> : vector<200x256xf32>
    %4 = tpu.matmul %2, %3, %cst {dimension_numbers = #tpu.dot_dimension_numbers<[1], [0], [0], [1], [0, 0, 1, 1], [], []>} : vector<200x8xbf16>, vector<8x256xbf16>, vector<200x256xf32> -> vector<200x256xf32>
    %c0_3 = arith.constant 0 : index
    %c0_4 = arith.constant 0 : index
    %c0_5 = arith.constant 0 : index
    %5 = vector.load %arg5[%c0_3, %c0_4, %c0_5] : memref<6x1x256xf32, #tpu.memory_space<vmem>>, vector<1x1x256xf32>
    %6 = vector.shape_cast %5 : vector<1x1x256xf32> to vector<1x256xf32>
    %7 = vector.broadcast %6 : vector<1x256xf32> to vector<200x256xf32>
    %8 = arith.addf %4, %7 : vector<200x256xf32>
    %9 = math.tanh %8 : vector<200x256xf32>
    %10 = arith.truncf %9 : vector<200x256xf32> to vector<200x256xbf16>
    %c0_6 = arith.constant 0 : index
    %c0_7 = arith.constant 0 : index
    %c0_8 = arith.constant 0 : index
    %11 = vector.load %arg4[%c0_6, %c0_7, %c0_8] : memref<5x256x256xbf16, #tpu.memory_space<vmem>>, vector<1x256x256xbf16>
    %12 = vector.shape_cast %11 : vector<1x256x256xbf16> to vector<256x256xbf16>
    %cst_9 = arith.constant dense<0.000000e+00> : vector<200x256xf32>
    %13 = tpu.matmul %10, %12, %cst_9 {dimension_numbers = #tpu.dot_dimension_numbers<[1], [0], [0], [1], [0, 0, 1, 1], [], []>} : vector<200x256xbf16>, vector<256x256xbf16>, vector<200x256xf32> -> vector<200x256xf32>
    %c1 = arith.constant 1 : index
    %c0_10 = arith.constant 0 : index
    %c0_11 = arith.constant 0 : index
    %14 = vector.load %arg5[%c1, %c0_10, %c0_11] : memref<6x1x256xf32, #tpu.memory_space<vmem>>, vector<1x1x256xf32>
    %15 = vector.shape_cast %14 : vector<1x1x256xf32> to vector<1x256xf32>
    %16 = vector.broadcast %15 : vector<1x256xf32> to vector<200x256xf32>
    %17 = arith.addf %13, %16 : vector<200x256xf32>
    %18 = math.tanh %17 : vector<200x256xf32>
    %19 = arith.truncf %18 : vector<200x256xf32> to vector<200x256xbf16>
    %c1_12 = arith.constant 1 : index
    %c0_13 = arith.constant 0 : index
    %c0_14 = arith.constant 0 : index
    %20 = vector.load %arg4[%c1_12, %c0_13, %c0_14] : memref<5x256x256xbf16, #tpu.memory_space<vmem>>, vector<1x256x256xbf16>
    %21 = vector.shape_cast %20 : vector<1x256x256xbf16> to vector<256x256xbf16>
    %cst_15 = arith.constant dense<0.000000e+00> : vector<200x256xf32>
    %22 = tpu.matmul %19, %21, %cst_15 {dimension_numbers = #tpu.dot_dimension_numbers<[1], [0], [0], [1], [0, 0, 1, 1], [], []>} : vector<200x256xbf16>, vector<256x256xbf16>, vector<200x256xf32> -> vector<200x256xf32>
    %c2 = arith.constant 2 : index
    %c0_16 = arith.constant 0 : index
    %c0_17 = arith.constant 0 : index
    %23 = vector.load %arg5[%c2, %c0_16, %c0_17] : memref<6x1x256xf32, #tpu.memory_space<vmem>>, vector<1x1x256xf32>
    %24 = vector.shape_cast %23 : vector<1x1x256xf32> to vector<1x256xf32>
    %25 = vector.broadcast %24 : vector<1x256xf32> to vector<200x256xf32>
    %26 = arith.addf %22, %25 : vector<200x256xf32>
    %27 = math.tanh %26 : vector<200x256xf32>
    %28 = arith.truncf %27 : vector<200x256xf32> to vector<200x256xbf16>
    %c2_18 = arith.constant 2 : index
    %c0_19 = arith.constant 0 : index
    %c0_20 = arith.constant 0 : index
    %29 = vector.load %arg4[%c2_18, %c0_19, %c0_20] : memref<5x256x256xbf16, #tpu.memory_space<vmem>>, vector<1x256x256xbf16>
    %30 = vector.shape_cast %29 : vector<1x256x256xbf16> to vector<256x256xbf16>
    %cst_21 = arith.constant dense<0.000000e+00> : vector<200x256xf32>
    %31 = tpu.matmul %28, %30, %cst_21 {dimension_numbers = #tpu.dot_dimension_numbers<[1], [0], [0], [1], [0, 0, 1, 1], [], []>} : vector<200x256xbf16>, vector<256x256xbf16>, vector<200x256xf32> -> vector<200x256xf32>
    %c3 = arith.constant 3 : index
    %c0_22 = arith.constant 0 : index
    %c0_23 = arith.constant 0 : index
    %32 = vector.load %arg5[%c3, %c0_22, %c0_23] : memref<6x1x256xf32, #tpu.memory_space<vmem>>, vector<1x1x256xf32>
    %33 = vector.shape_cast %32 : vector<1x1x256xf32> to vector<1x256xf32>
    %34 = vector.broadcast %33 : vector<1x256xf32> to vector<200x256xf32>
    %35 = arith.addf %31, %34 : vector<200x256xf32>
    %36 = math.tanh %35 : vector<200x256xf32>
    %37 = arith.truncf %36 : vector<200x256xf32> to vector<200x256xbf16>
    %c3_24 = arith.constant 3 : index
    %c0_25 = arith.constant 0 : index
    %c0_26 = arith.constant 0 : index
    %38 = vector.load %arg4[%c3_24, %c0_25, %c0_26] : memref<5x256x256xbf16, #tpu.memory_space<vmem>>, vector<1x256x256xbf16>
    %39 = vector.shape_cast %38 : vector<1x256x256xbf16> to vector<256x256xbf16>
    %cst_27 = arith.constant dense<0.000000e+00> : vector<200x256xf32>
    %40 = tpu.matmul %37, %39, %cst_27 {dimension_numbers = #tpu.dot_dimension_numbers<[1], [0], [0], [1], [0, 0, 1, 1], [], []>} : vector<200x256xbf16>, vector<256x256xbf16>, vector<200x256xf32> -> vector<200x256xf32>
    %c4 = arith.constant 4 : index
    %c0_28 = arith.constant 0 : index
    %c0_29 = arith.constant 0 : index
    %41 = vector.load %arg5[%c4, %c0_28, %c0_29] : memref<6x1x256xf32, #tpu.memory_space<vmem>>, vector<1x1x256xf32>
    %42 = vector.shape_cast %41 : vector<1x1x256xf32> to vector<1x256xf32>
    %43 = vector.broadcast %42 : vector<1x256xf32> to vector<200x256xf32>
    %44 = arith.addf %40, %43 : vector<200x256xf32>
    %45 = math.tanh %44 : vector<200x256xf32>
    %46 = arith.truncf %45 : vector<200x256xf32> to vector<200x256xbf16>
    %c4_30 = arith.constant 4 : index
    %c0_31 = arith.constant 0 : index
    %c0_32 = arith.constant 0 : index
    %47 = vector.load %arg4[%c4_30, %c0_31, %c0_32] : memref<5x256x256xbf16, #tpu.memory_space<vmem>>, vector<1x256x256xbf16>
    %48 = vector.shape_cast %47 : vector<1x256x256xbf16> to vector<256x256xbf16>
    %cst_33 = arith.constant dense<0.000000e+00> : vector<200x256xf32>
    %49 = tpu.matmul %46, %48, %cst_33 {dimension_numbers = #tpu.dot_dimension_numbers<[1], [0], [0], [1], [0, 0, 1, 1], [], []>} : vector<200x256xbf16>, vector<256x256xbf16>, vector<200x256xf32> -> vector<200x256xf32>
    %c5 = arith.constant 5 : index
    %c0_34 = arith.constant 0 : index
    %c0_35 = arith.constant 0 : index
    %50 = vector.load %arg5[%c5, %c0_34, %c0_35] : memref<6x1x256xf32, #tpu.memory_space<vmem>>, vector<1x1x256xf32>
    %51 = vector.shape_cast %50 : vector<1x1x256xf32> to vector<1x256xf32>
    %52 = vector.broadcast %51 : vector<1x256xf32> to vector<200x256xf32>
    %53 = arith.addf %49, %52 : vector<200x256xf32>
    %c0_36 = arith.constant 0 : index
    %c0_37 = arith.constant 0 : index
    %54 = vector.load %arg6[%c0_36, %c0_37] : memref<8x256xbf16, #tpu.memory_space<vmem>>, vector<8x256xbf16>
    %cst_38 = arith.constant dense<0.000000e+00> : vector<200x256xf32>
    %55 = tpu.matmul %2, %54, %cst_38 {dimension_numbers = #tpu.dot_dimension_numbers<[1], [0], [0], [1], [0, 0, 1, 1], [], []>} : vector<200x8xbf16>, vector<8x256xbf16>, vector<200x256xf32> -> vector<200x256xf32>
    %c0_39 = arith.constant 0 : index
    %c0_40 = arith.constant 0 : index
    %c0_41 = arith.constant 0 : index
    %56 = vector.load %arg8[%c0_39, %c0_40, %c0_41] : memref<6x1x256xf32, #tpu.memory_space<vmem>>, vector<1x1x256xf32>
    %57 = vector.shape_cast %56 : vector<1x1x256xf32> to vector<1x256xf32>
    %58 = vector.broadcast %57 : vector<1x256xf32> to vector<200x256xf32>
    %59 = arith.addf %55, %58 : vector<200x256xf32>
    %60 = math.tanh %59 : vector<200x256xf32>
    %61 = arith.truncf %60 : vector<200x256xf32> to vector<200x256xbf16>
    %c0_42 = arith.constant 0 : index
    %c0_43 = arith.constant 0 : index
    %c0_44 = arith.constant 0 : index
    %62 = vector.load %arg7[%c0_42, %c0_43, %c0_44] : memref<5x256x256xbf16, #tpu.memory_space<vmem>>, vector<1x256x256xbf16>
    %63 = vector.shape_cast %62 : vector<1x256x256xbf16> to vector<256x256xbf16>
    %cst_45 = arith.constant dense<0.000000e+00> : vector<200x256xf32>
    %64 = tpu.matmul %61, %63, %cst_45 {dimension_numbers = #tpu.dot_dimension_numbers<[1], [0], [0], [1], [0, 0, 1, 1], [], []>} : vector<200x256xbf16>, vector<256x256xbf16>, vector<200x256xf32> -> vector<200x256xf32>
    %c1_46 = arith.constant 1 : index
    %c0_47 = arith.constant 0 : index
    %c0_48 = arith.constant 0 : index
    %65 = vector.load %arg8[%c1_46, %c0_47, %c0_48] : memref<6x1x256xf32, #tpu.memory_space<vmem>>, vector<1x1x256xf32>
    %66 = vector.shape_cast %65 : vector<1x1x256xf32> to vector<1x256xf32>
    %67 = vector.broadcast %66 : vector<1x256xf32> to vector<200x256xf32>
    %68 = arith.addf %64, %67 : vector<200x256xf32>
    %69 = math.tanh %68 : vector<200x256xf32>
    %70 = arith.truncf %69 : vector<200x256xf32> to vector<200x256xbf16>
    %c1_49 = arith.constant 1 : index
    %c0_50 = arith.constant 0 : index
    %c0_51 = arith.constant 0 : index
    %71 = vector.load %arg7[%c1_49, %c0_50, %c0_51] : memref<5x256x256xbf16, #tpu.memory_space<vmem>>, vector<1x256x256xbf16>
    %72 = vector.shape_cast %71 : vector<1x256x256xbf16> to vector<256x256xbf16>
    %cst_52 = arith.constant dense<0.000000e+00> : vector<200x256xf32>
    %73 = tpu.matmul %70, %72, %cst_52 {dimension_numbers = #tpu.dot_dimension_numbers<[1], [0], [0], [1], [0, 0, 1, 1], [], []>} : vector<200x256xbf16>, vector<256x256xbf16>, vector<200x256xf32> -> vector<200x256xf32>
    %c2_53 = arith.constant 2 : index
    %c0_54 = arith.constant 0 : index
    %c0_55 = arith.constant 0 : index
    %74 = vector.load %arg8[%c2_53, %c0_54, %c0_55] : memref<6x1x256xf32, #tpu.memory_space<vmem>>, vector<1x1x256xf32>
    %75 = vector.shape_cast %74 : vector<1x1x256xf32> to vector<1x256xf32>
    %76 = vector.broadcast %75 : vector<1x256xf32> to vector<200x256xf32>
    %77 = arith.addf %73, %76 : vector<200x256xf32>
    %78 = math.tanh %77 : vector<200x256xf32>
    %79 = arith.truncf %78 : vector<200x256xf32> to vector<200x256xbf16>
    %c2_56 = arith.constant 2 : index
    %c0_57 = arith.constant 0 : index
    %c0_58 = arith.constant 0 : index
    %80 = vector.load %arg7[%c2_56, %c0_57, %c0_58] : memref<5x256x256xbf16, #tpu.memory_space<vmem>>, vector<1x256x256xbf16>
    %81 = vector.shape_cast %80 : vector<1x256x256xbf16> to vector<256x256xbf16>
    %cst_59 = arith.constant dense<0.000000e+00> : vector<200x256xf32>
    %82 = tpu.matmul %79, %81, %cst_59 {dimension_numbers = #tpu.dot_dimension_numbers<[1], [0], [0], [1], [0, 0, 1, 1], [], []>} : vector<200x256xbf16>, vector<256x256xbf16>, vector<200x256xf32> -> vector<200x256xf32>
    %c3_60 = arith.constant 3 : index
    %c0_61 = arith.constant 0 : index
    %c0_62 = arith.constant 0 : index
    %83 = vector.load %arg8[%c3_60, %c0_61, %c0_62] : memref<6x1x256xf32, #tpu.memory_space<vmem>>, vector<1x1x256xf32>
    %84 = vector.shape_cast %83 : vector<1x1x256xf32> to vector<1x256xf32>
    %85 = vector.broadcast %84 : vector<1x256xf32> to vector<200x256xf32>
    %86 = arith.addf %82, %85 : vector<200x256xf32>
    %87 = math.tanh %86 : vector<200x256xf32>
    %88 = arith.truncf %87 : vector<200x256xf32> to vector<200x256xbf16>
    %c3_63 = arith.constant 3 : index
    %c0_64 = arith.constant 0 : index
    %c0_65 = arith.constant 0 : index
    %89 = vector.load %arg7[%c3_63, %c0_64, %c0_65] : memref<5x256x256xbf16, #tpu.memory_space<vmem>>, vector<1x256x256xbf16>
    %90 = vector.shape_cast %89 : vector<1x256x256xbf16> to vector<256x256xbf16>
    %cst_66 = arith.constant dense<0.000000e+00> : vector<200x256xf32>
    %91 = tpu.matmul %88, %90, %cst_66 {dimension_numbers = #tpu.dot_dimension_numbers<[1], [0], [0], [1], [0, 0, 1, 1], [], []>} : vector<200x256xbf16>, vector<256x256xbf16>, vector<200x256xf32> -> vector<200x256xf32>
    %c4_67 = arith.constant 4 : index
    %c0_68 = arith.constant 0 : index
    %c0_69 = arith.constant 0 : index
    %92 = vector.load %arg8[%c4_67, %c0_68, %c0_69] : memref<6x1x256xf32, #tpu.memory_space<vmem>>, vector<1x1x256xf32>
    %93 = vector.shape_cast %92 : vector<1x1x256xf32> to vector<1x256xf32>
    %94 = vector.broadcast %93 : vector<1x256xf32> to vector<200x256xf32>
    %95 = arith.addf %91, %94 : vector<200x256xf32>
    %96 = math.tanh %95 : vector<200x256xf32>
    %97 = arith.truncf %96 : vector<200x256xf32> to vector<200x256xbf16>
    %c4_70 = arith.constant 4 : index
    %c0_71 = arith.constant 0 : index
    %c0_72 = arith.constant 0 : index
    %98 = vector.load %arg7[%c4_70, %c0_71, %c0_72] : memref<5x256x256xbf16, #tpu.memory_space<vmem>>, vector<1x256x256xbf16>
    %99 = vector.shape_cast %98 : vector<1x256x256xbf16> to vector<256x256xbf16>
    %cst_73 = arith.constant dense<0.000000e+00> : vector<200x256xf32>
    %100 = tpu.matmul %97, %99, %cst_73 {dimension_numbers = #tpu.dot_dimension_numbers<[1], [0], [0], [1], [0, 0, 1, 1], [], []>} : vector<200x256xbf16>, vector<256x256xbf16>, vector<200x256xf32> -> vector<200x256xf32>
    %c5_74 = arith.constant 5 : index
    %c0_75 = arith.constant 0 : index
    %c0_76 = arith.constant 0 : index
    %101 = vector.load %arg8[%c5_74, %c0_75, %c0_76] : memref<6x1x256xf32, #tpu.memory_space<vmem>>, vector<1x1x256xf32>
    %102 = vector.shape_cast %101 : vector<1x1x256xf32> to vector<1x256xf32>
    %103 = vector.broadcast %102 : vector<1x256xf32> to vector<200x256xf32>
    %104 = arith.addf %100, %103 : vector<200x256xf32>
    %c0_77 = arith.constant 0 : index
    %c0_78 = arith.constant 0 : index
    %105 = vector.load %arg9[%c0_77, %c0_78] : memref<8x256xbf16, #tpu.memory_space<vmem>>, vector<8x256xbf16>
    %cst_79 = arith.constant dense<0.000000e+00> : vector<200x256xf32>
    %106 = tpu.matmul %2, %105, %cst_79 {dimension_numbers = #tpu.dot_dimension_numbers<[1], [0], [0], [1], [0, 0, 1, 1], [], []>} : vector<200x8xbf16>, vector<8x256xbf16>, vector<200x256xf32> -> vector<200x256xf32>
    %c0_80 = arith.constant 0 : index
    %c0_81 = arith.constant 0 : index
    %c0_82 = arith.constant 0 : index
    %107 = vector.load %arg11[%c0_80, %c0_81, %c0_82] : memref<5x1x256xf32, #tpu.memory_space<vmem>>, vector<1x1x256xf32>
    %108 = vector.shape_cast %107 : vector<1x1x256xf32> to vector<1x256xf32>
    %109 = vector.broadcast %108 : vector<1x256xf32> to vector<200x256xf32>
    %110 = arith.addf %106, %109 : vector<200x256xf32>
    %111 = math.tanh %110 : vector<200x256xf32>
    %112 = arith.truncf %111 : vector<200x256xf32> to vector<200x256xbf16>
    %c0_83 = arith.constant 0 : index
    %c0_84 = arith.constant 0 : index
    %c0_85 = arith.constant 0 : index
    %113 = vector.load %arg10[%c0_83, %c0_84, %c0_85] : memref<4x256x256xbf16, #tpu.memory_space<vmem>>, vector<1x256x256xbf16>
    %114 = vector.shape_cast %113 : vector<1x256x256xbf16> to vector<256x256xbf16>
    %cst_86 = arith.constant dense<0.000000e+00> : vector<200x256xf32>
    %115 = tpu.matmul %112, %114, %cst_86 {dimension_numbers = #tpu.dot_dimension_numbers<[1], [0], [0], [1], [0, 0, 1, 1], [], []>} : vector<200x256xbf16>, vector<256x256xbf16>, vector<200x256xf32> -> vector<200x256xf32>
    %c1_87 = arith.constant 1 : index
    %c0_88 = arith.constant 0 : index
    %c0_89 = arith.constant 0 : index
    %116 = vector.load %arg11[%c1_87, %c0_88, %c0_89] : memref<5x1x256xf32, #tpu.memory_space<vmem>>, vector<1x1x256xf32>
    %117 = vector.shape_cast %116 : vector<1x1x256xf32> to vector<1x256xf32>
    %118 = vector.broadcast %117 : vector<1x256xf32> to vector<200x256xf32>
    %119 = arith.addf %115, %118 : vector<200x256xf32>
    %120 = math.tanh %119 : vector<200x256xf32>
    %121 = arith.truncf %120 : vector<200x256xf32> to vector<200x256xbf16>
    %c1_90 = arith.constant 1 : index
    %c0_91 = arith.constant 0 : index
    %c0_92 = arith.constant 0 : index
    %122 = vector.load %arg10[%c1_90, %c0_91, %c0_92] : memref<4x256x256xbf16, #tpu.memory_space<vmem>>, vector<1x256x256xbf16>
    %123 = vector.shape_cast %122 : vector<1x256x256xbf16> to vector<256x256xbf16>
    %cst_93 = arith.constant dense<0.000000e+00> : vector<200x256xf32>
    %124 = tpu.matmul %121, %123, %cst_93 {dimension_numbers = #tpu.dot_dimension_numbers<[1], [0], [0], [1], [0, 0, 1, 1], [], []>} : vector<200x256xbf16>, vector<256x256xbf16>, vector<200x256xf32> -> vector<200x256xf32>
    %c2_94 = arith.constant 2 : index
    %c0_95 = arith.constant 0 : index
    %c0_96 = arith.constant 0 : index
    %125 = vector.load %arg11[%c2_94, %c0_95, %c0_96] : memref<5x1x256xf32, #tpu.memory_space<vmem>>, vector<1x1x256xf32>
    %126 = vector.shape_cast %125 : vector<1x1x256xf32> to vector<1x256xf32>
    %127 = vector.broadcast %126 : vector<1x256xf32> to vector<200x256xf32>
    %128 = arith.addf %124, %127 : vector<200x256xf32>
    %129 = math.tanh %128 : vector<200x256xf32>
    %130 = arith.truncf %129 : vector<200x256xf32> to vector<200x256xbf16>
    %c2_97 = arith.constant 2 : index
    %c0_98 = arith.constant 0 : index
    %c0_99 = arith.constant 0 : index
    %131 = vector.load %arg10[%c2_97, %c0_98, %c0_99] : memref<4x256x256xbf16, #tpu.memory_space<vmem>>, vector<1x256x256xbf16>
    %132 = vector.shape_cast %131 : vector<1x256x256xbf16> to vector<256x256xbf16>
    %cst_100 = arith.constant dense<0.000000e+00> : vector<200x256xf32>
    %133 = tpu.matmul %130, %132, %cst_100 {dimension_numbers = #tpu.dot_dimension_numbers<[1], [0], [0], [1], [0, 0, 1, 1], [], []>} : vector<200x256xbf16>, vector<256x256xbf16>, vector<200x256xf32> -> vector<200x256xf32>
    %c3_101 = arith.constant 3 : index
    %c0_102 = arith.constant 0 : index
    %c0_103 = arith.constant 0 : index
    %134 = vector.load %arg11[%c3_101, %c0_102, %c0_103] : memref<5x1x256xf32, #tpu.memory_space<vmem>>, vector<1x1x256xf32>
    %135 = vector.shape_cast %134 : vector<1x1x256xf32> to vector<1x256xf32>
    %136 = vector.broadcast %135 : vector<1x256xf32> to vector<200x256xf32>
    %137 = arith.addf %133, %136 : vector<200x256xf32>
    %138 = math.tanh %137 : vector<200x256xf32>
    %139 = arith.truncf %138 : vector<200x256xf32> to vector<200x256xbf16>
    %c3_104 = arith.constant 3 : index
    %c0_105 = arith.constant 0 : index
    %c0_106 = arith.constant 0 : index
    %140 = vector.load %arg10[%c3_104, %c0_105, %c0_106] : memref<4x256x256xbf16, #tpu.memory_space<vmem>>, vector<1x256x256xbf16>
    %141 = vector.shape_cast %140 : vector<1x256x256xbf16> to vector<256x256xbf16>
    %cst_107 = arith.constant dense<0.000000e+00> : vector<200x256xf32>
    %142 = tpu.matmul %139, %141, %cst_107 {dimension_numbers = #tpu.dot_dimension_numbers<[1], [0], [0], [1], [0, 0, 1, 1], [], []>} : vector<200x256xbf16>, vector<256x256xbf16>, vector<200x256xf32> -> vector<200x256xf32>
    %c4_108 = arith.constant 4 : index
    %c0_109 = arith.constant 0 : index
    %c0_110 = arith.constant 0 : index
    %143 = vector.load %arg11[%c4_108, %c0_109, %c0_110] : memref<5x1x256xf32, #tpu.memory_space<vmem>>, vector<1x1x256xf32>
    %144 = vector.shape_cast %143 : vector<1x1x256xf32> to vector<1x256xf32>
    %145 = vector.broadcast %144 : vector<1x256xf32> to vector<200x256xf32>
    %146 = arith.addf %142, %145 : vector<200x256xf32>
    %147 = math.tanh %104 : vector<200x256xf32>
    %148 = vector.extract_strided_slice %53 {offsets = [0, 0], sizes = [200, 128], strides = [1, 1]} : vector<200x256xf32> to vector<200x128xf32>
    %149 = vector.extract_strided_slice %147 {offsets = [0, 0], sizes = [200, 128], strides = [1, 1]} : vector<200x256xf32> to vector<200x128xf32>
    %150 = arith.mulf %148, %149 : vector<200x128xf32>
    %151 = vector.extract_strided_slice %53 {offsets = [0, 128], sizes = [200, 128], strides = [1, 1]} : vector<200x256xf32> to vector<200x128xf32>
    %152 = vector.extract_strided_slice %147 {offsets = [0, 128], sizes = [200, 128], strides = [1, 1]} : vector<200x256xf32> to vector<200x128xf32>
    %153 = arith.mulf %151, %152 : vector<200x128xf32>
    %154 = arith.addf %150, %153 : vector<200x128xf32>
    %cst_111 = arith.constant dense<0.000000e+00> : vector<200xf32>
    %155 = vector.multi_reduction <add>, %154, %cst_111 [1] : vector<200x128xf32> to vector<200xf32>
    %156 = vector.shape_cast %155 : vector<200xf32> to vector<200x1xf32>
    %157 = vector.extract_strided_slice %146 {offsets = [0, 0], sizes = [200, 1], strides = [1, 1]} : vector<200x256xf32> to vector<200x1xf32>
    %158 = arith.addf %156, %157 : vector<200x1xf32>
    %159 = vector.extract_strided_slice %146 {offsets = [0, 128], sizes = [200, 1], strides = [1, 1]} : vector<200x256xf32> to vector<200x1xf32>
    %160 = arith.addf %158, %159 : vector<200x1xf32>
    %c0_112 = arith.constant 0 : index
    %c0_113 = arith.constant 0 : index
    %161 = vector.load %arg12[%c0_112, %c0_113] : memref<200x1xf32, #tpu.memory_space<vmem>>, vector<200x1xf32>
    tpu.vector_store %arg12[%c0_112, %c0_113], %160 {strides = array<i32>} : memref<200x1xf32, #tpu.memory_space<vmem>>, vector<200x1xf32>,
    return
  }
  func.func @transform_0(%arg0: i32, %arg1: i32) -> (i32, i32) {
    %c1_i32 = arith.constant 1 : i32
    %0 = arith.muli %arg0, %c1_i32 : i32
    %1 = arith.addi %0, %arg1 : i32
    %c0_i32 = arith.constant 0 : i32
    %c0_i32_0 = arith.constant 0 : i32
    return %1, %c0_i32 : i32, i32
  }
  func.func @transform_1(%arg0: i32, %arg1: i32) -> (i32, i32) {
    %c0_i32 = arith.constant 0 : i32
    %c0_i32_0 = arith.constant 0 : i32
    %c0_i32_1 = arith.constant 0 : i32
    return %c0_i32, %c0_i32_0 : i32, i32
  }
  func.func @transform_2(%arg0: i32, %arg1: i32) -> (i32, i32, i32) {
    %c0_i32 = arith.constant 0 : i32
    %c0_i32_0 = arith.constant 0 : i32
    %c0_i32_1 = arith.constant 0 : i32
    %c0_i32_2 = arith.constant 0 : i32
    return %c0_i32, %c0_i32_0, %c0_i32_1 : i32, i32, i32
  }
  func.func @transform_3(%arg0: i32, %arg1: i32) -> (i32, i32, i32) {
    %c0_i32 = arith.constant 0 : i32
    %c0_i32_0 = arith.constant 0 : i32
    %c0_i32_1 = arith.constant 0 : i32
    %c0_i32_2 = arith.constant 0 : i32
    return %c0_i32, %c0_i32_0, %c0_i32_1 : i32, i32, i32
  }
  func.func @transform_4(%arg0: i32, %arg1: i32) -> (i32, i32) {
    %c0_i32 = arith.constant 0 : i32
    %c0_i32_0 = arith.constant 0 : i32
    %c0_i32_1 = arith.constant 0 : i32
    return %c0_i32, %c0_i32_0 : i32, i32
  }
  func.func @transform_5(%arg0: i32, %arg1: i32) -> (i32, i32, i32) {
    %c0_i32 = arith.constant 0 : i32
    %c0_i32_0 = arith.constant 0 : i32
    %c0_i32_1 = arith.constant 0 : i32
    %c0_i32_2 = arith.constant 0 : i32
    return %c0_i32, %c0_i32_0, %c0_i32_1 : i32, i32, i32
  }
  func.func @transform_6(%arg0: i32, %arg1: i32) -> (i32, i32, i32) {
    %c0_i32 = arith.constant 0 : i32
    %c0_i32_0 = arith.constant 0 : i32
    %c0_i32_1 = arith.constant 0 : i32
    %c0_i32_2 = arith.constant 0 : i32
    return %c0_i32, %c0_i32_0, %c0_i32_1 : i32, i32, i32
  }
  func.func @transform_7(%arg0: i32, %arg1: i32) -> (i32, i32) {
    %c0_i32 = arith.constant 0 : i32
    %c0_i32_0 = arith.constant 0 : i32
    %c0_i32_1 = arith.constant 0 : i32
    return %c0_i32, %c0_i32_0 : i32, i32
  }
  func.func @transform_8(%arg0: i32, %arg1: i32) -> (i32, i32, i32) {
    %c0_i32 = arith.constant 0 : i32
    %c0_i32_0 = arith.constant 0 : i32
    %c0_i32_1 = arith.constant 0 : i32
    %c0_i32_2 = arith.constant 0 : i32
    return %c0_i32, %c0_i32_0, %c0_i32_1 : i32, i32, i32
  }
  func.func @transform_9(%arg0: i32, %arg1: i32) -> (i32, i32, i32) {
    %c0_i32 = arith.constant 0 : i32
    %c0_i32_0 = arith.constant 0 : i32
    %c0_i32_1 = arith.constant 0 : i32
    %c0_i32_2 = arith.constant 0 : i32
    return %c0_i32, %c0_i32_0, %c0_i32_1 : i32, i32, i32
  }
  func.func @transform_10(%arg0: i32, %arg1: i32) -> (i32, i32) {
    %c1_i32 = arith.constant 1 : i32
    %0 = arith.muli %arg0, %c1_i32 : i32
    %1 = arith.addi %0, %arg1 : i32
    %c0_i32 = arith.constant 0 : i32
    %c0_i32_0 = arith.constant 0 : i32
    return %1, %c0_i32 : i32, i32
  }
}

</mosaic_0001>

<bundles_post_ra>
// kernel: tpu_custom_call.1
= control target key start
LH: loop header
LB: loop body
LE: loop exit
PB: predicated region body
PF: predicated region fallthrough
CT: control target
= control target key end

     0   :  { %15 = vsyncpa [#allocation3], 0  ;;  %s11724_s0 = inlined_call_operand.vmem [shape: f32[200,8], index: 0, kind: input, shape index: {}]   ;;  %s11725_s1 = inlined_call_operand.vmem [shape: bf16[8,256], index: 1, kind: input, shape index: {}]   ;;  %s11726_s2 = inlined_call_operand.hbm [shape: bf16[5,256,256], index: 2, kind: input, shape index: {}]   ;;  %s11727_s3 = inlined_call_operand.vmem [shape: f32[6,1,256], index: 3, kind: input, shape index: {}]   ;;  %s11728_s4 = inlined_call_operand.vmem [shape: bf16[8,256], index: 4, kind: input, shape index: {}]   ;;  %s11729_s5 = inlined_call_operand.hbm [shape: bf16[5,256,256], index: 5, kind: input, shape index: {}]   ;;  %s11730_s6 = inlined_call_operand.vmem [shape: f32[6,1,256], index: 6, kind: input, shape index: {}]   ;;  %s11731_s7 = inlined_call_operand.vmem [shape: bf16[8,256], index: 7, kind: input, shape index: {}]   ;;  %s11732_s8 = inlined_call_operand.hbm [shape: bf16[4,256,256], index: 8, kind: input, shape index: {}]   ;;  %s11733_s9 = inlined_call_operand.vmem [shape: f32[5,1,256], index: 9, kind: input, shape index: {}]   ;;  %s11734_s10 = inlined_call_operand.vmem [shape: f32[200,1], index: 10, kind: output, shape index: {}]  }
   0x1   :  { %16 = vsyncpa [#allocation5], 0  ;;  %s10072_s13 = smov [#allocation4]   ;;  %s10073_s15 = smov [#allocation2]  }
   0x2   :  { %s50_s14 = sshll.u32 %s10072_s13, 4  ;;  %s34_s16 = sshll.u32 %s10073_s15, 4  ;;  %s51_s14 = int_to_ptr.vmem [resolvable:$true] %s50_s14  ;;  %s10133_s16 = int_to_ptr.vmem [resolvable:$true] %s34_s16 }
   0x3   :  { %s10002_s19 = scalar_lea.hbm %s11729_s5, 20480 }
   0x4   :  { %p10003_p0 = scmp.ne.s32.totalorder %s11729_s5, %s10002_s19  ;;  %p10006_p1 = scmp.lt.u32.totalorder %s10002_s19, %s11729_s5 }
   0x6   :  { %p10008_p2 = pnand %p10006_p1, %p10003_p0 }
   0x8   :  { %10011 = shalt.err (!%p10008_p2)
}
   0x9   :  { %s10012_s24 = scalar_lea.vmem %s51_s14, 20480  ;;  %p10017_p4 = scmp.lt.s32.totalorder %s51_s14, %s51_s14 }
   0xa   :  { %p10013_p3 = scmp.ne.s32.totalorder %s51_s14, %s10012_s24  ;;  %p10018_p5 = scmp.lt.s32.totalorder %s10012_s24, %s10012_s24 }
   0xc   :  { %p10019_p6 = por %p10018_p5, %p10017_p4 }
   0xe   :  { %p10020_p7 = pnand %p10019_p6, %p10013_p3 }
  0x10   :  { %10023 = shalt.err (!%p10020_p7)
}
  0x11   :  { %s10074_s25 = smov 128   ;;  %s10075_s26 = smov 8  }
  0x12   :  { %56 = dma.hbm_to_vmem [thread:$0]  %s11729_s5, 20480, %s51_s14, [#allocation5], %s10074_s25, %s10074_s25, %s10075_s26  }
  0x13   :  { %s10024_s11 = scalar_lea.hbm %s11726_s2, 20480 }
  0x14   :  { %p10025_p8 = scmp.ne.s32.totalorder %s11726_s2, %s10024_s11  ;;  %p10028_p9 = scmp.lt.u32.totalorder %s10024_s11, %s11726_s2 }
  0x16   :  { %p10030_p10 = pnand %p10028_p9, %p10025_p8 }
  0x18   :  { %10033 = shalt.err (!%p10030_p10)
}
  0x19   :  { %s10034_s18 = scalar_lea.vmem %s10133_s16, 20480  ;;  %p10039_p12 = scmp.lt.s32.totalorder %s10133_s16, %s10133_s16 }
  0x1a   :  { %p10035_p11 = scmp.ne.s32.totalorder %s10133_s16, %s10034_s18  ;;  %p10040_p13 = scmp.lt.s32.totalorder %s10034_s18, %s10034_s18 }
  0x1c   :  { %p10041_p0 = por %p10040_p13, %p10039_p12 }
  0x1e   :  { %p10042_p1 = pnand %p10041_p0, %p10035_p11 }
  0x20   :  { %10045 = shalt.err (!%p10042_p1)
}
  0x21   :  { %40 = dma.hbm_to_vmem [thread:$0]  %s11726_s2, 20480, %s10133_s16, [#allocation3], %s10074_s25, %s10074_s25, %s10075_s26  }
  0x22   :  { %s10076_s19 = smov [#allocation6]   ;;  %s10046_s23 = scalar_lea.hbm %s11732_s8, 16384 }
  0x23   :  { %s66_s20 = sshll.u32 %s10076_s19, 4  ;;  %p10047_p2 = scmp.ne.s32.totalorder %s11732_s8, %s10046_s23  ;;  %s67_s20 = int_to_ptr.vmem [resolvable:$true] %s66_s20 }
  0x24   :  { %p10050_p3 = scmp.lt.u32.totalorder %s10046_s23, %s11732_s8 }
  0x26   :  { %p10052_p4 = pnand %p10050_p3, %p10047_p2 }
  0x28   :  { %10055 = shalt.err (!%p10052_p4)
}
  0x29   :  { %s10056_s30 = scalar_lea.vmem %s67_s20, 16384  ;;  %p10061_p6 = scmp.lt.s32.totalorder %s67_s20, %s67_s20 }
  0x2a   :  { %p10057_p5 = scmp.ne.s32.totalorder %s67_s20, %s10056_s30  ;;  %p10062_p7 = scmp.lt.s32.totalorder %s10056_s30, %s10056_s30 }
  0x2c   :  { %p10063_p8 = por %p10062_p7, %p10061_p6 }
  0x2e   :  { %p10064_p9 = pnand %p10063_p8, %p10057_p5 }
  0x30   :  { %10067 = shalt.err (!%p10064_p9)
}
  0x31   :  { %72 = dma.hbm_to_vmem [thread:$0]  %s11732_s8, 16384, %s67_s20, [#allocation5], %s10074_s25, %s10074_s25, %s10075_s26  }
  0x32   :  { %10068 = dma.done.wait [#allocation3], 20480  }
  0x33   :  { %10069 = vsyncadd [#allocation3], 4294946816 }
  0x34   :  { %10070 = dma.done.wait [#allocation5], 36864  }
  0x35   :  { %10071 = vsyncadd [#allocation5], 4294930432  ;;  %v11735_v0 = vmov 0   ;;  %v176_v1 = vld [vmem:[%s11725_s1] sm:$0xff]  ;;  %vm234_vm0 = vcmask 1043456   ;;  %v114_v3 = vld [vmem:[%s11724_s0 + $0x8] sm:$0xff] }
  0x36   :  { %273 = vmatprep.mubr.bf16.mxu0 %v11735_v0  ;;  %353 = vmatprep.mubr.bf16.mxu1 %v11735_v0  ;;  %v113_v2 = vld [vmem:[%s11724_s0] sm:$0xff]  ;;  %v7257_v4 = vcombine.high %v176_v1, %v176_v1  ;;  %v7256_v5 = vcombine.low %v176_v1, %v176_v1  ;;  %v115_v6 = vld [vmem:[%s11724_s0 + $0x10] sm:$0xff]  ;;  %v116_v8 = vld [vmem:[%s11724_s0 + $0x18] sm:$0xff]  ;;  %vm194_vm1 = vcmask 64512   ;;  %vm7196_vm2 = vcmask 7168  }
  0x37   :  { %8452 = vtanh.f32 %v113_v2  ;;  %v7778_v9 = vld [vmem:[#allocation2 + $0x4] ss:$8 sps:$4 sm:$0xff]   ;;  %v119_v19 = vld [vmem:[%s11724_s0 + $0x30] sm:$0xff]  ;;  %v120_v20 = vld [vmem:[%s11724_s0 + $0x38] sm:$0xff] }
  0x38   :  { %8454 = vtanh.f32 %v114_v3  ;;  %7258 = vmatprep.subr.msk.bf16.mxu0 %vm234_vm0, %v7257_v4  ;;  %v236_v7 = vsel %vm234_vm0, %v7256_v5, 0  ;;  %7766 = vmatprep.subr.msk.bf16.mxu1 %vm234_vm0, %v7257_v4  ;;  %v117_v10 = vld [vmem:[%s11724_s0 + $0x20] sm:$0xff]  ;;  %v118_v12 = vld [vmem:[%s11724_s0 + $0x28] sm:$0xff]  ;;  %v131_v21 = vld [vmem:[%s11724_s0 + $0x90] sm:$0xff] }
  0x39   :  { %242 = vmatpush1.bf16.msra.mxu0 %v236_v7  ;;  %7767 = vmatpush1.bf16.msra.mxu1 %v236_v7  ;;  %8456 = vtanh.f32 %v115_v6  ;;  %v129_v15 = vld [vmem:[%s11724_s0 + $0x80] sm:$0xff]  ;;  %v130_v17 = vld [vmem:[%s11724_s0 + $0x88] sm:$0xff]  ;;  %v132_v23 = vld [vmem:[%s11724_s0 + $0x98] sm:$0xff] }
  0x3a   :  { %8458 = vtanh.f32 %v116_v8  ;;  %683 = vmatprep.subr.bf16.mxu1 %v7778_v9  ;;  %v121_v25 = vld [vmem:[%s11724_s0 + $0x40] sm:$0xff]  ;;  %v122_v26 = vld [vmem:[%s11724_s0 + $0x48] sm:$0xff]  ;;  %v7781_v34 = vld [vmem:[#allocation2 + $0x14] ss:$8 sps:$4 sm:$0xff]  }
  0x3b   :  { %8460 = vtanh.f32 %v117_v10  ;;  %v133_v28 = vld [vmem:[%s11724_s0 + $0xa0] sm:$0xff]  ;;  %v134_v29 = vld [vmem:[%s11724_s0 + $0xa8] sm:$0xff]  ;;  %v123_v38 = vld [vmem:[%s11724_s0 + $0x50] sm:$0xff] }
  0x3c   :  { %8462 = vtanh.f32 %v118_v12  ;;  %v7776_v32 = vld [vmem:[#allocation2] ss:$8 sps:$4 sm:$0xff]   ;;  %v124_v40 = vld [vmem:[%s11724_s0 + $0x58] sm:$0xff]  ;;  %v135_v43 = vld [vmem:[%s11724_s0 + $0xb0] sm:$0xff] }
  0x3d   :  { %8464 = vtanh.f32 %v129_v15  ;;  %v7779_v41 = vld [vmem:[#allocation2 + $0x10] ss:$8 sps:$4 sm:$0xff]   ;;  %v7784_v44 = vld [vmem:[#allocation2 + $0x24] ss:$8 sps:$4 sm:$0xff]   ;;  %v7782_v48 = vld [vmem:[#allocation2 + $0x20] ss:$8 sps:$4 sm:$0xff]  }
  0x3e   :  { %8466 = vtanh.f32 %v130_v17  ;;  %v136_v45 = vld [vmem:[%s11724_s0 + $0xb8] sm:$0xff]  ;;  %v125_v53 = vld [vmem:[%s11724_s0 + $0x60] sm:$0xff]  ;;  %v126_v56 = vld [vmem:[%s11724_s0 + $0x68] sm:$0xff] }
  0x3f   :  { %8468 = vtanh.f32 %v119_v19  ;;  %v7787_v49 = vld [vmem:[#allocation2 + $0x34] ss:$8 sps:$4 sm:$0xff]   ;;  %v7785_v54 = vld [vmem:[#allocation2 + $0x30] ss:$8 sps:$4 sm:$0xff]   ;;  %v7790_v57 = vld [vmem:[#allocation2 + $0x44] ss:$8 sps:$4 sm:$0xff]  }
  0x40   :  { %8470 = vtanh.f32 %v120_v20  ;;  %v137_v58 = vld [vmem:[%s11724_s0 + $0xc0] sm:$0xff]  ;;  %v7793_v62 = vld [vmem:[#allocation2 + $0x54] ss:$8 sps:$4 sm:$0xff]   ;;  %v7791_v3 = vld [vmem:[#allocation2 + $0x50] ss:$8 sps:$4 sm:$0xff]  }
  0x41   :  { %v8453_v11 = vpop.eup %8452  ;;  %8472 = vtanh.f32 %v131_v21  ;;  %v7788_v61 = vld [vmem:[#allocation2 + $0x40] ss:$8 sps:$4 sm:$0xff]   ;;  %v127_v5 = vld [vmem:[%s11724_s0 + $0x70] sm:$0xff]  ;;  %v7796_v6 = vld [vmem:[#allocation2 + $0x64] ss:$8 sps:$4 sm:$0xff]  }
  0x42   :  { %v8455_v13 = vpop.eup %8454  ;;  %8474 = vtanh.f32 %v132_v23  ;;  %v128_v7 = vld [vmem:[%s11724_s0 + $0x78] sm:$0xff]  ;;  %v7794_v10 = vld [vmem:[#allocation2 + $0x60] ss:$8 sps:$4 sm:$0xff]   ;;  %v7802_v17 = vld [vmem:[#allocation2 + $0x84] ss:$8 sps:$4 sm:$0xff]  }
  0x43   :  { %v10211_v14 = vpack.c.bf16 %v8455_v13, %v8453_v11  ;;  %v8457_v16 = vpop.eup %8456  ;;  %8476 = vtanh.f32 %v121_v25  ;;  %v7799_v11 = vld [vmem:[#allocation2 + $0x74] ss:$8 sps:$4 sm:$0xff]   ;;  %v7797_v15 = vld [vmem:[#allocation2 + $0x70] ss:$8 sps:$4 sm:$0xff]   ;;  %v7800_v20 = vld [vmem:[#allocation2 + $0x80] ss:$8 sps:$4 sm:$0xff]  }
  0x44   :  { %v8459_v18 = vpop.eup %8458  ;;  %8478 = vtanh.f32 %v122_v26  ;;  %v7805_v21 = vld [vmem:[#allocation2 + $0x94] ss:$8 sps:$4 sm:$0xff]   ;;  %v7808_v26 = vld [vmem:[#allocation2 + $0xa4] ss:$8 sps:$4 sm:$0xff]  }
  0x45   :  { %7259 = vmatmul.mubr.msk.bf16.vlgmr.msra.gmra.mrb[0].mxu0 %vm194_vm1, %v10211_v14  ;;  %v10231_v22 = vpack.c.bf16 %v8459_v18, %v8457_v16  ;;  %v8461_v24 = vpop.eup %8460  ;;  %8480 = vtanh.f32 %v133_v28  ;;  %v7806_v28 = vld [vmem:[#allocation2 + $0xa0] ss:$8 sps:$4 sm:$0xff]  }
  0x46   :  { %283 = vmatprep.mubr.bf16.mxu0 %v11735_v0  ;;  %v8463_v27 = vpop.eup %8462  ;;  %8482 = vtanh.f32 %v134_v29  ;;  %v7811_v29 = vld [vmem:[#allocation2 + $0xb4] ss:$8 sps:$4 sm:$0xff]  }
  0x47   :  { %v8465_v30 = vpop.eup %8464  ;;  %v10251_v31 = vpack.c.bf16 %v8463_v27, %v8461_v24  ;;  %8484 = vtanh.f32 %v123_v38  ;;  %v7803_v24 = vld [vmem:[#allocation2 + $0x90] ss:$8 sps:$4 sm:$0xff]   ;;  %v7818_v38 = vld [vmem:[#allocation2 + $0xe0] ss:$8 sps:$4 sm:$0xff]  }
  0x48   :  { %v8467_v33 = vpop.eup %8466  ;;  %8486 = vtanh.f32 %v124_v40  ;;  %v7821_v40 = vld [vmem:[#allocation2 + $0xf0] ss:$8 sps:$4 sm:$0xff]  }
  0x49   :  { %v8469_v35 = vpop.eup %8468  ;;  %v10253_v36 = vpack.c.bf16 %v8467_v33, %v8465_v30  ;;  %8488 = vtanh.f32 %v135_v43  ;;  %v7809_v30 = vld [vmem:[#allocation2 + $0xb0] ss:$8 sps:$4 sm:$0xff]   ;;  %v7812_v33 = vld [vmem:[#allocation2 + $0xc0] ss:$8 sps:$4 sm:$0xff]   ;;  %v7826_v43 = vld [vmem:[#allocation2 + $0x104] ss:$8 sps:$4 sm:$0xff]  }
  0x4a   :  { %v8471_v37 = vpop.eup %8470  ;;  %8490 = vtanh.f32 %v136_v45  ;;  %v7829_v45 = vld [vmem:[#allocation2 + $0x114] ss:$8 sps:$4 sm:$0xff]   ;;  %1126 = vmatprep.subr.bf16.mxu0 %v7826_v43 }
  0x4b   :  { %v8473_v39 = vpop.eup %8472  ;;  %7267 = vmatmul.mubr.msk.bf16.vlgmr.msra.gmra.mrb[0].mxu1 %vm194_vm1, %v10253_v36  ;;  %v10273_v46 = vpack.c.bf16 %v8471_v37, %v8469_v35  ;;  %8492 = vtanh.f32 %v125_v53  ;;  %v7815_v35 = vld [vmem:[#allocation2 + $0xd0] ss:$8 sps:$4 sm:$0xff]   ;;  %v7820_v37 = vld [vmem:[#allocation2 + $0xe4] ss:$8 sps:$4 sm:$0xff]   ;;  %v7830_v53 = vld [vmem:[#allocation2 + $0x120] ss:$8 sps:$4 sm:$0xff]  }
  0x4c   :  { %v8475_v42 = vpop.eup %8474  ;;  %363 = vmatprep.mubr.bf16.mxu1 %v11735_v0  ;;  %684 = vmatpush1.bf16.msra.mxu1 %v7776_v32  ;;  %8494 = vtanh.f32 %v126_v56  ;;  %v7814_v32 = vld [vmem:[#allocation2 + $0xc4] ss:$8 sps:$4 sm:$0xff]  }
  0x4d   :  { %7260 = vmatmul.mubr.msk.bf16.gmra.mrb[4].mxu0 %vm194_vm1, %v10231_v22  ;;  %685 = vmatprep.subr.bf16.mxu1 %v7781_v34  ;;  %v10275_v47 = vpack.c.bf16 %v8475_v42, %v8473_v39  ;;  %v8477_v50 = vpop.eup %8476  ;;  %8496 = vtanh.f32 %v137_v58  ;;  %v7817_v34 = vld [vmem:[#allocation2 + $0xd4] ss:$8 sps:$4 sm:$0xff]   ;;  %v7824_v42 = vld [vmem:[#allocation2 + $0x100] ss:$8 sps:$4 sm:$0xff]  }
  0x4e   :  { %293 = vmatprep.mubr.bf16.mxu0 %v11735_v0  ;;  %v8479_v51 = vpop.eup %8478  ;;  %8498 = vtanh.f32 %v127_v5  ;;  %v7823_v39 = vld [vmem:[#allocation2 + $0xf4] ss:$8 sps:$4 sm:$0xff]   ;;  %1127 = vmatpush1.bf16.msra.mxu0 %v7824_v42  ;;  %v7836_v5 = vld [vmem:[#allocation2 + $0x140] ss:$8 sps:$4 sm:$0xff]  }
  0x4f   :  { %v8481_v52 = vpop.eup %8480  ;;  %v10292_v59 = vpack.c.bf16 %v8479_v51, %v8477_v50  ;;  %8500 = vtanh.f32 %v128_v7  ;;  %1128 = vmatprep.subr.bf16.mxu0 %v7829_v45  ;;  %v177_v51 = vld [vmem:[%s11727_s3] sm:$0x3]  ;;  %v7841_v7 = vld [vmem:[#allocation2 + $0x154] ss:$8 sps:$4 sm:$0xff]  }
  0x50   :  { %686 = vmatpush1.bf16.msra.mxu1 %v7779_v41  ;;  %v8483_v55 = vpop.eup %8482  ;;  %v179_v41 = vlaneseq }
  0x51   :  { %687 = vmatprep.subr.bf16.mxu1 %v7784_v44  ;;  %v10294_v60 = vpack.c.bf16 %v8483_v55, %v8481_v52  ;;  %v8485_v63 = vpop.eup %8484 }
  0x52   :  { %v8487_v1 = vpop.eup %8486  ;;  %v180_v44 = vshrl.u32 %v179_v41, 7 }
  0x53   :  { %7268 = vmatmul.mubr.msk.bf16.gmra.mrb[4].mxu1 %vm194_vm1, %v10275_v47  ;;  %v8489_v2 = vpop.eup %8488  ;;  %v10308_v8 = vpack.c.bf16 %v8487_v1, %v8485_v63 }
  0x54   :  { %373 = vmatprep.mubr.bf16.mxu1 %v11735_v0  ;;  %688 = vmatpush1.bf16.msra.mxu1 %v7782_v48  ;;  %v8491_v4 = vpop.eup %8490  ;;  %v7827_v48 = vld [vmem:[#allocation2 + $0x110] ss:$8 sps:$4 sm:$0xff]   ;;  %v10331_v50 = vsub.s32 0, %v180_v44  ;;  %v10336_v52 = vsub.s32 1, %v180_v44 }
  0x55   :  { %7261 = vmatmul.mubr.msk.bf16.gmra.mrb[8].mxu0 %vm194_vm1, %v10251_v31  ;;  %689 = vmatprep.subr.bf16.mxu1 %v7787_v49  ;;  %v10310_v9 = vpack.c.bf16 %v8491_v4, %v8489_v2  ;;  %v8493_v12 = vpop.eup %8492  ;;  %v7832_v49 = vld [vmem:[#allocation2 + $0x124] ss:$8 sps:$4 sm:$0xff]  }
  0x56   :  { %303 = vmatprep.mubr.bf16.mxu0 %v11735_v0  ;;  %v8495_v13 = vpop.eup %8494  ;;  %1129 = vmatpush1.bf16.msra.mxu0 %v7827_v48  ;;  %v10339_v55 = vrot.slane %v177_v51, %v10331_v50  ;;  %v10342_v56 = vrot.slane %v177_v51, %v10336_v52 }
  0x57   :  { %v8497_v16 = vpop.eup %8496  ;;  %v10318_v18 = vpack.c.bf16 %v8495_v13, %v8493_v12  ;;  %1130 = vmatprep.subr.bf16.mxu0 %v7832_v49  ;;  %v7844_v12 = vld [vmem:[#allocation2 + $0x164] ss:$8 sps:$4 sm:$0xff]  }
  0x58   :  { %690 = vmatpush1.bf16.msra.mxu1 %v7785_v54  ;;  %v10320_v19 = vpack.c.bf16 %v8497_v16, %v8497_v16  ;;  %v8499_v23 = vpop.eup %8498  ;;  %v7835_v54 = vld [vmem:[#allocation2 + $0x134] ss:$8 sps:$4 sm:$0xff]  }
  0x59   :  { %691 = vmatprep.subr.bf16.mxu1 %v7790_v57  ;;  %v8501_v25 = vpop.eup %8500  ;;  %v7833_v57 = vld [vmem:[#allocation2 + $0x130] ss:$8 sps:$4 sm:$0xff]  }
  0x5a   :  { %v10327_v27 = vpack.c.bf16 %v8501_v25, %v8499_v23  ;;  %1131 = vmatpush1.bf16.msra.mxu0 %v7830_v53  ;;  %v7842_v23 = vld [vmem:[#allocation2 + $0x160] ss:$8 sps:$4 sm:$0xff]   ;;  %v7847_v25 = vld [vmem:[#allocation2 + $0x174] ss:$8 sps:$4 sm:$0xff]  }
  0x5b   :  { %7269 = vmatmul.mubr.msk.bf16.gmra.mrb[8].mxu1 %vm194_vm1, %v10294_v60  ;;  %1132 = vmatprep.subr.bf16.mxu0 %v7835_v54  ;;  %v7848_v54 = vld [vmem:[#allocation2 + $0x180] ss:$8 sps:$4 sm:$0xff]  }
  0x5c   :  { %383 = vmatprep.mubr.bf16.mxu1 %v11735_v0  ;;  %692 = vmatpush1.bf16.msra.mxu1 %v7788_v61  ;;  %v7838_v61 = vld [vmem:[#allocation2 + $0x144] ss:$8 sps:$4 sm:$0xff]  }
  0x5d   :  { %7262 = vmatmul.mubr.msk.bf16.gmra.mrb[12].mxu0 %vm194_vm1, %v10273_v46  ;;  %693 = vmatprep.subr.bf16.mxu1 %v7793_v62 }
  0x5e   :  { %313 = vmatprep.mubr.bf16.mxu0 %v11735_v0  ;;  %1133 = vmatpush1.bf16.msra.mxu0 %v7833_v57 }
  0x5f   :  { %1134 = vmatprep.subr.bf16.mxu0 %v7838_v61  ;;  %v7853_v61 = vld [vmem:[#allocation2 + $0x194] ss:$8 sps:$4 sm:$0xff]  }
  0x60   :  { %694 = vmatpush1.bf16.msra.mxu1 %v7791_v3 }
  0x61   :  { %695 = vmatprep.subr.bf16.mxu1 %v7796_v6 }
  0x62   :  { %1135 = vmatpush1.bf16.msra.mxu0 %v7836_v5 }
  0x63   :  { %7270 = vmatmul.mubr.msk.bf16.gmra.mrb[12].mxu1 %vm194_vm1, %v10310_v9  ;;  %1136 = vmatprep.subr.bf16.mxu0 %v7841_v7 }
  0x64   :  { %393 = vmatprep.mubr.bf16.mxu1 %v11735_v0  ;;  %696 = vmatpush1.bf16.msra.mxu1 %v7794_v10  ;;  %v7839_v10 = vld [vmem:[#allocation2 + $0x150] ss:$8 sps:$4 sm:$0xff]  }
  0x65   :  { %7263 = vmatmul.mubr.msk.bf16.gmra.mrb[16].mxu0 %vm194_vm1, %v10292_v59  ;;  %697 = vmatprep.subr.bf16.mxu1 %v7799_v11 }
  0x66   :  { %323 = vmatprep.mubr.bf16.mxu0 %v11735_v0  ;;  %1137 = vmatpush1.bf16.msra.mxu0 %v7839_v10  ;;  %v7856_v10 = vld [vmem:[#allocation2 + $0x1a4] ss:$8 sps:$4 sm:$0xff]  }
  0x67   :  { %1138 = vmatprep.subr.bf16.mxu0 %v7844_v12 }
  0x68   :  { %698 = vmatpush1.bf16.msra.mxu1 %v7797_v15 }
  0x69   :  { %699 = vmatprep.subr.bf16.mxu1 %v7802_v17 }
  0x6a   :  { %1139 = vmatpush1.bf16.msra.mxu0 %v7842_v23 }
  0x6b   :  { %7271 = vmatmul.mubr.msk.bf16.gmra.mrb[16].mxu1 %vm194_vm1, %v10320_v19  ;;  %1140 = vmatprep.subr.bf16.mxu0 %v7847_v25 }
  0x6c   :  { %700 = vmatpush1.bf16.msra.mxu1 %v7800_v20 }
  0x6d   :  { %7264 = vmatmul.mubr.msk.bf16.gmra.mrb[20].mxu0 %vm194_vm1, %v10308_v8  ;;  %701 = vmatprep.subr.bf16.mxu1 %v7805_v21 }
  0x6e   :  { %333 = vmatprep.mubr.bf16.mxu0 %v11735_v0 }
  0x70   :  { %702 = vmatpush1.bf16.msra.mxu1 %v7803_v24 }
  0x71   :  { %703 = vmatprep.subr.bf16.mxu1 %v7808_v26 }
  0x74   :  { %704 = vmatpush1.bf16.msra.mxu1 %v7806_v28 }
  0x75   :  { %7265 = vmatmul.mubr.msk.bf16.gmra.mrb[24].mxu0 %vm194_vm1, %v10318_v18  ;;  %705 = vmatprep.subr.bf16.mxu1 %v7811_v29 }
  0x76   :  { %343 = vmatprep.mubr.bf16.mxu0 %v11735_v0 }
  0x78   :  { %706 = vmatpush1.bf16.msra.mxu1 %v7809_v30  ;;  %v7845_v30 = vld [vmem:[#allocation2 + $0x170] ss:$8 sps:$4 sm:$0xff]  }
  0x79   :  { %707 = vmatprep.subr.bf16.mxu1 %v7814_v32  ;;  %1141 = vmatpush1.bf16.msra.mxu0 %v7845_v30 }
  0x7c   :  { %708 = vmatpush1.bf16.msra.mxu1 %v7812_v33 }
  0x7d   :  { %7266 = vmatmul.mubr.msk.bf16.gmra.mrb[28].mxu0 %vm194_vm1, %v10327_v27  ;;  %709 = vmatprep.subr.bf16.mxu1 %v7817_v34 }
  0x80   :  { %710 = vmatpush1.bf16.msra.mxu1 %v7815_v35 }
  0x81   :  { %711 = vmatprep.subr.bf16.mxu1 %v7820_v37  ;;  %v7850_v37 = vld [vmem:[#allocation2 + $0x184] ss:$8 sps:$4 sm:$0xff]  }
  0x82   :  { %1142 = vmatprep.subr.bf16.mxu0 %v7850_v37 }
  0x83   :  { %1143 = vmatpush1.bf16.msra.mxu0 %v7848_v54 }
  0x84   :  { %712 = vmatpush1.bf16.msra.mxu1 %v7818_v38  ;;  %1144 = vmatprep.subr.bf16.mxu0 %v7853_v61 }
  0x85   :  { %713 = vmatprep.subr.bf16.mxu1 %v7823_v39 }
  0x88   :  { %714 = vmatpush1.bf16.msra.mxu1 %v7821_v40 }
 0x118   :  { %v275_v58 = vpop.f32.mrb[0].mxu0 }
 0x119   :  { %v276_v62 = vadd.f32 %v275_v58, %v10339_v55  ;;  %v277_v63 = vpop.f32.mrb[1].mxu0 }
 0x11a   :  { %v278_v1 = vadd.f32 %v277_v63, %v10342_v56  ;;  %v279_v2 = vpop.f32.mrb[2].mxu0 }
 0x11b   :  { %8502 = vtanh.f32 %v276_v62  ;;  %v280_v3 = vadd.f32 %v279_v2, %v10339_v55  ;;  %v281_v4 = vpop.f32.mrb[3].mxu0 }
 0x11c   :  { %8504 = vtanh.f32 %v278_v1  ;;  %v282_v6 = vadd.f32 %v281_v4, %v10342_v56 }
 0x11d   :  { %8506 = vtanh.f32 %v280_v3  ;;  %v7851_v3 = vld [vmem:[#allocation2 + $0x190] ss:$8 sps:$4 sm:$0xff]  }
 0x11e   :  { %8508 = vtanh.f32 %v282_v6  ;;  %v355_v35 = vpop.f32.mrb[0].mxu1  ;;  %1145 = vmatpush1.bf16.msra.mxu0 %v7851_v3 }
 0x11f   :  { %v356_v41 = vadd.f32 %v355_v35, %v10339_v55  ;;  %v357_v42 = vpop.f32.mrb[1].mxu1  ;;  %1146 = vmatprep.subr.bf16.mxu0 %v7856_v10 }
 0x120   :  { %v285_v11 = vpop.f32.mrb[4].mxu0  ;;  %v359_v45 = vpop.f32.mrb[2].mxu1  ;;  %v358_v58 = vadd.f32 %v357_v42, %v10342_v56 }
 0x121   :  { %v286_v13 = vadd.f32 %v285_v11, %v10339_v55  ;;  %v287_v15 = vpop.f32.mrb[5].mxu0  ;;  %v360_v51 = vadd.f32 %v359_v45, %v10339_v55  ;;  %v361_v53 = vpop.f32.mrb[3].mxu1 }
 0x122   :  { %v288_v16 = vadd.f32 %v287_v15, %v10342_v56  ;;  %v289_v17 = vpop.f32.mrb[6].mxu0  ;;  %v362_v1 = vadd.f32 %v361_v53, %v10342_v56 }
 0x123   :  { %8510 = vtanh.f32 %v286_v13  ;;  %v290_v20 = vadd.f32 %v289_v17, %v10339_v55  ;;  %v291_v21 = vpop.f32.mrb[7].mxu0 }
 0x124   :  { %8512 = vtanh.f32 %v288_v16  ;;  %v292_v24 = vadd.f32 %v291_v21, %v10342_v56 }
 0x125   :  { %v8503_v26 = vpop.eup %8502  ;;  %8514 = vtanh.f32 %v290_v20 }
 0x126   :  { %v8505_v28 = vpop.eup %8504  ;;  %8516 = vtanh.f32 %v292_v24  ;;  %v365_v7 = vpop.f32.mrb[4].mxu1 }
 0x127   :  { %v8507_v29 = vpop.eup %8506  ;;  %v366_v15 = vadd.f32 %v365_v7, %v10339_v55  ;;  %v367_v16 = vpop.f32.mrb[5].mxu1 }
 0x128   :  { %v8509_v32 = vpop.eup %8508  ;;  %v295_v33 = vpop.f32.mrb[8].mxu0  ;;  %v452_v34 = vpack.c.bf16 %v8507_v29, %v8503_v26  ;;  %v368_v21 = vadd.f32 %v367_v16, %v10342_v56  ;;  %v7854_v29 = vld [vmem:[#allocation2 + $0x1a0] ss:$8 sps:$4 sm:$0xff]  }
 0x129   :  { %v296_v38 = vadd.f32 %v295_v33, %v10339_v55  ;;  %v297_v39 = vpop.f32.mrb[9].mxu0  ;;  %v453_v40 = vpack.c.bf16 %v8509_v32, %v8505_v28  ;;  %v369_v23 = vpop.f32.mrb[6].mxu1  ;;  %v7859_v33 = vld [vmem:[#allocation2 + $0x1b4] ss:$8 sps:$4 sm:$0xff]   ;;  %1147 = vmatpush1.bf16.msra.mxu0 %v7854_v29 }
 0x12a   :  { %v298_v43 = vadd.f32 %v297_v39, %v10342_v56  ;;  %v299_v44 = vpop.f32.mrb[10].mxu0  ;;  %v370_v26 = vadd.f32 %v369_v23, %v10339_v55  ;;  %v371_v28 = vpop.f32.mrb[7].mxu1  ;;  %1148 = vmatprep.subr.bf16.mxu0 %v7859_v33 }
 0x12b   :  { %8518 = vtanh.f32 %v296_v38  ;;  %v300_v48 = vadd.f32 %v299_v44, %v10339_v55  ;;  %v301_v49 = vpop.f32.mrb[11].mxu0  ;;  %715 = vmatprep.mubr.bf16.mxu1 %v453_v40  ;;  %v372_v32 = vadd.f32 %v371_v28, %v10342_v56  ;;  %v7857_v38 = vld [vmem:[#allocation2 + $0x1b0] ss:$8 sps:$4 sm:$0xff]  }
 0x12c   :  { %8520 = vtanh.f32 %v298_v43  ;;  %v302_v57 = vadd.f32 %v301_v49, %v10342_v56  ;;  %716 = vmatmul.mubr.bf16.vlgmr.msra.gmra.mrb[20].mxu1 %v452_v34 }
 0x12d   :  { %v8511_v62 = vpop.eup %8510  ;;  %8522 = vtanh.f32 %v300_v48  ;;  %1149 = vmatpush1.bf16.msra.mxu0 %v7857_v38 }
 0x12e   :  { %v8513_v63 = vpop.eup %8512  ;;  %8524 = vtanh.f32 %v302_v57  ;;  %v375_v42 = vpop.f32.mrb[8].mxu1 }
 0x12f   :  { %v8515_v2 = vpop.eup %8514  ;;  %8526 = vtanh.f32 %v356_v41  ;;  %v376_v49 = vadd.f32 %v375_v42, %v10339_v55 }
 0x130   :  { %v8517_v4 = vpop.eup %8516  ;;  %v305_v5 = vpop.f32.mrb[12].mxu0  ;;  %v454_v6 = vpack.c.bf16 %v8515_v2, %v8511_v62  ;;  %8528 = vtanh.f32 %v358_v58 }
 0x131   :  { %v306_v11 = vadd.f32 %v305_v5, %v10339_v55  ;;  %v307_v12 = vpop.f32.mrb[13].mxu0  ;;  %v455_v13 = vpack.c.bf16 %v8517_v4, %v8513_v63  ;;  %8530 = vtanh.f32 %v360_v51  ;;  %v377_v51 = vpop.f32.mrb[9].mxu1 }
 0x132   :  { %v308_v17 = vadd.f32 %v307_v12, %v10342_v56  ;;  %v309_v20 = vpop.f32.mrb[14].mxu0  ;;  %8532 = vtanh.f32 %v362_v1  ;;  %v378_v58 = vadd.f32 %v377_v51, %v10342_v56  ;;  %v379_v61 = vpop.f32.mrb[10].mxu1 }
 0x133   :  { %8534 = vtanh.f32 %v306_v11  ;;  %v310_v24 = vadd.f32 %v309_v20, %v10339_v55  ;;  %v311_v25 = vpop.f32.mrb[15].mxu0  ;;  %725 = vmatprep.mubr.bf16.mxu1 %v455_v13  ;;  %v380_v2 = vadd.f32 %v379_v61, %v10339_v55  ;;  %v381_v3 = vpop.f32.mrb[11].mxu1 }
 0x134   :  { %8536 = vtanh.f32 %v308_v17  ;;  %v312_v30 = vadd.f32 %v311_v25, %v10342_v56  ;;  %726 = vmatmul.mubr.bf16.gmra.mrb[24].mxu1 %v454_v6  ;;  %v382_v6 = vadd.f32 %v381_v3, %v10342_v56 }
 0x135   :  { %v8519_v34 = vpop.eup %8518  ;;  %8538 = vtanh.f32 %v310_v24 }
 0x136   :  { %v8521_v35 = vpop.eup %8520  ;;  %8540 = vtanh.f32 %v312_v30  ;;  %v385_v20 = vpop.f32.mrb[12].mxu1 }
 0x137   :  { %v8523_v37 = vpop.eup %8522  ;;  %8542 = vtanh.f32 %v366_v15  ;;  %v387_v28 = vpop.f32.mrb[13].mxu1 }
 0x138   :  { %v8525_v39 = vpop.eup %8524  ;;  %v315_v40 = vpop.f32.mrb[16].mxu0  ;;  %v456_v41 = vpack.c.bf16 %v8523_v37, %v8519_v34  ;;  %8544 = vtanh.f32 %v368_v21  ;;  %v388_v33 = vadd.f32 %v387_v28, %v10342_v56 }
 0x139   :  { %v10368_v43 = vpop.eup %8526  ;;  %v316_v44 = vadd.f32 %v315_v40, %v10339_v55  ;;  %v317_v45 = vpop.f32.mrb[17].mxu0  ;;  %v457_v48 = vpack.c.bf16 %v8525_v39, %v8521_v35  ;;  %8546 = vtanh.f32 %v370_v26  ;;  %v386_v26 = vadd.f32 %v385_v20, %v10339_v55 }
 0x13a   :  { %v10372_v53 = vpop.eup %8528  ;;  %v318_v54 = vadd.f32 %v317_v45, %v10342_v56  ;;  %v319_v57 = vpop.f32.mrb[18].mxu0  ;;  %8548 = vtanh.f32 %v372_v32 }
 0x13b   :  { %v10376_v62 = vpop.eup %8530  ;;  %8550 = vtanh.f32 %v316_v44  ;;  %v320_v63 = vadd.f32 %v319_v57, %v10339_v55  ;;  %v321_v1 = vpop.f32.mrb[19].mxu0  ;;  %735 = vmatprep.mubr.bf16.mxu1 %v457_v48 }
 0x13c   :  { %v10380_v4 = vpop.eup %8532  ;;  %8552 = vtanh.f32 %v318_v54  ;;  %v322_v5 = vadd.f32 %v321_v1, %v10342_v56  ;;  %736 = vmatmul.mubr.bf16.gmra.mrb[28].mxu1 %v456_v41  ;;  %v468_v7 = vpack.c.bf16 %v10376_v62, %v10368_v43  ;;  %v389_v34 = vpop.f32.mrb[14].mxu1  ;;  %v7863_v62 = vld [vmem:[#allocation2 + $0x1d0] ss:$8 sps:$4 sm:$0xff]  }
 0x13d   :  { %v8535_v10 = vpop.eup %8534  ;;  %8554 = vtanh.f32 %v320_v63  ;;  %v469_v11 = vpack.c.bf16 %v10380_v4, %v10372_v53  ;;  %v390_v39 = vadd.f32 %v389_v34, %v10339_v55  ;;  %v391_v40 = vpop.f32.mrb[15].mxu1  ;;  %v7862_v4 = vld [vmem:[#allocation2 + $0x1c4] ss:$8 sps:$4 sm:$0xff]  }
 0x13e   :  { %v8537_v12 = vpop.eup %8536  ;;  %8556 = vtanh.f32 %v322_v5  ;;  %v392_v44 = vadd.f32 %v391_v40, %v10342_v56  ;;  %v395_v63 = vpop.f32.mrb[16].mxu1  ;;  %1150 = vmatprep.subr.bf16.mxu0 %v7862_v4 }
 0x13f   :  { %v8539_v13 = vpop.eup %8538  ;;  %8558 = vtanh.f32 %v376_v49 }
 0x140   :  { %v8541_v15 = vpop.eup %8540  ;;  %v325_v16 = vpop.f32.mrb[20].mxu0  ;;  %v458_v17 = vpack.c.bf16 %v8539_v13, %v8535_v10  ;;  %8560 = vtanh.f32 %v378_v58 }
 0x141   :  { %v10388_v21 = vpop.eup %8542  ;;  %v326_v23 = vadd.f32 %v325_v16, %v10339_v55  ;;  %v327_v24 = vpop.f32.mrb[21].mxu0  ;;  %v459_v25 = vpack.c.bf16 %v8541_v15, %v8537_v12  ;;  %8562 = vtanh.f32 %v380_v2 }
 0x142   :  { %v10392_v29 = vpop.eup %8544  ;;  %v328_v30 = vadd.f32 %v327_v24, %v10342_v56  ;;  %v329_v32 = vpop.f32.mrb[22].mxu0  ;;  %8564 = vtanh.f32 %v382_v6  ;;  %v10412_v6 = vadd.f32 %v395_v63, %v10339_v55 }
 0x143   :  { %v10396_v35 = vpop.eup %8546  ;;  %8566 = vtanh.f32 %v326_v23  ;;  %v330_v37 = vadd.f32 %v329_v32, %v10339_v55  ;;  %v331_v38 = vpop.f32.mrb[23].mxu0  ;;  %745 = vmatprep.mubr.bf16.mxu1 %v459_v25 }
 0x144   :  { %v10400_v41 = vpop.eup %8548  ;;  %8568 = vtanh.f32 %v328_v30  ;;  %v332_v42 = vadd.f32 %v331_v38, %v10342_v56  ;;  %746 = vmatmul.mubr.bf16.gmra.mrb[32].mxu1 %v458_v17  ;;  %v470_v45 = vpack.c.bf16 %v10396_v35, %v10388_v21  ;;  %v397_v10 = vpop.f32.mrb[17].mxu1  ;;  %v7866_v35 = vld [vmem:[#allocation2 + $0x1e0] ss:$8 sps:$4 sm:$0xff]  }
 0x145   :  { %v8551_v48 = vpop.eup %8550  ;;  %8570 = vtanh.f32 %v330_v37  ;;  %v471_v49 = vpack.c.bf16 %v10400_v41, %v10392_v29  ;;  %v398_v16 = vadd.f32 %v397_v10, %v10342_v56  ;;  %v399_v17 = vpop.f32.mrb[18].mxu1  ;;  %v7868_v29 = vld [vmem:[#allocation2 + $0x1e4] ss:$8 sps:$4 sm:$0xff]   ;;  %v7869_v41 = vld [vmem:[#allocation2 + $0x1f0] ss:$8 sps:$4 sm:$0xff]  }
 0x146   :  { %v8553_v51 = vpop.eup %8552  ;;  %8572 = vtanh.f32 %v332_v42  ;;  %v400_v25 = vpop.f32.mrb[19].mxu1 }
 0x147   :  { %v8555_v54 = vpop.eup %8554  ;;  %8574 = vtanh.f32 %v386_v26 }
 0x148   :  { %v8557_v57 = vpop.eup %8556  ;;  %v335_v58 = vpop.f32.mrb[24].mxu0  ;;  %v460_v61 = vpack.c.bf16 %v8555_v54, %v8551_v48  ;;  %8576 = vtanh.f32 %v388_v33 }
 0x149   :  { %v10408_v1 = vpop.eup %8558  ;;  %v336_v2 = vadd.f32 %v335_v58, %v10339_v55  ;;  %v337_v3 = vpop.f32.mrb[25].mxu0  ;;  %v461_v5 = vpack.c.bf16 %v8557_v57, %v8553_v51  ;;  %8578 = vtanh.f32 %v390_v39 }
 0x14a   :  { %v10414_v12 = vpop.eup %8560  ;;  %v338_v13 = vadd.f32 %v337_v3, %v10342_v56  ;;  %v339_v15 = vpop.f32.mrb[26].mxu0  ;;  %8580 = vtanh.f32 %v392_v44 }
 0x14b   :  { %v10418_v20 = vpop.eup %8562  ;;  %8582 = vtanh.f32 %v336_v2  ;;  %v340_v23 = vadd.f32 %v339_v15, %v10339_v55  ;;  %v341_v24 = vpop.f32.mrb[27].mxu0  ;;  %755 = vmatprep.mubr.bf16.mxu1 %v461_v5 }
 0x14c   :  { %v8565_v26 = vpop.eup %8564  ;;  %8584 = vtanh.f32 %v338_v13  ;;  %v342_v28 = vadd.f32 %v341_v24, %v10342_v56  ;;  %756 = vmatmul.mubr.bf16.gmra.mrb[36].mxu1 %v460_v61  ;;  %v472_v30 = vpack.c.bf16 %v10418_v20, %v10408_v1 }
 0x14d   :  { %v8567_v32 = vpop.eup %8566  ;;  %8586 = vtanh.f32 %v340_v23  ;;  %v473_v33 = vpack.c.bf16 %v8565_v26, %v10414_v12 }
 0x14e   :  { %v8569_v34 = vpop.eup %8568  ;;  %8588 = vtanh.f32 %v342_v28 }
 0x14f   :  { %v8571_v37 = vpop.eup %8570 }
 0x150   :  { %v8573_v38 = vpop.eup %8572  ;;  %v345_v39 = vpop.f32.mrb[28].mxu0  ;;  %v462_v40 = vpack.c.bf16 %v8571_v37, %v8567_v32  ;;  %v7878_v37 = vld [vmem:[#allocation2 + $0x220] ss:$8 sps:$4 sm:$0xff]  }
 0x151   :  { %v8575_v42 = vpop.eup %8574  ;;  %v346_v44 = vadd.f32 %v345_v39, %v10339_v55  ;;  %v347_v48 = vpop.f32.mrb[29].mxu0  ;;  %v463_v51 = vpack.c.bf16 %v8573_v38, %v8569_v34  ;;  %v7272_v34 = vld [vmem:[%s11727_s3 + $0x2] sm:$0x3]  ;;  %v7883_v38 = vld [vmem:[#allocation2 + $0x234] ss:$8 sps:$4 sm:$0xff]  }
 0x152   :  { %v8577_v54 = vpop.eup %8576  ;;  %v348_v57 = vadd.f32 %v347_v48, %v10342_v56  ;;  %v349_v58 = vpop.f32.mrb[30].mxu0  ;;  %v10446_v39 = vrot.slane %v7272_v34, %v10331_v50  ;;  %v7886_v48 = vld [vmem:[#allocation2 + $0x244] ss:$8 sps:$4 sm:$0xff]  }
 0x153   :  { %v8579_v61 = vpop.eup %8578  ;;  %8590 = vtanh.f32 %v346_v44  ;;  %v350_v63 = vadd.f32 %v349_v58, %v10339_v55  ;;  %v351_v1 = vpop.f32.mrb[31].mxu0  ;;  %765 = vmatprep.mubr.bf16.mxu1 %v463_v51 }
 0x154   :  { %v8581_v2 = vpop.eup %8580  ;;  %8592 = vtanh.f32 %v348_v57  ;;  %v352_v3 = vadd.f32 %v351_v1, %v10342_v56  ;;  %766 = vmatmul.mubr.bf16.gmra.mrb[40].mxu1 %v462_v40  ;;  %v474_v5 = vpack.c.bf16 %v8579_v61, %v8575_v42  ;;  %v10449_v40 = vrot.slane %v7272_v34, %v10336_v52  ;;  %v7881_v42 = vld [vmem:[#allocation2 + $0x230] ss:$8 sps:$4 sm:$0xff]   ;;  %v7884_v1 = vld [vmem:[#allocation2 + $0x240] ss:$8 sps:$4 sm:$0xff]  }
 0x155   :  { %v8583_v10 = vpop.eup %8582  ;;  %8594 = vtanh.f32 %v350_v63  ;;  %v475_v12 = vpack.c.bf16 %v8581_v2, %v8577_v54 }
 0x156   :  { %v8585_v13 = vpop.eup %8584  ;;  %8596 = vtanh.f32 %v352_v3  ;;  %v7889_v3 = vld [vmem:[#allocation2 + $0x254] ss:$8 sps:$4 sm:$0xff]  }
 0x157   :  { %v8587_v15 = vpop.eup %8586  ;;  %8598 = vtanh.f32 %v398_v16  ;;  %v7877_v16 = vld [vmem:[#allocation2 + $0x214] ss:$8 sps:$4 sm:$0xff]  }
 0x158   :  { %v8589_v17 = vpop.eup %8588  ;;  %v464_v20 = vpack.c.bf16 %v8587_v15, %v8583_v10  ;;  %8600 = vtanh.f32 %v10412_v6  ;;  %v7874_v6 = vld [vmem:[#allocation2 + $0x204] ss:$8 sps:$4 sm:$0xff]  }
 0x159   :  { %v465_v23 = vpack.c.bf16 %v8589_v17, %v8585_v13  ;;  %1569 = vmatprep.subr.bf16.mxu1 %v7874_v6  ;;  %v7896_v6 = vld [vmem:[#allocation2 + $0x280] ss:$8 sps:$4 sm:$0xff]  }
 0x15b   :  { %775 = vmatprep.mubr.bf16.mxu1 %v465_v23 }
 0x15c   :  { %776 = vmatmul.mubr.bf16.gmra.mrb[44].mxu1 %v464_v20 }
 0x15d   :  { %v8591_v55 = vpop.eup %8590 }
 0x15e   :  { %v8593_v24 = vpop.eup %8592 }
 0x15f   :  { %v8595_v25 = vpop.eup %8594 }
 0x160   :  { %v8597_v26 = vpop.eup %8596  ;;  %v466_v28 = vpack.c.bf16 %v8595_v25, %v8591_v55 }
 0x161   :  { %v467_v32 = vpack.c.bf16 %v8597_v26, %v8593_v24  ;;  %v8599_v56 = vpop.eup %8598  ;;  %v7890_v24 = vld [vmem:[#allocation2 + $0x260] ss:$8 sps:$4 sm:$0xff]   ;;  %v7895_v26 = vld [vmem:[#allocation2 + $0x274] ss:$8 sps:$4 sm:$0xff]  }
 0x162   :  { %v477_v53 = vpack.c.bf16 %v8599_v56, %v8599_v56  ;;  %v8601_v43 = vpop.eup %8600 }
 0x163   :  { %785 = vmatprep.mubr.bf16.mxu1 %v467_v32  ;;  %v476_v21 = vpack.c.bf16 %v8601_v43, %v8601_v43 }
 0x164   :  { %786 = vmatmul.mubr.bf16.gmra.mrb[48].mxu1 %v466_v28 }
 0x165   :  { %795 = vmatprep.mubr.bf16.mxu1 %v469_v11  ;;  %v7860_v11 = vld [vmem:[#allocation2 + $0x1c0] ss:$8 sps:$4 sm:$0xff]  }
 0x166   :  { %1151 = vmatpush1.bf16.msra.mxu0 %v7860_v11 }
 0x16c   :  { %796 = vmatmul.mubr.bf16.gmra.mrb[52].mxu1 %v468_v7  ;;  %v7865_v7 = vld [vmem:[#allocation2 + $0x1d4] ss:$8 sps:$4 sm:$0xff]  }
 0x16d   :  { %805 = vmatprep.mubr.bf16.mxu1 %v471_v49  ;;  %1152 = vmatprep.subr.bf16.mxu0 %v7865_v7  ;;  %v7872_v49 = vld [vmem:[#allocation2 + $0x200] ss:$8 sps:$4 sm:$0xff]  }
 0x16e   :  { %1153 = vmatpush1.bf16.msra.mxu0 %v7863_v62  ;;  %1570 = vmatpush1.bf16.msra.mxu1 %v7872_v49  ;;  %v7898_v62 = vld [vmem:[#allocation2 + $0x284] ss:$8 sps:$4 sm:$0xff]  }
 0x16f   :  { %1154 = vmatprep.subr.bf16.mxu0 %v7868_v29  ;;  %1571 = vmatprep.subr.bf16.mxu1 %v7877_v16 }
 0x172   :  { %1155 = vmatpush1.bf16.msra.mxu0 %v7866_v35 }
 0x174   :  { %806 = vmatmul.mubr.bf16.gmra.mrb[56].mxu1 %v470_v45  ;;  %v7871_v45 = vld [vmem:[#allocation2 + $0x1f4] ss:$8 sps:$4 sm:$0xff]  }
 0x175   :  { %815 = vmatprep.mubr.bf16.mxu1 %v473_v33  ;;  %1156 = vmatprep.subr.bf16.mxu0 %v7871_v45  ;;  %v7880_v33 = vld [vmem:[#allocation2 + $0x224] ss:$8 sps:$4 sm:$0xff]  }
 0x176   :  { %1157 = vmatpush1.bf16.msra.mxu0 %v7869_v41 }
 0x17c   :  { %816 = vmatmul.mubr.bf16.gmra.mrb[60].mxu1 %v472_v30  ;;  %v7875_v30 = vld [vmem:[#allocation2 + $0x210] ss:$8 sps:$4 sm:$0xff]  }
 0x17d   :  { %825 = vmatprep.mubr.bf16.mxu1 %v475_v12  ;;  %1572 = vmatpush1.bf16.msra.mxu1 %v7875_v30  ;;  %v7892_v12 = vld [vmem:[#allocation2 + $0x264] ss:$8 sps:$4 sm:$0xff]   ;;  %v7901_v30 = vld [vmem:[#allocation2 + $0x294] ss:$8 sps:$4 sm:$0xff]  }
 0x17e   :  { %1573 = vmatprep.subr.bf16.mxu1 %v7880_v33 }
 0x181   :  { %1574 = vmatpush1.bf16.msra.mxu1 %v7878_v37 }
 0x182   :  { %1575 = vmatprep.subr.bf16.mxu1 %v7883_v38  ;;  %v7899_v38 = vld [vmem:[#allocation2 + $0x290] ss:$8 sps:$4 sm:$0xff]  }
 0x184   :  { %826 = vmatmul.mubr.bf16.gmra.mrb[64].mxu1 %v474_v5  ;;  %v7887_v5 = vld [vmem:[#allocation2 + $0x250] ss:$8 sps:$4 sm:$0xff]  }
 0x185   :  { %835 = vmatprep.mubr.bf16.mxu1 %v477_v53  ;;  %1576 = vmatpush1.bf16.msra.mxu1 %v7881_v42  ;;  %v7893_v53 = vld [vmem:[#allocation2 + $0x270] ss:$8 sps:$4 sm:$0xff]  }
 0x186   :  { %1577 = vmatprep.subr.bf16.mxu1 %v7886_v48 }
 0x189   :  { %1578 = vmatpush1.bf16.msra.mxu1 %v7884_v1 }
 0x18a   :  { %1579 = vmatprep.subr.bf16.mxu1 %v7889_v3  ;;  %v7902_v3 = vld [vmem:[#allocation2 + $0x2a0] ss:$8 sps:$4 sm:$0xff]  }
 0x18c   :  { %836 = vmatmul.mubr.bf16.gmra.mrb[68].mxu1 %v476_v21 }
 0x18d   :  { %1580 = vmatpush1.bf16.msra.mxu1 %v7887_v5 }
 0x18e   :  { %1581 = vmatprep.subr.bf16.mxu1 %v7892_v12 }
 0x191   :  { %1582 = vmatpush1.bf16.msra.mxu1 %v7890_v24  ;;  %v7910_v24 = vld [vmem:[#allocation2 + $0x2c4] ss:$8 sps:$4 sm:$0xff]  }
 0x192   :  { %1583 = vmatprep.subr.bf16.mxu1 %v7895_v26 }
 0x195   :  { %1584 = vmatpush1.bf16.msra.mxu1 %v7893_v53 }
 0x196   :  { %1585 = vmatprep.subr.bf16.mxu1 %v7898_v62 }
 0x199   :  { %1586 = vmatpush1.bf16.msra.mxu1 %v7896_v6 }
 0x19a   :  { %1587 = vmatprep.subr.bf16.mxu1 %v7901_v30 }
 0x19d   :  { %1588 = vmatpush1.bf16.msra.mxu1 %v7899_v38 }
 0x1ff   :  { %v717_v44 = vpop.f32.mrb[20].mxu1 }
 0x200   :  { %v718_v51 = vadd.f32 %v717_v44, %v10446_v39  ;;  %v719_v54 = vpop.f32.mrb[21].mxu1 }
 0x201   :  { %v720_v57 = vadd.f32 %v719_v54, %v10449_v40  ;;  %v721_v58 = vpop.f32.mrb[22].mxu1 }
 0x202   :  { %8602 = vtanh.f32 %v718_v51  ;;  %v722_v61 = vadd.f32 %v721_v58, %v10446_v39  ;;  %v723_v63 = vpop.f32.mrb[23].mxu1  ;;  %v7904_v51 = vld [vmem:[#allocation2 + $0x2a4] ss:$8 sps:$4 sm:$0xff]  }
 0x203   :  { %8604 = vtanh.f32 %v720_v57  ;;  %v724_v2 = vadd.f32 %v723_v63, %v10449_v40  ;;  %1589 = vmatprep.subr.bf16.mxu1 %v7904_v51 }
 0x204   :  { %8606 = vtanh.f32 %v722_v61  ;;  %1590 = vmatpush1.bf16.msra.mxu1 %v7902_v3 }
 0x205   :  { %8608 = vtanh.f32 %v724_v2 }
 0x207   :  { %v727_v10 = vpop.f32.mrb[24].mxu1 }
 0x208   :  { %v728_v13 = vadd.f32 %v727_v10, %v10446_v39  ;;  %v729_v15 = vpop.f32.mrb[25].mxu1  ;;  %v7907_v10 = vld [vmem:[#allocation2 + $0x2b4] ss:$8 sps:$4 sm:$0xff]  }
 0x209   :  { %v730_v17 = vadd.f32 %v729_v15, %v10449_v40  ;;  %v731_v20 = vpop.f32.mrb[26].mxu1  ;;  %1591 = vmatprep.subr.bf16.mxu1 %v7907_v10 }
 0x20a   :  { %8610 = vtanh.f32 %v728_v13  ;;  %v732_v23 = vadd.f32 %v731_v20, %v10446_v39  ;;  %v733_v55 = vpop.f32.mrb[27].mxu1 }
 0x20b   :  { %8612 = vtanh.f32 %v730_v17  ;;  %v734_v25 = vadd.f32 %v733_v55, %v10449_v40  ;;  %v7905_v17 = vld [vmem:[#allocation2 + $0x2b0] ss:$8 sps:$4 sm:$0xff]  }
 0x20c   :  { %v8603_v28 = vpop.eup %8602  ;;  %8614 = vtanh.f32 %v732_v23  ;;  %1592 = vmatpush1.bf16.msra.mxu1 %v7905_v17 }
 0x20d   :  { %v8605_v32 = vpop.eup %8604  ;;  %8616 = vtanh.f32 %v734_v25  ;;  %1593 = vmatprep.subr.bf16.mxu1 %v7910_v24 }
 0x20e   :  { %v8607_v56 = vpop.eup %8606 }
 0x20f   :  { %v8609_v4 = vpop.eup %8608  ;;  %v737_v11 = vpop.f32.mrb[28].mxu1  ;;  %v894_v43 = vpack.c.bf16 %v8607_v56, %v8603_v28 }
 0x210   :  { %v738_v7 = vadd.f32 %v737_v11, %v10446_v39  ;;  %v739_v21 = vpop.f32.mrb[29].mxu1  ;;  %v895_v29 = vpack.c.bf16 %v8609_v4, %v8605_v32  ;;  %v7908_v11 = vld [vmem:[#allocation2 + $0x2c0] ss:$8 sps:$4 sm:$0xff]  }
 0x211   :  { %v740_v35 = vadd.f32 %v739_v21, %v10449_v40  ;;  %v741_v41 = vpop.f32.mrb[30].mxu1  ;;  %1594 = vmatpush1.bf16.msra.mxu1 %v7908_v11 }
 0x212   :  { %8618 = vtanh.f32 %v738_v7  ;;  %v742_v45 = vadd.f32 %v741_v41, %v10446_v39  ;;  %v743_v49 = vpop.f32.mrb[31].mxu1  ;;  %1158 = vmatprep.mubr.bf16.mxu0 %v895_v29 }
 0x213   :  { %8620 = vtanh.f32 %v740_v35  ;;  %v744_v16 = vadd.f32 %v743_v49, %v10449_v40  ;;  %1159 = vmatmul.mubr.bf16.vlgmr.msra.gmra.mrb[32].mxu0 %v894_v43 }
 0x214   :  { %v8611_v33 = vpop.eup %8610  ;;  %8622 = vtanh.f32 %v742_v45 }
 0x215   :  { %v8613_v34 = vpop.eup %8612  ;;  %8624 = vtanh.f32 %v744_v16 }
 0x216   :  { %v8615_v37 = vpop.eup %8614 }
 0x217   :  { %v8617_v42 = vpop.eup %8616  ;;  %v747_v44 = vpop.f32.mrb[32].mxu1  ;;  %v896_v48 = vpack.c.bf16 %v8615_v37, %v8611_v33 }
 0x218   :  { %v748_v54 = vadd.f32 %v747_v44, %v10446_v39  ;;  %v749_v57 = vpop.f32.mrb[33].mxu1  ;;  %v897_v58 = vpack.c.bf16 %v8617_v42, %v8613_v34 }
 0x219   :  { %v750_v61 = vadd.f32 %v749_v57, %v10449_v40  ;;  %v751_v63 = vpop.f32.mrb[34].mxu1 }
 0x21a   :  { %8626 = vtanh.f32 %v748_v54  ;;  %v752_v1 = vadd.f32 %v751_v63, %v10446_v39  ;;  %v753_v2 = vpop.f32.mrb[35].mxu1  ;;  %1168 = vmatprep.mubr.bf16.mxu0 %v897_v58 }
 0x21b   :  { %8628 = vtanh.f32 %v750_v61  ;;  %v754_v5 = vadd.f32 %v753_v2, %v10449_v40  ;;  %1169 = vmatmul.mubr.bf16.gmra.mrb[36].mxu0 %v896_v48 }
 0x21c   :  { %v8619_v12 = vpop.eup %8618  ;;  %8630 = vtanh.f32 %v752_v1 }
 0x21d   :  { %v8621_v13 = vpop.eup %8620  ;;  %8632 = vtanh.f32 %v754_v5 }
 0x21e   :  { %v8623_v15 = vpop.eup %8622 }
 0x21f   :  { %v8625_v20 = vpop.eup %8624  ;;  %v757_v23 = vpop.f32.mrb[36].mxu1  ;;  %v898_v55 = vpack.c.bf16 %v8623_v15, %v8619_v12 }
 0x220   :  { %v758_v25 = vadd.f32 %v757_v23, %v10446_v39  ;;  %v759_v26 = vpop.f32.mrb[37].mxu1  ;;  %v899_v28 = vpack.c.bf16 %v8625_v20, %v8621_v13 }
 0x221   :  { %v760_v32 = vadd.f32 %v759_v26, %v10449_v40  ;;  %v761_v56 = vpop.f32.mrb[38].mxu1 }
 0x222   :  { %8634 = vtanh.f32 %v758_v25  ;;  %v762_v53 = vadd.f32 %v761_v56, %v10446_v39  ;;  %v763_v4 = vpop.f32.mrb[39].mxu1  ;;  %1178 = vmatprep.mubr.bf16.mxu0 %v899_v28 }
 0x223   :  { %8636 = vtanh.f32 %v760_v32  ;;  %v764_v43 = vadd.f32 %v763_v4, %v10449_v40  ;;  %1179 = vmatmul.mubr.bf16.gmra.mrb[40].mxu0 %v898_v55 }
 0x224   :  { %v8627_v62 = vpop.eup %8626  ;;  %8638 = vtanh.f32 %v762_v53 }
 0x225   :  { %v8629_v7 = vpop.eup %8628  ;;  %8640 = vtanh.f32 %v764_v43 }
 0x226   :  { %v8631_v21 = vpop.eup %8630 }
 0x227   :  { %v8633_v29 = vpop.eup %8632  ;;  %v767_v35 = vpop.f32.mrb[40].mxu1  ;;  %v900_v41 = vpack.c.bf16 %v8631_v21, %v8627_v62 }
 0x228   :  { %v768_v45 = vadd.f32 %v767_v35, %v10446_v39  ;;  %v769_v49 = vpop.f32.mrb[41].mxu1  ;;  %v901_v6 = vpack.c.bf16 %v8633_v29, %v8629_v7 }
 0x229   :  { %v770_v16 = vadd.f32 %v769_v49, %v10449_v40  ;;  %v771_v30 = vpop.f32.mrb[42].mxu1 }
 0x22a   :  { %8642 = vtanh.f32 %v768_v45  ;;  %v772_v33 = vadd.f32 %v771_v30, %v10446_v39  ;;  %v773_v34 = vpop.f32.mrb[43].mxu1  ;;  %1188 = vmatprep.mubr.bf16.mxu0 %v901_v6 }
 0x22b   :  { %8644 = vtanh.f32 %v770_v16  ;;  %v774_v37 = vadd.f32 %v773_v34, %v10449_v40  ;;  %1189 = vmatmul.mubr.bf16.gmra.mrb[44].mxu0 %v900_v41 }
 0x22c   :  { %v8635_v38 = vpop.eup %8634  ;;  %8646 = vtanh.f32 %v772_v33 }
 0x22d   :  { %v8637_v42 = vpop.eup %8636  ;;  %8648 = vtanh.f32 %v774_v37 }
 0x22e   :  { %v8639_v44 = vpop.eup %8638 }
 0x22f   :  { %v8641_v48 = vpop.eup %8640  ;;  %v777_v51 = vpop.f32.mrb[44].mxu1  ;;  %v902_v54 = vpack.c.bf16 %v8639_v44, %v8635_v38 }
 0x230   :  { %v778_v57 = vadd.f32 %v777_v51, %v10446_v39  ;;  %v779_v58 = vpop.f32.mrb[45].mxu1  ;;  %v903_v61 = vpack.c.bf16 %v8641_v48, %v8637_v42 }
 0x231   :  { %v780_v63 = vadd.f32 %v779_v58, %v10449_v40  ;;  %v781_v1 = vpop.f32.mrb[46].mxu1 }
 0x232   :  { %8650 = vtanh.f32 %v778_v57  ;;  %v782_v2 = vadd.f32 %v781_v1, %v10446_v39  ;;  %v783_v3 = vpop.f32.mrb[47].mxu1  ;;  %1198 = vmatprep.mubr.bf16.mxu0 %v903_v61 }
 0x233   :  { %8652 = vtanh.f32 %v780_v63  ;;  %v784_v5 = vadd.f32 %v783_v3, %v10449_v40  ;;  %1199 = vmatmul.mubr.bf16.gmra.mrb[48].mxu0 %v902_v54 }
 0x234   :  { %v8643_v10 = vpop.eup %8642  ;;  %8654 = vtanh.f32 %v782_v2 }
 0x235   :  { %v8645_v12 = vpop.eup %8644  ;;  %8656 = vtanh.f32 %v784_v5 }
 0x236   :  { %v8647_v13 = vpop.eup %8646 }
 0x237   :  { %v8649_v15 = vpop.eup %8648  ;;  %v787_v17 = vpop.f32.mrb[48].mxu1  ;;  %v904_v20 = vpack.c.bf16 %v8647_v13, %v8643_v10 }
 0x238   :  { %v788_v23 = vadd.f32 %v787_v17, %v10446_v39  ;;  %v789_v55 = vpop.f32.mrb[49].mxu1  ;;  %v905_v24 = vpack.c.bf16 %v8649_v15, %v8645_v12 }
 0x239   :  { %v790_v25 = vadd.f32 %v789_v55, %v10449_v40  ;;  %v791_v26 = vpop.f32.mrb[50].mxu1 }
 0x23a   :  { %8658 = vtanh.f32 %v788_v23  ;;  %v792_v28 = vadd.f32 %v791_v26, %v10446_v39  ;;  %v793_v32 = vpop.f32.mrb[51].mxu1  ;;  %1208 = vmatprep.mubr.bf16.mxu0 %v905_v24 }
 0x23b   :  { %8660 = vtanh.f32 %v790_v25  ;;  %v794_v56 = vadd.f32 %v793_v32, %v10449_v40  ;;  %1209 = vmatmul.mubr.bf16.gmra.mrb[52].mxu0 %v904_v20 }
 0x23c   :  { %v8651_v53 = vpop.eup %8650  ;;  %8662 = vtanh.f32 %v792_v28 }
 0x23d   :  { %v8653_v4 = vpop.eup %8652  ;;  %8664 = vtanh.f32 %v794_v56 }
 0x23e   :  { %v8655_v11 = vpop.eup %8654 }
 0x23f   :  { %v8657_v43 = vpop.eup %8656  ;;  %v797_v62 = vpop.f32.mrb[52].mxu1  ;;  %v906_v7 = vpack.c.bf16 %v8655_v11, %v8651_v53 }
 0x240   :  { %v798_v21 = vadd.f32 %v797_v62, %v10446_v39  ;;  %v799_v29 = vpop.f32.mrb[53].mxu1  ;;  %v907_v35 = vpack.c.bf16 %v8657_v43, %v8653_v4 }
 0x241   :  { %v800_v41 = vadd.f32 %v799_v29, %v10449_v40  ;;  %v801_v45 = vpop.f32.mrb[54].mxu1 }
 0x242   :  { %8666 = vtanh.f32 %v798_v21  ;;  %v802_v49 = vadd.f32 %v801_v45, %v10446_v39  ;;  %v803_v6 = vpop.f32.mrb[55].mxu1  ;;  %1218 = vmatprep.mubr.bf16.mxu0 %v907_v35 }
 0x243   :  { %8668 = vtanh.f32 %v800_v41  ;;  %v804_v16 = vadd.f32 %v803_v6, %v10449_v40  ;;  %1219 = vmatmul.mubr.bf16.gmra.mrb[56].mxu0 %v906_v7 }
 0x244   :  { %v8659_v30 = vpop.eup %8658  ;;  %8670 = vtanh.f32 %v802_v49 }
 0x245   :  { %v8661_v33 = vpop.eup %8660  ;;  %8672 = vtanh.f32 %v804_v16 }
 0x246   :  { %v8663_v34 = vpop.eup %8662 }
 0x247   :  { %v8665_v37 = vpop.eup %8664  ;;  %v807_v38 = vpop.f32.mrb[56].mxu1  ;;  %v908_v42 = vpack.c.bf16 %v8663_v34, %v8659_v30 }
 0x248   :  { %v808_v44 = vadd.f32 %v807_v38, %v10446_v39  ;;  %v809_v48 = vpop.f32.mrb[57].mxu1  ;;  %v909_v51 = vpack.c.bf16 %v8665_v37, %v8661_v33 }
 0x249   :  { %v810_v54 = vadd.f32 %v809_v48, %v10449_v40  ;;  %v811_v57 = vpop.f32.mrb[58].mxu1 }
 0x24a   :  { %8674 = vtanh.f32 %v808_v44  ;;  %v812_v58 = vadd.f32 %v811_v57, %v10446_v39  ;;  %v813_v61 = vpop.f32.mrb[59].mxu1  ;;  %1228 = vmatprep.mubr.bf16.mxu0 %v909_v51 }
 0x24b   :  { %8676 = vtanh.f32 %v810_v54  ;;  %v814_v63 = vadd.f32 %v813_v61, %v10449_v40  ;;  %1229 = vmatmul.mubr.bf16.gmra.mrb[60].mxu0 %v908_v42 }
 0x24c   :  { %v8667_v1 = vpop.eup %8666  ;;  %8678 = vtanh.f32 %v812_v58 }
 0x24d   :  { %v8669_v2 = vpop.eup %8668  ;;  %8680 = vtanh.f32 %v814_v63 }
 0x24e   :  { %v8671_v3 = vpop.eup %8670 }
 0x24f   :  { %v8673_v5 = vpop.eup %8672  ;;  %v817_v10 = vpop.f32.mrb[60].mxu1  ;;  %v910_v12 = vpack.c.bf16 %v8671_v3, %v8667_v1  ;;  %v7911_v1 = vld [vmem:[#allocation2 + $0x2d0] ss:$8 sps:$4 sm:$0xff]   ;;  %v7916_v3 = vld [vmem:[#allocation2 + $0x2e4] ss:$8 sps:$4 sm:$0xff]  }
 0x250   :  { %v818_v13 = vadd.f32 %v817_v10, %v10446_v39  ;;  %v819_v15 = vpop.f32.mrb[61].mxu1  ;;  %v911_v17 = vpack.c.bf16 %v8673_v5, %v8669_v2  ;;  %v7913_v2 = vld [vmem:[#allocation2 + $0x2d4] ss:$8 sps:$4 sm:$0xff]  }
 0x251   :  { %v820_v20 = vadd.f32 %v819_v15, %v10449_v40  ;;  %v821_v23 = vpop.f32.mrb[62].mxu1  ;;  %1595 = vmatprep.subr.bf16.mxu1 %v7913_v2  ;;  %v7919_v15 = vld [vmem:[#allocation2 + $0x2f4] ss:$8 sps:$4 sm:$0xff]  }
 0x252   :  { %8682 = vtanh.f32 %v818_v13  ;;  %v822_v55 = vadd.f32 %v821_v23, %v10446_v39  ;;  %v823_v24 = vpop.f32.mrb[63].mxu1  ;;  %1238 = vmatprep.mubr.bf16.mxu0 %v911_v17  ;;  %1596 = vmatpush1.bf16.msra.mxu1 %v7911_v1  ;;  %v7917_v13 = vld [vmem:[#allocation2 + $0x2f0] ss:$8 sps:$4 sm:$0xff]   ;;  %v7920_v17 = vld [vmem:[#allocation2 + $0x300] ss:$8 sps:$4 sm:$0xff]  }
 0x253   :  { %8684 = vtanh.f32 %v820_v20  ;;  %v824_v25 = vadd.f32 %v823_v24, %v10449_v40  ;;  %1239 = vmatmul.mubr.bf16.gmra.mrb[64].mxu0 %v910_v12  ;;  %1597 = vmatprep.subr.bf16.mxu1 %v7916_v3  ;;  %v7922_v20 = vld [vmem:[#allocation2 + $0x304] ss:$8 sps:$4 sm:$0xff]   ;;  %v7925_v23 = vld [vmem:[#allocation2 + $0x314] ss:$8 sps:$4 sm:$0xff]  }
 0x254   :  { %v8675_v26 = vpop.eup %8674  ;;  %8686 = vtanh.f32 %v822_v55  ;;  %2012 = vmatprep.subr.bf16.mxu0 %v7922_v20  ;;  %v7923_v55 = vld [vmem:[#allocation2 + $0x310] ss:$8 sps:$4 sm:$0xff]   ;;  %v7928_v24 = vld [vmem:[#allocation2 + $0x324] ss:$8 sps:$4 sm:$0xff]   ;;  %v7944_v20 = vld [vmem:[#allocation2 + $0x380] ss:$8 sps:$4 sm:$0xff]  }
 0x255   :  { %v8677_v28 = vpop.eup %8676  ;;  %8688 = vtanh.f32 %v824_v25  ;;  %2013 = vmatpush1.bf16.msra.mxu0 %v7920_v17  ;;  %v7305_v25 = vld [vmem:[%s11727_s3 + $0x4] sm:$0x3] }
 0x256   :  { %v8679_v32 = vpop.eup %8678  ;;  %2014 = vmatprep.subr.bf16.mxu0 %v7925_v23 }
 0x257   :  { %v8681_v56 = vpop.eup %8680  ;;  %v827_v53 = vpop.f32.mrb[64].mxu1  ;;  %v912_v4 = vpack.c.bf16 %v8679_v32, %v8675_v26  ;;  %v7926_v26 = vld [vmem:[#allocation2 + $0x320] ss:$8 sps:$4 sm:$0xff]   ;;  %v10505_v32 = vrot.slane %v7305_v25, %v10331_v50 }
 0x258   :  { %v828_v11 = vadd.f32 %v827_v53, %v10446_v39  ;;  %v829_v43 = vpop.f32.mrb[65].mxu1  ;;  %v913_v62 = vpack.c.bf16 %v8681_v56, %v8677_v28  ;;  %v7931_v28 = vld [vmem:[#allocation2 + $0x334] ss:$8 sps:$4 sm:$0xff]   ;;  %v10508_v56 = vrot.slane %v7305_v25, %v10336_v52  ;;  %v7929_v53 = vld [vmem:[#allocation2 + $0x330] ss:$8 sps:$4 sm:$0xff]  }
 0x259   :  { %v830_v7 = vadd.f32 %v829_v43, %v10449_v40  ;;  %v831_v21 = vpop.f32.mrb[66].mxu1  ;;  %2015 = vmatpush1.bf16.msra.mxu0 %v7923_v55  ;;  %v7949_v55 = vld [vmem:[#allocation2 + $0x394] ss:$8 sps:$4 sm:$0xff]  }
 0x25a   :  { %8690 = vtanh.f32 %v828_v11  ;;  %v832_v29 = vadd.f32 %v831_v21, %v10446_v39  ;;  %v833_v35 = vpop.f32.mrb[67].mxu1  ;;  %1248 = vmatprep.mubr.bf16.mxu0 %v913_v62  ;;  %2016 = vmatprep.subr.bf16.mxu0 %v7928_v24  ;;  %v7934_v11 = vld [vmem:[#allocation2 + $0x344] ss:$8 sps:$4 sm:$0xff]  }
 0x25b   :  { %8692 = vtanh.f32 %v830_v7  ;;  %v834_v41 = vadd.f32 %v833_v35, %v10449_v40  ;;  %1249 = vmatmul.mubr.bf16.gmra.mrb[68].mxu0 %v912_v4 }
 0x25c   :  { %v8683_v45 = vpop.eup %8682  ;;  %8694 = vtanh.f32 %v832_v29 }
 0x25d   :  { %v8685_v49 = vpop.eup %8684  ;;  %8696 = vtanh.f32 %v834_v41  ;;  %2017 = vmatpush1.bf16.msra.mxu0 %v7926_v26  ;;  %v7932_v41 = vld [vmem:[#allocation2 + $0x340] ss:$8 sps:$4 sm:$0xff]  }
 0x25e   :  { %v8687_v6 = vpop.eup %8686  ;;  %2018 = vmatprep.subr.bf16.mxu0 %v7931_v28  ;;  %v7947_v28 = vld [vmem:[#allocation2 + $0x390] ss:$8 sps:$4 sm:$0xff]  }
 0x25f   :  { %v8689_v16 = vpop.eup %8688  ;;  %v837_v30 = vpop.f32.mrb[68].mxu1  ;;  %v914_v33 = vpack.c.bf16 %v8687_v6, %v8683_v45  ;;  %v7935_v6 = vld [vmem:[#allocation2 + $0x350] ss:$8 sps:$4 sm:$0xff]  }
 0x260   :  { %v838_v34 = vadd.f32 %v837_v30, %v10446_v39  ;;  %v839_v37 = vpop.f32.mrb[69].mxu1  ;;  %v915_v38 = vpack.c.bf16 %v8689_v16, %v8685_v49  ;;  %v7937_v49 = vld [vmem:[#allocation2 + $0x354] ss:$8 sps:$4 sm:$0xff]   ;;  %v7940_v30 = vld [vmem:[#allocation2 + $0x364] ss:$8 sps:$4 sm:$0xff]  }
 0x261   :  { %v840_v42 = vadd.f32 %v839_v37, %v10449_v40  ;;  %v841_v44 = vpop.f32.mrb[70].mxu1  ;;  %v7914_v40 = vld [vmem:[#allocation2 + $0x2e0] ss:$8 sps:$4 sm:$0xff]   ;;  %2019 = vmatpush1.bf16.msra.mxu0 %v7929_v53 }
 0x262   :  { %8698 = vtanh.f32 %v838_v34  ;;  %1258 = vmatprep.mubr.bf16.mxu0 %v915_v38  ;;  %v842_v48 = vpop.f32.mrb[71].mxu1  ;;  %1598 = vmatpush1.bf16.msra.mxu1 %v7914_v40  ;;  %v7946_v40 = vld [vmem:[#allocation2 + $0x384] ss:$8 sps:$4 sm:$0xff]  }
 0x263   :  { %8700 = vtanh.f32 %v840_v42  ;;  %1259 = vmatmul.mubr.bf16.gmra.mrb[72].mxu0 %v914_v33  ;;  %1599 = vmatprep.subr.bf16.mxu1 %v7919_v15  ;;  %v7938_v48 = vld [vmem:[#allocation2 + $0x360] ss:$8 sps:$4 sm:$0xff]  }
 0x264   :  { %v8691_v51 = vpop.eup %8690  ;;  %2020 = vmatprep.subr.bf16.mxu0 %v7934_v11 }
 0x265   :  { %v8693_v54 = vpop.eup %8692  ;;  %2021 = vmatpush1.bf16.msra.mxu0 %v7932_v41 }
 0x266   :  { %v8695_v57 = vpop.eup %8694  ;;  %1600 = vmatpush1.bf16.msra.mxu1 %v7917_v13  ;;  %2022 = vmatprep.subr.bf16.mxu0 %v7937_v49  ;;  %v7950_v49 = vld [vmem:[#allocation2 + $0x3a0] ss:$8 sps:$4 sm:$0xff]  }
 0x267   :  { %v8697_v58 = vpop.eup %8696  ;;  %v916_v61 = vpack.c.bf16 %v8695_v57, %v8691_v51 }
 0x268   :  { %v917_v63 = vpack.c.bf16 %v8697_v58, %v8693_v54  ;;  %v7943_v54 = vld [vmem:[#allocation2 + $0x374] ss:$8 sps:$4 sm:$0xff]  }
 0x269   :  { %2023 = vmatpush1.bf16.msra.mxu0 %v7935_v6 }
 0x26a   :  { %1268 = vmatprep.mubr.bf16.mxu0 %v917_v63  ;;  %2024 = vmatprep.subr.bf16.mxu0 %v7940_v30  ;;  %v7941_v63 = vld [vmem:[#allocation2 + $0x370] ss:$8 sps:$4 sm:$0xff]  }
 0x26b   :  { %1269 = vmatmul.mubr.bf16.gmra.mrb[76].mxu0 %v916_v61 }
 0x26c   :  { %v8699_v39 = vpop.eup %8698 }
 0x26d   :  { %v8701_v5 = vpop.eup %8700  ;;  %v918_v12 = vpack.c.bf16 %v8699_v39, %v8699_v39  ;;  %2025 = vmatpush1.bf16.msra.mxu0 %v7938_v48  ;;  %v7958_v48 = vld [vmem:[#allocation2 + $0x3c4] ss:$8 sps:$4 sm:$0xff]  }
 0x26e   :  { %v919_v10 = vpack.c.bf16 %v8701_v5, %v8701_v5  ;;  %2026 = vmatprep.subr.bf16.mxu0 %v7943_v54 }
 0x270   :  { %1278 = vmatprep.mubr.bf16.mxu0 %v919_v10 }
 0x271   :  { %2027 = vmatpush1.bf16.msra.mxu0 %v7941_v63 }
 0x272   :  { %2028 = vmatprep.subr.bf16.mxu0 %v7946_v40 }
 0x273   :  { %1279 = vmatmul.mubr.bf16.gmra.mrb[80].mxu0 %v918_v12 }
 0x275   :  { %2029 = vmatpush1.bf16.msra.mxu0 %v7944_v20 }
 0x276   :  { %2030 = vmatprep.subr.bf16.mxu0 %v7949_v55 }
 0x279   :  { %2031 = vmatpush1.bf16.msra.mxu0 %v7947_v28 }
 0x2e6   :  { %v1160_v4 = vpop.f32.mrb[32].mxu0 }
 0x2e7   :  { %v1161_v43 = vadd.f32 %v1160_v4, %v10505_v32  ;;  %v1162_v62 = vpop.f32.mrb[33].mxu0 }
 0x2e8   :  { %v1163_v7 = vadd.f32 %v1162_v62, %v10508_v56  ;;  %v1164_v21 = vpop.f32.mrb[34].mxu0 }
 0x2e9   :  { %8702 = vtanh.f32 %v1161_v43  ;;  %v1165_v29 = vadd.f32 %v1164_v21, %v10505_v32  ;;  %v1166_v35 = vpop.f32.mrb[35].mxu0  ;;  %v7952_v43 = vld [vmem:[#allocation2 + $0x3a4] ss:$8 sps:$4 sm:$0xff]  }
 0x2ea   :  { %8704 = vtanh.f32 %v1163_v7  ;;  %v1167_v45 = vadd.f32 %v1166_v35, %v10508_v56  ;;  %2032 = vmatprep.subr.bf16.mxu0 %v7952_v43 }
 0x2eb   :  { %8706 = vtanh.f32 %v1165_v29  ;;  %2033 = vmatpush1.bf16.msra.mxu0 %v7950_v49 }
 0x2ec   :  { %8708 = vtanh.f32 %v1167_v45 }
 0x2ee   :  { %v1170_v16 = vpop.f32.mrb[36].mxu0 }
 0x2ef   :  { %v1171_v33 = vadd.f32 %v1170_v16, %v10505_v32  ;;  %v1172_v34 = vpop.f32.mrb[37].mxu0  ;;  %v7955_v16 = vld [vmem:[#allocation2 + $0x3b4] ss:$8 sps:$4 sm:$0xff]  }
 0x2f0   :  { %v1173_v37 = vadd.f32 %v1172_v34, %v10508_v56  ;;  %v1174_v38 = vpop.f32.mrb[38].mxu0  ;;  %2034 = vmatprep.subr.bf16.mxu0 %v7955_v16 }
 0x2f1   :  { %8710 = vtanh.f32 %v1171_v33  ;;  %v1175_v42 = vadd.f32 %v1174_v38, %v10505_v32  ;;  %v1176_v44 = vpop.f32.mrb[39].mxu0 }
 0x2f2   :  { %8712 = vtanh.f32 %v1173_v37  ;;  %v1177_v51 = vadd.f32 %v1176_v44, %v10508_v56  ;;  %v7953_v37 = vld [vmem:[#allocation2 + $0x3b0] ss:$8 sps:$4 sm:$0xff]  }
 0x2f3   :  { %v8703_v57 = vpop.eup %8702  ;;  %8714 = vtanh.f32 %v1175_v42  ;;  %2035 = vmatpush1.bf16.msra.mxu0 %v7953_v37 }
 0x2f4   :  { %v8705_v58 = vpop.eup %8704  ;;  %8716 = vtanh.f32 %v1177_v51  ;;  %2036 = vmatprep.subr.bf16.mxu0 %v7958_v48 }
 0x2f5   :  { %v8707_v61 = vpop.eup %8706 }
 0x2f6   :  { %v8709_v1 = vpop.eup %8708  ;;  %v1180_v2 = vpop.f32.mrb[40].mxu0  ;;  %v1337_v39 = vpack.c.bf16 %v8707_v61, %v8703_v57 }
 0x2f7   :  { %v1181_v3 = vadd.f32 %v1180_v2, %v10505_v32  ;;  %v1182_v5 = vpop.f32.mrb[41].mxu0  ;;  %v1338_v10 = vpack.c.bf16 %v8709_v1, %v8705_v58  ;;  %v7956_v2 = vld [vmem:[#allocation2 + $0x3c0] ss:$8 sps:$4 sm:$0xff]  }
 0x2f8   :  { %v1183_v12 = vadd.f32 %v1182_v5, %v10508_v56  ;;  %v1184_v13 = vpop.f32.mrb[42].mxu0  ;;  %2037 = vmatpush1.bf16.msra.mxu0 %v7956_v2 }
 0x2f9   :  { %8718 = vtanh.f32 %v1181_v3  ;;  %v1185_v15 = vadd.f32 %v1184_v13, %v10505_v32  ;;  %v1186_v17 = vpop.f32.mrb[43].mxu0  ;;  %1601 = vmatprep.mubr.bf16.mxu1 %v1338_v10 }
 0x2fa   :  { %8720 = vtanh.f32 %v1183_v12  ;;  %v1187_v23 = vadd.f32 %v1186_v17, %v10508_v56  ;;  %1602 = vmatmul.mubr.bf16.vlgmr.msra.gmra.mrb[72].mxu1 %v1337_v39 }
 0x2fb   :  { %v8711_v24 = vpop.eup %8710  ;;  %8722 = vtanh.f32 %v1185_v15 }
 0x2fc   :  { %v8713_v25 = vpop.eup %8712  ;;  %8724 = vtanh.f32 %v1187_v23 }
 0x2fd   :  { %v8715_v26 = vpop.eup %8714 }
 0x2fe   :  { %v8717_v53 = vpop.eup %8716  ;;  %v1190_v4 = vpop.f32.mrb[44].mxu0  ;;  %v1339_v11 = vpack.c.bf16 %v8715_v26, %v8711_v24 }
 0x2ff   :  { %v1191_v62 = vadd.f32 %v1190_v4, %v10505_v32  ;;  %v1192_v7 = vpop.f32.mrb[45].mxu0  ;;  %v1340_v21 = vpack.c.bf16 %v8717_v53, %v8713_v25 }
 0x300   :  { %v1193_v29 = vadd.f32 %v1192_v7, %v10508_v56  ;;  %v1194_v35 = vpop.f32.mrb[46].mxu0 }
 0x301   :  { %8726 = vtanh.f32 %v1191_v62  ;;  %v1195_v41 = vadd.f32 %v1194_v35, %v10505_v32  ;;  %v1196_v45 = vpop.f32.mrb[47].mxu0  ;;  %1611 = vmatprep.mubr.bf16.mxu1 %v1340_v21 }
 0x302   :  { %8728 = vtanh.f32 %v1193_v29  ;;  %v1197_v6 = vadd.f32 %v1196_v45, %v10508_v56  ;;  %1612 = vmatmul.mubr.bf16.gmra.mrb[76].mxu1 %v1339_v11 }
 0x303   :  { %v8719_v30 = vpop.eup %8718  ;;  %8730 = vtanh.f32 %v1195_v41 }
 0x304   :  { %v8721_v33 = vpop.eup %8720  ;;  %8732 = vtanh.f32 %v1197_v6 }
 0x305   :  { %v8723_v34 = vpop.eup %8722 }
 0x306   :  { %v8725_v38 = vpop.eup %8724  ;;  %v1200_v42 = vpop.f32.mrb[48].mxu0  ;;  %v1341_v44 = vpack.c.bf16 %v8723_v34, %v8719_v30 }
 0x307   :  { %v1201_v51 = vadd.f32 %v1200_v42, %v10505_v32  ;;  %v1202_v54 = vpop.f32.mrb[49].mxu0  ;;  %v1342_v57 = vpack.c.bf16 %v8725_v38, %v8721_v33 }
 0x308   :  { %v1203_v58 = vadd.f32 %v1202_v54, %v10508_v56  ;;  %v1204_v61 = vpop.f32.mrb[50].mxu0 }
 0x309   :  { %8734 = vtanh.f32 %v1201_v51  ;;  %v1205_v63 = vadd.f32 %v1204_v61, %v10505_v32  ;;  %v1206_v1 = vpop.f32.mrb[51].mxu0  ;;  %1621 = vmatprep.mubr.bf16.mxu1 %v1342_v57 }
 0x30a   :  { %8736 = vtanh.f32 %v1203_v58  ;;  %v1207_v39 = vadd.f32 %v1206_v1, %v10508_v56  ;;  %1622 = vmatmul.mubr.bf16.gmra.mrb[80].mxu1 %v1341_v44 }
 0x30b   :  { %v8727_v40 = vpop.eup %8726  ;;  %8738 = vtanh.f32 %v1205_v63 }
 0x30c   :  { %v8729_v3 = vpop.eup %8728  ;;  %8740 = vtanh.f32 %v1207_v39 }
 0x30d   :  { %v8731_v5 = vpop.eup %8730 }
 0x30e   :  { %v8733_v10 = vpop.eup %8732  ;;  %v1210_v12 = vpop.f32.mrb[52].mxu0  ;;  %v1343_v13 = vpack.c.bf16 %v8731_v5, %v8727_v40 }
 0x30f   :  { %v1211_v15 = vadd.f32 %v1210_v12, %v10505_v32  ;;  %v1212_v17 = vpop.f32.mrb[53].mxu0  ;;  %v1344_v20 = vpack.c.bf16 %v8733_v10, %v8729_v3 }
 0x310   :  { %v1213_v23 = vadd.f32 %v1212_v17, %v10508_v56  ;;  %v1214_v55 = vpop.f32.mrb[54].mxu0 }
 0x311   :  { %8742 = vtanh.f32 %v1211_v15  ;;  %v1215_v24 = vadd.f32 %v1214_v55, %v10505_v32  ;;  %v1216_v25 = vpop.f32.mrb[55].mxu0  ;;  %1631 = vmatprep.mubr.bf16.mxu1 %v1344_v20 }
 0x312   :  { %8744 = vtanh.f32 %v1213_v23  ;;  %v1217_v26 = vadd.f32 %v1216_v25, %v10508_v56  ;;  %1632 = vmatmul.mubr.bf16.gmra.mrb[84].mxu1 %v1343_v13 }
 0x313   :  { %v8735_v28 = vpop.eup %8734  ;;  %8746 = vtanh.f32 %v1215_v24 }
 0x314   :  { %v8737_v53 = vpop.eup %8736  ;;  %8748 = vtanh.f32 %v1217_v26 }
 0x315   :  { %v8739_v4 = vpop.eup %8738 }
 0x316   :  { %v8741_v11 = vpop.eup %8740  ;;  %v1220_v43 = vpop.f32.mrb[56].mxu0  ;;  %v1345_v62 = vpack.c.bf16 %v8739_v4, %v8735_v28 }
 0x317   :  { %v1221_v7 = vadd.f32 %v1220_v43, %v10505_v32  ;;  %v1222_v21 = vpop.f32.mrb[57].mxu0  ;;  %v1346_v29 = vpack.c.bf16 %v8741_v11, %v8737_v53 }
 0x318   :  { %v1223_v35 = vadd.f32 %v1222_v21, %v10508_v56  ;;  %v1224_v41 = vpop.f32.mrb[58].mxu0 }
 0x319   :  { %8750 = vtanh.f32 %v1221_v7  ;;  %v1225_v45 = vadd.f32 %v1224_v41, %v10505_v32  ;;  %v1226_v49 = vpop.f32.mrb[59].mxu0  ;;  %1641 = vmatprep.mubr.bf16.mxu1 %v1346_v29 }
 0x31a   :  { %8752 = vtanh.f32 %v1223_v35  ;;  %v1227_v6 = vadd.f32 %v1226_v49, %v10508_v56  ;;  %1642 = vmatmul.mubr.bf16.gmra.mrb[88].mxu1 %v1345_v62 }
 0x31b   :  { %v8743_v16 = vpop.eup %8742  ;;  %8754 = vtanh.f32 %v1225_v45 }
 0x31c   :  { %v8745_v30 = vpop.eup %8744  ;;  %8756 = vtanh.f32 %v1227_v6 }
 0x31d   :  { %v8747_v33 = vpop.eup %8746 }
 0x31e   :  { %v8749_v34 = vpop.eup %8748  ;;  %v1230_v37 = vpop.f32.mrb[60].mxu0  ;;  %v1347_v38 = vpack.c.bf16 %v8747_v33, %v8743_v16 }
 0x31f   :  { %v1231_v42 = vadd.f32 %v1230_v37, %v10505_v32  ;;  %v1232_v44 = vpop.f32.mrb[61].mxu0  ;;  %v1348_v48 = vpack.c.bf16 %v8749_v34, %v8745_v30 }
 0x320   :  { %v1233_v51 = vadd.f32 %v1232_v44, %v10508_v56  ;;  %v1234_v54 = vpop.f32.mrb[62].mxu0 }
 0x321   :  { %8758 = vtanh.f32 %v1231_v42  ;;  %v1235_v57 = vadd.f32 %v1234_v54, %v10505_v32  ;;  %v1236_v58 = vpop.f32.mrb[63].mxu0  ;;  %1651 = vmatprep.mubr.bf16.mxu1 %v1348_v48 }
 0x322   :  { %8760 = vtanh.f32 %v1233_v51  ;;  %v1237_v61 = vadd.f32 %v1236_v58, %v10508_v56  ;;  %1652 = vmatmul.mubr.bf16.gmra.mrb[92].mxu1 %v1347_v38 }
 0x323   :  { %v8751_v63 = vpop.eup %8750  ;;  %8762 = vtanh.f32 %v1235_v57 }
 0x324   :  { %v8753_v1 = vpop.eup %8752  ;;  %8764 = vtanh.f32 %v1237_v61 }
 0x325   :  { %v8755_v2 = vpop.eup %8754 }
 0x326   :  { %v8757_v39 = vpop.eup %8756  ;;  %v1240_v40 = vpop.f32.mrb[64].mxu0  ;;  %v1349_v3 = vpack.c.bf16 %v8755_v2, %v8751_v63 }
 0x327   :  { %v1241_v5 = vadd.f32 %v1240_v40, %v10505_v32  ;;  %v1242_v10 = vpop.f32.mrb[65].mxu0  ;;  %v1350_v12 = vpack.c.bf16 %v8757_v39, %v8753_v1 }
 0x328   :  { %v1243_v13 = vadd.f32 %v1242_v10, %v10508_v56  ;;  %v1244_v15 = vpop.f32.mrb[66].mxu0 }
 0x329   :  { %8766 = vtanh.f32 %v1241_v5  ;;  %v1245_v17 = vadd.f32 %v1244_v15, %v10505_v32  ;;  %v1246_v20 = vpop.f32.mrb[67].mxu0  ;;  %1661 = vmatprep.mubr.bf16.mxu1 %v1350_v12 }
 0x32a   :  { %8768 = vtanh.f32 %v1243_v13  ;;  %v1247_v23 = vadd.f32 %v1246_v20, %v10508_v56  ;;  %1662 = vmatmul.mubr.bf16.gmra.mrb[96].mxu1 %v1349_v3 }
 0x32b   :  { %v8759_v55 = vpop.eup %8758  ;;  %8770 = vtanh.f32 %v1245_v17 }
 0x32c   :  { %v8761_v24 = vpop.eup %8760  ;;  %8772 = vtanh.f32 %v1247_v23 }
 0x32d   :  { %v8763_v25 = vpop.eup %8762 }
 0x32e   :  { %v8765_v26 = vpop.eup %8764  ;;  %v1250_v28 = vpop.f32.mrb[68].mxu0  ;;  %v1351_v53 = vpack.c.bf16 %v8763_v25, %v8759_v55 }
 0x32f   :  { %v1251_v4 = vadd.f32 %v1250_v28, %v10505_v32  ;;  %v1252_v11 = vpop.f32.mrb[69].mxu0  ;;  %v1352_v43 = vpack.c.bf16 %v8765_v26, %v8761_v24 }
 0x330   :  { %v1253_v62 = vadd.f32 %v1252_v11, %v10508_v56  ;;  %v1254_v7 = vpop.f32.mrb[70].mxu0 }
 0x331   :  { %8774 = vtanh.f32 %v1251_v4  ;;  %v1255_v21 = vadd.f32 %v1254_v7, %v10505_v32  ;;  %v1256_v29 = vpop.f32.mrb[71].mxu0  ;;  %1671 = vmatprep.mubr.bf16.mxu1 %v1352_v43 }
 0x332   :  { %8776 = vtanh.f32 %v1253_v62  ;;  %v1257_v35 = vadd.f32 %v1256_v29, %v10508_v56  ;;  %1672 = vmatmul.mubr.bf16.gmra.mrb[100].mxu1 %v1351_v53 }
 0x333   :  { %v8767_v41 = vpop.eup %8766  ;;  %8778 = vtanh.f32 %v1255_v21 }
 0x334   :  { %v8769_v45 = vpop.eup %8768  ;;  %8780 = vtanh.f32 %v1257_v35 }
 0x335   :  { %v8771_v49 = vpop.eup %8770 }
 0x336   :  { %v8773_v6 = vpop.eup %8772  ;;  %v1260_v16 = vpop.f32.mrb[72].mxu0  ;;  %v1353_v30 = vpack.c.bf16 %v8771_v49, %v8767_v41  ;;  %v7959_v41 = vld [vmem:[#allocation2 + $0x3d0] ss:$8 sps:$4 sm:$0xff]  }
 0x337   :  { %v1261_v33 = vadd.f32 %v1260_v16, %v10505_v32  ;;  %v1262_v34 = vpop.f32.mrb[73].mxu0  ;;  %v1354_v37 = vpack.c.bf16 %v8773_v6, %v8769_v45  ;;  %v7961_v45 = vld [vmem:[#allocation2 + $0x3d4] ss:$8 sps:$4 sm:$0xff]  }
 0x338   :  { %v1263_v38 = vadd.f32 %v1262_v34, %v10508_v56  ;;  %v1264_v42 = vpop.f32.mrb[74].mxu0  ;;  %2038 = vmatprep.subr.bf16.mxu0 %v7961_v45  ;;  %v7967_v34 = vld [vmem:[#allocation2 + $0x3f4] ss:$8 sps:$4 sm:$0xff]   ;;  %v7973_v45 = vld [vmem:[#allocation2 + $0x410] ss:$8 sps:$4 sm:$0xff]  }
 0x339   :  { %8782 = vtanh.f32 %v1261_v33  ;;  %v1265_v44 = vadd.f32 %v1264_v42, %v10505_v32  ;;  %v1266_v48 = vpop.f32.mrb[75].mxu0  ;;  %1681 = vmatprep.mubr.bf16.mxu1 %v1354_v37  ;;  %2039 = vmatpush1.bf16.msra.mxu0 %v7959_v41  ;;  %v7965_v33 = vld [vmem:[#allocation2 + $0x3f0] ss:$8 sps:$4 sm:$0xff]   ;;  %v2616_v37 = vld [vmem:[%s11728_s4] sm:$0xff] }
 0x33a   :  { %8784 = vtanh.f32 %v1263_v38  ;;  %v1267_v51 = vadd.f32 %v1266_v48, %v10508_v56  ;;  %1682 = vmatmul.mubr.bf16.gmra.mrb[104].mxu1 %v1353_v30  ;;  %v7438_v38 = vcombine.high %v2616_v37, %v2616_v37  ;;  %v7338_v42 = vld [vmem:[%s11727_s3 + $0x6] sm:$0x3] }
 0x33b   :  { %v8775_v54 = vpop.eup %8774  ;;  %8786 = vtanh.f32 %v1265_v44  ;;  %v10568_v44 = vrot.slane %v7338_v42, %v10331_v50  ;;  %v10571_v48 = vrot.slane %v7338_v42, %v10336_v52 }
 0x33c   :  { %v8777_v57 = vpop.eup %8776  ;;  %8788 = vtanh.f32 %v1267_v51 }
 0x33d   :  { %v8779_v58 = vpop.eup %8778 }
 0x33e   :  { %v8781_v61 = vpop.eup %8780  ;;  %v1270_v63 = vpop.f32.mrb[76].mxu0  ;;  %v1355_v1 = vpack.c.bf16 %v8779_v58, %v8775_v54 }
 0x33f   :  { %v1271_v2 = vadd.f32 %v1270_v63, %v10505_v32  ;;  %v1272_v39 = vpop.f32.mrb[77].mxu0  ;;  %v1356_v40 = vpack.c.bf16 %v8781_v61, %v8777_v57 }
 0x340   :  { %v1273_v3 = vadd.f32 %v1272_v39, %v10508_v56  ;;  %v1274_v5 = vpop.f32.mrb[78].mxu0 }
 0x341   :  { %8790 = vtanh.f32 %v1271_v2  ;;  %v1275_v10 = vadd.f32 %v1274_v5, %v10505_v32  ;;  %v1276_v12 = vpop.f32.mrb[79].mxu0  ;;  %1691 = vmatprep.mubr.bf16.mxu1 %v1356_v40 }
 0x342   :  { %8792 = vtanh.f32 %v1273_v3  ;;  %v1277_v13 = vadd.f32 %v1276_v12, %v10508_v56  ;;  %1692 = vmatmul.mubr.bf16.gmra.mrb[108].mxu1 %v1355_v1 }
 0x343   :  { %v8783_v15 = vpop.eup %8782  ;;  %8794 = vtanh.f32 %v1275_v10 }
 0x344   :  { %v8785_v17 = vpop.eup %8784  ;;  %8796 = vtanh.f32 %v1277_v13 }
 0x345   :  { %v8787_v20 = vpop.eup %8786 }
 0x346   :  { %v8789_v23 = vpop.eup %8788  ;;  %v1280_v55 = vpop.f32.mrb[80].mxu0  ;;  %v1357_v24 = vpack.c.bf16 %v8787_v20, %v8783_v15  ;;  %v7972_v20 = vld [vmem:[#allocation2 + $0x404] ss:$8 sps:$4 sm:$0xff]  }
 0x347   :  { %v1281_v25 = vadd.f32 %v1280_v55, %v10505_v32  ;;  %v1282_v26 = vpop.f32.mrb[81].mxu0  ;;  %v1358_v28 = vpack.c.bf16 %v8789_v23, %v8785_v17  ;;  %v7962_v32 = vld [vmem:[#allocation2 + $0x3e0] ss:$8 sps:$4 sm:$0xff]   ;;  %2455 = vmatprep.subr.bf16.mxu1 %v7972_v20 }
 0x348   :  { %v1283_v53 = vadd.f32 %v1282_v26, %v10508_v56  ;;  %v1284_v4 = vpop.f32.mrb[82].mxu0  ;;  %v7964_v56 = vld [vmem:[#allocation2 + $0x3e4] ss:$8 sps:$4 sm:$0xff]   ;;  %v7970_v17 = vld [vmem:[#allocation2 + $0x400] ss:$8 sps:$4 sm:$0xff]  }
 0x349   :  { %v1285_v11 = vpop.f32.mrb[83].mxu0  ;;  %1701 = vmatprep.mubr.bf16.mxu1 %v1358_v28  ;;  %2040 = vmatprep.subr.bf16.mxu0 %v7964_v56 }
 0x34a   :  { %8798 = vtanh.f32 %v1283_v53  ;;  %1702 = vmatmul.mubr.bf16.gmra.mrb[112].mxu1 %v1357_v24  ;;  %2041 = vmatpush1.bf16.msra.mxu0 %v7962_v32  ;;  %v7437_v24 = vcombine.low %v2616_v37, %v2616_v37  ;;  %v7975_v32 = vld [vmem:[#allocation2 + $0x414] ss:$8 sps:$4 sm:$0xff]  }
 0x34b   :  { %v8791_v43 = vpop.eup %8790  ;;  %8800 = vtanh.f32 %v1281_v25  ;;  %2042 = vmatprep.subr.bf16.mxu0 %v7967_v34  ;;  %2456 = vmatpush1.bf16.msra.mxu1 %v7970_v17 }
 0x34c   :  { %v8793_v62 = vpop.eup %8792  ;;  %2457 = vmatprep.subr.bf16.mxu1 %v7975_v32 }
 0x34d   :  { %v8795_v7 = vpop.eup %8794 }
 0x34e   :  { %v8797_v21 = vpop.eup %8796  ;;  %v1359_v29 = vpack.c.bf16 %v8795_v7, %v8791_v43  ;;  %2043 = vmatpush1.bf16.msra.mxu0 %v7965_v33 }
 0x34f   :  { %v1360_v35 = vpack.c.bf16 %v8797_v21, %v8793_v62  ;;  %7439 = vmatprep.subr.msk.bf16.mxu0 %vm234_vm0, %v7438_v38  ;;  %v2635_v21 = vsel %vm234_vm0, %v7437_v24, 0  ;;  %2458 = vmatpush1.bf16.msra.mxu1 %v7973_v45  ;;  %v7979_v24 = vld [vmem:[#allocation2 + $0x430] ss:$8 sps:$4 sm:$0xff]  }
 0x351   :  { %1711 = vmatprep.mubr.bf16.mxu1 %v1360_v35 }
 0x352   :  { %1712 = vmatmul.mubr.bf16.gmra.mrb[116].mxu1 %v1359_v29 }
 0x354   :  { %v8799_v49 = vpop.eup %8798 }
 0x355   :  { %v8801_v6 = vpop.eup %8800  ;;  %v1362_v16 = vpack.c.bf16 %v8799_v49, %v8799_v49 }
 0x356   :  { %v1361_v30 = vpack.c.bf16 %v8801_v6, %v8801_v6 }
 0x357   :  { %1721 = vmatprep.mubr.bf16.mxu1 %v1362_v16 }
 0x35a   :  { %1722 = vmatmul.mubr.bf16.gmra.mrb[120].mxu1 %v1361_v30 }
 0x3cd   :  { %v1603_v51 = vpop.f32.mrb[72].mxu1 }
 0x3ce   :  { %v1604_v54 = vadd.f32 %v1603_v51, %v10568_v44  ;;  %v1605_v57 = vpop.f32.mrb[73].mxu1 }
 0x3cf   :  { %v1606_v58 = vadd.f32 %v1605_v57, %v10571_v48  ;;  %v1607_v61 = vpop.f32.mrb[74].mxu1 }
 0x3d0   :  { %8802 = vtanh.f32 %v1604_v54  ;;  %v1608_v63 = vadd.f32 %v1607_v61, %v10568_v44  ;;  %v1609_v1 = vpop.f32.mrb[75].mxu1  ;;  %v7976_v61 = vld [vmem:[#allocation2 + $0x420] ss:$8 sps:$4 sm:$0xff]  }
 0x3d1   :  { %8804 = vtanh.f32 %v1606_v58  ;;  %v1610_v2 = vadd.f32 %v1609_v1, %v10571_v48 }
 0x3d2   :  { %8806 = vtanh.f32 %v1608_v63  ;;  %v7978_v63 = vld [vmem:[#allocation2 + $0x424] ss:$8 sps:$4 sm:$0xff]  }
 0x3d3   :  { %8808 = vtanh.f32 %v1610_v2  ;;  %2459 = vmatprep.subr.bf16.mxu1 %v7978_v63 }
 0x3d4   :  { %2460 = vmatpush1.bf16.msra.mxu1 %v7976_v61 }
 0x3d5   :  { %v1613_v39 = vpop.f32.mrb[76].mxu1 }
 0x3d6   :  { %v1614_v40 = vadd.f32 %v1613_v39, %v10568_v44  ;;  %v1615_v3 = vpop.f32.mrb[77].mxu1 }
 0x3d7   :  { %v1616_v5 = vadd.f32 %v1615_v3, %v10571_v48  ;;  %v1617_v10 = vpop.f32.mrb[78].mxu1 }
 0x3d8   :  { %8810 = vtanh.f32 %v1614_v40  ;;  %v1618_v12 = vadd.f32 %v1617_v10, %v10568_v44  ;;  %v1619_v13 = vpop.f32.mrb[79].mxu1 }
 0x3d9   :  { %8812 = vtanh.f32 %v1616_v5  ;;  %v1620_v15 = vadd.f32 %v1619_v13, %v10571_v48 }
 0x3da   :  { %v8803_v23 = vpop.eup %8802  ;;  %8814 = vtanh.f32 %v1618_v12 }
 0x3db   :  { %v8805_v55 = vpop.eup %8804  ;;  %8816 = vtanh.f32 %v1620_v15 }
 0x3dc   :  { %v8807_v25 = vpop.eup %8806 }
 0x3dd   :  { %v8809_v26 = vpop.eup %8808  ;;  %v1623_v28 = vpop.f32.mrb[80].mxu1  ;;  %v1780_v53 = vpack.c.bf16 %v8807_v25, %v8803_v23  ;;  %v7981_v25 = vld [vmem:[#allocation2 + $0x434] ss:$8 sps:$4 sm:$0xff]  }
 0x3de   :  { %v1624_v4 = vadd.f32 %v1623_v28, %v10568_v44  ;;  %v1625_v11 = vpop.f32.mrb[81].mxu1  ;;  %v1781_v43 = vpack.c.bf16 %v8809_v26, %v8805_v55  ;;  %v7984_v28 = vld [vmem:[#allocation2 + $0x444] ss:$8 sps:$4 sm:$0xff]   ;;  %2461 = vmatprep.subr.bf16.mxu1 %v7981_v25 }
 0x3df   :  { %v1626_v62 = vadd.f32 %v1625_v11, %v10571_v48  ;;  %v1627_v7 = vpop.f32.mrb[82].mxu1  ;;  %2462 = vmatpush1.bf16.msra.mxu1 %v7979_v24  ;;  %v7982_v11 = vld [vmem:[#allocation2 + $0x440] ss:$8 sps:$4 sm:$0xff]  }
 0x3e0   :  { %8818 = vtanh.f32 %v1624_v4  ;;  %v1628_v29 = vadd.f32 %v1627_v7, %v10568_v44  ;;  %v1629_v35 = vpop.f32.mrb[83].mxu1  ;;  %2044 = vmatprep.mubr.bf16.mxu0 %v1781_v43  ;;  %2463 = vmatprep.subr.bf16.mxu1 %v7984_v28 }
 0x3e1   :  { %8820 = vtanh.f32 %v1626_v62  ;;  %v1630_v41 = vadd.f32 %v1629_v35, %v10571_v48  ;;  %2045 = vmatmul.mubr.bf16.vlgmr.msra.gmra.mrb[84].mxu0 %v1780_v53 }
 0x3e2   :  { %v8811_v56 = vpop.eup %8810  ;;  %8822 = vtanh.f32 %v1628_v29  ;;  %2641 = vmatpush1.bf16.msra.mxu0 %v2635_v21 }
 0x3e3   :  { %v8813_v49 = vpop.eup %8812  ;;  %8824 = vtanh.f32 %v1630_v41  ;;  %2464 = vmatpush1.bf16.msra.mxu1 %v7982_v11 }
 0x3e4   :  { %v8815_v6 = vpop.eup %8814 }
 0x3e5   :  { %v8817_v16 = vpop.eup %8816  ;;  %v1633_v30 = vpop.f32.mrb[84].mxu1  ;;  %v1782_v33 = vpack.c.bf16 %v8815_v6, %v8811_v56  ;;  %v7985_v6 = vld [vmem:[#allocation2 + $0x450] ss:$8 sps:$4 sm:$0xff]  }
 0x3e6   :  { %v1634_v34 = vadd.f32 %v1633_v30, %v10568_v44  ;;  %v1635_v37 = vpop.f32.mrb[85].mxu1  ;;  %v1783_v38 = vpack.c.bf16 %v8817_v16, %v8813_v49  ;;  %v7987_v16 = vld [vmem:[#allocation2 + $0x454] ss:$8 sps:$4 sm:$0xff]  }
 0x3e7   :  { %v1636_v42 = vadd.f32 %v1635_v37, %v10571_v48  ;;  %v1637_v51 = vpop.f32.mrb[86].mxu1  ;;  %2465 = vmatprep.subr.bf16.mxu1 %v7987_v16 }
 0x3e8   :  { %8826 = vtanh.f32 %v1634_v34  ;;  %v1638_v54 = vadd.f32 %v1637_v51, %v10568_v44  ;;  %v1639_v57 = vpop.f32.mrb[87].mxu1  ;;  %2054 = vmatprep.mubr.bf16.mxu0 %v1783_v38  ;;  %2466 = vmatpush1.bf16.msra.mxu1 %v7985_v6 }
 0x3e9   :  { %8828 = vtanh.f32 %v1636_v42  ;;  %v1640_v58 = vadd.f32 %v1639_v57, %v10571_v48  ;;  %2055 = vmatmul.mubr.bf16.gmra.mrb[88].mxu0 %v1782_v33 }
 0x3ea   :  { %v8819_v1 = vpop.eup %8818  ;;  %8830 = vtanh.f32 %v1638_v54 }
 0x3eb   :  { %v8821_v2 = vpop.eup %8820  ;;  %8832 = vtanh.f32 %v1640_v58 }
 0x3ec   :  { %v8823_v39 = vpop.eup %8822 }
 0x3ed   :  { %v8825_v40 = vpop.eup %8824  ;;  %v1643_v3 = vpop.f32.mrb[88].mxu1  ;;  %v1784_v5 = vpack.c.bf16 %v8823_v39, %v8819_v1  ;;  %v7988_v39 = vld [vmem:[#allocation2 + $0x460] ss:$8 sps:$4 sm:$0xff]  }
 0x3ee   :  { %v1644_v10 = vadd.f32 %v1643_v3, %v10568_v44  ;;  %v1645_v12 = vpop.f32.mrb[89].mxu1  ;;  %v1785_v13 = vpack.c.bf16 %v8825_v40, %v8821_v2  ;;  %v7990_v40 = vld [vmem:[#allocation2 + $0x464] ss:$8 sps:$4 sm:$0xff]  }
 0x3ef   :  { %v1646_v15 = vadd.f32 %v1645_v12, %v10571_v48  ;;  %v1647_v17 = vpop.f32.mrb[90].mxu1  ;;  %2467 = vmatprep.subr.bf16.mxu1 %v7990_v40 }
 0x3f0   :  { %8834 = vtanh.f32 %v1644_v10  ;;  %v1648_v20 = vadd.f32 %v1647_v17, %v10568_v44  ;;  %v1649_v23 = vpop.f32.mrb[91].mxu1  ;;  %2064 = vmatprep.mubr.bf16.mxu0 %v1785_v13  ;;  %2468 = vmatpush1.bf16.msra.mxu1 %v7988_v39 }
 0x3f1   :  { %8836 = vtanh.f32 %v1646_v15  ;;  %v1650_v55 = vadd.f32 %v1649_v23, %v10571_v48  ;;  %2065 = vmatmul.mubr.bf16.gmra.mrb[92].mxu0 %v1784_v5 }
 0x3f2   :  { %v8827_v26 = vpop.eup %8826  ;;  %8838 = vtanh.f32 %v1648_v20 }
 0x3f3   :  { %v8829_v53 = vpop.eup %8828  ;;  %8840 = vtanh.f32 %v1650_v55 }
 0x3f4   :  { %v8831_v4 = vpop.eup %8830 }
 0x3f5   :  { %v8833_v43 = vpop.eup %8832  ;;  %v1653_v62 = vpop.f32.mrb[92].mxu1  ;;  %v1786_v7 = vpack.c.bf16 %v8831_v4, %v8827_v26  ;;  %v7993_v4 = vld [vmem:[#allocation2 + $0x474] ss:$8 sps:$4 sm:$0xff]  }
 0x3f6   :  { %v1654_v21 = vadd.f32 %v1653_v62, %v10568_v44  ;;  %v1655_v29 = vpop.f32.mrb[93].mxu1  ;;  %v1787_v35 = vpack.c.bf16 %v8833_v43, %v8829_v53  ;;  %v7991_v53 = vld [vmem:[#allocation2 + $0x470] ss:$8 sps:$4 sm:$0xff]   ;;  %2469 = vmatprep.subr.bf16.mxu1 %v7993_v4 }
 0x3f7   :  { %v1656_v41 = vadd.f32 %v1655_v29, %v10571_v48  ;;  %v1657_v45 = vpop.f32.mrb[94].mxu1  ;;  %2470 = vmatpush1.bf16.msra.mxu1 %v7991_v53 }
 0x3f8   :  { %8842 = vtanh.f32 %v1654_v21  ;;  %v1658_v32 = vadd.f32 %v1657_v45, %v10568_v44  ;;  %v1659_v56 = vpop.f32.mrb[95].mxu1  ;;  %2074 = vmatprep.mubr.bf16.mxu0 %v1787_v35 }
 0x3f9   :  { %8844 = vtanh.f32 %v1656_v41  ;;  %v1660_v49 = vadd.f32 %v1659_v56, %v10571_v48  ;;  %2075 = vmatmul.mubr.bf16.gmra.mrb[96].mxu0 %v1786_v7 }
 0x3fa   :  { %v8835_v30 = vpop.eup %8834  ;;  %8846 = vtanh.f32 %v1658_v32 }
 0x3fb   :  { %v8837_v33 = vpop.eup %8836  ;;  %8848 = vtanh.f32 %v1660_v49 }
 0x3fc   :  { %v8839_v34 = vpop.eup %8838 }
 0x3fd   :  { %v8841_v37 = vpop.eup %8840  ;;  %v1663_v38 = vpop.f32.mrb[96].mxu1  ;;  %v1788_v42 = vpack.c.bf16 %v8839_v34, %v8835_v30  ;;  %v7994_v30 = vld [vmem:[#allocation2 + $0x480] ss:$8 sps:$4 sm:$0xff]  }
 0x3fe   :  { %v1664_v51 = vadd.f32 %v1663_v38, %v10568_v44  ;;  %v1665_v54 = vpop.f32.mrb[97].mxu1  ;;  %v1789_v57 = vpack.c.bf16 %v8841_v37, %v8837_v33  ;;  %v7996_v33 = vld [vmem:[#allocation2 + $0x484] ss:$8 sps:$4 sm:$0xff]  }
 0x3ff   :  { %v1666_v58 = vadd.f32 %v1665_v54, %v10571_v48  ;;  %v1667_v61 = vpop.f32.mrb[98].mxu1  ;;  %2471 = vmatprep.subr.bf16.mxu1 %v7996_v33 }
 0x400   :  { %8850 = vtanh.f32 %v1664_v51  ;;  %v1668_v63 = vadd.f32 %v1667_v61, %v10568_v44  ;;  %v1669_v1 = vpop.f32.mrb[99].mxu1  ;;  %2084 = vmatprep.mubr.bf16.mxu0 %v1789_v57  ;;  %2472 = vmatpush1.bf16.msra.mxu1 %v7994_v30 }
 0x401   :  { %8852 = vtanh.f32 %v1666_v58  ;;  %v1670_v2 = vadd.f32 %v1669_v1, %v10571_v48  ;;  %2085 = vmatmul.mubr.bf16.gmra.mrb[100].mxu0 %v1788_v42 }
 0x402   :  { %v8843_v3 = vpop.eup %8842  ;;  %8854 = vtanh.f32 %v1668_v63 }
 0x403   :  { %v8845_v5 = vpop.eup %8844  ;;  %8856 = vtanh.f32 %v1670_v2 }
 0x404   :  { %v8847_v10 = vpop.eup %8846 }
 0x405   :  { %v8849_v12 = vpop.eup %8848  ;;  %v1673_v13 = vpop.f32.mrb[100].mxu1  ;;  %v1790_v15 = vpack.c.bf16 %v8847_v10, %v8843_v3  ;;  %v7997_v3 = vld [vmem:[#allocation2 + $0x490] ss:$8 sps:$4 sm:$0xff]  }
 0x406   :  { %v1674_v17 = vadd.f32 %v1673_v13, %v10568_v44  ;;  %v1675_v20 = vpop.f32.mrb[101].mxu1  ;;  %v1791_v23 = vpack.c.bf16 %v8849_v12, %v8845_v5  ;;  %v7999_v5 = vld [vmem:[#allocation2 + $0x494] ss:$8 sps:$4 sm:$0xff]   ;;  %v8002_v12 = vld [vmem:[#allocation2 + $0x4a4] ss:$8 sps:$4 sm:$0xff]  }
 0x407   :  { %v1676_v55 = vadd.f32 %v1675_v20, %v10571_v48  ;;  %v1677_v24 = vpop.f32.mrb[102].mxu1  ;;  %2473 = vmatprep.subr.bf16.mxu1 %v7999_v5 }
 0x408   :  { %8858 = vtanh.f32 %v1674_v17  ;;  %v1678_v25 = vadd.f32 %v1677_v24, %v10568_v44  ;;  %v1679_v26 = vpop.f32.mrb[103].mxu1  ;;  %2094 = vmatprep.mubr.bf16.mxu0 %v1791_v23  ;;  %2474 = vmatpush1.bf16.msra.mxu1 %v7997_v3  ;;  %v8000_v17 = vld [vmem:[#allocation2 + $0x4a0] ss:$8 sps:$4 sm:$0xff]  }
 0x409   :  { %8860 = vtanh.f32 %v1676_v55  ;;  %v1680_v28 = vadd.f32 %v1679_v26, %v10571_v48  ;;  %2095 = vmatmul.mubr.bf16.gmra.mrb[104].mxu0 %v1790_v15  ;;  %2475 = vmatprep.subr.bf16.mxu1 %v8002_v12 }
 0x40a   :  { %v8851_v11 = vpop.eup %8850  ;;  %8862 = vtanh.f32 %v1678_v25 }
 0x40b   :  { %v8853_v43 = vpop.eup %8852  ;;  %8864 = vtanh.f32 %v1680_v28 }
 0x40c   :  { %v8855_v62 = vpop.eup %8854  ;;  %2476 = vmatpush1.bf16.msra.mxu1 %v8000_v17 }
 0x40d   :  { %v8857_v7 = vpop.eup %8856  ;;  %v1683_v21 = vpop.f32.mrb[104].mxu1  ;;  %v1792_v29 = vpack.c.bf16 %v8855_v62, %v8851_v11  ;;  %v8003_v62 = vld [vmem:[#allocation2 + $0x4b0] ss:$8 sps:$4 sm:$0xff]  }
 0x40e   :  { %v1684_v35 = vadd.f32 %v1683_v21, %v10568_v44  ;;  %v1685_v41 = vpop.f32.mrb[105].mxu1  ;;  %v1793_v45 = vpack.c.bf16 %v8857_v7, %v8853_v43  ;;  %v8005_v7 = vld [vmem:[#allocation2 + $0x4b4] ss:$8 sps:$4 sm:$0xff]  }
 0x40f   :  { %v1686_v32 = vadd.f32 %v1685_v41, %v10571_v48  ;;  %v1687_v56 = vpop.f32.mrb[106].mxu1  ;;  %2477 = vmatprep.subr.bf16.mxu1 %v8005_v7 }
 0x410   :  { %8866 = vtanh.f32 %v1684_v35  ;;  %v1688_v49 = vadd.f32 %v1687_v56, %v10568_v44  ;;  %v1689_v6 = vpop.f32.mrb[107].mxu1  ;;  %2104 = vmatprep.mubr.bf16.mxu0 %v1793_v45  ;;  %2478 = vmatpush1.bf16.msra.mxu1 %v8003_v62 }
 0x411   :  { %8868 = vtanh.f32 %v1686_v32  ;;  %v1690_v16 = vadd.f32 %v1689_v6, %v10571_v48  ;;  %2105 = vmatmul.mubr.bf16.gmra.mrb[108].mxu0 %v1792_v29 }
 0x412   :  { %v8859_v34 = vpop.eup %8858  ;;  %8870 = vtanh.f32 %v1688_v49 }
 0x413   :  { %v8861_v37 = vpop.eup %8860  ;;  %8872 = vtanh.f32 %v1690_v16 }
 0x414   :  { %v8863_v38 = vpop.eup %8862 }
 0x415   :  { %v8865_v42 = vpop.eup %8864  ;;  %v1693_v51 = vpop.f32.mrb[108].mxu1  ;;  %v1794_v54 = vpack.c.bf16 %v8863_v38, %v8859_v34  ;;  %v8006_v38 = vld [vmem:[#allocation2 + $0x4c0] ss:$8 sps:$4 sm:$0xff]  }
 0x416   :  { %v1694_v57 = vadd.f32 %v1693_v51, %v10568_v44  ;;  %v1695_v58 = vpop.f32.mrb[109].mxu1  ;;  %v1795_v61 = vpack.c.bf16 %v8865_v42, %v8861_v37  ;;  %v8008_v42 = vld [vmem:[#allocation2 + $0x4c4] ss:$8 sps:$4 sm:$0xff]  }
 0x417   :  { %v1696_v63 = vadd.f32 %v1695_v58, %v10571_v48  ;;  %v1697_v1 = vpop.f32.mrb[110].mxu1  ;;  %2479 = vmatprep.subr.bf16.mxu1 %v8008_v42 }
 0x418   :  { %8874 = vtanh.f32 %v1694_v57  ;;  %v1698_v2 = vadd.f32 %v1697_v1, %v10568_v44  ;;  %v1699_v39 = vpop.f32.mrb[111].mxu1  ;;  %2114 = vmatprep.mubr.bf16.mxu0 %v1795_v61  ;;  %2480 = vmatpush1.bf16.msra.mxu1 %v8006_v38 }
 0x419   :  { %8876 = vtanh.f32 %v1696_v63  ;;  %v1700_v40 = vadd.f32 %v1699_v39, %v10571_v48  ;;  %2115 = vmatmul.mubr.bf16.gmra.mrb[112].mxu0 %v1794_v54 }
 0x41a   :  { %v8867_v10 = vpop.eup %8866  ;;  %8878 = vtanh.f32 %v1698_v2 }
 0x41b   :  { %v8869_v13 = vpop.eup %8868  ;;  %8880 = vtanh.f32 %v1700_v40 }
 0x41c   :  { %v8871_v15 = vpop.eup %8870 }
 0x41d   :  { %v8873_v20 = vpop.eup %8872  ;;  %v1703_v23 = vpop.f32.mrb[112].mxu1  ;;  %v1796_v55 = vpack.c.bf16 %v8871_v15, %v8867_v10 }
 0x41e   :  { %v1704_v24 = vadd.f32 %v1703_v23, %v10568_v44  ;;  %v1705_v25 = vpop.f32.mrb[113].mxu1  ;;  %v1797_v26 = vpack.c.bf16 %v8873_v20, %v8869_v13  ;;  %v8009_v23 = vld [vmem:[#allocation2 + $0x4d0] ss:$8 sps:$4 sm:$0xff]  }
 0x41f   :  { %v1706_v28 = vadd.f32 %v1705_v25, %v10571_v48  ;;  %v1707_v53 = vpop.f32.mrb[114].mxu1 }
 0x420   :  { %8882 = vtanh.f32 %v1704_v24  ;;  %v1708_v4 = vadd.f32 %v1707_v53, %v10568_v44  ;;  %v1709_v11 = vpop.f32.mrb[115].mxu1  ;;  %2124 = vmatprep.mubr.bf16.mxu0 %v1797_v26  ;;  %v8015_v53 = vld [vmem:[#allocation2 + $0x4f0] ss:$8 sps:$4 sm:$0xff]  }
 0x421   :  { %8884 = vtanh.f32 %v1706_v28  ;;  %v1710_v43 = vadd.f32 %v1709_v11, %v10571_v48  ;;  %2125 = vmatmul.mubr.bf16.gmra.mrb[116].mxu0 %v1796_v55  ;;  %v8011_v55 = vld [vmem:[#allocation2 + $0x4d4] ss:$8 sps:$4 sm:$0xff]   ;;  %v8020_v11 = vld [vmem:[#allocation4 + $0x4] ss:$8 sps:$4 sm:$0xff]  }
 0x422   :  { %v8875_v21 = vpop.eup %8874  ;;  %8886 = vtanh.f32 %v1708_v4  ;;  %2481 = vmatprep.subr.bf16.mxu1 %v8011_v55  ;;  %v8017_v4 = vld [vmem:[#allocation2 + $0x4f4] ss:$8 sps:$4 sm:$0xff]   ;;  %v8026_v55 = vld [vmem:[#allocation4 + $0x24] ss:$8 sps:$4 sm:$0xff]  }
 0x423   :  { %v8877_v29 = vpop.eup %8876  ;;  %8888 = vtanh.f32 %v1710_v43  ;;  %2482 = vmatpush1.bf16.msra.mxu1 %v8009_v23  ;;  %v7371_v43 = vld [vmem:[%s11727_s3 + $0x8] sm:$0x3] }
 0x424   :  { %v8879_v35 = vpop.eup %8878  ;;  %v10667_v62 = vrot.slane %v7371_v43, %v10331_v50  ;;  %v10670_v7 = vrot.slane %v7371_v43, %v10336_v52 }
 0x425   :  { %v8881_v41 = vpop.eup %8880  ;;  %v1713_v45 = vpop.f32.mrb[116].mxu1  ;;  %v1798_v32 = vpack.c.bf16 %v8879_v35, %v8875_v21 }
 0x426   :  { %v1714_v56 = vadd.f32 %v1713_v45, %v10568_v44  ;;  %v1715_v49 = vpop.f32.mrb[117].mxu1  ;;  %v1799_v6 = vpack.c.bf16 %v8881_v41, %v8877_v29 }
 0x427   :  { %v1716_v16 = vadd.f32 %v1715_v49, %v10571_v48  ;;  %v1717_v30 = vpop.f32.mrb[118].mxu1 }
 0x428   :  { %8890 = vtanh.f32 %v1714_v56  ;;  %v1718_v33 = vadd.f32 %v1717_v30, %v10568_v44  ;;  %v1719_v34 = vpop.f32.mrb[119].mxu1  ;;  %2134 = vmatprep.mubr.bf16.mxu0 %v1799_v6 }
 0x429   :  { %8892 = vtanh.f32 %v1716_v16  ;;  %v1720_v37 = vadd.f32 %v1719_v34, %v10571_v48  ;;  %2135 = vmatmul.mubr.bf16.gmra.mrb[120].mxu0 %v1798_v32 }
 0x42a   :  { %v8883_v51 = vpop.eup %8882  ;;  %8894 = vtanh.f32 %v1718_v33 }
 0x42b   :  { %v8885_v54 = vpop.eup %8884  ;;  %8896 = vtanh.f32 %v1720_v37 }
 0x42c   :  { %v8887_v57 = vpop.eup %8886 }
 0x42d   :  { %v8889_v58 = vpop.eup %8888  ;;  %v1723_v61 = vpop.f32.mrb[120].mxu1  ;;  %v1800_v63 = vpack.c.bf16 %v8887_v57, %v8883_v51 }
 0x42e   :  { %v1724_v1 = vadd.f32 %v1723_v61, %v10568_v44  ;;  %v1725_v2 = vpop.f32.mrb[121].mxu1  ;;  %v1801_v39 = vpack.c.bf16 %v8889_v58, %v8885_v54  ;;  %v8012_v44 = vld [vmem:[#allocation2 + $0x4e0] ss:$8 sps:$4 sm:$0xff]  }
 0x42f   :  { %v1726_v40 = vadd.f32 %v1725_v2, %v10571_v48  ;;  %v1727_v3 = vpop.f32.mrb[122].mxu1  ;;  %v8014_v48 = vld [vmem:[#allocation2 + $0x4e4] ss:$8 sps:$4 sm:$0xff]  }
 0x430   :  { %v1728_v5 = vpop.f32.mrb[123].mxu1  ;;  %2144 = vmatprep.mubr.bf16.mxu0 %v1801_v39  ;;  %2483 = vmatprep.subr.bf16.mxu1 %v8014_v48 }
 0x431   :  { %8898 = vtanh.f32 %v1726_v40  ;;  %2145 = vmatmul.mubr.bf16.gmra.mrb[124].mxu0 %v1800_v63  ;;  %2484 = vmatpush1.bf16.msra.mxu1 %v8012_v44  ;;  %v8018_v40 = vld [vmem:[#allocation4] ss:$8 sps:$4 sm:$0xff]  }
 0x432   :  { %v8891_v10 = vpop.eup %8890  ;;  %8900 = vtanh.f32 %v1724_v1  ;;  %2485 = vmatprep.subr.bf16.mxu1 %v8017_v4  ;;  %v8024_v4 = vld [vmem:[#allocation4 + $0x20] ss:$8 sps:$4 sm:$0xff]  }
 0x433   :  { %v8893_v12 = vpop.eup %8892 }
 0x434   :  { %v8895_v13 = vpop.eup %8894 }
 0x435   :  { %v8897_v15 = vpop.eup %8896  ;;  %v1802_v17 = vpack.c.bf16 %v8895_v13, %v8891_v10  ;;  %2486 = vmatpush1.bf16.msra.mxu1 %v8015_v53  ;;  %v8023_v10 = vld [vmem:[#allocation4 + $0x14] ss:$8 sps:$4 sm:$0xff]  }
 0x436   :  { %v1803_v20 = vpack.c.bf16 %v8897_v15, %v8893_v12  ;;  %3082 = vmatprep.subr.bf16.mxu1 %v8020_v11 }
 0x438   :  { %2154 = vmatprep.mubr.bf16.mxu0 %v1803_v20  ;;  %v8021_v20 = vld [vmem:[#allocation4 + $0x10] ss:$8 sps:$4 sm:$0xff]  }
 0x439   :  { %2155 = vmatmul.mubr.bf16.gmra.mrb[128].mxu0 %v1802_v17 }
 0x43b   :  { %v8899_v24 = vpop.eup %8898 }
 0x43c   :  { %v8901_v25 = vpop.eup %8900  ;;  %v1805_v26 = vpack.c.bf16 %v8899_v24, %v8899_v24 }
 0x43d   :  { %v1804_v28 = vpack.c.bf16 %v8901_v25, %v8901_v25 }
 0x43e   :  { %2164 = vmatprep.mubr.bf16.mxu0 %v1805_v26 }
 0x441   :  { %2165 = vmatmul.mubr.bf16.gmra.mrb[132].mxu0 %v1804_v28 }
 0x442   :  { %2672 = vmatprep.mubr.bf16.mxu0 %v11735_v0 }
 0x449   :  { %7440 = vmatmul.mubr.msk.bf16.vlgmr.msra.gmra.mrb[136].mxu0 %vm194_vm1, %v10211_v14 }
 0x44a   :  { %2682 = vmatprep.mubr.bf16.mxu0 %v11735_v0 }
 0x451   :  { %7441 = vmatmul.mubr.msk.bf16.gmra.mrb[140].mxu0 %vm194_vm1, %v10231_v22 }
 0x452   :  { %2692 = vmatprep.mubr.bf16.mxu0 %v11735_v0 }
 0x459   :  { %7442 = vmatmul.mubr.msk.bf16.gmra.mrb[144].mxu0 %vm194_vm1, %v10251_v31 }
 0x45a   :  { %2702 = vmatprep.mubr.bf16.mxu0 %v11735_v0 }
 0x461   :  { %7443 = vmatmul.mubr.msk.bf16.gmra.mrb[148].mxu0 %vm194_vm1, %v10273_v46 }
 0x462   :  { %2712 = vmatprep.mubr.bf16.mxu0 %v11735_v0 }
 0x469   :  { %7444 = vmatmul.mubr.msk.bf16.gmra.mrb[152].mxu0 %vm194_vm1, %v10292_v59 }
 0x46a   :  { %2722 = vmatprep.mubr.bf16.mxu0 %v11735_v0 }
 0x471   :  { %7445 = vmatmul.mubr.msk.bf16.gmra.mrb[156].mxu0 %vm194_vm1, %v10308_v8 }
 0x472   :  { %2732 = vmatprep.mubr.bf16.mxu0 %v11735_v0 }
 0x479   :  { %7446 = vmatmul.mubr.msk.bf16.gmra.mrb[160].mxu0 %vm194_vm1, %v10318_v18 }
 0x47a   :  { %2742 = vmatprep.mubr.bf16.mxu0 %v11735_v0 }
 0x481   :  { %7447 = vmatmul.mubr.msk.bf16.gmra.mrb[164].mxu0 %vm194_vm1, %v10327_v27 }
 0x482   :  { %2752 = vmatprep.mubr.bf16.mxu0 %v11735_v0 }
 0x489   :  { %7448 = vmatmul.mubr.msk.bf16.gmra.mrb[168].mxu0 %vm194_vm1, %v10253_v36 }
 0x48a   :  { %2762 = vmatprep.mubr.bf16.mxu0 %v11735_v0 }
 0x491   :  { %7449 = vmatmul.mubr.msk.bf16.gmra.mrb[172].mxu0 %vm194_vm1, %v10275_v47 }
 0x492   :  { %2772 = vmatprep.mubr.bf16.mxu0 %v11735_v0 }
 0x499   :  { %7450 = vmatmul.mubr.msk.bf16.gmra.mrb[176].mxu0 %vm194_vm1, %v10294_v60 }
 0x49a   :  { %2782 = vmatprep.mubr.bf16.mxu0 %v11735_v0 }
 0x4a1   :  { %7451 = vmatmul.mubr.msk.bf16.gmra.mrb[180].mxu0 %vm194_vm1, %v10310_v9 }
 0x4a2   :  { %2792 = vmatprep.mubr.bf16.mxu0 %v11735_v0  ;;  %v8114_v0 = vld [vmem:[#allocation4 + $0x200] ss:$8 sps:$4 sm:$0xff]  }
 0x4a9   :  { %7452 = vmatmul.mubr.msk.bf16.gmra.mrb[184].mxu0 %vm194_vm1, %v10320_v19 }
 0x4b4   :  { %v2046_v21 = vpop.f32.mrb[84].mxu0 }
 0x4b5   :  { %v2047_v29 = vadd.f32 %v2046_v21, %v10667_v62  ;;  %v2048_v35 = vpop.f32.mrb[85].mxu0  ;;  %v8029_v21 = vld [vmem:[#allocation4 + $0x34] ss:$8 sps:$4 sm:$0xff]  }
 0x4b6   :  { %v2049_v41 = vadd.f32 %v2048_v35, %v10670_v7  ;;  %v2050_v45 = vpop.f32.mrb[86].mxu0 }
 0x4b7   :  { %8902 = vtanh.f32 %v2047_v29  ;;  %v2051_v32 = vadd.f32 %v2050_v45, %v10667_v62  ;;  %v2052_v56 = vpop.f32.mrb[87].mxu0 }
 0x4b8   :  { %8904 = vtanh.f32 %v2049_v41  ;;  %v2053_v49 = vadd.f32 %v2052_v56, %v10670_v7 }
 0x4b9   :  { %8906 = vtanh.f32 %v2051_v32  ;;  %v8027_v32 = vld [vmem:[#allocation4 + $0x30] ss:$8 sps:$4 sm:$0xff]  }
 0x4ba   :  { %8908 = vtanh.f32 %v2053_v49  ;;  %v8032_v49 = vld [vmem:[#allocation4 + $0x44] ss:$8 sps:$4 sm:$0xff]  }
 0x4bc   :  { %v2056_v6 = vpop.f32.mrb[88].mxu0 }
 0x4bd   :  { %v2057_v16 = vadd.f32 %v2056_v6, %v10667_v62  ;;  %v2058_v30 = vpop.f32.mrb[89].mxu0 }
 0x4be   :  { %v2059_v33 = vadd.f32 %v2058_v30, %v10670_v7  ;;  %v2060_v34 = vpop.f32.mrb[90].mxu0 }
 0x4bf   :  { %8910 = vtanh.f32 %v2057_v16  ;;  %v2061_v37 = vadd.f32 %v2060_v34, %v10667_v62  ;;  %v2062_v38 = vpop.f32.mrb[91].mxu0 }
 0x4c0   :  { %8912 = vtanh.f32 %v2059_v33  ;;  %v2063_v42 = vadd.f32 %v2062_v38, %v10670_v7 }
 0x4c1   :  { %v8903_v51 = vpop.eup %8902  ;;  %8914 = vtanh.f32 %v2061_v37 }
 0x4c2   :  { %v8905_v54 = vpop.eup %8904  ;;  %8916 = vtanh.f32 %v2063_v42  ;;  %v8030_v42 = vld [vmem:[#allocation4 + $0x40] ss:$8 sps:$4 sm:$0xff]  }
 0x4c3   :  { %v8907_v57 = vpop.eup %8906 }
 0x4c4   :  { %v8909_v58 = vpop.eup %8908  ;;  %v2066_v61 = vpop.f32.mrb[92].mxu0  ;;  %v2223_v63 = vpack.c.bf16 %v8907_v57, %v8903_v51  ;;  %v8035_v57 = vld [vmem:[#allocation4 + $0x54] ss:$8 sps:$4 sm:$0xff]  }
 0x4c5   :  { %v2067_v1 = vadd.f32 %v2066_v61, %v10667_v62  ;;  %v2068_v2 = vpop.f32.mrb[93].mxu0  ;;  %v2224_v39 = vpack.c.bf16 %v8909_v58, %v8905_v54 }
 0x4c6   :  { %v2069_v3 = vadd.f32 %v2068_v2, %v10670_v7  ;;  %v2070_v5 = vpop.f32.mrb[94].mxu0  ;;  %v8033_v2 = vld [vmem:[#allocation4 + $0x50] ss:$8 sps:$4 sm:$0xff]  }
 0x4c7   :  { %8918 = vtanh.f32 %v2067_v1  ;;  %v2071_v12 = vadd.f32 %v2070_v5, %v10667_v62  ;;  %v2072_v13 = vpop.f32.mrb[95].mxu0  ;;  %2487 = vmatprep.mubr.bf16.mxu1 %v2224_v39 }
 0x4c8   :  { %8920 = vtanh.f32 %v2069_v3  ;;  %v2073_v15 = vadd.f32 %v2072_v13, %v10670_v7  ;;  %2488 = vmatmul.mubr.bf16.vlgmr.msra.gmra.mrb[124].mxu1 %v2223_v63 }
 0x4c9   :  { %v8911_v17 = vpop.eup %8910  ;;  %8922 = vtanh.f32 %v2071_v12  ;;  %3083 = vmatpush1.bf16.msra.mxu1 %v8018_v40  ;;  %v8038_v40 = vld [vmem:[#allocation4 + $0x64] ss:$8 sps:$4 sm:$0xff]  }
 0x4ca   :  { %v8913_v23 = vpop.eup %8912  ;;  %8924 = vtanh.f32 %v2073_v15  ;;  %3084 = vmatprep.subr.bf16.mxu1 %v8023_v10 }
 0x4cb   :  { %v8915_v44 = vpop.eup %8914 }
 0x4cc   :  { %v8917_v48 = vpop.eup %8916  ;;  %v2076_v24 = vpop.f32.mrb[96].mxu0  ;;  %v2225_v25 = vpack.c.bf16 %v8915_v44, %v8911_v17  ;;  %v8041_v44 = vld [vmem:[#allocation4 + $0x74] ss:$8 sps:$4 sm:$0xff]  }
 0x4cd   :  { %v2077_v26 = vadd.f32 %v2076_v24, %v10667_v62  ;;  %v2078_v28 = vpop.f32.mrb[97].mxu0  ;;  %v2226_v53 = vpack.c.bf16 %v8917_v48, %v8913_v23  ;;  %3085 = vmatpush1.bf16.msra.mxu1 %v8021_v20  ;;  %v8036_v20 = vld [vmem:[#allocation4 + $0x60] ss:$8 sps:$4 sm:$0xff]  }
 0x4ce   :  { %v2079_v11 = vadd.f32 %v2078_v28, %v10670_v7  ;;  %v2080_v43 = vpop.f32.mrb[98].mxu0  ;;  %3086 = vmatprep.subr.bf16.mxu1 %v8026_v55  ;;  %v8039_v28 = vld [vmem:[#allocation4 + $0x70] ss:$8 sps:$4 sm:$0xff]  }
 0x4cf   :  { %8926 = vtanh.f32 %v2077_v26  ;;  %v2081_v29 = vadd.f32 %v2080_v43, %v10667_v62  ;;  %v2082_v35 = vpop.f32.mrb[99].mxu0  ;;  %2497 = vmatprep.mubr.bf16.mxu1 %v2226_v53 }
 0x4d0   :  { %8928 = vtanh.f32 %v2079_v11  ;;  %v2083_v41 = vadd.f32 %v2082_v35, %v10670_v7  ;;  %2498 = vmatmul.mubr.bf16.gmra.mrb[128].mxu1 %v2225_v25 }
 0x4d1   :  { %v8919_v45 = vpop.eup %8918  ;;  %8930 = vtanh.f32 %v2081_v29  ;;  %3087 = vmatpush1.bf16.msra.mxu1 %v8024_v4  ;;  %v8044_v4 = vld [vmem:[#allocation4 + $0x84] ss:$8 sps:$4 sm:$0xff]  }
 0x4d2   :  { %v8921_v56 = vpop.eup %8920  ;;  %8932 = vtanh.f32 %v2083_v41  ;;  %3088 = vmatprep.subr.bf16.mxu1 %v8029_v21 }
 0x4d3   :  { %v8923_v6 = vpop.eup %8922 }
 0x4d4   :  { %v8925_v16 = vpop.eup %8924  ;;  %v2086_v30 = vpop.f32.mrb[100].mxu0  ;;  %v2227_v33 = vpack.c.bf16 %v8923_v6, %v8919_v45  ;;  %v8047_v6 = vld [vmem:[#allocation4 + $0x94] ss:$8 sps:$4 sm:$0xff]  }
 0x4d5   :  { %v2087_v34 = vadd.f32 %v2086_v30, %v10667_v62  ;;  %v2088_v37 = vpop.f32.mrb[101].mxu0  ;;  %v2228_v38 = vpack.c.bf16 %v8925_v16, %v8921_v56  ;;  %3089 = vmatpush1.bf16.msra.mxu1 %v8027_v32  ;;  %v8042_v32 = vld [vmem:[#allocation4 + $0x80] ss:$8 sps:$4 sm:$0xff]  }
 0x4d6   :  { %v2089_v51 = vadd.f32 %v2088_v37, %v10670_v7  ;;  %v2090_v54 = vpop.f32.mrb[102].mxu0  ;;  %3090 = vmatprep.subr.bf16.mxu1 %v8032_v49  ;;  %v8045_v37 = vld [vmem:[#allocation4 + $0x90] ss:$8 sps:$4 sm:$0xff]  }
 0x4d7   :  { %8934 = vtanh.f32 %v2087_v34  ;;  %v2091_v58 = vadd.f32 %v2090_v54, %v10667_v62  ;;  %v2092_v61 = vpop.f32.mrb[103].mxu0  ;;  %2507 = vmatprep.mubr.bf16.mxu1 %v2228_v38 }
 0x4d8   :  { %8936 = vtanh.f32 %v2089_v51  ;;  %v2093_v63 = vadd.f32 %v2092_v61, %v10670_v7  ;;  %2508 = vmatmul.mubr.bf16.gmra.mrb[132].mxu1 %v2227_v33 }
 0x4d9   :  { %v8927_v1 = vpop.eup %8926  ;;  %8938 = vtanh.f32 %v2091_v58  ;;  %3091 = vmatpush1.bf16.msra.mxu1 %v8030_v42  ;;  %v8050_v42 = vld [vmem:[#allocation4 + $0xa4] ss:$8 sps:$4 sm:$0xff]  }
 0x4da   :  { %v8929_v39 = vpop.eup %8928  ;;  %8940 = vtanh.f32 %v2093_v63  ;;  %3092 = vmatprep.subr.bf16.mxu1 %v8035_v57 }
 0x4db   :  { %v8931_v3 = vpop.eup %8930 }
 0x4dc   :  { %v8933_v5 = vpop.eup %8932  ;;  %v2096_v10 = vpop.f32.mrb[104].mxu0  ;;  %v2229_v12 = vpack.c.bf16 %v8931_v3, %v8927_v1  ;;  %v8053_v3 = vld [vmem:[#allocation4 + $0xb4] ss:$8 sps:$4 sm:$0xff]  }
 0x4dd   :  { %v2097_v13 = vadd.f32 %v2096_v10, %v10667_v62  ;;  %v2098_v15 = vpop.f32.mrb[105].mxu0  ;;  %v2230_v17 = vpack.c.bf16 %v8933_v5, %v8929_v39  ;;  %3093 = vmatpush1.bf16.msra.mxu1 %v8033_v2  ;;  %v8048_v2 = vld [vmem:[#allocation4 + $0xa0] ss:$8 sps:$4 sm:$0xff]  }
 0x4de   :  { %v2099_v23 = vadd.f32 %v2098_v15, %v10670_v7  ;;  %v2100_v55 = vpop.f32.mrb[106].mxu0  ;;  %3094 = vmatprep.subr.bf16.mxu1 %v8038_v40  ;;  %v8051_v15 = vld [vmem:[#allocation4 + $0xb0] ss:$8 sps:$4 sm:$0xff]  }
 0x4df   :  { %8942 = vtanh.f32 %v2097_v13  ;;  %v2101_v48 = vadd.f32 %v2100_v55, %v10667_v62  ;;  %v2102_v24 = vpop.f32.mrb[107].mxu0  ;;  %2517 = vmatprep.mubr.bf16.mxu1 %v2230_v17 }
 0x4e0   :  { %8944 = vtanh.f32 %v2099_v23  ;;  %v2103_v25 = vadd.f32 %v2102_v24, %v10670_v7  ;;  %2518 = vmatmul.mubr.bf16.gmra.mrb[136].mxu1 %v2229_v12 }
 0x4e1   :  { %v8935_v26 = vpop.eup %8934  ;;  %8946 = vtanh.f32 %v2101_v48  ;;  %3095 = vmatpush1.bf16.msra.mxu1 %v8036_v20  ;;  %v8056_v20 = vld [vmem:[#allocation4 + $0xc4] ss:$8 sps:$4 sm:$0xff]  }
 0x4e2   :  { %v8937_v53 = vpop.eup %8936  ;;  %8948 = vtanh.f32 %v2103_v25  ;;  %3096 = vmatprep.subr.bf16.mxu1 %v8041_v44 }
 0x4e3   :  { %v8939_v11 = vpop.eup %8938 }
 0x4e4   :  { %v8941_v43 = vpop.eup %8940  ;;  %v2106_v21 = vpop.f32.mrb[108].mxu0  ;;  %v2231_v29 = vpack.c.bf16 %v8939_v11, %v8935_v26  ;;  %v8059_v11 = vld [vmem:[#allocation4 + $0xd4] ss:$8 sps:$4 sm:$0xff]  }
 0x4e5   :  { %v2107_v35 = vadd.f32 %v2106_v21, %v10667_v62  ;;  %v2108_v41 = vpop.f32.mrb[109].mxu0  ;;  %v2232_v45 = vpack.c.bf16 %v8941_v43, %v8937_v53  ;;  %3097 = vmatpush1.bf16.msra.mxu1 %v8039_v28  ;;  %v8054_v28 = vld [vmem:[#allocation4 + $0xc0] ss:$8 sps:$4 sm:$0xff]  }
 0x4e6   :  { %v2109_v56 = vadd.f32 %v2108_v41, %v10670_v7  ;;  %v2110_v49 = vpop.f32.mrb[110].mxu0  ;;  %3098 = vmatprep.subr.bf16.mxu1 %v8044_v4  ;;  %v8057_v41 = vld [vmem:[#allocation4 + $0xd0] ss:$8 sps:$4 sm:$0xff]  }
 0x4e7   :  { %8950 = vtanh.f32 %v2107_v35  ;;  %v2111_v16 = vadd.f32 %v2110_v49, %v10667_v62  ;;  %v2112_v30 = vpop.f32.mrb[111].mxu0  ;;  %2527 = vmatprep.mubr.bf16.mxu1 %v2232_v45 }
 0x4e8   :  { %8952 = vtanh.f32 %v2109_v56  ;;  %v2113_v33 = vadd.f32 %v2112_v30, %v10670_v7  ;;  %2528 = vmatmul.mubr.bf16.gmra.mrb[140].mxu1 %v2231_v29 }
 0x4e9   :  { %v8943_v34 = vpop.eup %8942  ;;  %8954 = vtanh.f32 %v2111_v16  ;;  %3099 = vmatpush1.bf16.msra.mxu1 %v8042_v32  ;;  %v8062_v32 = vld [vmem:[#allocation4 + $0xe4] ss:$8 sps:$4 sm:$0xff]  }
 0x4ea   :  { %v8945_v38 = vpop.eup %8944  ;;  %8956 = vtanh.f32 %v2113_v33  ;;  %3100 = vmatprep.subr.bf16.mxu1 %v8047_v6 }
 0x4eb   :  { %v8947_v51 = vpop.eup %8946 }
 0x4ec   :  { %v8949_v54 = vpop.eup %8948  ;;  %v2116_v57 = vpop.f32.mrb[112].mxu0  ;;  %v2233_v58 = vpack.c.bf16 %v8947_v51, %v8943_v34  ;;  %v8065_v51 = vld [vmem:[#allocation4 + $0xf4] ss:$8 sps:$4 sm:$0xff]  }
 0x4ed   :  { %v2117_v61 = vadd.f32 %v2116_v57, %v10667_v62  ;;  %v2118_v63 = vpop.f32.mrb[113].mxu0  ;;  %v2234_v1 = vpack.c.bf16 %v8949_v54, %v8945_v38  ;;  %3101 = vmatpush1.bf16.msra.mxu1 %v8045_v37  ;;  %v8060_v37 = vld [vmem:[#allocation4 + $0xe0] ss:$8 sps:$4 sm:$0xff]  }
 0x4ee   :  { %v2119_v39 = vadd.f32 %v2118_v63, %v10670_v7  ;;  %v2120_v40 = vpop.f32.mrb[114].mxu0  ;;  %3102 = vmatprep.subr.bf16.mxu1 %v8050_v42  ;;  %v8063_v63 = vld [vmem:[#allocation4 + $0xf0] ss:$8 sps:$4 sm:$0xff]  }
 0x4ef   :  { %8958 = vtanh.f32 %v2117_v61  ;;  %v2121_v5 = vadd.f32 %v2120_v40, %v10667_v62  ;;  %v2122_v10 = vpop.f32.mrb[115].mxu0  ;;  %2537 = vmatprep.mubr.bf16.mxu1 %v2234_v1 }
 0x4f0   :  { %8960 = vtanh.f32 %v2119_v39  ;;  %v2123_v12 = vadd.f32 %v2122_v10, %v10670_v7  ;;  %2538 = vmatmul.mubr.bf16.gmra.mrb[144].mxu1 %v2233_v58 }
 0x4f1   :  { %v8951_v13 = vpop.eup %8950  ;;  %8962 = vtanh.f32 %v2121_v5  ;;  %3103 = vmatpush1.bf16.msra.mxu1 %v8048_v2 }
 0x4f2   :  { %v8953_v17 = vpop.eup %8952  ;;  %8964 = vtanh.f32 %v2123_v12  ;;  %3104 = vmatprep.subr.bf16.mxu1 %v8053_v3 }
 0x4f3   :  { %v8955_v23 = vpop.eup %8954 }
 0x4f4   :  { %v8957_v55 = vpop.eup %8956  ;;  %v2126_v44 = vpop.f32.mrb[116].mxu0  ;;  %v2235_v48 = vpack.c.bf16 %v8955_v23, %v8951_v13 }
 0x4f5   :  { %v2127_v24 = vadd.f32 %v2126_v44, %v10667_v62  ;;  %v2128_v25 = vpop.f32.mrb[117].mxu0  ;;  %v2236_v26 = vpack.c.bf16 %v8957_v55, %v8953_v17  ;;  %3105 = vmatpush1.bf16.msra.mxu1 %v8051_v15 }
 0x4f6   :  { %v2129_v53 = vadd.f32 %v2128_v25, %v10670_v7  ;;  %v2130_v4 = vpop.f32.mrb[118].mxu0  ;;  %3106 = vmatprep.subr.bf16.mxu1 %v8056_v20 }
 0x4f7   :  { %8966 = vtanh.f32 %v2127_v24  ;;  %v2131_v43 = vadd.f32 %v2130_v4, %v10667_v62  ;;  %v2132_v21 = vpop.f32.mrb[119].mxu0  ;;  %2547 = vmatprep.mubr.bf16.mxu1 %v2236_v26 }
 0x4f8   :  { %8968 = vtanh.f32 %v2129_v53  ;;  %v2133_v29 = vadd.f32 %v2132_v21, %v10670_v7  ;;  %2548 = vmatmul.mubr.bf16.gmra.mrb[148].mxu1 %v2235_v48 }
 0x4f9   :  { %v8959_v35 = vpop.eup %8958  ;;  %8970 = vtanh.f32 %v2131_v43  ;;  %3107 = vmatpush1.bf16.msra.mxu1 %v8054_v28 }
 0x4fa   :  { %v8961_v45 = vpop.eup %8960  ;;  %8972 = vtanh.f32 %v2133_v29  ;;  %3108 = vmatprep.subr.bf16.mxu1 %v8059_v11 }
 0x4fb   :  { %v8963_v56 = vpop.eup %8962 }
 0x4fc   :  { %v8965_v49 = vpop.eup %8964  ;;  %v2136_v6 = vpop.f32.mrb[120].mxu0  ;;  %v2237_v16 = vpack.c.bf16 %v8963_v56, %v8959_v35 }
 0x4fd   :  { %v2137_v30 = vadd.f32 %v2136_v6, %v10667_v62  ;;  %v2138_v33 = vpop.f32.mrb[121].mxu0  ;;  %v2238_v34 = vpack.c.bf16 %v8965_v49, %v8961_v45  ;;  %3109 = vmatpush1.bf16.msra.mxu1 %v8057_v41 }
 0x4fe   :  { %v2139_v38 = vadd.f32 %v2138_v33, %v10670_v7  ;;  %v2140_v42 = vpop.f32.mrb[122].mxu0  ;;  %3110 = vmatprep.subr.bf16.mxu1 %v8062_v32 }
 0x4ff   :  { %8974 = vtanh.f32 %v2137_v30  ;;  %v2141_v54 = vadd.f32 %v2140_v42, %v10667_v62  ;;  %v2142_v57 = vpop.f32.mrb[123].mxu0  ;;  %2557 = vmatprep.mubr.bf16.mxu1 %v2238_v34 }
 0x500   :  { %8976 = vtanh.f32 %v2139_v38  ;;  %v2143_v58 = vadd.f32 %v2142_v57, %v10670_v7  ;;  %2558 = vmatmul.mubr.bf16.gmra.mrb[152].mxu1 %v2237_v16  ;;  %v2617_v38 = vld [vmem:[%s11730_s6] sm:$0x3] }
 0x501   :  { %v8967_v61 = vpop.eup %8966  ;;  %8978 = vtanh.f32 %v2141_v54  ;;  %3111 = vmatpush1.bf16.msra.mxu1 %v8060_v37  ;;  %v10726_v54 = vrot.slane %v2617_v38, %v10331_v50 }
 0x502   :  { %v8969_v1 = vpop.eup %8968  ;;  %8980 = vtanh.f32 %v2143_v58  ;;  %3112 = vmatprep.subr.bf16.mxu1 %v8065_v51 }
 0x503   :  { %v8971_v2 = vpop.eup %8970 }
 0x504   :  { %v8973_v39 = vpop.eup %8972  ;;  %v2146_v40 = vpop.f32.mrb[124].mxu0  ;;  %v2239_v3 = vpack.c.bf16 %v8971_v2, %v8967_v61 }
 0x505   :  { %v2147_v5 = vadd.f32 %v2146_v40, %v10667_v62  ;;  %v2148_v10 = vpop.f32.mrb[125].mxu0  ;;  %v2240_v12 = vpack.c.bf16 %v8973_v39, %v8969_v1  ;;  %3113 = vmatpush1.bf16.msra.mxu1 %v8063_v63 }
 0x506   :  { %v2149_v13 = vadd.f32 %v2148_v10, %v10670_v7  ;;  %v2150_v15 = vpop.f32.mrb[126].mxu0 }
 0x507   :  { %8982 = vtanh.f32 %v2147_v5  ;;  %v2151_v17 = vadd.f32 %v2150_v15, %v10667_v62  ;;  %v2152_v20 = vpop.f32.mrb[127].mxu0  ;;  %2567 = vmatprep.mubr.bf16.mxu1 %v2240_v12 }
 0x508   :  { %8984 = vtanh.f32 %v2149_v13  ;;  %v2153_v23 = vadd.f32 %v2152_v20, %v10670_v7  ;;  %2568 = vmatmul.mubr.bf16.gmra.mrb[156].mxu1 %v2239_v3 }
 0x509   :  { %v8975_v55 = vpop.eup %8974  ;;  %8986 = vtanh.f32 %v2151_v17 }
 0x50a   :  { %v8977_v44 = vpop.eup %8976  ;;  %8988 = vtanh.f32 %v2153_v23 }
 0x50b   :  { %v8979_v48 = vpop.eup %8978 }
 0x50c   :  { %v8981_v24 = vpop.eup %8980  ;;  %v2156_v25 = vpop.f32.mrb[128].mxu0  ;;  %v2241_v26 = vpack.c.bf16 %v8979_v48, %v8975_v55 }
 0x50d   :  { %v2157_v28 = vadd.f32 %v2156_v25, %v10667_v62  ;;  %v2158_v53 = vpop.f32.mrb[129].mxu0  ;;  %v2242_v4 = vpack.c.bf16 %v8981_v24, %v8977_v44 }
 0x50e   :  { %v2159_v11 = vadd.f32 %v2158_v53, %v10670_v7  ;;  %v2160_v43 = vpop.f32.mrb[130].mxu0 }
 0x50f   :  { %8990 = vtanh.f32 %v2157_v28  ;;  %v2161_v21 = vadd.f32 %v2160_v43, %v10667_v62  ;;  %v2162_v29 = vpop.f32.mrb[131].mxu0  ;;  %2577 = vmatprep.mubr.bf16.mxu1 %v2242_v4 }
 0x510   :  { %8992 = vtanh.f32 %v2159_v11  ;;  %v2163_v35 = vadd.f32 %v2162_v29, %v10670_v7  ;;  %2578 = vmatmul.mubr.bf16.gmra.mrb[160].mxu1 %v2241_v26 }
 0x511   :  { %v8983_v41 = vpop.eup %8982  ;;  %8994 = vtanh.f32 %v2161_v21 }
 0x512   :  { %v8985_v45 = vpop.eup %8984  ;;  %8996 = vtanh.f32 %v2163_v35 }
 0x513   :  { %v8987_v32 = vpop.eup %8986 }
 0x514   :  { %v8989_v56 = vpop.eup %8988  ;;  %v2166_v49 = vpop.f32.mrb[132].mxu0  ;;  %v2243_v6 = vpack.c.bf16 %v8987_v32, %v8983_v41 }
 0x515   :  { %v2167_v16 = vadd.f32 %v2166_v49, %v10667_v62  ;;  %v2168_v30 = vpop.f32.mrb[133].mxu0  ;;  %v2244_v33 = vpack.c.bf16 %v8989_v56, %v8985_v45  ;;  %v10729_v62 = vrot.slane %v2617_v38, %v10336_v52 }
 0x516   :  { %v2169_v34 = vadd.f32 %v2168_v30, %v10670_v7  ;;  %v2170_v37 = vpop.f32.mrb[134].mxu0  ;;  %v8068_v30 = vld [vmem:[#allocation4 + $0x104] ss:$8 sps:$4 sm:$0xff]  }
 0x517   :  { %v2171_v42 = vpop.f32.mrb[135].mxu0  ;;  %2587 = vmatprep.mubr.bf16.mxu1 %v2244_v33  ;;  %3525 = vmatprep.subr.bf16.mxu0 %v8068_v30 }
 0x518   :  { %8998 = vtanh.f32 %v2169_v34  ;;  %2588 = vmatmul.mubr.bf16.gmra.mrb[164].mxu1 %v2243_v6 }
 0x519   :  { %v8991_v51 = vpop.eup %8990  ;;  %9000 = vtanh.f32 %v2167_v16  ;;  %v8066_v16 = vld [vmem:[#allocation4 + $0x100] ss:$8 sps:$4 sm:$0xff]  }
 0x51a   :  { %v8993_v57 = vpop.eup %8992  ;;  %3526 = vmatpush1.bf16.msra.mxu0 %v8066_v16 }
 0x51b   :  { %v8995_v58 = vpop.eup %8994 }
 0x51c   :  { %v8997_v7 = vpop.eup %8996  ;;  %v2674_v61 = vpop.f32.mrb[136].mxu0  ;;  %v2245_v63 = vpack.c.bf16 %v8995_v58, %v8991_v51 }
 0x51d   :  { %v2675_v1 = vadd.f32 %v2674_v61, %v10726_v54  ;;  %v2676_v2 = vpop.f32.mrb[137].mxu0  ;;  %v2246_v39 = vpack.c.bf16 %v8997_v7, %v8993_v57 }
 0x51e   :  { %v2677_v40 = vadd.f32 %v2676_v2, %v10729_v62  ;;  %v2678_v3 = vpop.f32.mrb[138].mxu0  ;;  %v8069_v2 = vld [vmem:[#allocation4 + $0x110] ss:$8 sps:$4 sm:$0xff]  }
 0x51f   :  { %9002 = vtanh.f32 %v2675_v1  ;;  %v2679_v5 = vadd.f32 %v2678_v3, %v10726_v54  ;;  %2597 = vmatprep.mubr.bf16.mxu1 %v2246_v39  ;;  %v2680_v10 = vpop.f32.mrb[139].mxu0  ;;  %v8071_v39 = vld [vmem:[#allocation4 + $0x114] ss:$8 sps:$4 sm:$0xff]  }
 0x520   :  { %9004 = vtanh.f32 %v2677_v40  ;;  %v2681_v12 = vadd.f32 %v2680_v10, %v10729_v62  ;;  %2598 = vmatmul.mubr.bf16.gmra.mrb[168].mxu1 %v2245_v63  ;;  %3527 = vmatprep.subr.bf16.mxu0 %v8071_v39 }
 0x521   :  { %9006 = vtanh.f32 %v2679_v5  ;;  %3528 = vmatpush1.bf16.msra.mxu0 %v8069_v2 }
 0x522   :  { %v8999_v13 = vpop.eup %8998  ;;  %9008 = vtanh.f32 %v2681_v12 }
 0x523   :  { %v9001_v15 = vpop.eup %9000  ;;  %v2248_v17 = vpack.c.bf16 %v8999_v13, %v8999_v13 }
 0x524   :  { %v2684_v20 = vpop.f32.mrb[140].mxu0  ;;  %v2247_v24 = vpack.c.bf16 %v9001_v15, %v9001_v15 }
 0x525   :  { %v2685_v23 = vadd.f32 %v2684_v20, %v10726_v54  ;;  %2607 = vmatprep.mubr.bf16.mxu1 %v2248_v17  ;;  %v2686_v55 = vpop.f32.mrb[141].mxu0 }
 0x526   :  { %v2687_v44 = vadd.f32 %v2686_v55, %v10729_v62  ;;  %v2688_v48 = vpop.f32.mrb[142].mxu0  ;;  %v8074_v55 = vld [vmem:[#allocation4 + $0x124] ss:$8 sps:$4 sm:$0xff]  }
 0x527   :  { %9010 = vtanh.f32 %v2685_v23  ;;  %v2689_v25 = vadd.f32 %v2688_v48, %v10726_v54  ;;  %v2690_v26 = vpop.f32.mrb[143].mxu0  ;;  %v8072_v23 = vld [vmem:[#allocation4 + $0x120] ss:$8 sps:$4 sm:$0xff]   ;;  %3529 = vmatprep.subr.bf16.mxu0 %v8074_v55 }
 0x528   :  { %9012 = vtanh.f32 %v2687_v44  ;;  %v2691_v28 = vadd.f32 %v2690_v26, %v10729_v62  ;;  %2608 = vmatmul.mubr.bf16.gmra.mrb[172].mxu1 %v2247_v24  ;;  %3530 = vmatpush1.bf16.msra.mxu0 %v8072_v23 }
 0x529   :  { %v9003_v53 = vpop.eup %9002  ;;  %9014 = vtanh.f32 %v2689_v25 }
 0x52a   :  { %v9005_v4 = vpop.eup %9004  ;;  %9016 = vtanh.f32 %v2691_v28 }
 0x52b   :  { %v9007_v11 = vpop.eup %9006 }
 0x52c   :  { %v9009_v43 = vpop.eup %9008  ;;  %v2694_v21 = vpop.f32.mrb[144].mxu0  ;;  %v2851_v29 = vpack.c.bf16 %v9007_v11, %v9003_v53  ;;  %v8077_v11 = vld [vmem:[#allocation4 + $0x134] ss:$8 sps:$4 sm:$0xff]  }
 0x52d   :  { %v2695_v35 = vadd.f32 %v2694_v21, %v10726_v54  ;;  %v2696_v41 = vpop.f32.mrb[145].mxu0  ;;  %v2852_v45 = vpack.c.bf16 %v9009_v43, %v9005_v4  ;;  %v8075_v4 = vld [vmem:[#allocation4 + $0x130] ss:$8 sps:$4 sm:$0xff]   ;;  %3531 = vmatprep.subr.bf16.mxu0 %v8077_v11  ;;  %v8086_v11 = vld [vmem:[#allocation4 + $0x164] ss:$8 sps:$4 sm:$0xff]  }
 0x52e   :  { %v2697_v32 = vadd.f32 %v2696_v41, %v10729_v62  ;;  %v2698_v56 = vpop.f32.mrb[146].mxu0  ;;  %3532 = vmatpush1.bf16.msra.mxu0 %v8075_v4  ;;  %v8084_v4 = vld [vmem:[#allocation4 + $0x160] ss:$8 sps:$4 sm:$0xff]  }
 0x52f   :  { %9018 = vtanh.f32 %v2695_v35  ;;  %v2699_v49 = vadd.f32 %v2698_v56, %v10726_v54  ;;  %v2700_v6 = vpop.f32.mrb[147].mxu0  ;;  %3114 = vmatprep.mubr.bf16.mxu1 %v2852_v45 }
 0x530   :  { %9020 = vtanh.f32 %v2697_v32  ;;  %v2701_v33 = vadd.f32 %v2700_v6, %v10729_v62  ;;  %3115 = vmatmul.mubr.bf16.vlgmr.msra.gmra.mrb[176].mxu1 %v2851_v29 }
 0x531   :  { %v9011_v34 = vpop.eup %9010  ;;  %9022 = vtanh.f32 %v2699_v49 }
 0x532   :  { %v9013_v37 = vpop.eup %9012  ;;  %9024 = vtanh.f32 %v2701_v33 }
 0x533   :  { %v9015_v38 = vpop.eup %9014 }
 0x534   :  { %v9017_v42 = vpop.eup %9016  ;;  %v2704_v51 = vpop.f32.mrb[148].mxu0  ;;  %v2853_v57 = vpack.c.bf16 %v9015_v38, %v9011_v34  ;;  %v8080_v38 = vld [vmem:[#allocation4 + $0x144] ss:$8 sps:$4 sm:$0xff]  }
 0x535   :  { %v2705_v58 = vadd.f32 %v2704_v51, %v10726_v54  ;;  %v2706_v7 = vpop.f32.mrb[149].mxu0  ;;  %v2854_v61 = vpack.c.bf16 %v9017_v42, %v9013_v37  ;;  %v8078_v37 = vld [vmem:[#allocation4 + $0x140] ss:$8 sps:$4 sm:$0xff]   ;;  %3533 = vmatprep.subr.bf16.mxu0 %v8080_v38 }
 0x536   :  { %v2707_v63 = vadd.f32 %v2706_v7, %v10729_v62  ;;  %v2708_v1 = vpop.f32.mrb[150].mxu0  ;;  %3534 = vmatpush1.bf16.msra.mxu0 %v8078_v37 }
 0x537   :  { %9026 = vtanh.f32 %v2705_v58  ;;  %v2709_v40 = vadd.f32 %v2708_v1, %v10726_v54  ;;  %v2710_v3 = vpop.f32.mrb[151].mxu0  ;;  %3124 = vmatprep.mubr.bf16.mxu1 %v2854_v61 }
 0x538   :  { %9028 = vtanh.f32 %v2707_v63  ;;  %v2711_v5 = vadd.f32 %v2710_v3, %v10729_v62  ;;  %3125 = vmatmul.mubr.bf16.gmra.mrb[180].mxu1 %v2853_v57 }
 0x539   :  { %v9019_v10 = vpop.eup %9018  ;;  %9030 = vtanh.f32 %v2709_v40 }
 0x53a   :  { %v9021_v12 = vpop.eup %9020  ;;  %9032 = vtanh.f32 %v2711_v5 }
 0x53b   :  { %v9023_v13 = vpop.eup %9022 }
 0x53c   :  { %v9025_v15 = vpop.eup %9024  ;;  %v2714_v17 = vpop.f32.mrb[152].mxu0  ;;  %v2855_v20 = vpack.c.bf16 %v9023_v13, %v9019_v10  ;;  %v8083_v13 = vld [vmem:[#allocation4 + $0x154] ss:$8 sps:$4 sm:$0xff]  }
 0x53d   :  { %v2715_v44 = vadd.f32 %v2714_v17, %v10726_v54  ;;  %v2716_v48 = vpop.f32.mrb[153].mxu0  ;;  %v2856_v24 = vpack.c.bf16 %v9025_v15, %v9021_v12  ;;  %v8081_v12 = vld [vmem:[#allocation4 + $0x150] ss:$8 sps:$4 sm:$0xff]   ;;  %3535 = vmatprep.subr.bf16.mxu0 %v8083_v13 }
 0x53e   :  { %v2717_v25 = vadd.f32 %v2716_v48, %v10729_v62  ;;  %v2718_v26 = vpop.f32.mrb[154].mxu0  ;;  %3536 = vmatpush1.bf16.msra.mxu0 %v8081_v12 }
 0x53f   :  { %9034 = vtanh.f32 %v2715_v44  ;;  %v2719_v28 = vadd.f32 %v2718_v26, %v10726_v54  ;;  %v2720_v53 = vpop.f32.mrb[155].mxu0  ;;  %3134 = vmatprep.mubr.bf16.mxu1 %v2856_v24  ;;  %3537 = vmatprep.subr.bf16.mxu0 %v8086_v11 }
 0x540   :  { %9036 = vtanh.f32 %v2717_v25  ;;  %v2721_v43 = vadd.f32 %v2720_v53, %v10729_v62  ;;  %3135 = vmatmul.mubr.bf16.gmra.mrb[184].mxu1 %v2855_v20 }
 0x541   :  { %v9027_v21 = vpop.eup %9026  ;;  %9038 = vtanh.f32 %v2719_v28 }
 0x542   :  { %v9029_v29 = vpop.eup %9028  ;;  %9040 = vtanh.f32 %v2721_v43  ;;  %3538 = vmatpush1.bf16.msra.mxu0 %v8084_v4 }
 0x543   :  { %v9031_v35 = vpop.eup %9030 }
 0x544   :  { %v9033_v41 = vpop.eup %9032  ;;  %v2724_v45 = vpop.f32.mrb[156].mxu0  ;;  %v2857_v32 = vpack.c.bf16 %v9031_v35, %v9027_v21 }
 0x545   :  { %v2725_v56 = vadd.f32 %v2724_v45, %v10726_v54  ;;  %v2726_v49 = vpop.f32.mrb[157].mxu0  ;;  %v2858_v6 = vpack.c.bf16 %v9033_v41, %v9029_v29 }
 0x546   :  { %v2727_v16 = vadd.f32 %v2726_v49, %v10729_v62  ;;  %v2728_v30 = vpop.f32.mrb[158].mxu0 }
 0x547   :  { %9042 = vtanh.f32 %v2725_v56  ;;  %v2729_v33 = vadd.f32 %v2728_v30, %v10726_v54  ;;  %v2730_v34 = vpop.f32.mrb[159].mxu0  ;;  %3144 = vmatprep.mubr.bf16.mxu1 %v2858_v6 }
 0x548   :  { %9044 = vtanh.f32 %v2727_v16  ;;  %v2731_v42 = vadd.f32 %v2730_v34, %v10729_v62  ;;  %3145 = vmatmul.mubr.bf16.gmra.mrb[188].mxu1 %v2857_v32  ;;  %v8089_v34 = vld [vmem:[#allocation4 + $0x174] ss:$8 sps:$4 sm:$0xff]  }
 0x549   :  { %v9035_v51 = vpop.eup %9034  ;;  %9046 = vtanh.f32 %v2729_v33  ;;  %v8087_v33 = vld [vmem:[#allocation4 + $0x170] ss:$8 sps:$4 sm:$0xff]   ;;  %3539 = vmatprep.subr.bf16.mxu0 %v8089_v34 }
 0x54a   :  { %v9037_v57 = vpop.eup %9036  ;;  %9048 = vtanh.f32 %v2731_v42  ;;  %3540 = vmatpush1.bf16.msra.mxu0 %v8087_v33 }
 0x54b   :  { %v9039_v58 = vpop.eup %9038 }
 0x54c   :  { %v9041_v7 = vpop.eup %9040  ;;  %v2734_v61 = vpop.f32.mrb[160].mxu0  ;;  %v2859_v63 = vpack.c.bf16 %v9039_v58, %v9035_v51 }
 0x54d   :  { %v2735_v1 = vadd.f32 %v2734_v61, %v10726_v54  ;;  %v2736_v2 = vpop.f32.mrb[161].mxu0  ;;  %v2860_v39 = vpack.c.bf16 %v9041_v7, %v9037_v57  ;;  %v8092_v57 = vld [vmem:[#allocation4 + $0x184] ss:$8 sps:$4 sm:$0xff]   ;;  %v8090_v7 = vld [vmem:[#allocation4 + $0x180] ss:$8 sps:$4 sm:$0xff]  }
 0x54e   :  { %v2737_v40 = vadd.f32 %v2736_v2, %v10729_v62  ;;  %v2738_v3 = vpop.f32.mrb[162].mxu0  ;;  %3541 = vmatprep.subr.bf16.mxu0 %v8092_v57 }
 0x54f   :  { %9050 = vtanh.f32 %v2735_v1  ;;  %v2739_v5 = vadd.f32 %v2738_v3, %v10726_v54  ;;  %v2740_v10 = vpop.f32.mrb[163].mxu0  ;;  %3154 = vmatprep.mubr.bf16.mxu1 %v2860_v39  ;;  %3542 = vmatpush1.bf16.msra.mxu0 %v8090_v7  ;;  %v8099_v7 = vld [vmem:[#allocation4 + $0x1b0] ss:$8 sps:$4 sm:$0xff]  }
 0x550   :  { %9052 = vtanh.f32 %v2737_v40  ;;  %v2741_v15 = vadd.f32 %v2740_v10, %v10729_v62  ;;  %3155 = vmatmul.mubr.bf16.gmra.mrb[192].mxu1 %v2859_v63 }
 0x551   :  { %v9043_v17 = vpop.eup %9042  ;;  %9054 = vtanh.f32 %v2739_v5 }
 0x552   :  { %v9045_v20 = vpop.eup %9044  ;;  %9056 = vtanh.f32 %v2741_v15 }
 0x553   :  { %v9047_v23 = vpop.eup %9046 }
 0x554   :  { %v9049_v55 = vpop.eup %9048  ;;  %v2744_v44 = vpop.f32.mrb[164].mxu0  ;;  %v2861_v48 = vpack.c.bf16 %v9047_v23, %v9043_v17  ;;  %v8095_v23 = vld [vmem:[#allocation4 + $0x194] ss:$8 sps:$4 sm:$0xff]  }
 0x555   :  { %v2745_v24 = vadd.f32 %v2744_v44, %v10726_v54  ;;  %v2746_v25 = vpop.f32.mrb[165].mxu0  ;;  %v2862_v26 = vpack.c.bf16 %v9049_v55, %v9045_v20  ;;  %v8093_v20 = vld [vmem:[#allocation4 + $0x190] ss:$8 sps:$4 sm:$0xff]   ;;  %3543 = vmatprep.subr.bf16.mxu0 %v8095_v23 }
 0x556   :  { %v2747_v28 = vadd.f32 %v2746_v25, %v10729_v62  ;;  %v2748_v53 = vpop.f32.mrb[166].mxu0  ;;  %3544 = vmatpush1.bf16.msra.mxu0 %v8093_v20 }
 0x557   :  { %9058 = vtanh.f32 %v2745_v24  ;;  %v2749_v43 = vadd.f32 %v2748_v53, %v10726_v54  ;;  %v2750_v21 = vpop.f32.mrb[167].mxu0  ;;  %3164 = vmatprep.mubr.bf16.mxu1 %v2862_v26 }
 0x558   :  { %9060 = vtanh.f32 %v2747_v28  ;;  %v2751_v29 = vadd.f32 %v2750_v21, %v10729_v62  ;;  %3165 = vmatmul.mubr.bf16.gmra.mrb[196].mxu1 %v2861_v48 }
 0x559   :  { %v9051_v35 = vpop.eup %9050  ;;  %9062 = vtanh.f32 %v2749_v43 }
 0x55a   :  { %v9053_v41 = vpop.eup %9052  ;;  %9064 = vtanh.f32 %v2751_v29 }
 0x55b   :  { %v9055_v45 = vpop.eup %9054 }
 0x55c   :  { %v9057_v32 = vpop.eup %9056  ;;  %v2754_v56 = vpop.f32.mrb[168].mxu0  ;;  %v2863_v49 = vpack.c.bf16 %v9055_v45, %v9051_v35  ;;  %v8098_v45 = vld [vmem:[#allocation4 + $0x1a4] ss:$8 sps:$4 sm:$0xff]  }
 0x55d   :  { %v2755_v6 = vadd.f32 %v2754_v56, %v10726_v54  ;;  %v2756_v16 = vpop.f32.mrb[169].mxu0  ;;  %v2864_v30 = vpack.c.bf16 %v9057_v32, %v9053_v41  ;;  %v8096_v41 = vld [vmem:[#allocation4 + $0x1a0] ss:$8 sps:$4 sm:$0xff]   ;;  %3545 = vmatprep.subr.bf16.mxu0 %v8098_v45 }
 0x55e   :  { %v2757_v37 = vadd.f32 %v2756_v16, %v10729_v62  ;;  %v2758_v38 = vpop.f32.mrb[170].mxu0  ;;  %3546 = vmatpush1.bf16.msra.mxu0 %v8096_v41  ;;  %v8113_v41 = vld [vmem:[#allocation4 + $0x1f4] ss:$8 sps:$4 sm:$0xff]  }
 0x55f   :  { %9066 = vtanh.f32 %v2755_v6  ;;  %v2759_v42 = vadd.f32 %v2758_v38, %v10726_v54  ;;  %v2760_v51 = vpop.f32.mrb[171].mxu0  ;;  %3174 = vmatprep.mubr.bf16.mxu1 %v2864_v30 }
 0x560   :  { %9068 = vtanh.f32 %v2757_v37  ;;  %v2761_v58 = vadd.f32 %v2760_v51, %v10729_v62  ;;  %3175 = vmatmul.mubr.bf16.gmra.mrb[200].mxu1 %v2863_v49 }
 0x561   :  { %v9059_v61 = vpop.eup %9058  ;;  %9070 = vtanh.f32 %v2759_v42 }
 0x562   :  { %v9061_v63 = vpop.eup %9060  ;;  %9072 = vtanh.f32 %v2761_v58 }
 0x563   :  { %v9063_v1 = vpop.eup %9062 }
 0x564   :  { %v9065_v2 = vpop.eup %9064  ;;  %v2764_v39 = vpop.f32.mrb[172].mxu0  ;;  %v2865_v40 = vpack.c.bf16 %v9063_v1, %v9059_v61  ;;  %v8101_v61 = vld [vmem:[#allocation4 + $0x1b4] ss:$8 sps:$4 sm:$0xff]  }
 0x565   :  { %v2765_v3 = vadd.f32 %v2764_v39, %v10726_v54  ;;  %v2766_v5 = vpop.f32.mrb[173].mxu0  ;;  %v2866_v10 = vpack.c.bf16 %v9065_v2, %v9061_v63  ;;  %3547 = vmatprep.subr.bf16.mxu0 %v8101_v61 }
 0x566   :  { %v2767_v12 = vadd.f32 %v2766_v5, %v10729_v62  ;;  %v2768_v13 = vpop.f32.mrb[174].mxu0  ;;  %3548 = vmatpush1.bf16.msra.mxu0 %v8099_v7 }
 0x567   :  { %9074 = vtanh.f32 %v2765_v3  ;;  %v2769_v15 = vadd.f32 %v2768_v13, %v10726_v54  ;;  %v2770_v17 = vpop.f32.mrb[175].mxu0  ;;  %3184 = vmatprep.mubr.bf16.mxu1 %v2866_v10 }
 0x568   :  { %9076 = vtanh.f32 %v2767_v12  ;;  %v2771_v55 = vadd.f32 %v2770_v17, %v10729_v62  ;;  %3185 = vmatmul.mubr.bf16.gmra.mrb[204].mxu1 %v2865_v40  ;;  %v8104_v17 = vld [vmem:[#allocation4 + $0x1c4] ss:$8 sps:$4 sm:$0xff]  }
 0x569   :  { %v9067_v44 = vpop.eup %9066  ;;  %9078 = vtanh.f32 %v2769_v15  ;;  %v8102_v15 = vld [vmem:[#allocation4 + $0x1c0] ss:$8 sps:$4 sm:$0xff]   ;;  %3549 = vmatprep.subr.bf16.mxu0 %v8104_v17 }
 0x56a   :  { %v9069_v48 = vpop.eup %9068  ;;  %9080 = vtanh.f32 %v2771_v55  ;;  %3550 = vmatpush1.bf16.msra.mxu0 %v8102_v15 }
 0x56b   :  { %v9071_v24 = vpop.eup %9070 }
 0x56c   :  { %v9073_v25 = vpop.eup %9072  ;;  %v2774_v26 = vpop.f32.mrb[176].mxu0  ;;  %v2867_v28 = vpack.c.bf16 %v9071_v24, %v9067_v44 }
 0x56d   :  { %v2775_v53 = vadd.f32 %v2774_v26, %v10726_v54  ;;  %v2776_v4 = vpop.f32.mrb[177].mxu0  ;;  %v2868_v11 = vpack.c.bf16 %v9073_v25, %v9069_v48 }
 0x56e   :  { %v2777_v43 = vadd.f32 %v2776_v4, %v10729_v62  ;;  %v2778_v21 = vpop.f32.mrb[178].mxu0  ;;  %v8108_v4 = vld [vmem:[#allocation4 + $0x1e0] ss:$8 sps:$4 sm:$0xff]  }
 0x56f   :  { %9082 = vtanh.f32 %v2775_v53  ;;  %v2779_v29 = vadd.f32 %v2778_v21, %v10726_v54  ;;  %v2780_v35 = vpop.f32.mrb[179].mxu0  ;;  %3194 = vmatprep.mubr.bf16.mxu1 %v2868_v11  ;;  %v8107_v53 = vld [vmem:[#allocation4 + $0x1d4] ss:$8 sps:$4 sm:$0xff]   ;;  %v8110_v11 = vld [vmem:[#allocation4 + $0x1e4] ss:$8 sps:$4 sm:$0xff]  }
 0x570   :  { %9084 = vtanh.f32 %v2777_v43  ;;  %v2781_v32 = vadd.f32 %v2780_v35, %v10729_v62  ;;  %3195 = vmatmul.mubr.bf16.gmra.mrb[208].mxu1 %v2867_v28  ;;  %v8105_v28 = vld [vmem:[#allocation4 + $0x1d0] ss:$8 sps:$4 sm:$0xff]   ;;  %3551 = vmatprep.subr.bf16.mxu0 %v8107_v53 }
 0x571   :  { %v9075_v56 = vpop.eup %9074  ;;  %9086 = vtanh.f32 %v2779_v29  ;;  %3552 = vmatpush1.bf16.msra.mxu0 %v8105_v28  ;;  %v8111_v35 = vld [vmem:[#allocation4 + $0x1f0] ss:$8 sps:$4 sm:$0xff]  }
 0x572   :  { %v9077_v49 = vpop.eup %9076  ;;  %9088 = vtanh.f32 %v2781_v32  ;;  %3553 = vmatprep.subr.bf16.mxu0 %v8110_v11 }
 0x573   :  { %v9079_v6 = vpop.eup %9078 }
 0x574   :  { %v9081_v16 = vpop.eup %9080  ;;  %v2784_v30 = vpop.f32.mrb[180].mxu0  ;;  %v2869_v33 = vpack.c.bf16 %v9079_v6, %v9075_v56 }
 0x575   :  { %v2785_v34 = vadd.f32 %v2784_v30, %v10726_v54  ;;  %v2786_v37 = vpop.f32.mrb[181].mxu0  ;;  %v2870_v38 = vpack.c.bf16 %v9081_v16, %v9077_v49  ;;  %3554 = vmatpush1.bf16.msra.mxu0 %v8108_v4 }
 0x576   :  { %v2787_v42 = vadd.f32 %v2786_v37, %v10729_v62  ;;  %v2788_v51 = vpop.f32.mrb[182].mxu0  ;;  %3555 = vmatprep.subr.bf16.mxu0 %v8113_v41 }
 0x577   :  { %9090 = vtanh.f32 %v2785_v34  ;;  %v2789_v57 = vadd.f32 %v2788_v51, %v10726_v54  ;;  %v2790_v58 = vpop.f32.mrb[183].mxu0  ;;  %3204 = vmatprep.mubr.bf16.mxu1 %v2870_v38 }
 0x578   :  { %9092 = vtanh.f32 %v2787_v42  ;;  %v2791_v63 = vadd.f32 %v2790_v58, %v10729_v62  ;;  %3205 = vmatmul.mubr.bf16.gmra.mrb[212].mxu1 %v2869_v33 }
 0x579   :  { %v9083_v1 = vpop.eup %9082  ;;  %9094 = vtanh.f32 %v2789_v57  ;;  %3556 = vmatpush1.bf16.msra.mxu0 %v8111_v35 }
 0x57a   :  { %v9085_v2 = vpop.eup %9084  ;;  %9096 = vtanh.f32 %v2791_v63 }
 0x57b   :  { %v9087_v39 = vpop.eup %9086 }
 0x57c   :  { %v9089_v40 = vpop.eup %9088  ;;  %v2794_v3 = vpop.f32.mrb[184].mxu0  ;;  %v2871_v5 = vpack.c.bf16 %v9087_v39, %v9083_v1 }
 0x57d   :  { %v2795_v10 = vadd.f32 %v2794_v3, %v10726_v54  ;;  %v2872_v12 = vpack.c.bf16 %v9089_v40, %v9085_v2  ;;  %v2796_v13 = vpop.f32.mrb[185].mxu0 }
 0x57e   :  { %v2797_v20 = vadd.f32 %v2796_v13, %v10729_v62  ;;  %v2798_v23 = vpop.f32.mrb[186].mxu0 }
 0x57f   :  { %9098 = vtanh.f32 %v2795_v10  ;;  %3214 = vmatprep.mubr.bf16.mxu1 %v2872_v12  ;;  %v2799_v55 = vpop.f32.mrb[187].mxu0 }
 0x580   :  { %9100 = vtanh.f32 %v2797_v20  ;;  %3215 = vmatmul.mubr.bf16.gmra.mrb[216].mxu1 %v2871_v5 }
 0x581   :  { %v9091_v44 = vpop.eup %9090 }
 0x582   :  { %v9093_v48 = vpop.eup %9092 }
 0x583   :  { %v9095_v24 = vpop.eup %9094 }
 0x584   :  { %v9097_v25 = vpop.eup %9096  ;;  %v2873_v26 = vpack.c.bf16 %v9095_v24, %v9091_v44 }
 0x585   :  { %v2874_v54 = vpack.c.bf16 %v9097_v25, %v9093_v48 }
 0x587   :  { %3224 = vmatprep.mubr.bf16.mxu1 %v2874_v54 }
 0x588   :  { %3225 = vmatmul.mubr.bf16.gmra.mrb[220].mxu1 %v2873_v26 }
 0x589   :  { %v9099_v62 = vpop.eup %9098 }
 0x58a   :  { %v9101_v43 = vpop.eup %9100  ;;  %v2875_v29 = vpack.c.bf16 %v9099_v62, %v9099_v62 }
 0x58b   :  { %v2876_v21 = vpack.c.bf16 %v9101_v43, %v9101_v43 }
 0x58d   :  { %3234 = vmatprep.mubr.bf16.mxu1 %v2876_v21 }
 0x590   :  { %3235 = vmatmul.mubr.bf16.gmra.mrb[224].mxu1 %v2875_v29 }
 0x59b   :  { %v10781_v45 = vpop.f32.mrb[124].mxu1 }
 0x59c   :  { %v10783_v32 = vpop.f32.mrb[125].mxu1 }
 0x59d   :  { %v10785_v56 = vpop.f32.mrb[126].mxu1 }
 0x59e   :  { %v10787_v49 = vpop.f32.mrb[127].mxu1 }
 0x5a3   :  { %v10789_v6 = vpop.f32.mrb[128].mxu1 }
 0x5a4   :  { %v10791_v16 = vpop.f32.mrb[129].mxu1 }
 0x5a5   :  { %v10793_v30 = vpop.f32.mrb[130].mxu1 }
 0x5a6   :  { %v10795_v33 = vpop.f32.mrb[131].mxu1 }
 0x5ab   :  { %v10797_v34 = vpop.f32.mrb[132].mxu1 }
 0x5ac   :  { %v10799_v37 = vpop.f32.mrb[133].mxu1 }
 0x5ad   :  { %v10801_v38 = vpop.f32.mrb[134].mxu1 }
 0x5ae   :  { %v10803_v42 = vpop.f32.mrb[135].mxu1 }
 0x5b3   :  { %v10805_v51 = vpop.f32.mrb[136].mxu1 }
 0x5b4   :  { %v10807_v57 = vpop.f32.mrb[137].mxu1 }
 0x5b5   :  { %v10809_v58 = vpop.f32.mrb[138].mxu1 }
 0x5b6   :  { %v10811_v7 = vpop.f32.mrb[139].mxu1 }
 0x5bb   :  { %v10813_v61 = vpop.f32.mrb[140].mxu1 }
 0x5bc   :  { %v10815_v63 = vpop.f32.mrb[141].mxu1 }
 0x5bd   :  { %v10817_v1 = vpop.f32.mrb[142].mxu1 }
 0x5be   :  { %v10819_v2 = vpop.f32.mrb[143].mxu1 }
 0x5c3   :  { %v10821_v39 = vpop.f32.mrb[144].mxu1 }
 0x5c4   :  { %v10823_v40 = vpop.f32.mrb[145].mxu1 }
 0x5c5   :  { %v10825_v3 = vpop.f32.mrb[146].mxu1 }
 0x5c6   :  { %v10827_v5 = vpop.f32.mrb[147].mxu1 }
 0x5cb   :  { %v10829_v10 = vpop.f32.mrb[148].mxu1 }
 0x5cc   :  { %v10831_v12 = vpop.f32.mrb[149].mxu1 }
 0x5cd   :  { %v10833_v13 = vpop.f32.mrb[150].mxu1 }
 0x5ce   :  { %v10835_v15 = vpop.f32.mrb[151].mxu1 }
 0x5d3   :  { %v10837_v17 = vpop.f32.mrb[152].mxu1 }
 0x5d4   :  { %11737 = vst [vmem:[#allocation9_spill] sm:$0xff] %v10837_v17  ;;  %v10839_v20 = vpop.f32.mrb[153].mxu1  ;;  %v8153_v17 = vld [vmem:[#allocation4 + $0x2d0] ss:$8 sps:$4 sm:$0xff]  }
 0x5d5   :  { %11738 = vst [vmem:[#allocation10_spill] sm:$0xff] %v10839_v20  ;;  %v10841_v23 = vpop.f32.mrb[154].mxu1 }
 0x5d6   :  { %11739 = vst [vmem:[#allocation11_spill] sm:$0xff] %v10841_v23  ;;  %v10843_v55 = vpop.f32.mrb[155].mxu1 }
 0x5d7   :  { %11740 = vst [vmem:[#allocation12_spill] sm:$0xff] %v10843_v55 }
 0x5db   :  { %v10845_v44 = vpop.f32.mrb[156].mxu1 }
 0x5dc   :  { %11741 = vst [vmem:[#allocation13_spill] sm:$0xff] %v10845_v44  ;;  %v10847_v48 = vpop.f32.mrb[157].mxu1 }
 0x5dd   :  { %11742 = vst [vmem:[#allocation14_spill] sm:$0xff] %v10847_v48  ;;  %v10849_v24 = vpop.f32.mrb[158].mxu1  ;;  %v8134_v48 = vld [vmem:[#allocation4 + $0x264] ss:$8 sps:$4 sm:$0xff]  }
 0x5de   :  { %11743 = vst [vmem:[#allocation15_spill] sm:$0xff] %v10849_v24  ;;  %v10851_v25 = vpop.f32.mrb[159].mxu1  ;;  %v8126_v24 = vld [vmem:[#allocation4 + $0x240] ss:$8 sps:$4 sm:$0xff]  }
 0x5df   :  { %11744 = vst [vmem:[#allocation16_spill] sm:$0xff] %v10851_v25 }
 0x5e3   :  { %v10853_v26 = vpop.f32.mrb[160].mxu1 }
 0x5e4   :  { %11745 = vst [vmem:[#allocation17_spill] sm:$0xff] %v10853_v26  ;;  %v10855_v54 = vpop.f32.mrb[161].mxu1 }
 0x5e5   :  { %11746 = vst [vmem:[#allocation18_spill] sm:$0xff] %v10855_v54  ;;  %v10857_v28 = vpop.f32.mrb[162].mxu1  ;;  %v8119_v54 = vld [vmem:[#allocation4 + $0x214] ss:$8 sps:$4 sm:$0xff]  }
 0x5e6   :  { %11747 = vst [vmem:[#allocation19_spill] sm:$0xff] %v10857_v28  ;;  %v10859_v53 = vpop.f32.mrb[163].mxu1  ;;  %v8116_v28 = vld [vmem:[#allocation4 + $0x204] ss:$8 sps:$4 sm:$0xff]  }
 0x5e7   :  { %11748 = vst [vmem:[#allocation20_spill] sm:$0xff] %v10859_v53  ;;  %3968 = vmatprep.subr.bf16.mxu1 %v8116_v28 }
 0x5e8   :  { %3969 = vmatpush1.bf16.msra.mxu1 %v8114_v0 }
 0x5e9   :  { %3970 = vmatprep.subr.bf16.mxu1 %v8119_v54  ;;  %v8123_v54 = vld [vmem:[#allocation4 + $0x230] ss:$8 sps:$4 sm:$0xff]  }
 0x5eb   :  { %v10861_v62 = vpop.f32.mrb[164].mxu1 }
 0x5ec   :  { %11749 = vst [vmem:[#allocation21_spill] sm:$0xff] %v10861_v62  ;;  %v10863_v4 = vpop.f32.mrb[165].mxu1  ;;  %v8117_v62 = vld [vmem:[#allocation4 + $0x210] ss:$8 sps:$4 sm:$0xff]  }
 0x5ed   :  { %11750 = vst [vmem:[#allocation22_spill] sm:$0xff] %v10863_v4  ;;  %v10865_v11 = vpop.f32.mrb[166].mxu1  ;;  %3971 = vmatpush1.bf16.msra.mxu1 %v8117_v62 }
 0x5ee   :  { %11751 = vst [vmem:[#allocation23_spill] sm:$0xff] %v10865_v11  ;;  %v10867_v43 = vpop.f32.mrb[167].mxu1  ;;  %v8122_v11 = vld [vmem:[#allocation4 + $0x224] ss:$8 sps:$4 sm:$0xff]  }
 0x5ef   :  { %11752 = vst [vmem:[#allocation24_spill] sm:$0xff] %v10867_v43  ;;  %3972 = vmatprep.subr.bf16.mxu1 %v8122_v11 }
 0x5f3   :  { %v10869_v21 = vpop.f32.mrb[168].mxu1 }
 0x5f4   :  { %11753 = vst [vmem:[#allocation25_spill] sm:$0xff] %v10869_v21  ;;  %v10871_v29 = vpop.f32.mrb[169].mxu1  ;;  %v8125_v21 = vld [vmem:[#allocation4 + $0x234] ss:$8 sps:$4 sm:$0xff]  }
 0x5f5   :  { %11754 = vst [vmem:[#allocation26_spill] sm:$0xff] %v10871_v29  ;;  %v10873_v35 = vpop.f32.mrb[170].mxu1  ;;  %v7453_v29 = vld [vmem:[%s11730_s6 + $0x2] sm:$0x3] }
 0x5f6   :  { %11755 = vst [vmem:[#allocation27_spill] sm:$0xff] %v10873_v35  ;;  %v10875_v41 = vpop.f32.mrb[171].mxu1  ;;  %v10885_v28 = vrot.slane %v7453_v29, %v10331_v50  ;;  %v10888_v0 = vrot.slane %v7453_v29, %v10336_v52 }
 0x5f7   :  { %11756 = vst [vmem:[#allocation28_spill] sm:$0xff] %v10875_v41  ;;  %v8120_v41 = vld [vmem:[#allocation4 + $0x220] ss:$8 sps:$4 sm:$0xff]  }
 0x5f8   :  { %3973 = vmatpush1.bf16.msra.mxu1 %v8120_v41  ;;  %v8131_v41 = vld [vmem:[#allocation4 + $0x254] ss:$8 sps:$4 sm:$0xff]  }
 0x5f9   :  { %3974 = vmatprep.subr.bf16.mxu1 %v8125_v21  ;;  %v8129_v21 = vld [vmem:[#allocation4 + $0x250] ss:$8 sps:$4 sm:$0xff]  }
 0x5fb   :  { %v10877_v53 = vpop.f32.mrb[172].mxu1 }
 0x5fc   :  { %11757 = vst [vmem:[#allocation29_spill] sm:$0xff] %v10877_v53  ;;  %v10879_v4 = vpop.f32.mrb[173].mxu1  ;;  %3975 = vmatpush1.bf16.msra.mxu1 %v8123_v54 }
 0x5fd   :  { %11758 = vst [vmem:[#allocation30_spill] sm:$0xff] %v10879_v4  ;;  %v2613_v43 = vpop.f32.mrb[174].mxu1 }
 0x5fe   :  { %v2614_v35 = vpop.f32.mrb[175].mxu1  ;;  %v8128_v43 = vld [vmem:[#allocation4 + $0x244] ss:$8 sps:$4 sm:$0xff]  }
 0x5ff   :  { %3976 = vmatprep.subr.bf16.mxu1 %v8128_v43 }
 0x600   :  { %3977 = vmatpush1.bf16.msra.mxu1 %v8126_v24  ;;  %v8137_v24 = vld [vmem:[#allocation4 + $0x274] ss:$8 sps:$4 sm:$0xff]  }
 0x601   :  { %3978 = vmatprep.subr.bf16.mxu1 %v8131_v41 }
 0x603   :  { %v3116_v53 = vpop.f32.mrb[176].mxu1 }
 0x604   :  { %v3117_v4 = vadd.f32 %v3116_v53, %v10885_v28  ;;  %v3118_v26 = vpop.f32.mrb[177].mxu1  ;;  %3979 = vmatpush1.bf16.msra.mxu1 %v8129_v21 }
 0x605   :  { %v3119_v35 = vadd.f32 %v3118_v26, %v10888_v0  ;;  %v3120_v62 = vpop.f32.mrb[178].mxu1  ;;  %3980 = vmatprep.subr.bf16.mxu1 %v8134_v48 }
 0x606   :  { %9102 = vtanh.f32 %v3117_v4  ;;  %v3121_v11 = vadd.f32 %v3120_v62, %v10885_v28  ;;  %v3122_v25 = vpop.f32.mrb[179].mxu1 }
 0x607   :  { %9104 = vtanh.f32 %v3119_v35  ;;  %v3123_v29 = vadd.f32 %v3122_v25, %v10888_v0  ;;  %v8132_v25 = vld [vmem:[#allocation4 + $0x260] ss:$8 sps:$4 sm:$0xff]  }
 0x608   :  { %9106 = vtanh.f32 %v3121_v11  ;;  %3981 = vmatpush1.bf16.msra.mxu1 %v8132_v25  ;;  %v8138_v25 = vld [vmem:[#allocation4 + $0x280] ss:$8 sps:$4 sm:$0xff]  }
 0x609   :  { %9108 = vtanh.f32 %v3123_v29  ;;  %3982 = vmatprep.subr.bf16.mxu1 %v8137_v24  ;;  %v8143_v24 = vld [vmem:[#allocation4 + $0x294] ss:$8 sps:$4 sm:$0xff]  }
 0x60b   :  { %v3126_v53 = vpop.f32.mrb[180].mxu1 }
 0x60c   :  { %v3127_v26 = vadd.f32 %v3126_v53, %v10885_v28  ;;  %v3128_v4 = vpop.f32.mrb[181].mxu1  ;;  %v8135_v53 = vld [vmem:[#allocation4 + $0x270] ss:$8 sps:$4 sm:$0xff]  }
 0x60d   :  { %v3129_v62 = vadd.f32 %v3128_v4, %v10888_v0  ;;  %v3130_v44 = vpop.f32.mrb[182].mxu1  ;;  %3983 = vmatpush1.bf16.msra.mxu1 %v8135_v53 }
 0x60e   :  { %9110 = vtanh.f32 %v3127_v26  ;;  %v3131_v54 = vadd.f32 %v3130_v44, %v10885_v28  ;;  %v3132_v35 = vpop.f32.mrb[183].mxu1  ;;  %v8140_v44 = vld [vmem:[#allocation4 + $0x284] ss:$8 sps:$4 sm:$0xff]  }
 0x60f   :  { %9112 = vtanh.f32 %v3129_v62  ;;  %v3133_v43 = vadd.f32 %v3132_v35, %v10888_v0  ;;  %3984 = vmatprep.subr.bf16.mxu1 %v8140_v44 }
 0x610   :  { %v9103_v11 = vpop.eup %9102  ;;  %9114 = vtanh.f32 %v3131_v54 }
 0x611   :  { %v9105_v29 = vpop.eup %9104  ;;  %9116 = vtanh.f32 %v3133_v43  ;;  %3985 = vmatpush1.bf16.msra.mxu1 %v8138_v25  ;;  %v8144_v25 = vld [vmem:[#allocation4 + $0x2a0] ss:$8 sps:$4 sm:$0xff]  }
 0x612   :  { %v9107_v41 = vpop.eup %9106  ;;  %3986 = vmatprep.subr.bf16.mxu1 %v8143_v24  ;;  %v8149_v24 = vld [vmem:[#allocation4 + $0x2b4] ss:$8 sps:$4 sm:$0xff]  }
 0x613   :  { %v9109_v4 = vpop.eup %9108  ;;  %v3136_v55 = vpop.f32.mrb[184].mxu1  ;;  %v3293_v26 = vpack.c.bf16 %v9107_v41, %v9103_v11 }
 0x614   :  { %v3137_v21 = vadd.f32 %v3136_v55, %v10885_v28  ;;  %v3138_v23 = vpop.f32.mrb[185].mxu1  ;;  %v3294_v62 = vpack.c.bf16 %v9109_v4, %v9105_v29 }
 0x615   :  { %v3139_v35 = vadd.f32 %v3138_v23, %v10888_v0  ;;  %v3140_v48 = vpop.f32.mrb[186].mxu1  ;;  %v8141_v23 = vld [vmem:[#allocation4 + $0x290] ss:$8 sps:$4 sm:$0xff]  }
 0x616   :  { %9118 = vtanh.f32 %v3137_v21  ;;  %v3141_v54 = vadd.f32 %v3140_v48, %v10885_v28  ;;  %v3142_v20 = vpop.f32.mrb[187].mxu1  ;;  %3557 = vmatprep.mubr.bf16.mxu0 %v3294_v62  ;;  %v8146_v62 = vld [vmem:[#allocation4 + $0x2a4] ss:$8 sps:$4 sm:$0xff]   ;;  %3987 = vmatpush1.bf16.msra.mxu1 %v8141_v23 }
 0x617   :  { %9120 = vtanh.f32 %v3139_v35  ;;  %v3143_v43 = vadd.f32 %v3142_v20, %v10888_v0  ;;  %3558 = vmatmul.mubr.bf16.vlgmr.msra.gmra.mrb[188].mxu0 %v3293_v26  ;;  %3988 = vmatprep.subr.bf16.mxu1 %v8146_v62 }
 0x618   :  { %v9111_v11 = vpop.eup %9110  ;;  %9122 = vtanh.f32 %v3141_v54 }
 0x619   :  { %v9113_v55 = vpop.eup %9112  ;;  %9124 = vtanh.f32 %v3143_v43 }
 0x61a   :  { %v9115_v29 = vpop.eup %9114  ;;  %3989 = vmatpush1.bf16.msra.mxu1 %v8144_v25  ;;  %v8150_v25 = vld [vmem:[#allocation4 + $0x2c0] ss:$8 sps:$4 sm:$0xff]  }
 0x61b   :  { %v9117_v41 = vpop.eup %9116  ;;  %v3146_v4 = vpop.f32.mrb[188].mxu1  ;;  %v3295_v21 = vpack.c.bf16 %v9115_v29, %v9111_v11  ;;  %3990 = vmatprep.subr.bf16.mxu1 %v8149_v24 }
 0x61c   :  { %v3147_v53 = vadd.f32 %v3146_v4, %v10885_v28  ;;  %v3148_v35 = vpop.f32.mrb[189].mxu1  ;;  %v3296_v48 = vpack.c.bf16 %v9117_v41, %v9113_v55  ;;  %v8147_v41 = vld [vmem:[#allocation4 + $0x2b0] ss:$8 sps:$4 sm:$0xff]  }
 0x61d   :  { %v3149_v20 = vadd.f32 %v3148_v35, %v10888_v0  ;;  %v3150_v26 = vpop.f32.mrb[190].mxu1 }
 0x61e   :  { %9126 = vtanh.f32 %v3147_v53  ;;  %v3151_v44 = vadd.f32 %v3150_v26, %v10885_v28  ;;  %v3152_v54 = vpop.f32.mrb[191].mxu1  ;;  %3567 = vmatprep.mubr.bf16.mxu0 %v3296_v48  ;;  %v8152_v48 = vld [vmem:[#allocation4 + $0x2c4] ss:$8 sps:$4 sm:$0xff]   ;;  %3991 = vmatpush1.bf16.msra.mxu1 %v8147_v41 }
 0x61f   :  { %9128 = vtanh.f32 %v3149_v20  ;;  %v3153_v43 = vadd.f32 %v3152_v54, %v10888_v0  ;;  %3568 = vmatmul.mubr.bf16.gmra.mrb[192].mxu0 %v3295_v21  ;;  %3992 = vmatprep.subr.bf16.mxu1 %v8152_v48 }
 0x620   :  { %v9119_v11 = vpop.eup %9118  ;;  %9130 = vtanh.f32 %v3151_v44 }
 0x621   :  { %v9121_v29 = vpop.eup %9120  ;;  %9132 = vtanh.f32 %v3153_v43 }
 0x622   :  { %v9123_v55 = vpop.eup %9122  ;;  %3993 = vmatpush1.bf16.msra.mxu1 %v8150_v25 }
 0x623   :  { %v9125_v4 = vpop.eup %9124  ;;  %v3156_v53 = vpop.f32.mrb[192].mxu1  ;;  %v3297_v35 = vpack.c.bf16 %v9123_v55, %v9119_v11 }
 0x624   :  { %v3157_v23 = vadd.f32 %v3156_v53, %v10885_v28  ;;  %v3158_v20 = vpop.f32.mrb[193].mxu1  ;;  %v3298_v26 = vpack.c.bf16 %v9125_v4, %v9121_v29 }
 0x625   :  { %v3159_v21 = vadd.f32 %v3158_v20, %v10888_v0  ;;  %v3160_v62 = vpop.f32.mrb[194].mxu1 }
 0x626   :  { %9134 = vtanh.f32 %v3157_v23  ;;  %v3161_v44 = vadd.f32 %v3160_v62, %v10885_v28  ;;  %v3162_v54 = vpop.f32.mrb[195].mxu1  ;;  %3577 = vmatprep.mubr.bf16.mxu0 %v3298_v26 }
 0x627   :  { %9136 = vtanh.f32 %v3159_v21  ;;  %v3163_v43 = vadd.f32 %v3162_v54, %v10888_v0  ;;  %3578 = vmatmul.mubr.bf16.gmra.mrb[196].mxu0 %v3297_v35 }
 0x628   :  { %v9127_v24 = vpop.eup %9126  ;;  %9138 = vtanh.f32 %v3161_v44 }
 0x629   :  { %v9129_v11 = vpop.eup %9128  ;;  %9140 = vtanh.f32 %v3163_v43 }
 0x62a   :  { %v9131_v29 = vpop.eup %9130 }
 0x62b   :  { %v9133_v55 = vpop.eup %9132  ;;  %v3166_v4 = vpop.f32.mrb[196].mxu1  ;;  %v3299_v53 = vpack.c.bf16 %v9131_v29, %v9127_v24 }
 0x62c   :  { %v3167_v23 = vadd.f32 %v3166_v4, %v10885_v28  ;;  %v3168_v20 = vpop.f32.mrb[197].mxu1  ;;  %v3300_v26 = vpack.c.bf16 %v9133_v55, %v9129_v11 }
 0x62d   :  { %v3169_v41 = vadd.f32 %v3168_v20, %v10888_v0  ;;  %v3170_v21 = vpop.f32.mrb[198].mxu1 }
 0x62e   :  { %9142 = vtanh.f32 %v3167_v23  ;;  %v3171_v35 = vadd.f32 %v3170_v21, %v10885_v28  ;;  %v3172_v48 = vpop.f32.mrb[199].mxu1  ;;  %3587 = vmatprep.mubr.bf16.mxu0 %v3300_v26 }
 0x62f   :  { %9144 = vtanh.f32 %v3169_v41  ;;  %v3173_v62 = vadd.f32 %v3172_v48, %v10888_v0  ;;  %3588 = vmatmul.mubr.bf16.gmra.mrb[200].mxu0 %v3299_v53 }
 0x630   :  { %v9135_v44 = vpop.eup %9134  ;;  %9146 = vtanh.f32 %v3171_v35 }
 0x631   :  { %v9137_v54 = vpop.eup %9136  ;;  %9148 = vtanh.f32 %v3173_v62 }
 0x632   :  { %v9139_v25 = vpop.eup %9138 }
 0x633   :  { %v9141_v43 = vpop.eup %9140  ;;  %v3176_v24 = vpop.f32.mrb[200].mxu1  ;;  %v3301_v11 = vpack.c.bf16 %v9139_v25, %v9135_v44 }
 0x634   :  { %v3177_v29 = vadd.f32 %v3176_v24, %v10885_v28  ;;  %v3178_v55 = vpop.f32.mrb[201].mxu1  ;;  %v3302_v4 = vpack.c.bf16 %v9141_v43, %v9137_v54 }
 0x635   :  { %v3179_v23 = vadd.f32 %v3178_v55, %v10888_v0  ;;  %v3180_v20 = vpop.f32.mrb[202].mxu1 }
 0x636   :  { %9150 = vtanh.f32 %v3177_v29  ;;  %v3181_v26 = vadd.f32 %v3180_v20, %v10885_v28  ;;  %v3182_v41 = vpop.f32.mrb[203].mxu1  ;;  %3597 = vmatprep.mubr.bf16.mxu0 %v3302_v4 }
 0x637   :  { %9152 = vtanh.f32 %v3179_v23  ;;  %v3183_v53 = vadd.f32 %v3182_v41, %v10888_v0  ;;  %3598 = vmatmul.mubr.bf16.gmra.mrb[204].mxu0 %v3301_v11 }
 0x638   :  { %v9143_v21 = vpop.eup %9142  ;;  %9154 = vtanh.f32 %v3181_v26 }
 0x639   :  { %v9145_v35 = vpop.eup %9144  ;;  %9156 = vtanh.f32 %v3183_v53 }
 0x63a   :  { %v9147_v48 = vpop.eup %9146 }
 0x63b   :  { %v9149_v62 = vpop.eup %9148  ;;  %v3186_v44 = vpop.f32.mrb[204].mxu1  ;;  %v3303_v54 = vpack.c.bf16 %v9147_v48, %v9143_v21 }
 0x63c   :  { %v3187_v25 = vadd.f32 %v3186_v44, %v10885_v28  ;;  %v3188_v43 = vpop.f32.mrb[205].mxu1  ;;  %v3304_v24 = vpack.c.bf16 %v9149_v62, %v9145_v35 }
 0x63d   :  { %v3189_v29 = vadd.f32 %v3188_v43, %v10888_v0  ;;  %v3190_v55 = vpop.f32.mrb[206].mxu1 }
 0x63e   :  { %9158 = vtanh.f32 %v3187_v25  ;;  %v3191_v4 = vadd.f32 %v3190_v55, %v10885_v28  ;;  %v3192_v23 = vpop.f32.mrb[207].mxu1  ;;  %3607 = vmatprep.mubr.bf16.mxu0 %v3304_v24 }
 0x63f   :  { %9160 = vtanh.f32 %v3189_v29  ;;  %v3193_v11 = vadd.f32 %v3192_v23, %v10888_v0  ;;  %3608 = vmatmul.mubr.bf16.gmra.mrb[208].mxu0 %v3303_v54 }
 0x640   :  { %v9151_v20 = vpop.eup %9150  ;;  %9162 = vtanh.f32 %v3191_v4 }
 0x641   :  { %v9153_v26 = vpop.eup %9152  ;;  %9164 = vtanh.f32 %v3193_v11 }
 0x642   :  { %v9155_v41 = vpop.eup %9154 }
 0x643   :  { %v9157_v53 = vpop.eup %9156  ;;  %v3196_v21 = vpop.f32.mrb[208].mxu1  ;;  %v3305_v35 = vpack.c.bf16 %v9155_v41, %v9151_v20 }
 0x644   :  { %v3197_v48 = vadd.f32 %v3196_v21, %v10885_v28  ;;  %v3198_v62 = vpop.f32.mrb[209].mxu1  ;;  %v3306_v44 = vpack.c.bf16 %v9157_v53, %v9153_v26 }
 0x645   :  { %v3199_v25 = vadd.f32 %v3198_v62, %v10888_v0  ;;  %v3200_v43 = vpop.f32.mrb[210].mxu1 }
 0x646   :  { %9166 = vtanh.f32 %v3197_v48  ;;  %v3201_v24 = vadd.f32 %v3200_v43, %v10885_v28  ;;  %v3202_v29 = vpop.f32.mrb[211].mxu1  ;;  %3617 = vmatprep.mubr.bf16.mxu0 %v3306_v44 }
 0x647   :  { %9168 = vtanh.f32 %v3199_v25  ;;  %v3203_v54 = vadd.f32 %v3202_v29, %v10888_v0  ;;  %3618 = vmatmul.mubr.bf16.gmra.mrb[212].mxu0 %v3305_v35 }
 0x648   :  { %v9159_v55 = vpop.eup %9158  ;;  %9170 = vtanh.f32 %v3201_v24 }
 0x649   :  { %v9161_v4 = vpop.eup %9160  ;;  %9172 = vtanh.f32 %v3203_v54 }
 0x64a   :  { %v9163_v23 = vpop.eup %9162 }
 0x64b   :  { %v9165_v11 = vpop.eup %9164  ;;  %v3206_v20 = vpop.f32.mrb[212].mxu1  ;;  %v3307_v26 = vpack.c.bf16 %v9163_v23, %v9159_v55 }
 0x64c   :  { %v3207_v41 = vadd.f32 %v3206_v20, %v10885_v28  ;;  %v3208_v53 = vpop.f32.mrb[213].mxu1  ;;  %v3308_v21 = vpack.c.bf16 %v9165_v11, %v9161_v4 }
 0x64d   :  { %v3209_v48 = vadd.f32 %v3208_v53, %v10888_v0  ;;  %v3210_v62 = vpop.f32.mrb[214].mxu1 }
 0x64e   :  { %9174 = vtanh.f32 %v3207_v41  ;;  %v3211_v44 = vadd.f32 %v3210_v62, %v10885_v28  ;;  %v3212_v25 = vpop.f32.mrb[215].mxu1  ;;  %3627 = vmatprep.mubr.bf16.mxu0 %v3308_v21 }
 0x64f   :  { %9176 = vtanh.f32 %v3209_v48  ;;  %v3213_v35 = vadd.f32 %v3212_v25, %v10888_v0  ;;  %3628 = vmatmul.mubr.bf16.gmra.mrb[216].mxu0 %v3307_v26 }
 0x650   :  { %v9167_v43 = vpop.eup %9166  ;;  %9178 = vtanh.f32 %v3211_v44 }
 0x651   :  { %v9169_v24 = vpop.eup %9168  ;;  %9180 = vtanh.f32 %v3213_v35 }
 0x652   :  { %v9171_v29 = vpop.eup %9170 }
 0x653   :  { %v9173_v54 = vpop.eup %9172  ;;  %v3216_v55 = vpop.f32.mrb[216].mxu1  ;;  %v3309_v4 = vpack.c.bf16 %v9171_v29, %v9167_v43 }
 0x654   :  { %v3217_v23 = vadd.f32 %v3216_v55, %v10885_v28  ;;  %v3218_v11 = vpop.f32.mrb[217].mxu1  ;;  %v3310_v20 = vpack.c.bf16 %v9173_v54, %v9169_v24 }
 0x655   :  { %v3219_v41 = vadd.f32 %v3218_v11, %v10888_v0  ;;  %v3220_v53 = vpop.f32.mrb[218].mxu1 }
 0x656   :  { %9182 = vtanh.f32 %v3217_v23  ;;  %v3221_v21 = vadd.f32 %v3220_v53, %v10885_v28  ;;  %v3222_v48 = vpop.f32.mrb[219].mxu1  ;;  %3637 = vmatprep.mubr.bf16.mxu0 %v3310_v20 }
 0x657   :  { %9184 = vtanh.f32 %v3219_v41  ;;  %v3223_v26 = vadd.f32 %v3222_v48, %v10888_v0  ;;  %3638 = vmatmul.mubr.bf16.gmra.mrb[220].mxu0 %v3309_v4 }
 0x658   :  { %v9175_v62 = vpop.eup %9174  ;;  %9186 = vtanh.f32 %v3221_v21 }
 0x659   :  { %v9177_v44 = vpop.eup %9176  ;;  %9188 = vtanh.f32 %v3223_v26 }
 0x65a   :  { %v9179_v25 = vpop.eup %9178 }
 0x65b   :  { %v9181_v35 = vpop.eup %9180  ;;  %v3226_v43 = vpop.f32.mrb[220].mxu1  ;;  %v3311_v24 = vpack.c.bf16 %v9179_v25, %v9175_v62 }
 0x65c   :  { %v3227_v29 = vadd.f32 %v3226_v43, %v10885_v28  ;;  %v3228_v54 = vpop.f32.mrb[221].mxu1  ;;  %v3312_v55 = vpack.c.bf16 %v9181_v35, %v9177_v44 }
 0x65d   :  { %v3229_v23 = vadd.f32 %v3228_v54, %v10888_v0  ;;  %v3230_v11 = vpop.f32.mrb[222].mxu1 }
 0x65e   :  { %9190 = vtanh.f32 %v3227_v29  ;;  %v3231_v20 = vadd.f32 %v3230_v11, %v10885_v28  ;;  %v3232_v41 = vpop.f32.mrb[223].mxu1  ;;  %3647 = vmatprep.mubr.bf16.mxu0 %v3312_v55 }
 0x65f   :  { %9192 = vtanh.f32 %v3229_v23  ;;  %v3233_v4 = vadd.f32 %v3232_v41, %v10888_v0  ;;  %3648 = vmatmul.mubr.bf16.gmra.mrb[224].mxu0 %v3311_v24 }
 0x660   :  { %v9183_v53 = vpop.eup %9182  ;;  %9194 = vtanh.f32 %v3231_v20 }
 0x661   :  { %v9185_v21 = vpop.eup %9184  ;;  %9196 = vtanh.f32 %v3233_v4 }
 0x662   :  { %v9187_v48 = vpop.eup %9186 }
 0x663   :  { %v9189_v26 = vpop.eup %9188  ;;  %v3236_v62 = vpop.f32.mrb[224].mxu1  ;;  %v3313_v44 = vpack.c.bf16 %v9187_v48, %v9183_v53  ;;  %v8155_v53 = vld [vmem:[#allocation4 + $0x2d4] ss:$8 sps:$4 sm:$0xff]  }
 0x664   :  { %v3237_v25 = vadd.f32 %v3236_v62, %v10885_v28  ;;  %v3238_v35 = vpop.f32.mrb[225].mxu1  ;;  %v3314_v43 = vpack.c.bf16 %v9189_v26, %v9185_v21  ;;  %3994 = vmatprep.subr.bf16.mxu1 %v8155_v53  ;;  %v8158_v21 = vld [vmem:[#allocation4 + $0x2e4] ss:$8 sps:$4 sm:$0xff]  }
 0x665   :  { %v3239_v29 = vadd.f32 %v3238_v35, %v10888_v0  ;;  %v3240_v54 = vpop.f32.mrb[226].mxu1  ;;  %3995 = vmatpush1.bf16.msra.mxu1 %v8153_v17  ;;  %v8156_v0 = vld [vmem:[#allocation4 + $0x2e0] ss:$8 sps:$4 sm:$0xff]   ;;  %v8170_v17 = vld [vmem:[#allocation4 + $0x324] ss:$8 sps:$4 sm:$0xff]  }
 0x666   :  { %9198 = vtanh.f32 %v3237_v25  ;;  %3657 = vmatprep.mubr.bf16.mxu0 %v3314_v43  ;;  %v3241_v55 = vpop.f32.mrb[227].mxu1  ;;  %3996 = vmatprep.subr.bf16.mxu1 %v8158_v21  ;;  %v8161_v25 = vld [vmem:[#allocation4 + $0x2f4] ss:$8 sps:$4 sm:$0xff]   ;;  %v8162_v35 = vld [vmem:[#allocation4 + $0x300] ss:$8 sps:$4 sm:$0xff]  }
 0x667   :  { %9200 = vtanh.f32 %v3239_v29  ;;  %3658 = vmatmul.mubr.bf16.gmra.mrb[228].mxu0 %v3313_v44  ;;  %v8159_v44 = vld [vmem:[#allocation4 + $0x2f0] ss:$8 sps:$4 sm:$0xff]   ;;  %v8164_v43 = vld [vmem:[#allocation4 + $0x304] ss:$8 sps:$4 sm:$0xff]   ;;  %v8167_v29 = vld [vmem:[#allocation4 + $0x314] ss:$8 sps:$4 sm:$0xff]  }
 0x668   :  { %v9191_v24 = vpop.eup %9190  ;;  %4411 = vmatprep.subr.bf16.mxu0 %v8164_v43  ;;  %v8165_v54 = vld [vmem:[#allocation4 + $0x310] ss:$8 sps:$4 sm:$0xff]   ;;  %v7486_v55 = vld [vmem:[%s11730_s6 + $0x4] sm:$0x3] }
 0x669   :  { %v9193_v23 = vpop.eup %9192  ;;  %3997 = vmatpush1.bf16.msra.mxu1 %v8156_v0  ;;  %4412 = vmatpush1.bf16.msra.mxu0 %v8162_v35  ;;  %v8176_v53 = vld [vmem:[#allocation4 + $0x344] ss:$8 sps:$4 sm:$0xff]   ;;  %v8179_v35 = vld [vmem:[#allocation4 + $0x354] ss:$8 sps:$4 sm:$0xff]   ;;  %v8177_v43 = vld [vmem:[#allocation4 + $0x350] ss:$8 sps:$4 sm:$0xff]  }
 0x66a   :  { %v9195_v11 = vpop.eup %9194  ;;  %3998 = vmatprep.subr.bf16.mxu1 %v8161_v25  ;;  %4413 = vmatprep.subr.bf16.mxu0 %v8167_v29 }
 0x66b   :  { %v9197_v20 = vpop.eup %9196  ;;  %v3315_v41 = vpack.c.bf16 %v9195_v11, %v9191_v24  ;;  %v8168_v24 = vld [vmem:[#allocation4 + $0x320] ss:$8 sps:$4 sm:$0xff]   ;;  %v10944_v11 = vrot.slane %v7486_v55, %v10331_v50 }
 0x66c   :  { %v3316_v4 = vpack.c.bf16 %v9197_v20, %v9193_v23  ;;  %v8173_v23 = vld [vmem:[#allocation4 + $0x334] ss:$8 sps:$4 sm:$0xff]   ;;  %v10947_v20 = vrot.slane %v7486_v55, %v10336_v52 }
 0x66d   :  { %3999 = vmatpush1.bf16.msra.mxu1 %v8159_v44  ;;  %4414 = vmatpush1.bf16.msra.mxu0 %v8165_v54  ;;  %v8174_v44 = vld [vmem:[#allocation4 + $0x340] ss:$8 sps:$4 sm:$0xff]   ;;  %v8182_v54 = vld [vmem:[#allocation4 + $0x364] ss:$8 sps:$4 sm:$0xff]  }
 0x66e   :  { %3667 = vmatprep.mubr.bf16.mxu0 %v3316_v4  ;;  %4415 = vmatprep.subr.bf16.mxu0 %v8170_v17 }
 0x66f   :  { %3668 = vmatmul.mubr.bf16.gmra.mrb[232].mxu0 %v3315_v41  ;;  %v8171_v41 = vld [vmem:[#allocation4 + $0x330] ss:$8 sps:$4 sm:$0xff]  }
 0x670   :  { %v9199_v28 = vpop.eup %9198 }
 0x671   :  { %v9201_v48 = vpop.eup %9200  ;;  %v3317_v62 = vpack.c.bf16 %v9199_v28, %v9199_v28  ;;  %4416 = vmatpush1.bf16.msra.mxu0 %v8168_v24 }
 0x672   :  { %v3318_v26 = vpack.c.bf16 %v9201_v48, %v9201_v48  ;;  %4417 = vmatprep.subr.bf16.mxu0 %v8173_v23 }
 0x674   :  { %3677 = vmatprep.mubr.bf16.mxu0 %v3318_v26 }
 0x675   :  { %4418 = vmatpush1.bf16.msra.mxu0 %v8171_v41 }
 0x676   :  { %4419 = vmatprep.subr.bf16.mxu0 %v8176_v53  ;;  %v8180_v53 = vld [vmem:[#allocation4 + $0x360] ss:$8 sps:$4 sm:$0xff]  }
 0x677   :  { %3678 = vmatmul.mubr.bf16.gmra.mrb[236].mxu0 %v3317_v62 }
 0x679   :  { %4420 = vmatpush1.bf16.msra.mxu0 %v8174_v44 }
 0x67a   :  { %4421 = vmatprep.subr.bf16.mxu0 %v8179_v35 }
 0x67d   :  { %4422 = vmatpush1.bf16.msra.mxu0 %v8177_v43 }
 0x67e   :  { %4423 = vmatprep.subr.bf16.mxu0 %v8182_v54 }
 0x681   :  { %4424 = vmatpush1.bf16.msra.mxu0 %v8180_v53 }
 0x6ea   :  { %v3559_v4 = vpop.f32.mrb[188].mxu0 }
 0x6eb   :  { %v3560_v28 = vadd.f32 %v3559_v4, %v10944_v11  ;;  %v3561_v0 = vpop.f32.mrb[189].mxu0 }
 0x6ec   :  { %v3562_v21 = vadd.f32 %v3561_v0, %v10947_v20  ;;  %v3563_v48 = vpop.f32.mrb[190].mxu0  ;;  %v8185_v0 = vld [vmem:[#allocation4 + $0x374] ss:$8 sps:$4 sm:$0xff]  }
 0x6ed   :  { %9202 = vtanh.f32 %v3560_v28  ;;  %v3564_v26 = vadd.f32 %v3563_v48, %v10944_v11  ;;  %v3565_v62 = vpop.f32.mrb[191].mxu0  ;;  %4425 = vmatprep.subr.bf16.mxu0 %v8185_v0 }
 0x6ee   :  { %9204 = vtanh.f32 %v3562_v21  ;;  %v3566_v25 = vadd.f32 %v3565_v62, %v10947_v20  ;;  %v8183_v62 = vld [vmem:[#allocation4 + $0x370] ss:$8 sps:$4 sm:$0xff]  }
 0x6ef   :  { %9206 = vtanh.f32 %v3564_v26  ;;  %4426 = vmatpush1.bf16.msra.mxu0 %v8183_v62 }
 0x6f0   :  { %9208 = vtanh.f32 %v3566_v25 }
 0x6f2   :  { %v3569_v29 = vpop.f32.mrb[192].mxu0 }
 0x6f3   :  { %v3570_v17 = vadd.f32 %v3569_v29, %v10944_v11  ;;  %v3571_v55 = vpop.f32.mrb[193].mxu0  ;;  %v8188_v29 = vld [vmem:[#allocation4 + $0x384] ss:$8 sps:$4 sm:$0xff]  }
 0x6f4   :  { %v3572_v24 = vadd.f32 %v3571_v55, %v10947_v20  ;;  %v3573_v23 = vpop.f32.mrb[194].mxu0  ;;  %4427 = vmatprep.subr.bf16.mxu0 %v8188_v29 }
 0x6f5   :  { %9210 = vtanh.f32 %v3570_v17  ;;  %v3574_v41 = vadd.f32 %v3573_v23, %v10944_v11  ;;  %v3575_v4 = vpop.f32.mrb[195].mxu0 }
 0x6f6   :  { %9212 = vtanh.f32 %v3572_v24  ;;  %v3576_v28 = vadd.f32 %v3575_v4, %v10947_v20  ;;  %v8186_v4 = vld [vmem:[#allocation4 + $0x380] ss:$8 sps:$4 sm:$0xff]  }
 0x6f7   :  { %v9203_v21 = vpop.eup %9202  ;;  %9214 = vtanh.f32 %v3574_v41  ;;  %4428 = vmatpush1.bf16.msra.mxu0 %v8186_v4 }
 0x6f8   :  { %v9205_v48 = vpop.eup %9204  ;;  %9216 = vtanh.f32 %v3576_v28  ;;  %v8191_v28 = vld [vmem:[#allocation4 + $0x394] ss:$8 sps:$4 sm:$0xff]  }
 0x6f9   :  { %v9207_v26 = vpop.eup %9206  ;;  %4429 = vmatprep.subr.bf16.mxu0 %v8191_v28 }
 0x6fa   :  { %v9209_v44 = vpop.eup %9208  ;;  %v3579_v25 = vpop.f32.mrb[196].mxu0  ;;  %v3736_v35 = vpack.c.bf16 %v9207_v26, %v9203_v21  ;;  %v8189_v26 = vld [vmem:[#allocation4 + $0x390] ss:$8 sps:$4 sm:$0xff]  }
 0x6fb   :  { %v3580_v43 = vadd.f32 %v3579_v25, %v10944_v11  ;;  %v3581_v17 = vpop.f32.mrb[197].mxu0  ;;  %v3737_v55 = vpack.c.bf16 %v9209_v44, %v9205_v48  ;;  %4430 = vmatpush1.bf16.msra.mxu0 %v8189_v26 }
 0x6fc   :  { %v3582_v24 = vadd.f32 %v3581_v17, %v10947_v20  ;;  %v3583_v54 = vpop.f32.mrb[198].mxu0  ;;  %v8194_v17 = vld [vmem:[#allocation4 + $0x3a4] ss:$8 sps:$4 sm:$0xff]  }
 0x6fd   :  { %9218 = vtanh.f32 %v3580_v43  ;;  %v3584_v23 = vadd.f32 %v3583_v54, %v10944_v11  ;;  %v3585_v41 = vpop.f32.mrb[199].mxu0  ;;  %4000 = vmatprep.mubr.bf16.mxu1 %v3737_v55  ;;  %4431 = vmatprep.subr.bf16.mxu0 %v8194_v17 }
 0x6fe   :  { %9220 = vtanh.f32 %v3582_v24  ;;  %v3586_v53 = vadd.f32 %v3585_v41, %v10947_v20  ;;  %4001 = vmatmul.mubr.bf16.vlgmr.msra.gmra.mrb[228].mxu1 %v3736_v35  ;;  %v8192_v41 = vld [vmem:[#allocation4 + $0x3a0] ss:$8 sps:$4 sm:$0xff]  }
 0x6ff   :  { %v9211_v0 = vpop.eup %9210  ;;  %9222 = vtanh.f32 %v3584_v23  ;;  %4432 = vmatpush1.bf16.msra.mxu0 %v8192_v41 }
 0x700   :  { %v9213_v21 = vpop.eup %9212  ;;  %9224 = vtanh.f32 %v3586_v53  ;;  %v8197_v53 = vld [vmem:[#allocation4 + $0x3b4] ss:$8 sps:$4 sm:$0xff]  }
 0x701   :  { %v9215_v48 = vpop.eup %9214  ;;  %4433 = vmatprep.subr.bf16.mxu0 %v8197_v53 }
 0x702   :  { %v9217_v44 = vpop.eup %9216  ;;  %v3589_v25 = vpop.f32.mrb[200].mxu0  ;;  %v3738_v43 = vpack.c.bf16 %v9215_v48, %v9211_v0  ;;  %v8195_v48 = vld [vmem:[#allocation4 + $0x3b0] ss:$8 sps:$4 sm:$0xff]  }
 0x703   :  { %v3590_v62 = vadd.f32 %v3589_v25, %v10944_v11  ;;  %v3591_v55 = vpop.f32.mrb[201].mxu0  ;;  %v3739_v24 = vpack.c.bf16 %v9217_v44, %v9213_v21  ;;  %4434 = vmatpush1.bf16.msra.mxu0 %v8195_v48 }
 0x704   :  { %v3592_v35 = vadd.f32 %v3591_v55, %v10947_v20  ;;  %v3593_v29 = vpop.f32.mrb[202].mxu0  ;;  %v8200_v55 = vld [vmem:[#allocation4 + $0x3c4] ss:$8 sps:$4 sm:$0xff]  }
 0x705   :  { %9226 = vtanh.f32 %v3590_v62  ;;  %v3594_v54 = vadd.f32 %v3593_v29, %v10944_v11  ;;  %v3595_v23 = vpop.f32.mrb[203].mxu0  ;;  %4010 = vmatprep.mubr.bf16.mxu1 %v3739_v24  ;;  %4435 = vmatprep.subr.bf16.mxu0 %v8200_v55 }
 0x706   :  { %9228 = vtanh.f32 %v3592_v35  ;;  %v3596_v4 = vadd.f32 %v3595_v23, %v10947_v20  ;;  %4011 = vmatmul.mubr.bf16.gmra.mrb[232].mxu1 %v3738_v43  ;;  %v8198_v23 = vld [vmem:[#allocation4 + $0x3c0] ss:$8 sps:$4 sm:$0xff]  }
 0x707   :  { %v9219_v28 = vpop.eup %9218  ;;  %9230 = vtanh.f32 %v3594_v54  ;;  %4436 = vmatpush1.bf16.msra.mxu0 %v8198_v23 }
 0x708   :  { %v9221_v0 = vpop.eup %9220  ;;  %9232 = vtanh.f32 %v3596_v4 }
 0x709   :  { %v9223_v21 = vpop.eup %9222 }
 0x70a   :  { %v9225_v44 = vpop.eup %9224  ;;  %v3599_v25 = vpop.f32.mrb[204].mxu0  ;;  %v3740_v62 = vpack.c.bf16 %v9223_v21, %v9219_v28 }
 0x70b   :  { %v3600_v26 = vadd.f32 %v3599_v25, %v10944_v11  ;;  %v3601_v24 = vpop.f32.mrb[205].mxu0  ;;  %v3741_v35 = vpack.c.bf16 %v9225_v44, %v9221_v0 }
 0x70c   :  { %v3602_v43 = vadd.f32 %v3601_v24, %v10947_v20  ;;  %v3603_v17 = vpop.f32.mrb[206].mxu0 }
 0x70d   :  { %9234 = vtanh.f32 %v3600_v26  ;;  %v3604_v29 = vadd.f32 %v3603_v17, %v10944_v11  ;;  %v3605_v54 = vpop.f32.mrb[207].mxu0  ;;  %4020 = vmatprep.mubr.bf16.mxu1 %v3741_v35 }
 0x70e   :  { %9236 = vtanh.f32 %v3602_v43  ;;  %v3606_v41 = vadd.f32 %v3605_v54, %v10947_v20  ;;  %4021 = vmatmul.mubr.bf16.gmra.mrb[236].mxu1 %v3740_v62 }
 0x70f   :  { %v9227_v4 = vpop.eup %9226  ;;  %9238 = vtanh.f32 %v3604_v29 }
 0x710   :  { %v9229_v53 = vpop.eup %9228  ;;  %9240 = vtanh.f32 %v3606_v41 }
 0x711   :  { %v9231_v28 = vpop.eup %9230 }
 0x712   :  { %v9233_v0 = vpop.eup %9232  ;;  %v3609_v21 = vpop.f32.mrb[208].mxu0  ;;  %v3742_v44 = vpack.c.bf16 %v9231_v28, %v9227_v4 }
 0x713   :  { %v3610_v25 = vadd.f32 %v3609_v21, %v10944_v11  ;;  %v3611_v26 = vpop.f32.mrb[209].mxu0  ;;  %v3743_v24 = vpack.c.bf16 %v9233_v0, %v9229_v53 }
 0x714   :  { %v3612_v48 = vadd.f32 %v3611_v26, %v10947_v20  ;;  %v3613_v35 = vpop.f32.mrb[210].mxu0 }
 0x715   :  { %9242 = vtanh.f32 %v3610_v25  ;;  %v3614_v62 = vadd.f32 %v3613_v35, %v10944_v11  ;;  %v3615_v55 = vpop.f32.mrb[211].mxu0  ;;  %4030 = vmatprep.mubr.bf16.mxu1 %v3743_v24 }
 0x716   :  { %9244 = vtanh.f32 %v3612_v48  ;;  %v3616_v43 = vadd.f32 %v3615_v55, %v10947_v20  ;;  %4031 = vmatmul.mubr.bf16.gmra.mrb[240].mxu1 %v3742_v44 }
 0x717   :  { %v9235_v17 = vpop.eup %9234  ;;  %9246 = vtanh.f32 %v3614_v62 }
 0x718   :  { %v9237_v29 = vpop.eup %9236  ;;  %9248 = vtanh.f32 %v3616_v43 }
 0x719   :  { %v9239_v54 = vpop.eup %9238 }
 0x71a   :  { %v9241_v23 = vpop.eup %9240  ;;  %v3619_v41 = vpop.f32.mrb[212].mxu0  ;;  %v3744_v4 = vpack.c.bf16 %v9239_v54, %v9235_v17 }
 0x71b   :  { %v3620_v53 = vadd.f32 %v3619_v41, %v10944_v11  ;;  %v3621_v28 = vpop.f32.mrb[213].mxu0  ;;  %v3745_v0 = vpack.c.bf16 %v9241_v23, %v9237_v29 }
 0x71c   :  { %v3622_v21 = vadd.f32 %v3621_v28, %v10947_v20  ;;  %v3623_v25 = vpop.f32.mrb[214].mxu0 }
 0x71d   :  { %9250 = vtanh.f32 %v3620_v53  ;;  %v3624_v26 = vadd.f32 %v3623_v25, %v10944_v11  ;;  %v3625_v24 = vpop.f32.mrb[215].mxu0  ;;  %4040 = vmatprep.mubr.bf16.mxu1 %v3745_v0 }
 0x71e   :  { %9252 = vtanh.f32 %v3622_v21  ;;  %v3626_v44 = vadd.f32 %v3625_v24, %v10947_v20  ;;  %4041 = vmatmul.mubr.bf16.gmra.mrb[244].mxu1 %v3744_v4 }
 0x71f   :  { %v9243_v48 = vpop.eup %9242  ;;  %9254 = vtanh.f32 %v3624_v26 }
 0x720   :  { %v9245_v35 = vpop.eup %9244  ;;  %9256 = vtanh.f32 %v3626_v44 }
 0x721   :  { %v9247_v62 = vpop.eup %9246 }
 0x722   :  { %v9249_v55 = vpop.eup %9248  ;;  %v3629_v43 = vpop.f32.mrb[216].mxu0  ;;  %v3746_v17 = vpack.c.bf16 %v9247_v62, %v9243_v48 }
 0x723   :  { %v3630_v29 = vadd.f32 %v3629_v43, %v10944_v11  ;;  %v3631_v54 = vpop.f32.mrb[217].mxu0  ;;  %v3747_v23 = vpack.c.bf16 %v9249_v55, %v9245_v35 }
 0x724   :  { %v3632_v41 = vadd.f32 %v3631_v54, %v10947_v20  ;;  %v3633_v53 = vpop.f32.mrb[218].mxu0 }
 0x725   :  { %9258 = vtanh.f32 %v3630_v29  ;;  %v3634_v28 = vadd.f32 %v3633_v53, %v10944_v11  ;;  %v3635_v0 = vpop.f32.mrb[219].mxu0  ;;  %4050 = vmatprep.mubr.bf16.mxu1 %v3747_v23 }
 0x726   :  { %9260 = vtanh.f32 %v3632_v41  ;;  %v3636_v4 = vadd.f32 %v3635_v0, %v10947_v20  ;;  %4051 = vmatmul.mubr.bf16.gmra.mrb[248].mxu1 %v3746_v17 }
 0x727   :  { %v9251_v21 = vpop.eup %9250  ;;  %9262 = vtanh.f32 %v3634_v28 }
 0x728   :  { %v9253_v25 = vpop.eup %9252  ;;  %9264 = vtanh.f32 %v3636_v4 }
 0x729   :  { %v9255_v26 = vpop.eup %9254 }
 0x72a   :  { %v9257_v24 = vpop.eup %9256  ;;  %v3639_v44 = vpop.f32.mrb[220].mxu0  ;;  %v3748_v48 = vpack.c.bf16 %v9255_v26, %v9251_v21 }
 0x72b   :  { %v3640_v35 = vadd.f32 %v3639_v44, %v10944_v11  ;;  %v3641_v62 = vpop.f32.mrb[221].mxu0  ;;  %v3749_v55 = vpack.c.bf16 %v9257_v24, %v9253_v25 }
 0x72c   :  { %v3642_v43 = vadd.f32 %v3641_v62, %v10947_v20  ;;  %v3643_v29 = vpop.f32.mrb[222].mxu0 }
 0x72d   :  { %9266 = vtanh.f32 %v3640_v35  ;;  %v3644_v54 = vadd.f32 %v3643_v29, %v10944_v11  ;;  %v3645_v23 = vpop.f32.mrb[223].mxu0  ;;  %4060 = vmatprep.mubr.bf16.mxu1 %v3749_v55 }
 0x72e   :  { %9268 = vtanh.f32 %v3642_v43  ;;  %v3646_v17 = vadd.f32 %v3645_v23, %v10947_v20  ;;  %4061 = vmatmul.mubr.bf16.gmra.mrb[252].mxu1 %v3748_v48 }
 0x72f   :  { %v9259_v41 = vpop.eup %9258  ;;  %9270 = vtanh.f32 %v3644_v54 }
 0x730   :  { %v9261_v53 = vpop.eup %9260  ;;  %9272 = vtanh.f32 %v3646_v17 }
 0x731   :  { %v9263_v28 = vpop.eup %9262 }
 0x732   :  { %v9265_v0 = vpop.eup %9264  ;;  %v3750_v4 = vpack.c.bf16 %v9263_v28, %v9259_v41  ;;  %v3649_v21 = vpop.f32.mrb[224].mxu0 }
 0x733   :  { %v3650_v25 = vadd.f32 %v3649_v21, %v10944_v11  ;;  %v3651_v26 = vpop.f32.mrb[225].mxu0  ;;  %v3751_v24 = vpack.c.bf16 %v9265_v0, %v9261_v53 }
 0x734   :  { %v3652_v44 = vadd.f32 %v3651_v26, %v10947_v20  ;;  %v3653_v35 = vpop.f32.mrb[226].mxu0 }
 0x735   :  { %9274 = vtanh.f32 %v3650_v25  ;;  %v3654_v62 = vadd.f32 %v3653_v35, %v10944_v11  ;;  %v3655_v55 = vpop.f32.mrb[227].mxu0  ;;  %4070 = vmatprep.mubr.bf16.mxu1 %v3751_v24 }
 0x736   :  { %9276 = vtanh.f32 %v3652_v44  ;;  %v3656_v48 = vadd.f32 %v3655_v55, %v10947_v20  ;;  %4071 = vmatmul.mubr.bf16.gmra.mrb[0].mxu1 %v3750_v4 }
 0x737   :  { %v9267_v43 = vpop.eup %9266  ;;  %9278 = vtanh.f32 %v3654_v62 }
 0x738   :  { %v9269_v29 = vpop.eup %9268  ;;  %9280 = vtanh.f32 %v3656_v48 }
 0x739   :  { %v9271_v54 = vpop.eup %9270 }
 0x73a   :  { %v9273_v23 = vpop.eup %9272  ;;  %v3752_v17 = vpack.c.bf16 %v9271_v54, %v9267_v43  ;;  %v3659_v41 = vpop.f32.mrb[228].mxu0 }
 0x73b   :  { %v3660_v53 = vadd.f32 %v3659_v41, %v10944_v11  ;;  %v3661_v28 = vpop.f32.mrb[229].mxu0  ;;  %v3753_v0 = vpack.c.bf16 %v9273_v23, %v9269_v29 }
 0x73c   :  { %v3662_v21 = vadd.f32 %v3661_v28, %v10947_v20  ;;  %v3663_v25 = vpop.f32.mrb[230].mxu0 }
 0x73d   :  { %9282 = vtanh.f32 %v3660_v53  ;;  %v3664_v26 = vadd.f32 %v3663_v25, %v10944_v11  ;;  %v3665_v24 = vpop.f32.mrb[231].mxu0  ;;  %4080 = vmatprep.mubr.bf16.mxu1 %v3753_v0 }
 0x73e   :  { %9284 = vtanh.f32 %v3662_v21  ;;  %v3666_v4 = vadd.f32 %v3665_v24, %v10947_v20  ;;  %4081 = vmatmul.mubr.bf16.gmra.mrb[4].mxu1 %v3752_v17 }
 0x73f   :  { %v9275_v44 = vpop.eup %9274  ;;  %9286 = vtanh.f32 %v3664_v26 }
 0x740   :  { %v9277_v35 = vpop.eup %9276  ;;  %9288 = vtanh.f32 %v3666_v4 }
 0x741   :  { %v9279_v62 = vpop.eup %9278 }
 0x742   :  { %v9281_v55 = vpop.eup %9280  ;;  %v3754_v48 = vpack.c.bf16 %v9279_v62, %v9275_v44  ;;  %v3669_v43 = vpop.f32.mrb[232].mxu0 }
 0x743   :  { %v3670_v29 = vadd.f32 %v3669_v43, %v10944_v11  ;;  %v3671_v54 = vpop.f32.mrb[233].mxu0  ;;  %v3755_v23 = vpack.c.bf16 %v9281_v55, %v9277_v35 }
 0x744   :  { %v3672_v41 = vadd.f32 %v3671_v54, %v10947_v20  ;;  %v3673_v53 = vpop.f32.mrb[234].mxu0 }
 0x745   :  { %9290 = vtanh.f32 %v3670_v29  ;;  %v3674_v28 = vadd.f32 %v3673_v53, %v10944_v11  ;;  %v3675_v0 = vpop.f32.mrb[235].mxu0  ;;  %4090 = vmatprep.mubr.bf16.mxu1 %v3755_v23 }
 0x746   :  { %9292 = vtanh.f32 %v3672_v41  ;;  %v3676_v17 = vadd.f32 %v3675_v0, %v10947_v20  ;;  %4091 = vmatmul.mubr.bf16.gmra.mrb[8].mxu1 %v3754_v48 }
 0x747   :  { %v9283_v21 = vpop.eup %9282  ;;  %9294 = vtanh.f32 %v3674_v28 }
 0x748   :  { %v9285_v25 = vpop.eup %9284  ;;  %9296 = vtanh.f32 %v3676_v17  ;;  %v8201_v17 = vld [vmem:[#allocation4 + $0x3d0] ss:$8 sps:$4 sm:$0xff]  }
 0x749   :  { %v9287_v26 = vpop.eup %9286 }
 0x74a   :  { %v9289_v24 = vpop.eup %9288  ;;  %v3756_v4 = vpack.c.bf16 %v9287_v26, %v9283_v21  ;;  %v3679_v44 = vpop.f32.mrb[236].mxu0  ;;  %v8203_v21 = vld [vmem:[#allocation4 + $0x3d4] ss:$8 sps:$4 sm:$0xff]  }
 0x74b   :  { %v3680_v35 = vadd.f32 %v3679_v44, %v10944_v11  ;;  %v3681_v62 = vpop.f32.mrb[237].mxu0  ;;  %v3757_v55 = vpack.c.bf16 %v9289_v24, %v9285_v25  ;;  %4437 = vmatprep.subr.bf16.mxu0 %v8203_v21  ;;  %v8204_v11 = vld [vmem:[#allocation4 + $0x3e0] ss:$8 sps:$4 sm:$0xff]   ;;  %v8207_v44 = vld [vmem:[#allocation4 + $0x3f0] ss:$8 sps:$4 sm:$0xff]  }
 0x74c   :  { %v3682_v43 = vadd.f32 %v3681_v62, %v10947_v20  ;;  %v3683_v29 = vpop.f32.mrb[238].mxu0  ;;  %4438 = vmatpush1.bf16.msra.mxu0 %v8201_v17  ;;  %v8206_v20 = vld [vmem:[#allocation4 + $0x3e4] ss:$8 sps:$4 sm:$0xff]  }
 0x74d   :  { %v3684_v54 = vpop.f32.mrb[239].mxu0  ;;  %4100 = vmatprep.mubr.bf16.mxu1 %v3757_v55  ;;  %4439 = vmatprep.subr.bf16.mxu0 %v8206_v20  ;;  %v5015_v62 = vld [vmem:[%s11731_s7] sm:$0xff] }
 0x74e   :  { %9298 = vtanh.f32 %v3682_v43  ;;  %4101 = vmatmul.mubr.bf16.gmra.mrb[12].mxu1 %v3756_v4  ;;  %v7619_v55 = vcombine.high %v5015_v62, %v5015_v62  ;;  %v7519_v43 = vld [vmem:[%s11730_s6 + $0x6] sm:$0x3] }
 0x74f   :  { %v9291_v48 = vpop.eup %9290  ;;  %9300 = vtanh.f32 %v3680_v35  ;;  %v8209_v35 = vld [vmem:[#allocation4 + $0x3f4] ss:$8 sps:$4 sm:$0xff]   ;;  %v11007_v29 = vrot.slane %v7519_v43, %v10331_v50  ;;  %v11010_v54 = vrot.slane %v7519_v43, %v10336_v52  ;;  %v8214_v43 = vld [vmem:[#allocation4 + $0x404] ss:$8 sps:$4 sm:$0xff]  }
 0x750   :  { %v9293_v23 = vpop.eup %9292  ;;  %4440 = vmatpush1.bf16.msra.mxu0 %v8204_v11  ;;  %4854 = vmatprep.subr.bf16.mxu1 %v8214_v43 }
 0x751   :  { %v9295_v41 = vpop.eup %9294  ;;  %4441 = vmatprep.subr.bf16.mxu0 %v8209_v35 }
 0x752   :  { %v9297_v53 = vpop.eup %9296  ;;  %v3758_v28 = vpack.c.bf16 %v9295_v41, %v9291_v48 }
 0x753   :  { %v3759_v0 = vpack.c.bf16 %v9297_v53, %v9293_v23 }
 0x754   :  { %4442 = vmatpush1.bf16.msra.mxu0 %v8207_v44 }
 0x755   :  { %4110 = vmatprep.mubr.bf16.mxu1 %v3759_v0  ;;  %7620 = vmatprep.subr.msk.bf16.mxu0 %vm234_vm0, %v7619_v55  ;;  %v8212_v55 = vld [vmem:[#allocation4 + $0x400] ss:$8 sps:$4 sm:$0xff]  }
 0x756   :  { %4111 = vmatmul.mubr.bf16.gmra.mrb[16].mxu1 %v3758_v28 }
 0x757   :  { %4855 = vmatpush1.bf16.msra.mxu1 %v8212_v55  ;;  %v8217_v55 = vld [vmem:[#allocation4 + $0x414] ss:$8 sps:$4 sm:$0xff]  }
 0x758   :  { %v9299_v25 = vpop.eup %9298  ;;  %4856 = vmatprep.subr.bf16.mxu1 %v8217_v55 }
 0x759   :  { %v9301_v26 = vpop.eup %9300  ;;  %v3761_v24 = vpack.c.bf16 %v9299_v25, %v9299_v25 }
 0x75a   :  { %v3760_v4 = vpack.c.bf16 %v9301_v26, %v9301_v26 }
 0x75b   :  { %4120 = vmatprep.mubr.bf16.mxu1 %v3761_v24 }
 0x75e   :  { %4121 = vmatmul.mubr.bf16.gmra.mrb[20].mxu1 %v3760_v4 }
 0x7d1   :  { %v4002_v48 = vpop.f32.mrb[228].mxu1 }
 0x7d2   :  { %v4003_v23 = vadd.f32 %v4002_v48, %v11007_v29  ;;  %v4004_v41 = vpop.f32.mrb[229].mxu1 }
 0x7d3   :  { %v4005_v53 = vadd.f32 %v4004_v41, %v11010_v54  ;;  %v4006_v28 = vpop.f32.mrb[230].mxu1  ;;  %v7618_v41 = vcombine.low %v5015_v62, %v5015_v62 }
 0x7d4   :  { %9302 = vtanh.f32 %v4003_v23  ;;  %v4007_v0 = vadd.f32 %v4006_v28, %v11007_v29  ;;  %v4008_v17 = vpop.f32.mrb[231].mxu1 }
 0x7d5   :  { %9304 = vtanh.f32 %v4005_v53  ;;  %v4009_v21 = vadd.f32 %v4008_v17, %v11010_v54 }
 0x7d6   :  { %9306 = vtanh.f32 %v4007_v0 }
 0x7d7   :  { %9308 = vtanh.f32 %v4009_v21 }
 0x7d9   :  { %v4012_v11 = vpop.f32.mrb[232].mxu1 }
 0x7da   :  { %v4013_v20 = vadd.f32 %v4012_v11, %v11007_v29  ;;  %v4014_v25 = vpop.f32.mrb[233].mxu1 }
 0x7db   :  { %v4015_v26 = vadd.f32 %v4014_v25, %v11010_v54  ;;  %v4016_v24 = vpop.f32.mrb[234].mxu1 }
 0x7dc   :  { %9310 = vtanh.f32 %v4013_v20  ;;  %v4017_v4 = vadd.f32 %v4016_v24, %v11007_v29  ;;  %v4018_v44 = vpop.f32.mrb[235].mxu1  ;;  %v5034_v24 = vsel %vm234_vm0, %v7618_v41, 0 }
 0x7dd   :  { %9312 = vtanh.f32 %v4015_v26  ;;  %v4019_v35 = vadd.f32 %v4018_v44, %v11010_v54 }
 0x7de   :  { %v9303_v48 = vpop.eup %9302  ;;  %9314 = vtanh.f32 %v4017_v4 }
 0x7df   :  { %v9305_v23 = vpop.eup %9304  ;;  %9316 = vtanh.f32 %v4019_v35  ;;  %v8215_v35 = vld [vmem:[#allocation4 + $0x410] ss:$8 sps:$4 sm:$0xff]  }
 0x7e0   :  { %v9307_v53 = vpop.eup %9306  ;;  %4857 = vmatpush1.bf16.msra.mxu1 %v8215_v35 }
 0x7e1   :  { %v9309_v28 = vpop.eup %9308  ;;  %v4022_v0 = vpop.f32.mrb[236].mxu1  ;;  %v4179_v17 = vpack.c.bf16 %v9307_v53, %v9303_v48 }
 0x7e2   :  { %v4023_v21 = vadd.f32 %v4022_v0, %v11007_v29  ;;  %v4024_v11 = vpop.f32.mrb[237].mxu1  ;;  %v4180_v20 = vpack.c.bf16 %v9309_v28, %v9305_v23 }
 0x7e3   :  { %v4025_v25 = vadd.f32 %v4024_v11, %v11010_v54  ;;  %v4026_v26 = vpop.f32.mrb[238].mxu1 }
 0x7e4   :  { %9318 = vtanh.f32 %v4023_v21  ;;  %v4027_v4 = vadd.f32 %v4026_v26, %v11007_v29  ;;  %v4028_v44 = vpop.f32.mrb[239].mxu1  ;;  %4443 = vmatprep.mubr.bf16.mxu0 %v4180_v20 }
 0x7e5   :  { %9320 = vtanh.f32 %v4025_v25  ;;  %v4029_v62 = vadd.f32 %v4028_v44, %v11010_v54  ;;  %4444 = vmatmul.mubr.bf16.vlgmr.msra.gmra.mrb[240].mxu0 %v4179_v17  ;;  %v8220_v44 = vld [vmem:[#allocation4 + $0x424] ss:$8 sps:$4 sm:$0xff]  }
 0x7e6   :  { %v9311_v43 = vpop.eup %9310  ;;  %9322 = vtanh.f32 %v4027_v4  ;;  %5040 = vmatpush1.bf16.msra.mxu0 %v5034_v24  ;;  %v8218_v4 = vld [vmem:[#allocation4 + $0x420] ss:$8 sps:$4 sm:$0xff]   ;;  %4858 = vmatprep.subr.bf16.mxu1 %v8220_v44 }
 0x7e7   :  { %v9313_v48 = vpop.eup %9312  ;;  %9324 = vtanh.f32 %v4029_v62  ;;  %4859 = vmatpush1.bf16.msra.mxu1 %v8218_v4  ;;  %v8226_v4 = vld [vmem:[#allocation4 + $0x444] ss:$8 sps:$4 sm:$0xff]  }
 0x7e8   :  { %v9315_v23 = vpop.eup %9314 }
 0x7e9   :  { %v9317_v41 = vpop.eup %9316  ;;  %v4032_v53 = vpop.f32.mrb[240].mxu1  ;;  %v4181_v28 = vpack.c.bf16 %v9315_v23, %v9311_v43 }
 0x7ea   :  { %v4033_v0 = vadd.f32 %v4032_v53, %v11007_v29  ;;  %v4034_v21 = vpop.f32.mrb[241].mxu1  ;;  %v4182_v11 = vpack.c.bf16 %v9317_v41, %v9313_v48 }
 0x7eb   :  { %v4035_v20 = vadd.f32 %v4034_v21, %v11010_v54  ;;  %v4036_v17 = vpop.f32.mrb[242].mxu1 }
 0x7ec   :  { %9326 = vtanh.f32 %v4033_v0  ;;  %v4037_v25 = vadd.f32 %v4036_v17, %v11007_v29  ;;  %v4038_v26 = vpop.f32.mrb[243].mxu1  ;;  %4453 = vmatprep.mubr.bf16.mxu0 %v4182_v11 }
 0x7ed   :  { %9328 = vtanh.f32 %v4035_v20  ;;  %v4039_v24 = vadd.f32 %v4038_v26, %v11010_v54  ;;  %4454 = vmatmul.mubr.bf16.gmra.mrb[244].mxu0 %v4181_v28  ;;  %v8223_v26 = vld [vmem:[#allocation4 + $0x434] ss:$8 sps:$4 sm:$0xff]  }
 0x7ee   :  { %v9319_v62 = vpop.eup %9318  ;;  %9330 = vtanh.f32 %v4037_v25  ;;  %v8221_v25 = vld [vmem:[#allocation4 + $0x430] ss:$8 sps:$4 sm:$0xff]   ;;  %4860 = vmatprep.subr.bf16.mxu1 %v8223_v26 }
 0x7ef   :  { %v9321_v35 = vpop.eup %9320  ;;  %9332 = vtanh.f32 %v4039_v24  ;;  %4861 = vmatpush1.bf16.msra.mxu1 %v8221_v25  ;;  %v8229_v25 = vld [vmem:[#allocation4 + $0x454] ss:$8 sps:$4 sm:$0xff]  }
 0x7f0   :  { %v9323_v55 = vpop.eup %9322  ;;  %4862 = vmatprep.subr.bf16.mxu1 %v8226_v4 }
 0x7f1   :  { %v9325_v43 = vpop.eup %9324  ;;  %v4042_v48 = vpop.f32.mrb[244].mxu1  ;;  %v4183_v23 = vpack.c.bf16 %v9323_v55, %v9319_v62 }
 0x7f2   :  { %v4043_v41 = vadd.f32 %v4042_v48, %v11007_v29  ;;  %v4044_v53 = vpop.f32.mrb[245].mxu1  ;;  %v4184_v0 = vpack.c.bf16 %v9325_v43, %v9321_v35  ;;  %v8224_v35 = vld [vmem:[#allocation4 + $0x440] ss:$8 sps:$4 sm:$0xff]  }
 0x7f3   :  { %v4045_v21 = vadd.f32 %v4044_v53, %v11010_v54  ;;  %v4046_v11 = vpop.f32.mrb[246].mxu1  ;;  %4863 = vmatpush1.bf16.msra.mxu1 %v8224_v35 }
 0x7f4   :  { %9334 = vtanh.f32 %v4043_v41  ;;  %v4047_v28 = vadd.f32 %v4046_v11, %v11007_v29  ;;  %v4048_v20 = vpop.f32.mrb[247].mxu1  ;;  %4463 = vmatprep.mubr.bf16.mxu0 %v4184_v0  ;;  %4864 = vmatprep.subr.bf16.mxu1 %v8229_v25 }
 0x7f5   :  { %9336 = vtanh.f32 %v4045_v21  ;;  %v4049_v17 = vadd.f32 %v4048_v20, %v11010_v54  ;;  %4464 = vmatmul.mubr.bf16.gmra.mrb[248].mxu0 %v4183_v23 }
 0x7f6   :  { %v9327_v24 = vpop.eup %9326  ;;  %9338 = vtanh.f32 %v4047_v28 }
 0x7f7   :  { %v9329_v44 = vpop.eup %9328  ;;  %9340 = vtanh.f32 %v4049_v17  ;;  %v8227_v17 = vld [vmem:[#allocation4 + $0x450] ss:$8 sps:$4 sm:$0xff]  }
 0x7f8   :  { %v9331_v62 = vpop.eup %9330  ;;  %4865 = vmatpush1.bf16.msra.mxu1 %v8227_v17 }
 0x7f9   :  { %v9333_v55 = vpop.eup %9332  ;;  %v4052_v43 = vpop.f32.mrb[248].mxu1  ;;  %v4185_v48 = vpack.c.bf16 %v9331_v62, %v9327_v24 }
 0x7fa   :  { %v4053_v41 = vadd.f32 %v4052_v43, %v11007_v29  ;;  %v4054_v53 = vpop.f32.mrb[249].mxu1  ;;  %v4186_v0 = vpack.c.bf16 %v9333_v55, %v9329_v44 }
 0x7fb   :  { %v4055_v23 = vadd.f32 %v4054_v53, %v11010_v54  ;;  %v4056_v21 = vpop.f32.mrb[250].mxu1 }
 0x7fc   :  { %9342 = vtanh.f32 %v4053_v41  ;;  %v4057_v11 = vadd.f32 %v4056_v21, %v11007_v29  ;;  %v4058_v28 = vpop.f32.mrb[251].mxu1  ;;  %4473 = vmatprep.mubr.bf16.mxu0 %v4186_v0 }
 0x7fd   :  { %9344 = vtanh.f32 %v4055_v23  ;;  %v4059_v20 = vadd.f32 %v4058_v28, %v11010_v54  ;;  %4474 = vmatmul.mubr.bf16.gmra.mrb[252].mxu0 %v4185_v48  ;;  %v8232_v28 = vld [vmem:[#allocation4 + $0x464] ss:$8 sps:$4 sm:$0xff]  }
 0x7fe   :  { %v9335_v26 = vpop.eup %9334  ;;  %9346 = vtanh.f32 %v4057_v11  ;;  %v8230_v11 = vld [vmem:[#allocation4 + $0x460] ss:$8 sps:$4 sm:$0xff]   ;;  %4866 = vmatprep.subr.bf16.mxu1 %v8232_v28 }
 0x7ff   :  { %v9337_v24 = vpop.eup %9336  ;;  %9348 = vtanh.f32 %v4059_v20  ;;  %4867 = vmatpush1.bf16.msra.mxu1 %v8230_v11 }
 0x800   :  { %v9339_v4 = vpop.eup %9338 }
 0x801   :  { %v9341_v44 = vpop.eup %9340  ;;  %v4187_v62 = vpack.c.bf16 %v9339_v4, %v9335_v26  ;;  %v4062_v55 = vpop.f32.mrb[252].mxu1 }
 0x802   :  { %v4063_v43 = vadd.f32 %v4062_v55, %v11007_v29  ;;  %v4064_v41 = vpop.f32.mrb[253].mxu1  ;;  %v4188_v35 = vpack.c.bf16 %v9341_v44, %v9337_v24 }
 0x803   :  { %v4065_v53 = vadd.f32 %v4064_v41, %v11010_v54  ;;  %v4066_v0 = vpop.f32.mrb[254].mxu1 }
 0x804   :  { %9350 = vtanh.f32 %v4063_v43  ;;  %v4067_v48 = vadd.f32 %v4066_v0, %v11007_v29  ;;  %v4068_v23 = vpop.f32.mrb[255].mxu1  ;;  %4483 = vmatprep.mubr.bf16.mxu0 %v4188_v35 }
 0x805   :  { %9352 = vtanh.f32 %v4065_v53  ;;  %v4069_v21 = vadd.f32 %v4068_v23, %v11010_v54  ;;  %4484 = vmatmul.mubr.bf16.gmra.mrb[0].mxu0 %v4187_v62  ;;  %v8235_v23 = vld [vmem:[#allocation4 + $0x474] ss:$8 sps:$4 sm:$0xff]  }
 0x806   :  { %v9343_v20 = vpop.eup %9342  ;;  %9354 = vtanh.f32 %v4067_v48  ;;  %v8233_v48 = vld [vmem:[#allocation4 + $0x470] ss:$8 sps:$4 sm:$0xff]   ;;  %4868 = vmatprep.subr.bf16.mxu1 %v8235_v23 }
 0x807   :  { %v9345_v17 = vpop.eup %9344  ;;  %9356 = vtanh.f32 %v4069_v21  ;;  %4869 = vmatpush1.bf16.msra.mxu1 %v8233_v48 }
 0x808   :  { %v9347_v25 = vpop.eup %9346 }
 0x809   :  { %v9349_v26 = vpop.eup %9348  ;;  %v4189_v24 = vpack.c.bf16 %v9347_v25, %v9343_v20  ;;  %v4072_v4 = vpop.f32.mrb[0].mxu1 }
 0x80a   :  { %v4073_v44 = vadd.f32 %v4072_v4, %v11007_v29  ;;  %v4074_v55 = vpop.f32.mrb[1].mxu1  ;;  %v4190_v43 = vpack.c.bf16 %v9349_v26, %v9345_v17 }
 0x80b   :  { %v4075_v41 = vadd.f32 %v4074_v55, %v11010_v54  ;;  %v4076_v35 = vpop.f32.mrb[2].mxu1 }
 0x80c   :  { %9358 = vtanh.f32 %v4073_v44  ;;  %v4077_v62 = vadd.f32 %v4076_v35, %v11007_v29  ;;  %v4078_v53 = vpop.f32.mrb[3].mxu1  ;;  %4493 = vmatprep.mubr.bf16.mxu0 %v4190_v43 }
 0x80d   :  { %9360 = vtanh.f32 %v4075_v41  ;;  %v4079_v0 = vadd.f32 %v4078_v53, %v11010_v54  ;;  %4494 = vmatmul.mubr.bf16.gmra.mrb[4].mxu0 %v4189_v24  ;;  %v8238_v53 = vld [vmem:[#allocation4 + $0x484] ss:$8 sps:$4 sm:$0xff]  }
 0x80e   :  { %v9351_v21 = vpop.eup %9350  ;;  %9362 = vtanh.f32 %v4077_v62  ;;  %v8236_v62 = vld [vmem:[#allocation4 + $0x480] ss:$8 sps:$4 sm:$0xff]   ;;  %4870 = vmatprep.subr.bf16.mxu1 %v8238_v53 }
 0x80f   :  { %v9353_v11 = vpop.eup %9352  ;;  %9364 = vtanh.f32 %v4079_v0  ;;  %4871 = vmatpush1.bf16.msra.mxu1 %v8236_v62  ;;  %v8244_v62 = vld [vmem:[#allocation4 + $0x4a4] ss:$8 sps:$4 sm:$0xff]  }
 0x810   :  { %v9355_v28 = vpop.eup %9354 }
 0x811   :  { %v9357_v20 = vpop.eup %9356  ;;  %v4191_v17 = vpack.c.bf16 %v9355_v28, %v9351_v21  ;;  %v4082_v25 = vpop.f32.mrb[4].mxu1 }
 0x812   :  { %v4083_v26 = vadd.f32 %v4082_v25, %v11007_v29  ;;  %v4084_v4 = vpop.f32.mrb[5].mxu1  ;;  %v4192_v44 = vpack.c.bf16 %v9357_v20, %v9353_v11 }
 0x813   :  { %v4085_v55 = vadd.f32 %v4084_v4, %v11010_v54  ;;  %v4086_v43 = vpop.f32.mrb[6].mxu1 }
 0x814   :  { %9366 = vtanh.f32 %v4083_v26  ;;  %v4087_v24 = vadd.f32 %v4086_v43, %v11007_v29  ;;  %v4088_v41 = vpop.f32.mrb[7].mxu1  ;;  %4503 = vmatprep.mubr.bf16.mxu0 %v4192_v44 }
 0x815   :  { %9368 = vtanh.f32 %v4085_v55  ;;  %v4089_v35 = vadd.f32 %v4088_v41, %v11010_v54  ;;  %4504 = vmatmul.mubr.bf16.gmra.mrb[8].mxu0 %v4191_v17  ;;  %v8241_v41 = vld [vmem:[#allocation4 + $0x494] ss:$8 sps:$4 sm:$0xff]  }
 0x816   :  { %v9359_v0 = vpop.eup %9358  ;;  %9370 = vtanh.f32 %v4087_v24  ;;  %v8239_v24 = vld [vmem:[#allocation4 + $0x490] ss:$8 sps:$4 sm:$0xff]   ;;  %4872 = vmatprep.subr.bf16.mxu1 %v8241_v41 }
 0x817   :  { %v9361_v48 = vpop.eup %9360  ;;  %9372 = vtanh.f32 %v4089_v35  ;;  %4873 = vmatpush1.bf16.msra.mxu1 %v8239_v24  ;;  %v8247_v24 = vld [vmem:[#allocation4 + $0x4b4] ss:$8 sps:$4 sm:$0xff]  }
 0x818   :  { %v9363_v23 = vpop.eup %9362  ;;  %4874 = vmatprep.subr.bf16.mxu1 %v8244_v62 }
 0x819   :  { %v9365_v21 = vpop.eup %9364  ;;  %v4193_v11 = vpack.c.bf16 %v9363_v23, %v9359_v0  ;;  %v4092_v28 = vpop.f32.mrb[8].mxu1 }
 0x81a   :  { %v4093_v20 = vadd.f32 %v4092_v28, %v11007_v29  ;;  %v4094_v25 = vpop.f32.mrb[9].mxu1  ;;  %v4194_v26 = vpack.c.bf16 %v9365_v21, %v9361_v48  ;;  %v8242_v48 = vld [vmem:[#allocation4 + $0x4a0] ss:$8 sps:$4 sm:$0xff]  }
 0x81b   :  { %v4095_v4 = vadd.f32 %v4094_v25, %v11010_v54  ;;  %v4096_v44 = vpop.f32.mrb[10].mxu1  ;;  %4875 = vmatpush1.bf16.msra.mxu1 %v8242_v48 }
 0x81c   :  { %9374 = vtanh.f32 %v4093_v20  ;;  %v4097_v17 = vadd.f32 %v4096_v44, %v11007_v29  ;;  %v4098_v55 = vpop.f32.mrb[11].mxu1  ;;  %4513 = vmatprep.mubr.bf16.mxu0 %v4194_v26  ;;  %4876 = vmatprep.subr.bf16.mxu1 %v8247_v24 }
 0x81d   :  { %9376 = vtanh.f32 %v4095_v4  ;;  %v4099_v43 = vadd.f32 %v4098_v55, %v11010_v54  ;;  %4514 = vmatmul.mubr.bf16.gmra.mrb[12].mxu0 %v4193_v11 }
 0x81e   :  { %v9367_v35 = vpop.eup %9366  ;;  %9378 = vtanh.f32 %v4097_v17 }
 0x81f   :  { %v9369_v53 = vpop.eup %9368  ;;  %9380 = vtanh.f32 %v4099_v43  ;;  %v8245_v43 = vld [vmem:[#allocation4 + $0x4b0] ss:$8 sps:$4 sm:$0xff]  }
 0x820   :  { %v9371_v0 = vpop.eup %9370  ;;  %4877 = vmatpush1.bf16.msra.mxu1 %v8245_v43 }
 0x821   :  { %v9373_v23 = vpop.eup %9372  ;;  %v4195_v21 = vpack.c.bf16 %v9371_v0, %v9367_v35  ;;  %v4102_v28 = vpop.f32.mrb[12].mxu1 }
 0x822   :  { %v4103_v20 = vadd.f32 %v4102_v28, %v11007_v29  ;;  %v4104_v25 = vpop.f32.mrb[13].mxu1  ;;  %v4196_v26 = vpack.c.bf16 %v9373_v23, %v9369_v53 }
 0x823   :  { %v4105_v11 = vadd.f32 %v4104_v25, %v11010_v54  ;;  %v4106_v4 = vpop.f32.mrb[14].mxu1 }
 0x824   :  { %9382 = vtanh.f32 %v4103_v20  ;;  %v4107_v44 = vadd.f32 %v4106_v4, %v11007_v29  ;;  %v4108_v17 = vpop.f32.mrb[15].mxu1  ;;  %4523 = vmatprep.mubr.bf16.mxu0 %v4196_v26 }
 0x825   :  { %9384 = vtanh.f32 %v4105_v11  ;;  %v4109_v55 = vadd.f32 %v4108_v17, %v11010_v54  ;;  %4524 = vmatmul.mubr.bf16.gmra.mrb[16].mxu0 %v4195_v21  ;;  %v8250_v17 = vld [vmem:[#allocation4 + $0x4c4] ss:$8 sps:$4 sm:$0xff]  }
 0x826   :  { %v9375_v41 = vpop.eup %9374  ;;  %9386 = vtanh.f32 %v4107_v44  ;;  %v8248_v44 = vld [vmem:[#allocation4 + $0x4c0] ss:$8 sps:$4 sm:$0xff]   ;;  %4878 = vmatprep.subr.bf16.mxu1 %v8250_v17  ;;  %v8251_v17 = vld [vmem:[#allocation4 + $0x4d0] ss:$8 sps:$4 sm:$0xff]  }
 0x827   :  { %v9377_v35 = vpop.eup %9376  ;;  %9388 = vtanh.f32 %v4109_v55  ;;  %4879 = vmatpush1.bf16.msra.mxu1 %v8248_v44 }
 0x828   :  { %v9379_v62 = vpop.eup %9378 }
 0x829   :  { %v9381_v53 = vpop.eup %9380  ;;  %v4197_v0 = vpack.c.bf16 %v9379_v62, %v9375_v41  ;;  %v4112_v23 = vpop.f32.mrb[16].mxu1 }
 0x82a   :  { %v4113_v28 = vadd.f32 %v4112_v23, %v11007_v29  ;;  %v4114_v20 = vpop.f32.mrb[17].mxu1  ;;  %v4198_v48 = vpack.c.bf16 %v9381_v53, %v9377_v35 }
 0x82b   :  { %v4115_v25 = vadd.f32 %v4114_v20, %v11010_v54  ;;  %v4116_v26 = vpop.f32.mrb[18].mxu1 }
 0x82c   :  { %9390 = vtanh.f32 %v4113_v28  ;;  %v4117_v21 = vadd.f32 %v4116_v26, %v11007_v29  ;;  %v4118_v11 = vpop.f32.mrb[19].mxu1  ;;  %4533 = vmatprep.mubr.bf16.mxu0 %v4198_v48 }
 0x82d   :  { %9392 = vtanh.f32 %v4115_v25  ;;  %v4119_v4 = vadd.f32 %v4118_v11, %v11010_v54  ;;  %4534 = vmatmul.mubr.bf16.gmra.mrb[20].mxu0 %v4197_v0 }
 0x82e   :  { %v9383_v55 = vpop.eup %9382  ;;  %9394 = vtanh.f32 %v4117_v21 }
 0x82f   :  { %v9385_v43 = vpop.eup %9384  ;;  %9396 = vtanh.f32 %v4119_v4 }
 0x830   :  { %v9387_v24 = vpop.eup %9386 }
 0x831   :  { %v9389_v41 = vpop.eup %9388  ;;  %v4199_v35 = vpack.c.bf16 %v9387_v24, %v9383_v55  ;;  %v4122_v62 = vpop.f32.mrb[20].mxu1  ;;  %v8253_v55 = vld [vmem:[#allocation4 + $0x4d4] ss:$8 sps:$4 sm:$0xff]   ;;  %v8256_v24 = vld [vmem:[#allocation4 + $0x4e4] ss:$8 sps:$4 sm:$0xff]  }
 0x832   :  { %v4123_v53 = vadd.f32 %v4122_v62, %v11007_v29  ;;  %v4124_v23 = vpop.f32.mrb[21].mxu1  ;;  %v4200_v28 = vpack.c.bf16 %v9389_v41, %v9385_v43  ;;  %4880 = vmatprep.subr.bf16.mxu1 %v8253_v55  ;;  %v11759_v62 = vmov 0  }
 0x833   :  { %v4125_v20 = vadd.f32 %v4124_v23, %v11010_v54  ;;  %v4126_v48 = vpop.f32.mrb[22].mxu1  ;;  %4881 = vmatpush1.bf16.msra.mxu1 %v8251_v17  ;;  %v8257_v23 = vld [vmem:[#allocation4 + $0x4f0] ss:$8 sps:$4 sm:$0xff]  }
 0x834   :  { %v4127_v0 = vpop.f32.mrb[23].mxu1  ;;  %4543 = vmatprep.mubr.bf16.mxu0 %v4200_v28  ;;  %4882 = vmatprep.subr.bf16.mxu1 %v8256_v24  ;;  %v8262_v28 = vld [vmem:[#allocation6 + $0x4] ss:$8 sps:$4 sm:$0xff]  }
 0x835   :  { %9398 = vtanh.f32 %v4125_v20  ;;  %4544 = vmatmul.mubr.bf16.gmra.mrb[24].mxu0 %v4199_v35  ;;  %v8254_v35 = vld [vmem:[#allocation4 + $0x4e0] ss:$8 sps:$4 sm:$0xff]  }
 0x836   :  { %v9391_v25 = vpop.eup %9390  ;;  %9400 = vtanh.f32 %v4123_v53  ;;  %v8259_v53 = vld [vmem:[#allocation4 + $0x4f4] ss:$8 sps:$4 sm:$0xff]  }
 0x837   :  { %v9393_v26 = vpop.eup %9392  ;;  %4883 = vmatpush1.bf16.msra.mxu1 %v8254_v35 }
 0x838   :  { %v9395_v21 = vpop.eup %9394  ;;  %4884 = vmatprep.subr.bf16.mxu1 %v8259_v53  ;;  %v8265_v53 = vld [vmem:[#allocation6 + $0x14] ss:$8 sps:$4 sm:$0xff]  }
 0x839   :  { %v9397_v11 = vpop.eup %9396  ;;  %v4201_v4 = vpack.c.bf16 %v9395_v21, %v9391_v25 }
 0x83a   :  { %v4202_v44 = vpack.c.bf16 %v9397_v11, %v9393_v26 }
 0x83b   :  { %4885 = vmatpush1.bf16.msra.mxu1 %v8257_v23 }
 0x83c   :  { %4553 = vmatprep.mubr.bf16.mxu0 %v4202_v44  ;;  %5481 = vmatprep.subr.bf16.mxu1 %v8262_v28 }
 0x83d   :  { %4554 = vmatmul.mubr.bf16.gmra.mrb[28].mxu0 %v4201_v4 }
 0x83f   :  { %v9399_v29 = vpop.eup %9398 }
 0x840   :  { %v9401_v54 = vpop.eup %9400  ;;  %v4204_v43 = vpack.c.bf16 %v9399_v29, %v9399_v29 }
 0x841   :  { %v4203_v41 = vpack.c.bf16 %v9401_v54, %v9401_v54 }
 0x842   :  { %4563 = vmatprep.mubr.bf16.mxu0 %v4204_v43 }
 0x845   :  { %4564 = vmatmul.mubr.bf16.gmra.mrb[32].mxu0 %v4203_v41  ;;  %v8260_v41 = vld [vmem:[#allocation6] ss:$8 sps:$4 sm:$0xff]  }
 0x846   :  { %5071 = vmatprep.mubr.bf16.mxu0 %v11759_v62 }
 0x84d   :  { %7621 = vmatmul.mubr.msk.bf16.vlgmr.msra.gmra.mrb[36].mxu0 %vm194_vm1, %v10211_v14  ;;  %v7552_v14 = vld [vmem:[%s11730_s6 + $0x8] sm:$0x3] }
 0x84e   :  { %5081 = vmatprep.mubr.bf16.mxu0 %v11759_v62 }
 0x855   :  { %7622 = vmatmul.mubr.msk.bf16.gmra.mrb[40].mxu0 %vm194_vm1, %v10231_v22  ;;  %v11106_v22 = vrot.slane %v7552_v14, %v10331_v50 }
 0x856   :  { %5091 = vmatprep.mubr.bf16.mxu0 %v11759_v62 }
 0x85d   :  { %7623 = vmatmul.mubr.msk.bf16.gmra.mrb[44].mxu0 %vm194_vm1, %v10251_v31  ;;  %v11109_v31 = vrot.slane %v7552_v14, %v10336_v52 }
 0x85e   :  { %5101 = vmatprep.mubr.bf16.mxu0 %v11759_v62 }
 0x865   :  { %7624 = vmatmul.mubr.msk.bf16.gmra.mrb[48].mxu0 %vm194_vm1, %v10273_v46 }
 0x866   :  { %5111 = vmatprep.mubr.bf16.mxu0 %v11759_v62 }
 0x86d   :  { %7625 = vmatmul.mubr.msk.bf16.gmra.mrb[52].mxu0 %vm194_vm1, %v10292_v59 }
 0x86e   :  { %5121 = vmatprep.mubr.bf16.mxu0 %v11759_v62 }
 0x875   :  { %7626 = vmatmul.mubr.msk.bf16.gmra.mrb[56].mxu0 %vm194_vm1, %v10308_v8 }
 0x876   :  { %5131 = vmatprep.mubr.bf16.mxu0 %v11759_v62 }
 0x87d   :  { %7627 = vmatmul.mubr.msk.bf16.gmra.mrb[60].mxu0 %vm194_vm1, %v10318_v18 }
 0x87e   :  { %5141 = vmatprep.mubr.bf16.mxu0 %v11759_v62 }
 0x885   :  { %7628 = vmatmul.mubr.msk.bf16.gmra.mrb[64].mxu0 %vm194_vm1, %v10327_v27 }
 0x886   :  { %5151 = vmatprep.mubr.bf16.mxu0 %v11759_v62 }
 0x88d   :  { %7629 = vmatmul.mubr.msk.bf16.gmra.mrb[68].mxu0 %vm194_vm1, %v10253_v36 }
 0x88e   :  { %5161 = vmatprep.mubr.bf16.mxu0 %v11759_v62 }
 0x895   :  { %7630 = vmatmul.mubr.msk.bf16.gmra.mrb[72].mxu0 %vm194_vm1, %v10275_v47 }
 0x896   :  { %5171 = vmatprep.mubr.bf16.mxu0 %v11759_v62 }
 0x89d   :  { %7631 = vmatmul.mubr.msk.bf16.gmra.mrb[76].mxu0 %vm194_vm1, %v10294_v60 }
 0x89e   :  { %5181 = vmatprep.mubr.bf16.mxu0 %v11759_v62 }
 0x8a5   :  { %7632 = vmatmul.mubr.msk.bf16.gmra.mrb[80].mxu0 %vm194_vm1, %v10310_v9 }
 0x8a6   :  { %5191 = vmatprep.mubr.bf16.mxu0 %v11759_v62 }
 0x8ad   :  { %7633 = vmatmul.mubr.msk.bf16.gmra.mrb[84].mxu0 %vm194_vm1, %v10320_v19 }
 0x8b8   :  { %v4445_v36 = vpop.f32.mrb[240].mxu0 }
 0x8b9   :  { %v4446_v46 = vadd.f32 %v4445_v36, %v11106_v22  ;;  %v4447_v47 = vpop.f32.mrb[241].mxu0 }
 0x8ba   :  { %v4448_v59 = vadd.f32 %v4447_v47, %v11109_v31  ;;  %v4449_v60 = vpop.f32.mrb[242].mxu0 }
 0x8bb   :  { %9402 = vtanh.f32 %v4446_v46  ;;  %v4450_v8 = vadd.f32 %v4449_v60, %v11106_v22  ;;  %v4451_v9 = vpop.f32.mrb[243].mxu0  ;;  %v8263_v46 = vld [vmem:[#allocation6 + $0x10] ss:$8 sps:$4 sm:$0xff]  }
 0x8bc   :  { %9404 = vtanh.f32 %v4448_v59  ;;  %v4452_v18 = vadd.f32 %v4451_v9, %v11109_v31  ;;  %v8268_v59 = vld [vmem:[#allocation6 + $0x24] ss:$8 sps:$4 sm:$0xff]  }
 0x8bd   :  { %9406 = vtanh.f32 %v4450_v8 }
 0x8be   :  { %9408 = vtanh.f32 %v4452_v18 }
 0x8c0   :  { %v4455_v19 = vpop.f32.mrb[244].mxu0 }
 0x8c1   :  { %v4456_v27 = vadd.f32 %v4455_v19, %v11106_v22  ;;  %v4457_v20 = vpop.f32.mrb[245].mxu0 }
 0x8c2   :  { %v4458_v48 = vadd.f32 %v4457_v20, %v11109_v31  ;;  %v4459_v0 = vpop.f32.mrb[246].mxu0 }
 0x8c3   :  { %9410 = vtanh.f32 %v4456_v27  ;;  %v4460_v25 = vadd.f32 %v4459_v0, %v11106_v22  ;;  %v4461_v26 = vpop.f32.mrb[247].mxu0 }
 0x8c4   :  { %9412 = vtanh.f32 %v4458_v48  ;;  %v4462_v21 = vadd.f32 %v4461_v26, %v11109_v31  ;;  %v8266_v48 = vld [vmem:[#allocation6 + $0x20] ss:$8 sps:$4 sm:$0xff]   ;;  %v8271_v26 = vld [vmem:[#allocation6 + $0x34] ss:$8 sps:$4 sm:$0xff]  }
 0x8c5   :  { %v9403_v11 = vpop.eup %9402  ;;  %9414 = vtanh.f32 %v4460_v25 }
 0x8c6   :  { %v9405_v4 = vpop.eup %9404  ;;  %9416 = vtanh.f32 %v4462_v21 }
 0x8c7   :  { %v9407_v44 = vpop.eup %9406 }
 0x8c8   :  { %v9409_v17 = vpop.eup %9408  ;;  %v4622_v55 = vpack.c.bf16 %v9407_v44, %v9403_v11  ;;  %v4465_v29 = vpop.f32.mrb[248].mxu0 }
 0x8c9   :  { %v4466_v54 = vadd.f32 %v4465_v29, %v11106_v22  ;;  %v4467_v43 = vpop.f32.mrb[249].mxu0  ;;  %v4623_v24 = vpack.c.bf16 %v9409_v17, %v9405_v4  ;;  %v8269_v17 = vld [vmem:[#allocation6 + $0x30] ss:$8 sps:$4 sm:$0xff]   ;;  %v8274_v29 = vld [vmem:[#allocation6 + $0x44] ss:$8 sps:$4 sm:$0xff]  }
 0x8ca   :  { %v4468_v35 = vadd.f32 %v4467_v43, %v11109_v31  ;;  %v4469_v62 = vpop.f32.mrb[250].mxu0 }
 0x8cb   :  { %9418 = vtanh.f32 %v4466_v54  ;;  %v4470_v23 = vadd.f32 %v4469_v62, %v11106_v22  ;;  %v4471_v28 = vpop.f32.mrb[251].mxu0  ;;  %4886 = vmatprep.mubr.bf16.mxu1 %v4623_v24 }
 0x8cc   :  { %9420 = vtanh.f32 %v4468_v35  ;;  %v4472_v14 = vadd.f32 %v4471_v28, %v11109_v31  ;;  %4887 = vmatmul.mubr.bf16.vlgmr.msra.gmra.mrb[24].mxu1 %v4622_v55 }
 0x8cd   :  { %v9411_v36 = vpop.eup %9410  ;;  %9422 = vtanh.f32 %v4470_v23  ;;  %5482 = vmatpush1.bf16.msra.mxu1 %v8260_v41  ;;  %v8272_v23 = vld [vmem:[#allocation6 + $0x40] ss:$8 sps:$4 sm:$0xff]  }
 0x8ce   :  { %v9413_v47 = vpop.eup %9412  ;;  %9424 = vtanh.f32 %v4472_v14  ;;  %5483 = vmatprep.subr.bf16.mxu1 %v8265_v53 }
 0x8cf   :  { %v9415_v60 = vpop.eup %9414 }
 0x8d0   :  { %v9417_v8 = vpop.eup %9416  ;;  %v4624_v9 = vpack.c.bf16 %v9415_v60, %v9411_v36  ;;  %v4475_v18 = vpop.f32.mrb[252].mxu0  ;;  %v8277_v36 = vld [vmem:[#allocation6 + $0x54] ss:$8 sps:$4 sm:$0xff]  }
 0x8d1   :  { %v4476_v19 = vadd.f32 %v4475_v18, %v11106_v22  ;;  %v4477_v27 = vpop.f32.mrb[253].mxu0  ;;  %v4625_v20 = vpack.c.bf16 %v9417_v8, %v9413_v47  ;;  %5484 = vmatpush1.bf16.msra.mxu1 %v8263_v46  ;;  %v8275_v8 = vld [vmem:[#allocation6 + $0x50] ss:$8 sps:$4 sm:$0xff]   ;;  %v8280_v18 = vld [vmem:[#allocation6 + $0x64] ss:$8 sps:$4 sm:$0xff]  }
 0x8d2   :  { %v4478_v0 = vadd.f32 %v4477_v27, %v11109_v31  ;;  %v4479_v25 = vpop.f32.mrb[254].mxu0  ;;  %5485 = vmatprep.subr.bf16.mxu1 %v8268_v59 }
 0x8d3   :  { %9426 = vtanh.f32 %v4476_v19  ;;  %v4480_v21 = vadd.f32 %v4479_v25, %v11106_v22  ;;  %v4481_v11 = vpop.f32.mrb[255].mxu0  ;;  %4896 = vmatprep.mubr.bf16.mxu1 %v4625_v20 }
 0x8d4   :  { %9428 = vtanh.f32 %v4478_v0  ;;  %v4482_v4 = vadd.f32 %v4481_v11, %v11109_v31  ;;  %4897 = vmatmul.mubr.bf16.gmra.mrb[28].mxu1 %v4624_v9 }
 0x8d5   :  { %v9419_v44 = vpop.eup %9418  ;;  %9430 = vtanh.f32 %v4480_v21  ;;  %5486 = vmatpush1.bf16.msra.mxu1 %v8266_v48  ;;  %v8278_v21 = vld [vmem:[#allocation6 + $0x60] ss:$8 sps:$4 sm:$0xff]  }
 0x8d6   :  { %v9421_v55 = vpop.eup %9420  ;;  %9432 = vtanh.f32 %v4482_v4  ;;  %5487 = vmatprep.subr.bf16.mxu1 %v8271_v26 }
 0x8d7   :  { %v9423_v54 = vpop.eup %9422 }
 0x8d8   :  { %v9425_v43 = vpop.eup %9424  ;;  %v4626_v24 = vpack.c.bf16 %v9423_v54, %v9419_v44  ;;  %v4485_v41 = vpop.f32.mrb[0].mxu0  ;;  %v8283_v44 = vld [vmem:[#allocation6 + $0x74] ss:$8 sps:$4 sm:$0xff]  }
 0x8d9   :  { %v4486_v35 = vadd.f32 %v4485_v41, %v11106_v22  ;;  %v4487_v62 = vpop.f32.mrb[1].mxu0  ;;  %v4627_v53 = vpack.c.bf16 %v9425_v43, %v9421_v55  ;;  %5488 = vmatpush1.bf16.msra.mxu1 %v8269_v17  ;;  %v8281_v43 = vld [vmem:[#allocation6 + $0x70] ss:$8 sps:$4 sm:$0xff]   ;;  %v8286_v41 = vld [vmem:[#allocation6 + $0x84] ss:$8 sps:$4 sm:$0xff]  }
 0x8da   :  { %v4488_v28 = vadd.f32 %v4487_v62, %v11109_v31  ;;  %v4489_v14 = vpop.f32.mrb[2].mxu0  ;;  %5489 = vmatprep.subr.bf16.mxu1 %v8274_v29 }
 0x8db   :  { %9434 = vtanh.f32 %v4486_v35  ;;  %v4490_v46 = vadd.f32 %v4489_v14, %v11106_v22  ;;  %v4491_v47 = vpop.f32.mrb[3].mxu0  ;;  %4906 = vmatprep.mubr.bf16.mxu1 %v4627_v53 }
 0x8dc   :  { %9436 = vtanh.f32 %v4488_v28  ;;  %v4492_v59 = vadd.f32 %v4491_v47, %v11109_v31  ;;  %4907 = vmatmul.mubr.bf16.gmra.mrb[32].mxu1 %v4626_v24 }
 0x8dd   :  { %v9427_v60 = vpop.eup %9426  ;;  %9438 = vtanh.f32 %v4490_v46  ;;  %5490 = vmatpush1.bf16.msra.mxu1 %v8272_v23  ;;  %v8284_v46 = vld [vmem:[#allocation6 + $0x80] ss:$8 sps:$4 sm:$0xff]  }
 0x8de   :  { %v9429_v9 = vpop.eup %9428  ;;  %9440 = vtanh.f32 %v4492_v59  ;;  %5491 = vmatprep.subr.bf16.mxu1 %v8277_v36 }
 0x8df   :  { %v9431_v19 = vpop.eup %9430 }
 0x8e0   :  { %v9433_v27 = vpop.eup %9432  ;;  %v4628_v20 = vpack.c.bf16 %v9431_v19, %v9427_v60  ;;  %v4495_v48 = vpop.f32.mrb[4].mxu0  ;;  %v8289_v60 = vld [vmem:[#allocation6 + $0x94] ss:$8 sps:$4 sm:$0xff]  }
 0x8e1   :  { %v4496_v0 = vadd.f32 %v4495_v48, %v11106_v22  ;;  %v4497_v25 = vpop.f32.mrb[5].mxu0  ;;  %v4629_v26 = vpack.c.bf16 %v9433_v27, %v9429_v9  ;;  %5492 = vmatpush1.bf16.msra.mxu1 %v8275_v8  ;;  %v8287_v27 = vld [vmem:[#allocation6 + $0x90] ss:$8 sps:$4 sm:$0xff]   ;;  %v8292_v48 = vld [vmem:[#allocation6 + $0xa4] ss:$8 sps:$4 sm:$0xff]  }
 0x8e2   :  { %v4498_v11 = vadd.f32 %v4497_v25, %v11109_v31  ;;  %v4499_v4 = vpop.f32.mrb[6].mxu0  ;;  %5493 = vmatprep.subr.bf16.mxu1 %v8280_v18 }
 0x8e3   :  { %9442 = vtanh.f32 %v4496_v0  ;;  %v4500_v17 = vadd.f32 %v4499_v4, %v11106_v22  ;;  %v4501_v55 = vpop.f32.mrb[7].mxu0  ;;  %4916 = vmatprep.mubr.bf16.mxu1 %v4629_v26 }
 0x8e4   :  { %9444 = vtanh.f32 %v4498_v11  ;;  %v4502_v29 = vadd.f32 %v4501_v55, %v11109_v31  ;;  %4917 = vmatmul.mubr.bf16.gmra.mrb[36].mxu1 %v4628_v20 }
 0x8e5   :  { %v9435_v54 = vpop.eup %9434  ;;  %9446 = vtanh.f32 %v4500_v17  ;;  %5494 = vmatpush1.bf16.msra.mxu1 %v8278_v21  ;;  %v8290_v17 = vld [vmem:[#allocation6 + $0xa0] ss:$8 sps:$4 sm:$0xff]  }
 0x8e6   :  { %v9437_v24 = vpop.eup %9436  ;;  %9448 = vtanh.f32 %v4502_v29  ;;  %5495 = vmatprep.subr.bf16.mxu1 %v8283_v44 }
 0x8e7   :  { %v9439_v35 = vpop.eup %9438 }
 0x8e8   :  { %v9441_v62 = vpop.eup %9440  ;;  %v4630_v53 = vpack.c.bf16 %v9439_v35, %v9435_v54  ;;  %v4505_v23 = vpop.f32.mrb[8].mxu0  ;;  %v8295_v54 = vld [vmem:[#allocation6 + $0xb4] ss:$8 sps:$4 sm:$0xff]  }
 0x8e9   :  { %v4506_v28 = vadd.f32 %v4505_v23, %v11106_v22  ;;  %v4507_v14 = vpop.f32.mrb[9].mxu0  ;;  %v4631_v36 = vpack.c.bf16 %v9441_v62, %v9437_v24  ;;  %5496 = vmatpush1.bf16.msra.mxu1 %v8281_v43  ;;  %v8293_v62 = vld [vmem:[#allocation6 + $0xb0] ss:$8 sps:$4 sm:$0xff]   ;;  %v8298_v23 = vld [vmem:[#allocation6 + $0xc4] ss:$8 sps:$4 sm:$0xff]  }
 0x8ea   :  { %v4508_v47 = vadd.f32 %v4507_v14, %v11109_v31  ;;  %v4509_v59 = vpop.f32.mrb[10].mxu0  ;;  %5497 = vmatprep.subr.bf16.mxu1 %v8286_v41 }
 0x8eb   :  { %9450 = vtanh.f32 %v4506_v28  ;;  %v4510_v8 = vadd.f32 %v4509_v59, %v11106_v22  ;;  %v4511_v9 = vpop.f32.mrb[11].mxu0  ;;  %4926 = vmatprep.mubr.bf16.mxu1 %v4631_v36 }
 0x8ec   :  { %9452 = vtanh.f32 %v4508_v47  ;;  %v4512_v18 = vadd.f32 %v4511_v9, %v11109_v31  ;;  %4927 = vmatmul.mubr.bf16.gmra.mrb[40].mxu1 %v4630_v53 }
 0x8ed   :  { %v9443_v19 = vpop.eup %9442  ;;  %9454 = vtanh.f32 %v4510_v8  ;;  %5498 = vmatpush1.bf16.msra.mxu1 %v8284_v46  ;;  %v8296_v8 = vld [vmem:[#allocation6 + $0xc0] ss:$8 sps:$4 sm:$0xff]  }
 0x8ee   :  { %v9445_v20 = vpop.eup %9444  ;;  %9456 = vtanh.f32 %v4512_v18  ;;  %5499 = vmatprep.subr.bf16.mxu1 %v8289_v60 }
 0x8ef   :  { %v9447_v0 = vpop.eup %9446 }
 0x8f0   :  { %v9449_v25 = vpop.eup %9448  ;;  %v4632_v26 = vpack.c.bf16 %v9447_v0, %v9443_v19  ;;  %v4515_v21 = vpop.f32.mrb[12].mxu0  ;;  %v8301_v19 = vld [vmem:[#allocation6 + $0xd4] ss:$8 sps:$4 sm:$0xff]  }
 0x8f1   :  { %v4516_v11 = vadd.f32 %v4515_v21, %v11106_v22  ;;  %v4517_v4 = vpop.f32.mrb[13].mxu0  ;;  %v4633_v44 = vpack.c.bf16 %v9449_v25, %v9445_v20  ;;  %5500 = vmatpush1.bf16.msra.mxu1 %v8287_v27  ;;  %v8299_v25 = vld [vmem:[#allocation6 + $0xd0] ss:$8 sps:$4 sm:$0xff]   ;;  %v8304_v21 = vld [vmem:[#allocation6 + $0xe4] ss:$8 sps:$4 sm:$0xff]  }
 0x8f2   :  { %v4518_v55 = vadd.f32 %v4517_v4, %v11109_v31  ;;  %v4519_v29 = vpop.f32.mrb[14].mxu0  ;;  %5501 = vmatprep.subr.bf16.mxu1 %v8292_v48 }
 0x8f3   :  { %9458 = vtanh.f32 %v4516_v11  ;;  %v4520_v43 = vadd.f32 %v4519_v29, %v11106_v22  ;;  %v4521_v24 = vpop.f32.mrb[15].mxu0  ;;  %4936 = vmatprep.mubr.bf16.mxu1 %v4633_v44 }
 0x8f4   :  { %9460 = vtanh.f32 %v4518_v55  ;;  %v4522_v41 = vadd.f32 %v4521_v24, %v11109_v31  ;;  %4937 = vmatmul.mubr.bf16.gmra.mrb[44].mxu1 %v4632_v26 }
 0x8f5   :  { %v9451_v35 = vpop.eup %9450  ;;  %9462 = vtanh.f32 %v4520_v43  ;;  %5502 = vmatpush1.bf16.msra.mxu1 %v8290_v17  ;;  %v8302_v43 = vld [vmem:[#allocation6 + $0xe0] ss:$8 sps:$4 sm:$0xff]  }
 0x8f6   :  { %v9453_v53 = vpop.eup %9452  ;;  %9464 = vtanh.f32 %v4522_v41  ;;  %5503 = vmatprep.subr.bf16.mxu1 %v8295_v54 }
 0x8f7   :  { %v9455_v28 = vpop.eup %9454 }
 0x8f8   :  { %v9457_v14 = vpop.eup %9456  ;;  %v4634_v36 = vpack.c.bf16 %v9455_v28, %v9451_v35  ;;  %v4525_v46 = vpop.f32.mrb[16].mxu0  ;;  %v8307_v35 = vld [vmem:[#allocation6 + $0xf4] ss:$8 sps:$4 sm:$0xff]  }
 0x8f9   :  { %v4526_v47 = vadd.f32 %v4525_v46, %v11106_v22  ;;  %v4527_v59 = vpop.f32.mrb[17].mxu0  ;;  %v4635_v60 = vpack.c.bf16 %v9457_v14, %v9453_v53  ;;  %5504 = vmatpush1.bf16.msra.mxu1 %v8293_v62  ;;  %v8305_v14 = vld [vmem:[#allocation6 + $0xf0] ss:$8 sps:$4 sm:$0xff]  }
 0x8fa   :  { %v4528_v9 = vadd.f32 %v4527_v59, %v11109_v31  ;;  %v4529_v18 = vpop.f32.mrb[18].mxu0  ;;  %5505 = vmatprep.subr.bf16.mxu1 %v8298_v23 }
 0x8fb   :  { %9466 = vtanh.f32 %v4526_v47  ;;  %v4530_v27 = vadd.f32 %v4529_v18, %v11106_v22  ;;  %v4531_v20 = vpop.f32.mrb[19].mxu0  ;;  %4946 = vmatprep.mubr.bf16.mxu1 %v4635_v60 }
 0x8fc   :  { %9468 = vtanh.f32 %v4528_v9  ;;  %v4532_v48 = vadd.f32 %v4531_v20, %v11109_v31  ;;  %4947 = vmatmul.mubr.bf16.gmra.mrb[48].mxu1 %v4634_v36 }
 0x8fd   :  { %v9459_v0 = vpop.eup %9458  ;;  %9470 = vtanh.f32 %v4530_v27  ;;  %5506 = vmatpush1.bf16.msra.mxu1 %v8296_v8 }
 0x8fe   :  { %v9461_v26 = vpop.eup %9460  ;;  %9472 = vtanh.f32 %v4532_v48  ;;  %5507 = vmatprep.subr.bf16.mxu1 %v8301_v19 }
 0x8ff   :  { %v9463_v11 = vpop.eup %9462 }
 0x900   :  { %v9465_v4 = vpop.eup %9464  ;;  %v4636_v44 = vpack.c.bf16 %v9463_v11, %v9459_v0  ;;  %v4535_v17 = vpop.f32.mrb[20].mxu0 }
 0x901   :  { %v4536_v55 = vadd.f32 %v4535_v17, %v11106_v22  ;;  %v4537_v29 = vpop.f32.mrb[21].mxu0  ;;  %v4637_v54 = vpack.c.bf16 %v9465_v4, %v9461_v26  ;;  %5508 = vmatpush1.bf16.msra.mxu1 %v8299_v25 }
 0x902   :  { %v4538_v24 = vadd.f32 %v4537_v29, %v11109_v31  ;;  %v4539_v41 = vpop.f32.mrb[22].mxu0  ;;  %5509 = vmatprep.subr.bf16.mxu1 %v8304_v21 }
 0x903   :  { %9474 = vtanh.f32 %v4536_v55  ;;  %v4540_v62 = vadd.f32 %v4539_v41, %v11106_v22  ;;  %v4541_v53 = vpop.f32.mrb[23].mxu0  ;;  %4956 = vmatprep.mubr.bf16.mxu1 %v4637_v54 }
 0x904   :  { %9476 = vtanh.f32 %v4538_v24  ;;  %v4542_v23 = vadd.f32 %v4541_v53, %v11109_v31  ;;  %4957 = vmatmul.mubr.bf16.gmra.mrb[52].mxu1 %v4636_v44 }
 0x905   :  { %v9467_v28 = vpop.eup %9466  ;;  %9478 = vtanh.f32 %v4540_v62  ;;  %5510 = vmatpush1.bf16.msra.mxu1 %v8302_v43 }
 0x906   :  { %v9469_v36 = vpop.eup %9468  ;;  %9480 = vtanh.f32 %v4542_v23  ;;  %5511 = vmatprep.subr.bf16.mxu1 %v8307_v35 }
 0x907   :  { %v9471_v46 = vpop.eup %9470 }
 0x908   :  { %v9473_v47 = vpop.eup %9472  ;;  %v4638_v59 = vpack.c.bf16 %v9471_v46, %v9467_v28  ;;  %v4545_v60 = vpop.f32.mrb[24].mxu0 }
 0x909   :  { %v4546_v8 = vadd.f32 %v4545_v60, %v11106_v22  ;;  %v4547_v9 = vpop.f32.mrb[25].mxu0  ;;  %v4639_v18 = vpack.c.bf16 %v9473_v47, %v9469_v36  ;;  %5512 = vmatpush1.bf16.msra.mxu1 %v8305_v14 }
 0x90a   :  { %v4548_v19 = vadd.f32 %v4547_v9, %v11109_v31  ;;  %v4549_v27 = vpop.f32.mrb[26].mxu0  ;;  %v5016_v9 = vld [vmem:[%s11733_s9] sm:$0x3] }
 0x90b   :  { %9482 = vtanh.f32 %v4546_v8  ;;  %v4550_v20 = vadd.f32 %v4549_v27, %v11106_v22  ;;  %v4551_v48 = vpop.f32.mrb[27].mxu0  ;;  %4966 = vmatprep.mubr.bf16.mxu1 %v4639_v18  ;;  %v11165_v27 = vrot.slane %v5016_v9, %v10331_v50 }
 0x90c   :  { %9484 = vtanh.f32 %v4548_v19  ;;  %v4552_v0 = vadd.f32 %v4551_v48, %v11109_v31  ;;  %4967 = vmatmul.mubr.bf16.gmra.mrb[56].mxu1 %v4638_v59 }
 0x90d   :  { %v9475_v25 = vpop.eup %9474  ;;  %9486 = vtanh.f32 %v4550_v20 }
 0x90e   :  { %v9477_v26 = vpop.eup %9476  ;;  %9488 = vtanh.f32 %v4552_v0 }
 0x90f   :  { %v9479_v21 = vpop.eup %9478 }
 0x910   :  { %v9481_v11 = vpop.eup %9480  ;;  %v4640_v4 = vpack.c.bf16 %v9479_v21, %v9475_v25  ;;  %v4555_v44 = vpop.f32.mrb[28].mxu0 }
 0x911   :  { %v4556_v17 = vadd.f32 %v4555_v44, %v11106_v22  ;;  %v4557_v55 = vpop.f32.mrb[29].mxu0  ;;  %v4641_v29 = vpack.c.bf16 %v9481_v11, %v9477_v26 }
 0x912   :  { %v4558_v54 = vadd.f32 %v4557_v55, %v11109_v31  ;;  %v4559_v43 = vpop.f32.mrb[30].mxu0 }
 0x913   :  { %9490 = vtanh.f32 %v4556_v17  ;;  %v4560_v24 = vadd.f32 %v4559_v43, %v11106_v22  ;;  %v4561_v41 = vpop.f32.mrb[31].mxu0  ;;  %4976 = vmatprep.mubr.bf16.mxu1 %v4641_v29 }
 0x914   :  { %9492 = vtanh.f32 %v4558_v54  ;;  %v4562_v35 = vadd.f32 %v4561_v41, %v11109_v31  ;;  %4977 = vmatmul.mubr.bf16.gmra.mrb[60].mxu1 %v4640_v4 }
 0x915   :  { %v9483_v62 = vpop.eup %9482  ;;  %9494 = vtanh.f32 %v4560_v24 }
 0x916   :  { %v9485_v53 = vpop.eup %9484  ;;  %9496 = vtanh.f32 %v4562_v35 }
 0x917   :  { %v9487_v23 = vpop.eup %9486 }
 0x918   :  { %v9489_v28 = vpop.eup %9488  ;;  %v4642_v14 = vpack.c.bf16 %v9487_v23, %v9483_v62  ;;  %v4565_v36 = vpop.f32.mrb[32].mxu0 }
 0x919   :  { %v4566_v46 = vadd.f32 %v4565_v36, %v11106_v22  ;;  %v4567_v47 = vpop.f32.mrb[33].mxu0  ;;  %v4643_v59 = vpack.c.bf16 %v9489_v28, %v9485_v53  ;;  %v11168_v22 = vrot.slane %v5016_v9, %v10336_v52 }
 0x91a   :  { %v4568_v60 = vadd.f32 %v4567_v47, %v11109_v31  ;;  %v4569_v8 = vpop.f32.mrb[34].mxu0 }
 0x91b   :  { %v4570_v18 = vpop.f32.mrb[35].mxu0  ;;  %4986 = vmatprep.mubr.bf16.mxu1 %v4643_v59 }
 0x91c   :  { %9498 = vtanh.f32 %v4568_v60  ;;  %4987 = vmatmul.mubr.bf16.gmra.mrb[64].mxu1 %v4642_v14 }
 0x91d   :  { %v9491_v19 = vpop.eup %9490  ;;  %9500 = vtanh.f32 %v4566_v46 }
 0x91e   :  { %v9493_v20 = vpop.eup %9492 }
 0x91f   :  { %v9495_v48 = vpop.eup %9494 }
 0x920   :  { %v9497_v31 = vpop.eup %9496  ;;  %v4644_v0 = vpack.c.bf16 %v9495_v48, %v9491_v19  ;;  %v5073_v25 = vpop.f32.mrb[36].mxu0 }
 0x921   :  { %v5074_v26 = vadd.f32 %v5073_v25, %v11165_v27  ;;  %v5075_v21 = vpop.f32.mrb[37].mxu0  ;;  %v4645_v11 = vpack.c.bf16 %v9497_v31, %v9493_v20 }
 0x922   :  { %v5076_v4 = vadd.f32 %v5075_v21, %v11168_v22  ;;  %v5077_v44 = vpop.f32.mrb[38].mxu0 }
 0x923   :  { %9502 = vtanh.f32 %v5074_v26  ;;  %v5078_v17 = vadd.f32 %v5077_v44, %v11165_v27  ;;  %4996 = vmatprep.mubr.bf16.mxu1 %v4645_v11  ;;  %v5079_v55 = vpop.f32.mrb[39].mxu0  ;;  %v8310_v44 = vld [vmem:[#allocation6 + $0x104] ss:$8 sps:$4 sm:$0xff]  }
 0x924   :  { %9504 = vtanh.f32 %v5076_v4  ;;  %v5080_v29 = vadd.f32 %v5079_v55, %v11168_v22  ;;  %4997 = vmatmul.mubr.bf16.gmra.mrb[68].mxu1 %v4644_v0  ;;  %v8308_v4 = vld [vmem:[#allocation6 + $0x100] ss:$8 sps:$4 sm:$0xff]   ;;  %5924 = vmatprep.subr.bf16.mxu0 %v8310_v44 }
 0x925   :  { %9506 = vtanh.f32 %v5078_v17  ;;  %5925 = vmatpush1.bf16.msra.mxu0 %v8308_v4 }
 0x926   :  { %v9499_v54 = vpop.eup %9498  ;;  %9508 = vtanh.f32 %v5080_v29 }
 0x927   :  { %v9501_v43 = vpop.eup %9500  ;;  %v4647_v24 = vpack.c.bf16 %v9499_v54, %v9499_v54 }
 0x928   :  { %v5083_v41 = vpop.f32.mrb[40].mxu0  ;;  %v4646_v53 = vpack.c.bf16 %v9501_v43, %v9501_v43 }
 0x929   :  { %v5084_v35 = vadd.f32 %v5083_v41, %v11165_v27  ;;  %5006 = vmatprep.mubr.bf16.mxu1 %v4647_v24  ;;  %v5085_v62 = vpop.f32.mrb[41].mxu0 }
 0x92a   :  { %v5086_v23 = vadd.f32 %v5085_v62, %v11168_v22  ;;  %v5087_v28 = vpop.f32.mrb[42].mxu0 }
 0x92b   :  { %9510 = vtanh.f32 %v5084_v35  ;;  %v5088_v14 = vadd.f32 %v5087_v28, %v11165_v27  ;;  %v5089_v36 = vpop.f32.mrb[43].mxu0 }
 0x92c   :  { %9512 = vtanh.f32 %v5086_v23  ;;  %v5090_v46 = vadd.f32 %v5089_v36, %v11168_v22  ;;  %5007 = vmatmul.mubr.bf16.gmra.mrb[72].mxu1 %v4646_v53  ;;  %v8311_v36 = vld [vmem:[#allocation6 + $0x110] ss:$8 sps:$4 sm:$0xff]  }
 0x92d   :  { %v9503_v47 = vpop.eup %9502  ;;  %9514 = vtanh.f32 %v5088_v14 }
 0x92e   :  { %v9505_v59 = vpop.eup %9504  ;;  %9516 = vtanh.f32 %v5090_v46  ;;  %v8313_v46 = vld [vmem:[#allocation6 + $0x114] ss:$8 sps:$4 sm:$0xff]  }
 0x92f   :  { %v9507_v60 = vpop.eup %9506  ;;  %5926 = vmatprep.subr.bf16.mxu0 %v8313_v46 }
 0x930   :  { %v9509_v8 = vpop.eup %9508  ;;  %v5250_v9 = vpack.c.bf16 %v9507_v60, %v9503_v47  ;;  %v5093_v18 = vpop.f32.mrb[44].mxu0  ;;  %5927 = vmatpush1.bf16.msra.mxu0 %v8311_v36 }
 0x931   :  { %v5094_v19 = vadd.f32 %v5093_v18, %v11165_v27  ;;  %v5095_v20 = vpop.f32.mrb[45].mxu0  ;;  %v5251_v48 = vpack.c.bf16 %v9509_v8, %v9505_v59 }
 0x932   :  { %v5096_v31 = vadd.f32 %v5095_v20, %v11168_v22  ;;  %v5097_v0 = vpop.f32.mrb[46].mxu0 }
 0x933   :  { %9518 = vtanh.f32 %v5094_v19  ;;  %v5098_v25 = vadd.f32 %v5097_v0, %v11165_v27  ;;  %v5099_v26 = vpop.f32.mrb[47].mxu0  ;;  %5513 = vmatprep.mubr.bf16.mxu1 %v5251_v48 }
 0x934   :  { %9520 = vtanh.f32 %v5096_v31  ;;  %v5100_v21 = vadd.f32 %v5099_v26, %v11168_v22  ;;  %5514 = vmatmul.mubr.bf16.vlgmr.msra.gmra.mrb[76].mxu1 %v5250_v9  ;;  %v8316_v26 = vld [vmem:[#allocation6 + $0x124] ss:$8 sps:$4 sm:$0xff]  }
 0x935   :  { %v9511_v11 = vpop.eup %9510  ;;  %9522 = vtanh.f32 %v5098_v25  ;;  %v8314_v25 = vld [vmem:[#allocation6 + $0x120] ss:$8 sps:$4 sm:$0xff]   ;;  %5928 = vmatprep.subr.bf16.mxu0 %v8316_v26 }
 0x936   :  { %v9513_v17 = vpop.eup %9512  ;;  %9524 = vtanh.f32 %v5100_v21  ;;  %5929 = vmatpush1.bf16.msra.mxu0 %v8314_v25 }
 0x937   :  { %v9515_v55 = vpop.eup %9514 }
 0x938   :  { %v9517_v29 = vpop.eup %9516  ;;  %v5252_v54 = vpack.c.bf16 %v9515_v55, %v9511_v11  ;;  %v5103_v43 = vpop.f32.mrb[48].mxu0  ;;  %v8319_v55 = vld [vmem:[#allocation6 + $0x134] ss:$8 sps:$4 sm:$0xff]  }
 0x939   :  { %v5104_v24 = vadd.f32 %v5103_v43, %v11165_v27  ;;  %v5105_v41 = vpop.f32.mrb[49].mxu0  ;;  %v5253_v35 = vpack.c.bf16 %v9517_v29, %v9513_v17  ;;  %v8317_v17 = vld [vmem:[#allocation6 + $0x130] ss:$8 sps:$4 sm:$0xff]   ;;  %5930 = vmatprep.subr.bf16.mxu0 %v8319_v55  ;;  %v8325_v55 = vld [vmem:[#allocation6 + $0x154] ss:$8 sps:$4 sm:$0xff]  }
 0x93a   :  { %v5106_v62 = vadd.f32 %v5105_v41, %v11168_v22  ;;  %v5107_v53 = vpop.f32.mrb[50].mxu0  ;;  %5931 = vmatpush1.bf16.msra.mxu0 %v8317_v17  ;;  %v8323_v17 = vld [vmem:[#allocation6 + $0x150] ss:$8 sps:$4 sm:$0xff]  }
 0x93b   :  { %9526 = vtanh.f32 %v5104_v24  ;;  %v5108_v23 = vadd.f32 %v5107_v53, %v11165_v27  ;;  %v5109_v28 = vpop.f32.mrb[51].mxu0  ;;  %5523 = vmatprep.mubr.bf16.mxu1 %v5253_v35 }
 0x93c   :  { %9528 = vtanh.f32 %v5106_v62  ;;  %v5110_v14 = vadd.f32 %v5109_v28, %v11168_v22  ;;  %5524 = vmatmul.mubr.bf16.gmra.mrb[80].mxu1 %v5252_v54 }
 0x93d   :  { %v9519_v47 = vpop.eup %9518  ;;  %9530 = vtanh.f32 %v5108_v23 }
 0x93e   :  { %v9521_v59 = vpop.eup %9520  ;;  %9532 = vtanh.f32 %v5110_v14 }
 0x93f   :  { %v9523_v60 = vpop.eup %9522 }
 0x940   :  { %v9525_v8 = vpop.eup %9524  ;;  %v5254_v9 = vpack.c.bf16 %v9523_v60, %v9519_v47  ;;  %v5113_v18 = vpop.f32.mrb[52].mxu0  ;;  %v8322_v60 = vld [vmem:[#allocation6 + $0x144] ss:$8 sps:$4 sm:$0xff]  }
 0x941   :  { %v5114_v19 = vadd.f32 %v5113_v18, %v11165_v27  ;;  %v5115_v20 = vpop.f32.mrb[53].mxu0  ;;  %v5255_v48 = vpack.c.bf16 %v9525_v8, %v9521_v59  ;;  %v8320_v59 = vld [vmem:[#allocation6 + $0x140] ss:$8 sps:$4 sm:$0xff]   ;;  %5932 = vmatprep.subr.bf16.mxu0 %v8322_v60 }
 0x942   :  { %v5116_v31 = vadd.f32 %v5115_v20, %v11168_v22  ;;  %v5117_v0 = vpop.f32.mrb[54].mxu0  ;;  %5933 = vmatpush1.bf16.msra.mxu0 %v8320_v59  ;;  %v8328_v59 = vld [vmem:[#allocation6 + $0x164] ss:$8 sps:$4 sm:$0xff]  }
 0x943   :  { %9534 = vtanh.f32 %v5114_v19  ;;  %v5118_v21 = vadd.f32 %v5117_v0, %v11165_v27  ;;  %v5119_v11 = vpop.f32.mrb[55].mxu0  ;;  %5533 = vmatprep.mubr.bf16.mxu1 %v5255_v48  ;;  %5934 = vmatprep.subr.bf16.mxu0 %v8325_v55 }
 0x944   :  { %9536 = vtanh.f32 %v5116_v31  ;;  %v5120_v4 = vadd.f32 %v5119_v11, %v11168_v22  ;;  %5534 = vmatmul.mubr.bf16.gmra.mrb[84].mxu1 %v5254_v9 }
 0x945   :  { %v9527_v44 = vpop.eup %9526  ;;  %9538 = vtanh.f32 %v5118_v21 }
 0x946   :  { %v9529_v29 = vpop.eup %9528  ;;  %9540 = vtanh.f32 %v5120_v4  ;;  %5935 = vmatpush1.bf16.msra.mxu0 %v8323_v17 }
 0x947   :  { %v9531_v54 = vpop.eup %9530  ;;  %5936 = vmatprep.subr.bf16.mxu0 %v8328_v59 }
 0x948   :  { %v9533_v43 = vpop.eup %9532  ;;  %v5256_v24 = vpack.c.bf16 %v9531_v54, %v9527_v44  ;;  %v5123_v41 = vpop.f32.mrb[56].mxu0 }
 0x949   :  { %v5124_v35 = vadd.f32 %v5123_v41, %v11165_v27  ;;  %v5125_v62 = vpop.f32.mrb[57].mxu0  ;;  %v5257_v53 = vpack.c.bf16 %v9533_v43, %v9529_v29 }
 0x94a   :  { %v5126_v23 = vadd.f32 %v5125_v62, %v11168_v22  ;;  %v5127_v28 = vpop.f32.mrb[58].mxu0 }
 0x94b   :  { %9542 = vtanh.f32 %v5124_v35  ;;  %v5128_v14 = vadd.f32 %v5127_v28, %v11165_v27  ;;  %v5129_v36 = vpop.f32.mrb[59].mxu0  ;;  %5543 = vmatprep.mubr.bf16.mxu1 %v5257_v53 }
 0x94c   :  { %9544 = vtanh.f32 %v5126_v23  ;;  %v5130_v46 = vadd.f32 %v5129_v36, %v11168_v22  ;;  %5544 = vmatmul.mubr.bf16.gmra.mrb[88].mxu1 %v5256_v24 }
 0x94d   :  { %v9535_v47 = vpop.eup %9534  ;;  %9546 = vtanh.f32 %v5128_v14 }
 0x94e   :  { %v9537_v8 = vpop.eup %9536  ;;  %9548 = vtanh.f32 %v5130_v46 }
 0x94f   :  { %v9539_v9 = vpop.eup %9538 }
 0x950   :  { %v9541_v18 = vpop.eup %9540  ;;  %v5258_v19 = vpack.c.bf16 %v9539_v9, %v9535_v47  ;;  %v5133_v20 = vpop.f32.mrb[60].mxu0  ;;  %v8326_v47 = vld [vmem:[#allocation6 + $0x160] ss:$8 sps:$4 sm:$0xff]  }
 0x951   :  { %v5134_v48 = vadd.f32 %v5133_v20, %v11165_v27  ;;  %v5135_v31 = vpop.f32.mrb[61].mxu0  ;;  %v5259_v0 = vpack.c.bf16 %v9541_v18, %v9537_v8  ;;  %5937 = vmatpush1.bf16.msra.mxu0 %v8326_v47 }
 0x952   :  { %v5136_v25 = vadd.f32 %v5135_v31, %v11168_v22  ;;  %v5137_v26 = vpop.f32.mrb[62].mxu0 }
 0x953   :  { %9550 = vtanh.f32 %v5134_v48  ;;  %v5138_v21 = vadd.f32 %v5137_v26, %v11165_v27  ;;  %v5139_v11 = vpop.f32.mrb[63].mxu0  ;;  %5553 = vmatprep.mubr.bf16.mxu1 %v5259_v0 }
 0x954   :  { %9552 = vtanh.f32 %v5136_v25  ;;  %v5140_v4 = vadd.f32 %v5139_v11, %v11168_v22  ;;  %5554 = vmatmul.mubr.bf16.gmra.mrb[92].mxu1 %v5258_v19 }
 0x955   :  { %v9543_v44 = vpop.eup %9542  ;;  %9554 = vtanh.f32 %v5138_v21 }
 0x956   :  { %v9545_v29 = vpop.eup %9544  ;;  %9556 = vtanh.f32 %v5140_v4  ;;  %v8329_v4 = vld [vmem:[#allocation6 + $0x170] ss:$8 sps:$4 sm:$0xff]  }
 0x957   :  { %v9547_v54 = vpop.eup %9546 }
 0x958   :  { %v9549_v43 = vpop.eup %9548  ;;  %v5260_v24 = vpack.c.bf16 %v9547_v54, %v9543_v44  ;;  %v5143_v41 = vpop.f32.mrb[64].mxu0  ;;  %v8331_v44 = vld [vmem:[#allocation6 + $0x174] ss:$8 sps:$4 sm:$0xff]  }
 0x959   :  { %v5144_v35 = vadd.f32 %v5143_v41, %v11165_v27  ;;  %v5145_v62 = vpop.f32.mrb[65].mxu0  ;;  %v5261_v53 = vpack.c.bf16 %v9549_v43, %v9545_v29  ;;  %5938 = vmatprep.subr.bf16.mxu0 %v8331_v44  ;;  %v8334_v29 = vld [vmem:[#allocation6 + $0x184] ss:$8 sps:$4 sm:$0xff]   ;;  %v8332_v43 = vld [vmem:[#allocation6 + $0x180] ss:$8 sps:$4 sm:$0xff]  }
 0x95a   :  { %v5146_v23 = vadd.f32 %v5145_v62, %v11168_v22  ;;  %v5147_v28 = vpop.f32.mrb[66].mxu0  ;;  %5939 = vmatpush1.bf16.msra.mxu0 %v8329_v4 }
 0x95b   :  { %9558 = vtanh.f32 %v5144_v35  ;;  %v5148_v14 = vadd.f32 %v5147_v28, %v11165_v27  ;;  %v5149_v36 = vpop.f32.mrb[67].mxu0  ;;  %5563 = vmatprep.mubr.bf16.mxu1 %v5261_v53  ;;  %5940 = vmatprep.subr.bf16.mxu0 %v8334_v29  ;;  %v8338_v29 = vld [vmem:[#allocation6 + $0x1a0] ss:$8 sps:$4 sm:$0xff]  }
 0x95c   :  { %9560 = vtanh.f32 %v5146_v23  ;;  %v5150_v46 = vadd.f32 %v5149_v36, %v11168_v22  ;;  %5564 = vmatmul.mubr.bf16.gmra.mrb[96].mxu1 %v5260_v24 }
 0x95d   :  { %v9551_v60 = vpop.eup %9550  ;;  %9562 = vtanh.f32 %v5148_v14 }
 0x95e   :  { %v9553_v8 = vpop.eup %9552  ;;  %9564 = vtanh.f32 %v5150_v46  ;;  %5941 = vmatpush1.bf16.msra.mxu0 %v8332_v43 }
 0x95f   :  { %v9555_v9 = vpop.eup %9554 }
 0x960   :  { %v9557_v18 = vpop.eup %9556  ;;  %v5262_v19 = vpack.c.bf16 %v9555_v9, %v9551_v60  ;;  %v5153_v20 = vpop.f32.mrb[68].mxu0  ;;  %v8337_v9 = vld [vmem:[#allocation6 + $0x194] ss:$8 sps:$4 sm:$0xff]  }
 0x961   :  { %v5154_v48 = vadd.f32 %v5153_v20, %v11165_v27  ;;  %v5155_v31 = vpop.f32.mrb[69].mxu0  ;;  %v5263_v0 = vpack.c.bf16 %v9557_v18, %v9553_v8  ;;  %v8335_v8 = vld [vmem:[#allocation6 + $0x190] ss:$8 sps:$4 sm:$0xff]   ;;  %5942 = vmatprep.subr.bf16.mxu0 %v8337_v9  ;;  %v8343_v9 = vld [vmem:[#allocation6 + $0x1b4] ss:$8 sps:$4 sm:$0xff]  }
 0x962   :  { %v5156_v25 = vadd.f32 %v5155_v31, %v11168_v22  ;;  %v5157_v26 = vpop.f32.mrb[70].mxu0  ;;  %5943 = vmatpush1.bf16.msra.mxu0 %v8335_v8  ;;  %v8341_v8 = vld [vmem:[#allocation6 + $0x1b0] ss:$8 sps:$4 sm:$0xff]  }
 0x963   :  { %9566 = vtanh.f32 %v5154_v48  ;;  %v5158_v21 = vadd.f32 %v5157_v26, %v11165_v27  ;;  %v5159_v11 = vpop.f32.mrb[71].mxu0  ;;  %5573 = vmatprep.mubr.bf16.mxu1 %v5263_v0 }
 0x964   :  { %9568 = vtanh.f32 %v5156_v25  ;;  %v5160_v17 = vadd.f32 %v5159_v11, %v11168_v22  ;;  %5574 = vmatmul.mubr.bf16.gmra.mrb[100].mxu1 %v5262_v19 }
 0x965   :  { %v9559_v55 = vpop.eup %9558  ;;  %9570 = vtanh.f32 %v5158_v21 }
 0x966   :  { %v9561_v54 = vpop.eup %9560  ;;  %9572 = vtanh.f32 %v5160_v17 }
 0x967   :  { %v9563_v24 = vpop.eup %9562 }
 0x968   :  { %v9565_v41 = vpop.eup %9564  ;;  %v5264_v35 = vpack.c.bf16 %v9563_v24, %v9559_v55  ;;  %v5163_v62 = vpop.f32.mrb[72].mxu0 }
 0x969   :  { %v5164_v53 = vadd.f32 %v5163_v62, %v11165_v27  ;;  %v5165_v23 = vpop.f32.mrb[73].mxu0  ;;  %v5265_v28 = vpack.c.bf16 %v9565_v41, %v9561_v54  ;;  %v8340_v54 = vld [vmem:[#allocation6 + $0x1a4] ss:$8 sps:$4 sm:$0xff]  }
 0x96a   :  { %v5166_v14 = vadd.f32 %v5165_v23, %v11168_v22  ;;  %v5167_v36 = vpop.f32.mrb[74].mxu0  ;;  %5944 = vmatprep.subr.bf16.mxu0 %v8340_v54 }
 0x96b   :  { %9574 = vtanh.f32 %v5164_v53  ;;  %v5168_v46 = vadd.f32 %v5167_v36, %v11165_v27  ;;  %v5169_v47 = vpop.f32.mrb[75].mxu0  ;;  %5583 = vmatprep.mubr.bf16.mxu1 %v5265_v28  ;;  %5945 = vmatpush1.bf16.msra.mxu0 %v8338_v29 }
 0x96c   :  { %9576 = vtanh.f32 %v5166_v14  ;;  %v5170_v59 = vadd.f32 %v5169_v47, %v11168_v22  ;;  %5584 = vmatmul.mubr.bf16.gmra.mrb[104].mxu1 %v5264_v35  ;;  %5946 = vmatprep.subr.bf16.mxu0 %v8343_v9 }
 0x96d   :  { %v9567_v60 = vpop.eup %9566  ;;  %9578 = vtanh.f32 %v5168_v46 }
 0x96e   :  { %v9569_v18 = vpop.eup %9568  ;;  %9580 = vtanh.f32 %v5170_v59 }
 0x96f   :  { %v9571_v19 = vpop.eup %9570  ;;  %5947 = vmatpush1.bf16.msra.mxu0 %v8341_v8 }
 0x970   :  { %v9573_v20 = vpop.eup %9572  ;;  %v5266_v48 = vpack.c.bf16 %v9571_v19, %v9567_v60  ;;  %v5173_v31 = vpop.f32.mrb[76].mxu0 }
 0x971   :  { %v5174_v0 = vadd.f32 %v5173_v31, %v11165_v27  ;;  %v5175_v25 = vpop.f32.mrb[77].mxu0  ;;  %v5267_v26 = vpack.c.bf16 %v9573_v20, %v9569_v18 }
 0x972   :  { %v5176_v21 = vadd.f32 %v5175_v25, %v11168_v22  ;;  %v5177_v11 = vpop.f32.mrb[78].mxu0 }
 0x973   :  { %9582 = vtanh.f32 %v5174_v0  ;;  %v5178_v4 = vadd.f32 %v5177_v11, %v11165_v27  ;;  %v5179_v44 = vpop.f32.mrb[79].mxu0  ;;  %5593 = vmatprep.mubr.bf16.mxu1 %v5267_v26 }
 0x974   :  { %9584 = vtanh.f32 %v5176_v21  ;;  %v5180_v17 = vadd.f32 %v5179_v44, %v11168_v22  ;;  %5594 = vmatmul.mubr.bf16.gmra.mrb[108].mxu1 %v5266_v48  ;;  %v8344_v44 = vld [vmem:[#allocation6 + $0x1c0] ss:$8 sps:$4 sm:$0xff]  }
 0x975   :  { %v9575_v55 = vpop.eup %9574  ;;  %9586 = vtanh.f32 %v5178_v4 }
 0x976   :  { %v9577_v43 = vpop.eup %9576  ;;  %9588 = vtanh.f32 %v5180_v17  ;;  %v8346_v17 = vld [vmem:[#allocation6 + $0x1c4] ss:$8 sps:$4 sm:$0xff]  }
 0x977   :  { %v9579_v24 = vpop.eup %9578  ;;  %5948 = vmatprep.subr.bf16.mxu0 %v8346_v17 }
 0x978   :  { %v9581_v41 = vpop.eup %9580  ;;  %v5268_v35 = vpack.c.bf16 %v9579_v24, %v9575_v55  ;;  %v5183_v62 = vpop.f32.mrb[80].mxu0  ;;  %5949 = vmatpush1.bf16.msra.mxu0 %v8344_v44 }
 0x979   :  { %v5184_v53 = vadd.f32 %v5183_v62, %v11165_v27  ;;  %v5185_v23 = vpop.f32.mrb[81].mxu0  ;;  %v5269_v28 = vpack.c.bf16 %v9581_v41, %v9577_v43  ;;  %v8347_v41 = vld [vmem:[#allocation6 + $0x1d0] ss:$8 sps:$4 sm:$0xff]  }
 0x97a   :  { %v5186_v14 = vadd.f32 %v5185_v23, %v11168_v22  ;;  %v5187_v36 = vpop.f32.mrb[82].mxu0 }
 0x97b   :  { %9590 = vtanh.f32 %v5184_v53  ;;  %v5188_v46 = vadd.f32 %v5187_v36, %v11165_v27  ;;  %v5189_v47 = vpop.f32.mrb[83].mxu0  ;;  %5603 = vmatprep.mubr.bf16.mxu1 %v5269_v28  ;;  %v8352_v28 = vld [vmem:[#allocation6 + $0x1e4] ss:$8 sps:$4 sm:$0xff]   ;;  %v8355_v36 = vld [vmem:[#allocation6 + $0x1f4] ss:$8 sps:$4 sm:$0xff]  }
 0x97c   :  { %9592 = vtanh.f32 %v5186_v14  ;;  %v5190_v59 = vadd.f32 %v5189_v47, %v11168_v22  ;;  %5604 = vmatmul.mubr.bf16.gmra.mrb[112].mxu1 %v5268_v35  ;;  %v8349_v35 = vld [vmem:[#allocation6 + $0x1d4] ss:$8 sps:$4 sm:$0xff]   ;;  %v8350_v14 = vld [vmem:[#allocation6 + $0x1e0] ss:$8 sps:$4 sm:$0xff]  }
 0x97d   :  { %v9583_v60 = vpop.eup %9582  ;;  %9594 = vtanh.f32 %v5188_v46  ;;  %5950 = vmatprep.subr.bf16.mxu0 %v8349_v35  ;;  %v8353_v46 = vld [vmem:[#allocation6 + $0x1f0] ss:$8 sps:$4 sm:$0xff]   ;;  %v7585_v47 = vld [vmem:[%s11730_s6 + $0xa] sm:$0x3] }
 0x97e   :  { %v9585_v18 = vpop.eup %9584  ;;  %9596 = vtanh.f32 %v5190_v59  ;;  %5951 = vmatpush1.bf16.msra.mxu0 %v8347_v41  ;;  %v11224_v59 = vrot.slane %v7585_v47, %v10331_v50 }
 0x97f   :  { %v9587_v19 = vpop.eup %9586  ;;  %5952 = vmatprep.subr.bf16.mxu0 %v8352_v28 }
 0x980   :  { %v9589_v20 = vpop.eup %9588  ;;  %v5270_v48 = vpack.c.bf16 %v9587_v19, %v9583_v60  ;;  %v5193_v31 = vpop.f32.mrb[84].mxu0  ;;  %v11227_v60 = vrot.slane %v7585_v47, %v10336_v52 }
 0x981   :  { %v5194_v0 = vadd.f32 %v5193_v31, %v11165_v27  ;;  %v5271_v25 = vpack.c.bf16 %v9589_v20, %v9585_v18  ;;  %v5195_v26 = vpop.f32.mrb[85].mxu0 }
 0x982   :  { %v5196_v21 = vadd.f32 %v5195_v26, %v11168_v22  ;;  %v5197_v11 = vpop.f32.mrb[86].mxu0  ;;  %5953 = vmatpush1.bf16.msra.mxu0 %v8350_v14 }
 0x983   :  { %9598 = vtanh.f32 %v5194_v0  ;;  %5613 = vmatprep.mubr.bf16.mxu1 %v5271_v25  ;;  %v5198_v4 = vpop.f32.mrb[87].mxu0  ;;  %5954 = vmatprep.subr.bf16.mxu0 %v8355_v36  ;;  %v7404_v25 = vld [vmem:[%s11727_s3 + $0xa] sm:$0x3] }
 0x984   :  { %9600 = vtanh.f32 %v5196_v21  ;;  %5614 = vmatmul.mubr.bf16.gmra.mrb[116].mxu1 %v5270_v48  ;;  %v11237_v26 = vrot.slane %v7404_v25, %v10331_v50  ;;  %v11240_v11 = vrot.slane %v7404_v25, %v10336_v52 }
 0x985   :  { %v9591_v55 = vpop.eup %9590 }
 0x986   :  { %v9593_v29 = vpop.eup %9592  ;;  %5955 = vmatpush1.bf16.msra.mxu0 %v8353_v46  ;;  %v2492_v41 = vadd.f32 %v10783_v32, %v11240_v11 }
 0x987   :  { %v9595_v54 = vpop.eup %9594 }
 0x988   :  { %v9597_v43 = vpop.eup %9596  ;;  %v5272_v24 = vpack.c.bf16 %v9595_v54, %v9591_v55 }
 0x989   :  { %v5273_v27 = vpack.c.bf16 %v9597_v43, %v9593_v29  ;;  %v2490_v43 = vadd.f32 %v10781_v45, %v11237_v26 }
 0x98b   :  { %5623 = vmatprep.mubr.bf16.mxu1 %v5273_v27 }
 0x98c   :  { %5624 = vmatmul.mubr.bf16.gmra.mrb[120].mxu1 %v5272_v24 }
 0x98d   :  { %v9599_v22 = vpop.eup %9598 }
 0x98e   :  { %v9601_v62 = vpop.eup %9600  ;;  %v5274_v23 = vpack.c.bf16 %v9599_v22, %v9599_v22  ;;  %v2494_v22 = vadd.f32 %v10785_v56, %v11237_v26 }
 0x98f   :  { %v5275_v53 = vpack.c.bf16 %v9601_v62, %v9601_v62 }
 0x991   :  { %5633 = vmatprep.mubr.bf16.mxu1 %v5275_v53 }
 0x994   :  { %5634 = vmatmul.mubr.bf16.gmra.mrb[124].mxu1 %v5274_v23  ;;  %v2496_v23 = vadd.f32 %v10787_v49, %v11240_v11  ;;  %v2500_v49 = vadd.f32 %v10789_v6, %v11237_v26 }
 0x99f   :  { %v4888_v8 = vpop.f32.mrb[24].mxu1 }
 0x9a0   :  { %v4889_v9 = vadd.f32 %v4888_v8, %v11224_v59  ;;  %v4890_v18 = vpop.f32.mrb[25].mxu1 }
 0x9a1   :  { %v4891_v19 = vadd.f32 %v4890_v18, %v11227_v60  ;;  %v4892_v20 = vpop.f32.mrb[26].mxu1 }
 0x9a2   :  { %9602 = vtanh.f32 %v4889_v9  ;;  %v4893_v48 = vadd.f32 %v4892_v20, %v11224_v59  ;;  %v4894_v31 = vpop.f32.mrb[27].mxu1 }
 0x9a3   :  { %9604 = vtanh.f32 %v4891_v19  ;;  %v4895_v0 = vadd.f32 %v4894_v31, %v11227_v60 }
 0x9a4   :  { %9606 = vtanh.f32 %v4893_v48 }
 0x9a5   :  { %9608 = vtanh.f32 %v4895_v0  ;;  %v2502_v0 = vadd.f32 %v10791_v16, %v11240_v11 }
 0x9a7   :  { %v4898_v21 = vpop.f32.mrb[28].mxu1 }
 0x9a8   :  { %v4899_v4 = vadd.f32 %v4898_v21, %v11224_v59  ;;  %v4900_v44 = vpop.f32.mrb[29].mxu1  ;;  %v2504_v21 = vadd.f32 %v10793_v30, %v11237_v26 }
 0x9a9   :  { %v4901_v17 = vadd.f32 %v4900_v44, %v11227_v60  ;;  %v4902_v55 = vpop.f32.mrb[30].mxu1 }
 0x9aa   :  { %9610 = vtanh.f32 %v4899_v4  ;;  %v4903_v29 = vadd.f32 %v4902_v55, %v11224_v59  ;;  %v4904_v54 = vpop.f32.mrb[31].mxu1 }
 0x9ab   :  { %9612 = vtanh.f32 %v4901_v17  ;;  %v4905_v24 = vadd.f32 %v4904_v54, %v11227_v60  ;;  %v2506_v17 = vadd.f32 %v10795_v33, %v11240_v11  ;;  %v2510_v33 = vadd.f32 %v10797_v34, %v11237_v26 }
 0x9ac   :  { %v9603_v27 = vpop.eup %9602  ;;  %9614 = vtanh.f32 %v4903_v29 }
 0x9ad   :  { %v9605_v35 = vpop.eup %9604  ;;  %9616 = vtanh.f32 %v4905_v24  ;;  %v7021_v62 = vmul.f32 %v9603_v27, %v2490_v43 }
 0x9ae   :  { %v9607_v53 = vpop.eup %9606  ;;  %v7046_v28 = vmul.f32 %v9605_v35, %v2492_v41 }
 0x9af   :  { %v9609_v45 = vpop.eup %9608  ;;  %v4908_v14 = vpop.f32.mrb[32].mxu1  ;;  %v7022_v36 = vmul.f32 %v9607_v53, %v2494_v22 }
 0x9b0   :  { %v4909_v46 = vadd.f32 %v4908_v14, %v11224_v59  ;;  %v4910_v47 = vpop.f32.mrb[33].mxu1  ;;  %v7071_v8 = vadd.f32 %v7046_v28, %v7021_v62  ;;  %v7047_v32 = vmul.f32 %v9609_v45, %v2496_v23  ;;  %v2512_v28 = vadd.f32 %v10799_v37, %v11240_v11 }
 0x9b1   :  { %v4911_v9 = vadd.f32 %v4910_v47, %v11227_v60  ;;  %v4912_v18 = vpop.f32.mrb[34].mxu1  ;;  %v2514_v14 = vadd.f32 %v10801_v38, %v11237_v26  ;;  %v2516_v47 = vadd.f32 %v10803_v42, %v11240_v11  ;;  %v2520_v42 = vadd.f32 %v10805_v51, %v11237_v26 }
 0x9b2   :  { %9618 = vtanh.f32 %v4909_v46  ;;  %v4913_v56 = vadd.f32 %v4912_v18, %v11224_v59  ;;  %v4914_v19 = vpop.f32.mrb[35].mxu1  ;;  %7096 = vadd.xlane.f32.xlu0 %v7071_v8  ;;  %v7072_v20 = vadd.f32 %v7047_v32, %v7022_v36 }
 0x9b3   :  { %9620 = vtanh.f32 %v4911_v9  ;;  %v4915_v48 = vadd.f32 %v4914_v19, %v11227_v60 }
 0x9b4   :  { %v9611_v31 = vpop.eup %9610  ;;  %9622 = vtanh.f32 %v4913_v56 }
 0x9b5   :  { %v9613_v25 = vpop.eup %9612  ;;  %9624 = vtanh.f32 %v4915_v48  ;;  %v7023_v4 = vmul.f32 %v9611_v31, %v2500_v49 }
 0x9b6   :  { %v9615_v44 = vpop.eup %9614  ;;  %7098 = vadd.xlane.f32.xlu0 %v7072_v20  ;;  %v7048_v6 = vmul.f32 %v9613_v25, %v2502_v0 }
 0x9b7   :  { %v9617_v55 = vpop.eup %9616  ;;  %v4918_v29 = vpop.f32.mrb[36].mxu1  ;;  %v7024_v54 = vmul.f32 %v9615_v44, %v2504_v21  ;;  %v2522_v21 = vadd.f32 %v10807_v57, %v11240_v11  ;;  %v2524_v44 = vadd.f32 %v10809_v58, %v11237_v26 }
 0x9b8   :  { %v4919_v43 = vadd.f32 %v4918_v29, %v11224_v59  ;;  %v4920_v24 = vpop.f32.mrb[37].mxu1  ;;  %v7073_v16 = vadd.f32 %v7048_v6, %v7023_v4  ;;  %v7049_v27 = vmul.f32 %v9617_v55, %v2506_v17  ;;  %v2526_v55 = vadd.f32 %v10811_v7, %v11240_v11 }
 0x9b9   :  { %v4921_v41 = vadd.f32 %v4920_v24, %v11227_v60  ;;  %v4922_v35 = vpop.f32.mrb[38].mxu1  ;;  %v2530_v7 = vadd.f32 %v10813_v61, %v11237_v26 }
 0x9ba   :  { %9626 = vtanh.f32 %v4919_v43  ;;  %v4923_v30 = vadd.f32 %v4922_v35, %v11224_v59  ;;  %v4924_v22 = vpop.f32.mrb[39].mxu1  ;;  %7100 = vadd.xlane.f32.xlu1 %v7073_v16  ;;  %v7074_v62 = vadd.f32 %v7049_v27, %v7024_v54 }
 0x9bb   :  { %9628 = vtanh.f32 %v4921_v41  ;;  %v4925_v53 = vadd.f32 %v4924_v22, %v11227_v60 }
 0x9bc   :  { %v9619_v23 = vpop.eup %9618  ;;  %9630 = vtanh.f32 %v4923_v30 }
 0x9bd   :  { %v9621_v45 = vpop.eup %9620  ;;  %9632 = vtanh.f32 %v4925_v53  ;;  %v7025_v36 = vmul.f32 %v9619_v23, %v2510_v33  ;;  %v2532_v53 = vadd.f32 %v10815_v63, %v11240_v11 }
 0x9be   :  { %v9623_v46 = vpop.eup %9622  ;;  %7102 = vadd.xlane.f32.xlu1 %v7074_v62  ;;  %v7050_v34 = vmul.f32 %v9621_v45, %v2512_v28  ;;  %v2534_v28 = vadd.f32 %v10817_v1, %v11237_v26 }
 0x9bf   :  { %v9625_v8 = vpop.eup %9624  ;;  %v4928_v32 = vpop.f32.mrb[40].mxu1  ;;  %v7026_v9 = vmul.f32 %v9623_v46, %v2514_v14 }
 0x9c0   :  { %v4929_v18 = vadd.f32 %v4928_v32, %v11224_v59  ;;  %v4930_v56 = vpop.f32.mrb[41].mxu1  ;;  %v7075_v37 = vadd.f32 %v7050_v34, %v7025_v36  ;;  %v7051_v19 = vmul.f32 %v9625_v8, %v2516_v47  ;;  %v2536_v36 = vadd.f32 %v10819_v2, %v11240_v11 }
 0x9c1   :  { %v4931_v20 = vadd.f32 %v4930_v56, %v11227_v60  ;;  %v4932_v49 = vpop.f32.mrb[42].mxu1  ;;  %v2540_v2 = vadd.f32 %v10821_v39, %v11237_v26 }
 0x9c2   :  { %9634 = vtanh.f32 %v4929_v18  ;;  %v4933_v38 = vadd.f32 %v4932_v49, %v11224_v59  ;;  %v4934_v48 = vpop.f32.mrb[43].mxu1  ;;  %7104 = vadd.xlane.f32.xlu0 %v7075_v37  ;;  %v7076_v31 = vadd.f32 %v7051_v19, %v7026_v9 }
 0x9c3   :  { %9636 = vtanh.f32 %v4931_v20  ;;  %v4935_v0 = vadd.f32 %v4934_v48, %v11227_v60 }
 0x9c4   :  { %v9627_v25 = vpop.eup %9626  ;;  %9638 = vtanh.f32 %v4933_v38  ;;  %7106 = vadd.xlane.f32.xlu1 %v7076_v31  ;;  %v2542_v38 = vadd.f32 %v10823_v40, %v11240_v11  ;;  %v2544_v31 = vadd.f32 %v10825_v3, %v11237_v26 }
 0x9c5   :  { %v9629_v4 = vpop.eup %9628  ;;  %9640 = vtanh.f32 %v4935_v0  ;;  %v7027_v17 = vmul.f32 %v9627_v25, %v2520_v42  ;;  %v2546_v25 = vadd.f32 %v10827_v5, %v11240_v11  ;;  %v2550_v5 = vadd.f32 %v10829_v10, %v11237_v26 }
 0x9c6   :  { %v9631_v6 = vpop.eup %9630  ;;  %v7052_v51 = vmul.f32 %v9629_v4, %v2522_v21 }
 0x9c7   :  { %v9633_v29 = vpop.eup %9632  ;;  %v4938_v54 = vpop.f32.mrb[44].mxu1  ;;  %v7028_v43 = vmul.f32 %v9631_v6, %v2524_v44 }
 0x9c8   :  { %v4939_v24 = vadd.f32 %v4938_v54, %v11224_v59  ;;  %v4940_v16 = vpop.f32.mrb[45].mxu1  ;;  %v7077_v57 = vadd.f32 %v7052_v51, %v7027_v17  ;;  %v7053_v27 = vmul.f32 %v9633_v29, %v2526_v55 }
 0x9c9   :  { %v4941_v41 = vadd.f32 %v4940_v16, %v11227_v60  ;;  %v4942_v35 = vpop.f32.mrb[46].mxu1 }
 0x9ca   :  { %9642 = vtanh.f32 %v4939_v24  ;;  %v4943_v58 = vadd.f32 %v4942_v35, %v11224_v59  ;;  %v4944_v30 = vpop.f32.mrb[47].mxu1  ;;  %7108 = vadd.xlane.f32.xlu0 %v7077_v57  ;;  %v7078_v22 = vadd.f32 %v7053_v27, %v7028_v43  ;;  %v2552_v57 = vadd.f32 %v10831_v12, %v11240_v11 }
 0x9cb   :  { %9644 = vtanh.f32 %v4941_v41  ;;  %v4945_v62 = vadd.f32 %v4944_v30, %v11227_v60  ;;  %v2554_v41 = vadd.f32 %v10833_v13, %v11237_v26  ;;  %v2556_v30 = vadd.f32 %v10835_v15, %v11240_v11  ;;  %v11760_v15 = vld [vmem:[#allocation9_spill] sm:$0xff] }
 0x9cc   :  { %v9635_v33 = vpop.eup %9634  ;;  %9646 = vtanh.f32 %v4943_v58  ;;  %7110 = vadd.xlane.f32.xlu1 %v7078_v22 }
 0x9cd   :  { %v9637_v23 = vpop.eup %9636  ;;  %9648 = vtanh.f32 %v4945_v62  ;;  %v7029_v45 = vmul.f32 %v9635_v33, %v2530_v7 }
 0x9ce   :  { %v9639_v14 = vpop.eup %9638  ;;  %v7054_v61 = vmul.f32 %v9637_v23, %v2532_v53 }
 0x9cf   :  { %v9641_v46 = vpop.eup %9640  ;;  %v4948_v47 = vpop.f32.mrb[48].mxu1  ;;  %v7030_v34 = vmul.f32 %v9639_v14, %v2534_v28 }
 0x9d0   :  { %v4949_v8 = vadd.f32 %v4948_v47, %v11224_v59  ;;  %v4950_v32 = vpop.f32.mrb[49].mxu1  ;;  %v7079_v63 = vadd.f32 %v7054_v61, %v7029_v45  ;;  %v7055_v9 = vmul.f32 %v9641_v46, %v2536_v36  ;;  %v2560_v61 = vadd.f32 %v11760_v15, %v11237_v26 }
 0x9d1   :  { %v4951_v18 = vadd.f32 %v4950_v32, %v11227_v60  ;;  %v4952_v56 = vpop.f32.mrb[50].mxu1 }
 0x9d2   :  { %9650 = vtanh.f32 %v4949_v8  ;;  %v4953_v1 = vadd.f32 %v4952_v56, %v11224_v59  ;;  %v4954_v37 = vpop.f32.mrb[51].mxu1  ;;  %7112 = vadd.xlane.f32.xlu0 %v7079_v63  ;;  %v7080_v19 = vadd.f32 %v7055_v9, %v7030_v34  ;;  %v11761_v34 = vld [vmem:[#allocation10_spill] sm:$0xff]  ;;  %v11762_v63 = vld [vmem:[#allocation11_spill] sm:$0xff] }
 0x9d3   :  { %9652 = vtanh.f32 %v4951_v18  ;;  %v4955_v20 = vadd.f32 %v4954_v37, %v11227_v60  ;;  %v2562_v8 = vadd.f32 %v11761_v34, %v11240_v11  ;;  %v2564_v9 = vadd.f32 %v11762_v63, %v11237_v26 }
 0x9d4   :  { %v9643_v49 = vpop.eup %9642  ;;  %9654 = vtanh.f32 %v4953_v1  ;;  %7114 = vadd.xlane.f32.xlu1 %v7080_v19  ;;  %v11763_v1 = vld [vmem:[#allocation12_spill] sm:$0xff] }
 0x9d5   :  { %v9645_v48 = vpop.eup %9644  ;;  %9656 = vtanh.f32 %v4955_v20  ;;  %v7031_v42 = vmul.f32 %v9643_v49, %v2540_v2  ;;  %v2566_v37 = vadd.f32 %v11763_v1, %v11240_v11 }
 0x9d6   :  { %v9647_v0 = vpop.eup %9646  ;;  %v7056_v39 = vmul.f32 %v9645_v48, %v2542_v38 }
 0x9d7   :  { %v9649_v21 = vpop.eup %9648  ;;  %v4958_v4 = vpop.f32.mrb[52].mxu1  ;;  %v7032_v44 = vmul.f32 %v9647_v0, %v2544_v31 }
 0x9d8   :  { %v4959_v17 = vadd.f32 %v4958_v4, %v11224_v59  ;;  %v4960_v6 = vpop.f32.mrb[53].mxu1  ;;  %v7081_v40 = vadd.f32 %v7056_v39, %v7031_v42  ;;  %v7057_v55 = vmul.f32 %v9649_v21, %v2546_v25 }
 0x9d9   :  { %v4961_v51 = vadd.f32 %v4960_v6, %v11227_v60  ;;  %v4962_v29 = vpop.f32.mrb[54].mxu1 }
 0x9da   :  { %9658 = vtanh.f32 %v4959_v17  ;;  %v4963_v3 = vadd.f32 %v4962_v29, %v11224_v59  ;;  %v4964_v54 = vpop.f32.mrb[55].mxu1  ;;  %7116 = vadd.xlane.f32.xlu0 %v7081_v40  ;;  %v7082_v43 = vadd.f32 %v7057_v55, %v7032_v44  ;;  %v11764_v44 = vld [vmem:[#allocation13_spill] sm:$0xff]  ;;  %v11765_v55 = vld [vmem:[#allocation14_spill] sm:$0xff] }
 0x9db   :  { %9660 = vtanh.f32 %v4961_v51  ;;  %v4965_v24 = vadd.f32 %v4964_v54, %v11227_v60  ;;  %v2570_v17 = vadd.f32 %v11764_v44, %v11237_v26  ;;  %v2572_v51 = vadd.f32 %v11765_v55, %v11240_v11 }
 0x9dc   :  { %v9651_v16 = vpop.eup %9650  ;;  %9662 = vtanh.f32 %v4963_v3  ;;  %7118 = vadd.xlane.f32.xlu1 %v7082_v43  ;;  %v11766_v3 = vld [vmem:[#allocation15_spill] sm:$0xff] }
 0x9dd   :  { %v9653_v27 = vpop.eup %9652  ;;  %9664 = vtanh.f32 %v4965_v24  ;;  %v7033_v35 = vmul.f32 %v9651_v16, %v2550_v5  ;;  %v2574_v54 = vadd.f32 %v11766_v3, %v11237_v26  ;;  %v11767_v24 = vld [vmem:[#allocation16_spill] sm:$0xff] }
 0x9de   :  { %v9655_v58 = vpop.eup %9654  ;;  %v7058_v10 = vmul.f32 %v9653_v27, %v2552_v57  ;;  %v2576_v16 = vadd.f32 %v11767_v24, %v11240_v11 }
 0x9df   :  { %v9657_v22 = vpop.eup %9656  ;;  %v4968_v7 = vpop.f32.mrb[56].mxu1  ;;  %v7034_v62 = vmul.f32 %v9655_v58, %v2554_v41 }
 0x9e0   :  { %v4969_v33 = vadd.f32 %v4968_v7, %v11224_v59  ;;  %v4970_v53 = vpop.f32.mrb[57].mxu1  ;;  %v7083_v12 = vadd.f32 %v7058_v10, %v7033_v35  ;;  %v7059_v23 = vmul.f32 %v9657_v22, %v2556_v30 }
 0x9e1   :  { %v4971_v28 = vadd.f32 %v4970_v53, %v11227_v60  ;;  %v4972_v45 = vpop.f32.mrb[58].mxu1 }
 0x9e2   :  { %9666 = vtanh.f32 %v4969_v33  ;;  %v4973_v13 = vadd.f32 %v4972_v45, %v11224_v59  ;;  %v4974_v14 = vpop.f32.mrb[59].mxu1  ;;  %7120 = vadd.xlane.f32.xlu0 %v7083_v12  ;;  %v7084_v36 = vadd.f32 %v7059_v23, %v7034_v62  ;;  %v11768_v23 = vld [vmem:[#allocation17_spill] sm:$0xff] }
 0x9e3   :  { %9668 = vtanh.f32 %v4971_v28  ;;  %v4975_v46 = vadd.f32 %v4974_v14, %v11227_v60  ;;  %v2580_v28 = vadd.f32 %v11768_v23, %v11237_v26  ;;  %v11769_v14 = vld [vmem:[#allocation18_spill] sm:$0xff] }
 0x9e4   :  { %v9659_v47 = vpop.eup %9658  ;;  %9670 = vtanh.f32 %v4973_v13  ;;  %7122 = vadd.xlane.f32.xlu1 %v7084_v36  ;;  %v2582_v36 = vadd.f32 %v11769_v14, %v11240_v11  ;;  %v11779_v14 = vld [vmem:[#allocation28_spill] sm:$0xff] }
 0x9e5   :  { %v9661_v32 = vpop.eup %9660  ;;  %9672 = vtanh.f32 %v4975_v46  ;;  %v7035_v18 = vmul.f32 %v9659_v47, %v2560_v61  ;;  %v11770_v61 = vld [vmem:[#allocation19_spill] sm:$0xff] }
 0x9e6   :  { %v9663_v56 = vpop.eup %9662  ;;  %v7060_v19 = vmul.f32 %v9661_v32, %v2562_v8  ;;  %v2584_v46 = vadd.f32 %v11770_v61, %v11237_v26  ;;  %v11771_v8 = vld [vmem:[#allocation20_spill] sm:$0xff] }
 0x9e7   :  { %v9665_v2 = vpop.eup %9664  ;;  %v4978_v20 = vpop.f32.mrb[60].mxu1  ;;  %v7036_v49 = vmul.f32 %v9663_v56, %v2564_v9  ;;  %v2586_v32 = vadd.f32 %v11771_v8, %v11240_v11 }
 0x9e8   :  { %v4979_v38 = vadd.f32 %v4978_v20, %v11224_v59  ;;  %v4980_v48 = vpop.f32.mrb[61].mxu1  ;;  %v7085_v31 = vadd.f32 %v7060_v19, %v7035_v18  ;;  %v7061_v42 = vmul.f32 %v9665_v2, %v2566_v37 }
 0x9e9   :  { %v4981_v0 = vadd.f32 %v4980_v48, %v11227_v60  ;;  %v4982_v25 = vpop.f32.mrb[62].mxu1 }
 0x9ea   :  { %9674 = vtanh.f32 %v4979_v38  ;;  %v4983_v39 = vadd.f32 %v4982_v25, %v11224_v59  ;;  %v4984_v21 = vpop.f32.mrb[63].mxu1  ;;  %7124 = vadd.xlane.f32.xlu0 %v7085_v31  ;;  %v7086_v4 = vadd.f32 %v7061_v42, %v7036_v49  ;;  %v11772_v42 = vld [vmem:[#allocation21_spill] sm:$0xff] }
 0x9eb   :  { %9676 = vtanh.f32 %v4981_v0  ;;  %v4985_v6 = vadd.f32 %v4984_v21, %v11227_v60  ;;  %v2590_v0 = vadd.f32 %v11772_v42, %v11237_v26  ;;  %v11773_v21 = vld [vmem:[#allocation22_spill] sm:$0xff] }
 0x9ec   :  { %v9667_v40 = vpop.eup %9666  ;;  %9678 = vtanh.f32 %v4983_v39  ;;  %7126 = vadd.xlane.f32.xlu1 %v7086_v4  ;;  %v2592_v4 = vadd.f32 %v11773_v21, %v11240_v11 }
 0x9ed   :  { %v9669_v29 = vpop.eup %9668  ;;  %9680 = vtanh.f32 %v4985_v6  ;;  %v7037_v43 = vmul.f32 %v9667_v40, %v2570_v17  ;;  %v11774_v17 = vld [vmem:[#allocation23_spill] sm:$0xff] }
 0x9ee   :  { %v9671_v5 = vpop.eup %9670  ;;  %v7062_v57 = vmul.f32 %v9669_v29, %v2572_v51  ;;  %v2594_v6 = vadd.f32 %v11774_v17, %v11237_v26  ;;  %v11775_v51 = vld [vmem:[#allocation24_spill] sm:$0xff] }
 0x9ef   :  { %v9673_v27 = vpop.eup %9672  ;;  %v4988_v41 = vpop.f32.mrb[64].mxu1  ;;  %v7038_v35 = vmul.f32 %v9671_v5, %v2574_v54  ;;  %v2596_v29 = vadd.f32 %v11775_v51, %v11240_v11 }
 0x9f0   :  { %v4989_v58 = vadd.f32 %v4988_v41, %v11224_v59  ;;  %v4990_v30 = vpop.f32.mrb[65].mxu1  ;;  %v7087_v10 = vadd.f32 %v7062_v57, %v7037_v43  ;;  %v7063_v22 = vmul.f32 %v9673_v27, %v2576_v16 }
 0x9f1   :  { %v4991_v7 = vadd.f32 %v4990_v30, %v11227_v60  ;;  %v4992_v62 = vpop.f32.mrb[66].mxu1 }
 0x9f2   :  { %9682 = vtanh.f32 %v4989_v58  ;;  %v4993_v33 = vadd.f32 %v4992_v62, %v11224_v59  ;;  %v4994_v53 = vpop.f32.mrb[67].mxu1  ;;  %7128 = vadd.xlane.f32.xlu0 %v7087_v10  ;;  %v7088_v12 = vadd.f32 %v7063_v22, %v7038_v35  ;;  %v7634_v58 = vld [vmem:[%s11733_s9 + $0x2] sm:$0x3] }
 0x9f3   :  { %9684 = vtanh.f32 %v4991_v7  ;;  %v4995_v45 = vadd.f32 %v4994_v53, %v11227_v60  ;;  %v11776_v22 = vld [vmem:[#allocation25_spill] sm:$0xff] }
 0x9f4   :  { %v9675_v13 = vpop.eup %9674  ;;  %9686 = vtanh.f32 %v4993_v33  ;;  %7130 = vadd.xlane.f32.xlu1 %v7088_v12  ;;  %v2600_v7 = vadd.f32 %v11776_v22, %v11237_v26  ;;  %v11778_v12 = vld [vmem:[#allocation27_spill] sm:$0xff] }
 0x9f5   :  { %v9677_v15 = vpop.eup %9676  ;;  %9688 = vtanh.f32 %v4995_v45  ;;  %v7039_v47 = vmul.f32 %v9675_v13, %v2580_v28  ;;  %v2604_v23 = vadd.f32 %v11778_v12, %v11237_v26  ;;  %v11389_v28 = vrot.slane %v7634_v58, %v10336_v52  ;;  %v8361_v12 = vld [vmem:[#allocation6 + $0x214] ss:$8 sps:$4 sm:$0xff]  }
 0x9f6   :  { %v9679_v34 = vpop.eup %9678  ;;  %v7064_v63 = vmul.f32 %v9677_v15, %v2582_v36  ;;  %v2606_v36 = vadd.f32 %v11779_v14, %v11240_v11  ;;  %v8364_v14 = vld [vmem:[#allocation6 + $0x224] ss:$8 sps:$4 sm:$0xff]  }
 0x9f7   :  { %v9681_v9 = vpop.eup %9680  ;;  %v4998_v18 = vpop.f32.mrb[68].mxu1  ;;  %v7040_v56 = vmul.f32 %v9679_v34, %v2584_v46 }
 0x9f8   :  { %v4999_v1 = vadd.f32 %v4998_v18, %v11224_v59  ;;  %v5000_v37 = vpop.f32.mrb[69].mxu1  ;;  %v7089_v19 = vadd.f32 %v7064_v63, %v7039_v47  ;;  %v7065_v2 = vmul.f32 %v9681_v9, %v2586_v32 }
 0x9f9   :  { %v5001_v20 = vadd.f32 %v5000_v37, %v11227_v60  ;;  %v5002_v49 = vpop.f32.mrb[70].mxu1 }
 0x9fa   :  { %9690 = vtanh.f32 %v4999_v1  ;;  %v5003_v38 = vadd.f32 %v5002_v49, %v11224_v59  ;;  %v5004_v48 = vpop.f32.mrb[71].mxu1  ;;  %7132 = vadd.xlane.f32.xlu0 %v7089_v19  ;;  %v7090_v31 = vadd.f32 %v7065_v2, %v7040_v56  ;;  %v11780_v19 = vld [vmem:[#allocation29_spill] sm:$0xff] }
 0x9fb   :  { %9692 = vtanh.f32 %v5001_v20  ;;  %v5005_v25 = vadd.f32 %v5004_v48, %v11227_v60  ;;  %v2610_v2 = vadd.f32 %v11780_v19, %v11237_v26  ;;  %v8370_v19 = vld [vmem:[#allocation6 + $0x244] ss:$8 sps:$4 sm:$0xff]  }
 0x9fc   :  { %v9683_v39 = vpop.eup %9682  ;;  %9694 = vtanh.f32 %v5003_v38  ;;  %7134 = vadd.xlane.f32.xlu1 %v7090_v31  ;;  %v11781_v38 = vld [vmem:[#allocation30_spill] sm:$0xff] }
 0x9fd   :  { %v9685_v44 = vpop.eup %9684  ;;  %9696 = vtanh.f32 %v5005_v25  ;;  %v7041_v40 = vmul.f32 %v9683_v39, %v2590_v0  ;;  %v2612_v48 = vadd.f32 %v11781_v38, %v11240_v11 }
 0x9fe   :  { %v9687_v55 = vpop.eup %9686  ;;  %v7066_v3 = vmul.f32 %v9685_v44, %v2592_v4 }
 0x9ff   :  { %v9689_v54 = vpop.eup %9688  ;;  %v5008_v43 = vpop.f32.mrb[72].mxu1  ;;  %v7042_v5 = vmul.f32 %v9687_v55, %v2594_v6 }
 0xa00   :  { %v5009_v24 = vadd.f32 %v5008_v43, %v11224_v59  ;;  %v5010_v16 = vpop.f32.mrb[73].mxu1  ;;  %v7091_v57 = vadd.f32 %v7066_v3, %v7041_v40  ;;  %v7067_v27 = vmul.f32 %v9689_v54, %v2596_v29  ;;  %v11777_v59 = vld [vmem:[#allocation26_spill] sm:$0xff] }
 0xa01   :  { %v5011_v41 = vadd.f32 %v5010_v16, %v11227_v60  ;;  %v5012_v35 = vpop.f32.mrb[74].mxu1  ;;  %v2602_v33 = vadd.f32 %v11777_v59, %v11240_v11  ;;  %v11384_v60 = vrot.slane %v7634_v58, %v10331_v50  ;;  %v8356_v43 = vld [vmem:[#allocation6 + $0x200] ss:$8 sps:$4 sm:$0xff]  }
 0xa02   :  { %9698 = vtanh.f32 %v5009_v24  ;;  %v5013_v30 = vpop.f32.mrb[75].mxu1  ;;  %7136 = vadd.xlane.f32.xlu0 %v7091_v57  ;;  %v7092_v10 = vadd.f32 %v7067_v27, %v7042_v5  ;;  %v8358_v5 = vld [vmem:[#allocation6 + $0x204] ss:$8 sps:$4 sm:$0xff]  }
 0xa03   :  { %9700 = vtanh.f32 %v5011_v41  ;;  %6367 = vmatprep.subr.bf16.mxu1 %v8358_v5 }
 0xa04   :  { %v9691_v62 = vpop.eup %9690  ;;  %7138 = vadd.xlane.f32.xlu1 %v7092_v10  ;;  %6368 = vmatpush1.bf16.msra.mxu1 %v8356_v43 }
 0xa05   :  { %v9693_v53 = vpop.eup %9692  ;;  %v7043_v45 = vmul.f32 %v9691_v62, %v2600_v7  ;;  %6369 = vmatprep.subr.bf16.mxu1 %v8361_v12 }
 0xa06   :  { %v9695_v13 = vpop.eup %9694  ;;  %v7068_v15 = vmul.f32 %v9693_v53, %v2602_v33  ;;  %v8359_v53 = vld [vmem:[#allocation6 + $0x210] ss:$8 sps:$4 sm:$0xff]  }
 0xa07   :  { %v9697_v61 = vpop.eup %9696  ;;  %v5515_v46 = vpop.f32.mrb[76].mxu1  ;;  %v7044_v47 = vmul.f32 %v9695_v13, %v2604_v23 }
 0xa08   :  { %v5516_v34 = vadd.f32 %v5515_v46, %v11384_v60  ;;  %v5517_v8 = vpop.f32.mrb[77].mxu1  ;;  %v7093_v32 = vadd.f32 %v7068_v15, %v7043_v45  ;;  %v7069_v63 = vmul.f32 %v9697_v61, %v2606_v36  ;;  %6370 = vmatpush1.bf16.msra.mxu1 %v8359_v53 }
 0xa09   :  { %v5518_v9 = vadd.f32 %v5517_v8, %v11389_v28  ;;  %v5519_v18 = vpop.f32.mrb[78].mxu1  ;;  %6371 = vmatprep.subr.bf16.mxu1 %v8364_v14  ;;  %v8367_v8 = vld [vmem:[#allocation6 + $0x234] ss:$8 sps:$4 sm:$0xff]  }
 0xa0a   :  { %9702 = vtanh.f32 %v5516_v34  ;;  %v5520_v56 = vadd.f32 %v5519_v18, %v11384_v60  ;;  %v5521_v1 = vpop.f32.mrb[79].mxu1  ;;  %7140 = vadd.xlane.f32.xlu0 %v7093_v32  ;;  %v7094_v37 = vadd.f32 %v7069_v63, %v7044_v47  ;;  %v8362_v47 = vld [vmem:[#allocation6 + $0x220] ss:$8 sps:$4 sm:$0xff]   ;;  %v8365_v18 = vld [vmem:[#allocation6 + $0x230] ss:$8 sps:$4 sm:$0xff]  }
 0xa0b   :  { %9704 = vtanh.f32 %v5518_v9  ;;  %v5522_v20 = vadd.f32 %v5521_v1, %v11389_v28 }
 0xa0c   :  { %v9699_v49 = vpop.eup %9698  ;;  %9706 = vtanh.f32 %v5520_v56  ;;  %7142 = vadd.xlane.f32.xlu1 %v7094_v37  ;;  %6372 = vmatpush1.bf16.msra.mxu1 %v8362_v47  ;;  %v8383_v47 = vld [vmem:[#allocation6 + $0x290] ss:$8 sps:$4 sm:$0xff]  }
 0xa0d   :  { %v9701_v31 = vpop.eup %9700  ;;  %9708 = vtanh.f32 %v5522_v20  ;;  %v7045_v42 = vmul.f32 %v9699_v49, %v2610_v2  ;;  %6373 = vmatprep.subr.bf16.mxu1 %v8367_v8 }
 0xa0e   :  { %v7070_v0 = vmul.f32 %v9701_v31, %v2612_v48 }
 0xa0f   :  { %v5525_v25 = vpop.f32.mrb[80].mxu1 }
 0xa10   :  { %v5526_v39 = vadd.f32 %v5525_v25, %v11384_v60  ;;  %v5527_v21 = vpop.f32.mrb[81].mxu1  ;;  %v7095_v4 = vadd.f32 %v7070_v0, %v7045_v42  ;;  %6374 = vmatpush1.bf16.msra.mxu1 %v8365_v18  ;;  %v8368_v0 = vld [vmem:[#allocation6 + $0x240] ss:$8 sps:$4 sm:$0xff]  }
 0xa11   :  { %v5528_v26 = vadd.f32 %v5527_v21, %v11389_v28  ;;  %v5529_v44 = vpop.f32.mrb[82].mxu1  ;;  %6375 = vmatprep.subr.bf16.mxu1 %v8370_v19 }
 0xa12   :  { %9710 = vtanh.f32 %v5526_v39  ;;  %v5530_v17 = vadd.f32 %v5529_v44, %v11384_v60  ;;  %v5531_v6 = vpop.f32.mrb[83].mxu1  ;;  %7144 = vadd.xlane.f32.xlu0 %v7095_v4  ;;  %v8373_v39 = vld [vmem:[#allocation6 + $0x254] ss:$8 sps:$4 sm:$0xff]   ;;  %v8371_v44 = vld [vmem:[#allocation6 + $0x250] ss:$8 sps:$4 sm:$0xff]  }
 0xa13   :  { %9712 = vtanh.f32 %v5528_v26  ;;  %v5532_v11 = vadd.f32 %v5531_v6, %v11389_v28 }
 0xa14   :  { %v9703_v40 = vpop.eup %9702  ;;  %9714 = vtanh.f32 %v5530_v17  ;;  %6376 = vmatpush1.bf16.msra.mxu1 %v8368_v0  ;;  %v8389_v0 = vld [vmem:[#allocation6 + $0x2b0] ss:$8 sps:$4 sm:$0xff]  }
 0xa15   :  { %v9705_v55 = vpop.eup %9704  ;;  %9716 = vtanh.f32 %v5532_v11  ;;  %6377 = vmatprep.subr.bf16.mxu1 %v8373_v39 }
 0xa16   :  { %v9707_v51 = vpop.eup %9706 }
 0xa17   :  { %v9709_v29 = vpop.eup %9708  ;;  %v5692_v3 = vpack.c.bf16 %v9707_v51, %v9703_v40  ;;  %v5535_v54 = vpop.f32.mrb[84].mxu1  ;;  %v8376_v40 = vld [vmem:[#allocation6 + $0x264] ss:$8 sps:$4 sm:$0xff]  }
 0xa18   :  { %v5536_v24 = vadd.f32 %v5535_v54, %v11384_v60  ;;  %v5537_v16 = vpop.f32.mrb[85].mxu1  ;;  %v5693_v57 = vpack.c.bf16 %v9709_v29, %v9705_v55  ;;  %6378 = vmatpush1.bf16.msra.mxu1 %v8371_v44 }
 0xa19   :  { %v5538_v27 = vadd.f32 %v5537_v16, %v11389_v28  ;;  %v5539_v41 = vpop.f32.mrb[86].mxu1  ;;  %6379 = vmatprep.subr.bf16.mxu1 %v8376_v40 }
 0xa1a   :  { %9718 = vtanh.f32 %v5536_v24  ;;  %v5540_v35 = vadd.f32 %v5539_v41, %v11384_v60  ;;  %v5541_v58 = vpop.f32.mrb[87].mxu1  ;;  %5956 = vmatprep.mubr.bf16.mxu0 %v5693_v57  ;;  %v8374_v24 = vld [vmem:[#allocation6 + $0x260] ss:$8 sps:$4 sm:$0xff]   ;;  %v8379_v57 = vld [vmem:[#allocation6 + $0x274] ss:$8 sps:$4 sm:$0xff]  }
 0xa1b   :  { %9720 = vtanh.f32 %v5538_v27  ;;  %v5542_v30 = vadd.f32 %v5541_v58, %v11389_v28  ;;  %5957 = vmatmul.mubr.bf16.vlgmr.msra.gmra.mrb[88].mxu0 %v5692_v3  ;;  %v8377_v58 = vld [vmem:[#allocation6 + $0x270] ss:$8 sps:$4 sm:$0xff]  }
 0xa1c   :  { %v9711_v10 = vpop.eup %9710  ;;  %9722 = vtanh.f32 %v5540_v35  ;;  %6380 = vmatpush1.bf16.msra.mxu1 %v8374_v24 }
 0xa1d   :  { %v9713_v22 = vpop.eup %9712  ;;  %9724 = vtanh.f32 %v5542_v30  ;;  %6381 = vmatprep.subr.bf16.mxu1 %v8379_v57 }
 0xa1e   :  { %v9715_v7 = vpop.eup %9714 }
 0xa1f   :  { %v9717_v62 = vpop.eup %9716  ;;  %v5694_v59 = vpack.c.bf16 %v9715_v7, %v9711_v10  ;;  %v5545_v33 = vpop.f32.mrb[88].mxu1  ;;  %v8382_v7 = vld [vmem:[#allocation6 + $0x284] ss:$8 sps:$4 sm:$0xff]  }
 0xa20   :  { %v5546_v23 = vadd.f32 %v5545_v33, %v11384_v60  ;;  %v5547_v45 = vpop.f32.mrb[89].mxu1  ;;  %v5695_v13 = vpack.c.bf16 %v9717_v62, %v9713_v22  ;;  %6382 = vmatpush1.bf16.msra.mxu1 %v8377_v58 }
 0xa21   :  { %v5548_v36 = vadd.f32 %v5547_v45, %v11389_v28  ;;  %v5549_v15 = vpop.f32.mrb[90].mxu1  ;;  %6383 = vmatprep.subr.bf16.mxu1 %v8382_v7 }
 0xa22   :  { %9726 = vtanh.f32 %v5546_v23  ;;  %v5550_v61 = vadd.f32 %v5549_v15, %v11384_v60  ;;  %v5551_v46 = vpop.f32.mrb[91].mxu1  ;;  %5966 = vmatprep.mubr.bf16.mxu0 %v5695_v13  ;;  %v8380_v13 = vld [vmem:[#allocation6 + $0x280] ss:$8 sps:$4 sm:$0xff]  }
 0xa23   :  { %9728 = vtanh.f32 %v5548_v36  ;;  %v5552_v34 = vadd.f32 %v5551_v46, %v11389_v28  ;;  %5967 = vmatmul.mubr.bf16.gmra.mrb[92].mxu0 %v5694_v59  ;;  %v8385_v36 = vld [vmem:[#allocation6 + $0x294] ss:$8 sps:$4 sm:$0xff]  }
 0xa24   :  { %v9719_v32 = vpop.eup %9718  ;;  %9730 = vtanh.f32 %v5550_v61  ;;  %6384 = vmatpush1.bf16.msra.mxu1 %v8380_v13 }
 0xa25   :  { %v9721_v63 = vpop.eup %9720  ;;  %9732 = vtanh.f32 %v5552_v34  ;;  %6385 = vmatprep.subr.bf16.mxu1 %v8385_v36 }
 0xa26   :  { %v9723_v9 = vpop.eup %9722 }
 0xa27   :  { %v9725_v56 = vpop.eup %9724  ;;  %v5696_v1 = vpack.c.bf16 %v9723_v9, %v9719_v32  ;;  %v5555_v37 = vpop.f32.mrb[92].mxu1 }
 0xa28   :  { %v5556_v2 = vadd.f32 %v5555_v37, %v11384_v60  ;;  %v5557_v20 = vpop.f32.mrb[93].mxu1  ;;  %v5697_v49 = vpack.c.bf16 %v9725_v56, %v9721_v63  ;;  %v8388_v63 = vld [vmem:[#allocation6 + $0x2a4] ss:$8 sps:$4 sm:$0xff]   ;;  %6386 = vmatpush1.bf16.msra.mxu1 %v8383_v47 }
 0xa29   :  { %v5558_v38 = vadd.f32 %v5557_v20, %v11389_v28  ;;  %v5559_v48 = vpop.f32.mrb[94].mxu1  ;;  %v8386_v20 = vld [vmem:[#allocation6 + $0x2a0] ss:$8 sps:$4 sm:$0xff]   ;;  %6387 = vmatprep.subr.bf16.mxu1 %v8388_v63 }
 0xa2a   :  { %9734 = vtanh.f32 %v5556_v2  ;;  %v5560_v31 = vadd.f32 %v5559_v48, %v11384_v60  ;;  %v5561_v42 = vpop.f32.mrb[95].mxu1  ;;  %5976 = vmatprep.mubr.bf16.mxu0 %v5697_v49 }
 0xa2b   :  { %9736 = vtanh.f32 %v5558_v38  ;;  %v5562_v25 = vadd.f32 %v5561_v42, %v11389_v28  ;;  %5977 = vmatmul.mubr.bf16.gmra.mrb[96].mxu0 %v5696_v1  ;;  %v8391_v38 = vld [vmem:[#allocation6 + $0x2b4] ss:$8 sps:$4 sm:$0xff]  }
 0xa2c   :  { %v9727_v21 = vpop.eup %9726  ;;  %9738 = vtanh.f32 %v5560_v31  ;;  %6388 = vmatpush1.bf16.msra.mxu1 %v8386_v20 }
 0xa2d   :  { %v9729_v4 = vpop.eup %9728  ;;  %9740 = vtanh.f32 %v5562_v25  ;;  %6389 = vmatprep.subr.bf16.mxu1 %v8391_v38 }
 0xa2e   :  { %v9731_v26 = vpop.eup %9730 }
 0xa2f   :  { %v9733_v17 = vpop.eup %9732  ;;  %v5698_v6 = vpack.c.bf16 %v9731_v26, %v9727_v21  ;;  %v5565_v11 = vpop.f32.mrb[96].mxu1 }
 0xa30   :  { %v5566_v55 = vadd.f32 %v5565_v11, %v11384_v60  ;;  %v5567_v51 = vpop.f32.mrb[97].mxu1  ;;  %v5699_v29 = vpack.c.bf16 %v9733_v17, %v9729_v4  ;;  %v8394_v4 = vld [vmem:[#allocation6 + $0x2c4] ss:$8 sps:$4 sm:$0xff]   ;;  %6390 = vmatpush1.bf16.msra.mxu1 %v8389_v0 }
 0xa31   :  { %v5568_v3 = vadd.f32 %v5567_v51, %v11389_v28  ;;  %v5569_v54 = vpop.f32.mrb[98].mxu1  ;;  %v8392_v51 = vld [vmem:[#allocation6 + $0x2c0] ss:$8 sps:$4 sm:$0xff]   ;;  %6391 = vmatprep.subr.bf16.mxu1 %v8394_v4 }
 0xa32   :  { %9742 = vtanh.f32 %v5566_v55  ;;  %v5570_v43 = vadd.f32 %v5569_v54, %v11384_v60  ;;  %v5571_v5 = vpop.f32.mrb[99].mxu1  ;;  %5986 = vmatprep.mubr.bf16.mxu0 %v5699_v29 }
 0xa33   :  { %9744 = vtanh.f32 %v5568_v3  ;;  %v5572_v16 = vadd.f32 %v5571_v5, %v11389_v28  ;;  %5987 = vmatmul.mubr.bf16.gmra.mrb[100].mxu0 %v5698_v6 }
 0xa34   :  { %v9735_v27 = vpop.eup %9734  ;;  %9746 = vtanh.f32 %v5570_v43  ;;  %6392 = vmatpush1.bf16.msra.mxu1 %v8392_v51 }
 0xa35   :  { %v9737_v41 = vpop.eup %9736  ;;  %9748 = vtanh.f32 %v5572_v16 }
 0xa36   :  { %v9739_v35 = vpop.eup %9738 }
 0xa37   :  { %v9741_v30 = vpop.eup %9740  ;;  %v5700_v10 = vpack.c.bf16 %v9739_v35, %v9735_v27  ;;  %v5575_v22 = vpop.f32.mrb[100].mxu1 }
 0xa38   :  { %v5576_v62 = vadd.f32 %v5575_v22, %v11384_v60  ;;  %v5577_v59 = vpop.f32.mrb[101].mxu1  ;;  %v5701_v33 = vpack.c.bf16 %v9741_v30, %v9737_v41 }
 0xa39   :  { %v5578_v53 = vadd.f32 %v5577_v59, %v11389_v28  ;;  %v5579_v12 = vpop.f32.mrb[102].mxu1 }
 0xa3a   :  { %9750 = vtanh.f32 %v5576_v62  ;;  %v5580_v23 = vadd.f32 %v5579_v12, %v11384_v60  ;;  %v5581_v45 = vpop.f32.mrb[103].mxu1  ;;  %5996 = vmatprep.mubr.bf16.mxu0 %v5701_v33 }
 0xa3b   :  { %9752 = vtanh.f32 %v5578_v53  ;;  %v5582_v14 = vadd.f32 %v5581_v45, %v11389_v28  ;;  %5997 = vmatmul.mubr.bf16.gmra.mrb[104].mxu0 %v5700_v10 }
 0xa3c   :  { %v9743_v15 = vpop.eup %9742  ;;  %9754 = vtanh.f32 %v5580_v23 }
 0xa3d   :  { %v9745_v61 = vpop.eup %9744  ;;  %9756 = vtanh.f32 %v5582_v14 }
 0xa3e   :  { %v9747_v46 = vpop.eup %9746 }
 0xa3f   :  { %v9749_v34 = vpop.eup %9748  ;;  %v5702_v8 = vpack.c.bf16 %v9747_v46, %v9743_v15  ;;  %v5585_v32 = vpop.f32.mrb[104].mxu1 }
 0xa40   :  { %v5586_v9 = vadd.f32 %v5585_v32, %v11384_v60  ;;  %v5587_v18 = vpop.f32.mrb[105].mxu1  ;;  %v5703_v56 = vpack.c.bf16 %v9749_v34, %v9745_v61 }
 0xa41   :  { %v5588_v1 = vadd.f32 %v5587_v18, %v11389_v28  ;;  %v5589_v37 = vpop.f32.mrb[106].mxu1 }
 0xa42   :  { %9758 = vtanh.f32 %v5586_v9  ;;  %v5590_v19 = vadd.f32 %v5589_v37, %v11384_v60  ;;  %v5591_v2 = vpop.f32.mrb[107].mxu1  ;;  %6006 = vmatprep.mubr.bf16.mxu0 %v5703_v56 }
 0xa43   :  { %9760 = vtanh.f32 %v5588_v1  ;;  %v5592_v49 = vadd.f32 %v5591_v2, %v11389_v28  ;;  %6007 = vmatmul.mubr.bf16.gmra.mrb[108].mxu0 %v5702_v8 }
 0xa44   :  { %v9751_v48 = vpop.eup %9750  ;;  %9762 = vtanh.f32 %v5590_v19 }
 0xa45   :  { %v9753_v31 = vpop.eup %9752  ;;  %9764 = vtanh.f32 %v5592_v49 }
 0xa46   :  { %v9755_v42 = vpop.eup %9754 }
 0xa47   :  { %v9757_v25 = vpop.eup %9756  ;;  %v5704_v39 = vpack.c.bf16 %v9755_v42, %v9751_v48  ;;  %v5595_v21 = vpop.f32.mrb[108].mxu1 }
 0xa48   :  { %v5596_v26 = vadd.f32 %v5595_v21, %v11384_v60  ;;  %v5597_v44 = vpop.f32.mrb[109].mxu1  ;;  %v5705_v17 = vpack.c.bf16 %v9757_v25, %v9753_v31 }
 0xa49   :  { %v5598_v6 = vadd.f32 %v5597_v44, %v11389_v28  ;;  %v5599_v11 = vpop.f32.mrb[110].mxu1 }
 0xa4a   :  { %9766 = vtanh.f32 %v5596_v26  ;;  %v5600_v40 = vadd.f32 %v5599_v11, %v11384_v60  ;;  %v5601_v55 = vpop.f32.mrb[111].mxu1  ;;  %6016 = vmatprep.mubr.bf16.mxu0 %v5705_v17 }
 0xa4b   :  { %9768 = vtanh.f32 %v5598_v6  ;;  %v5602_v29 = vadd.f32 %v5601_v55, %v11389_v28  ;;  %6017 = vmatmul.mubr.bf16.gmra.mrb[112].mxu0 %v5704_v39 }
 0xa4c   :  { %v9759_v3 = vpop.eup %9758  ;;  %9770 = vtanh.f32 %v5600_v40 }
 0xa4d   :  { %v9761_v54 = vpop.eup %9760  ;;  %9772 = vtanh.f32 %v5602_v29 }
 0xa4e   :  { %v9763_v43 = vpop.eup %9762 }
 0xa4f   :  { %v9765_v5 = vpop.eup %9764  ;;  %v5706_v24 = vpack.c.bf16 %v9763_v43, %v9759_v3  ;;  %v5605_v16 = vpop.f32.mrb[112].mxu1  ;;  %v8395_v3 = vld [vmem:[#allocation6 + $0x2d0] ss:$8 sps:$4 sm:$0xff]  }
 0xa50   :  { %v5606_v57 = vadd.f32 %v5605_v16, %v11384_v60  ;;  %v5607_v27 = vpop.f32.mrb[113].mxu1  ;;  %v5707_v41 = vpack.c.bf16 %v9765_v5, %v9761_v54  ;;  %v8397_v54 = vld [vmem:[#allocation6 + $0x2d4] ss:$8 sps:$4 sm:$0xff]   ;;  %v8398_v16 = vld [vmem:[#allocation6 + $0x2e0] ss:$8 sps:$4 sm:$0xff]  }
 0xa51   :  { %v5608_v35 = vadd.f32 %v5607_v27, %v11389_v28  ;;  %v5609_v58 = vpop.f32.mrb[114].mxu1  ;;  %6393 = vmatprep.subr.bf16.mxu1 %v8397_v54  ;;  %v8401_v27 = vld [vmem:[#allocation6 + $0x2f0] ss:$8 sps:$4 sm:$0xff]  }
 0xa52   :  { %9774 = vtanh.f32 %v5606_v57  ;;  %v5610_v30 = vadd.f32 %v5609_v58, %v11384_v60  ;;  %v5611_v10 = vpop.f32.mrb[115].mxu1  ;;  %6026 = vmatprep.mubr.bf16.mxu0 %v5707_v41  ;;  %6394 = vmatpush1.bf16.msra.mxu1 %v8395_v3  ;;  %v8403_v57 = vld [vmem:[#allocation6 + $0x2f4] ss:$8 sps:$4 sm:$0xff]   ;;  %v8404_v41 = vld [vmem:[#allocation6 + $0x300] ss:$8 sps:$4 sm:$0xff]  }
 0xa53   :  { %9776 = vtanh.f32 %v5608_v35  ;;  %v5612_v22 = vadd.f32 %v5611_v10, %v11389_v28  ;;  %6027 = vmatmul.mubr.bf16.gmra.mrb[116].mxu0 %v5706_v24  ;;  %v8400_v24 = vld [vmem:[#allocation6 + $0x2e4] ss:$8 sps:$4 sm:$0xff]   ;;  %v8409_v58 = vld [vmem:[#allocation6 + $0x314] ss:$8 sps:$4 sm:$0xff]  }
 0xa54   :  { %v9767_v7 = vpop.eup %9766  ;;  %9778 = vtanh.f32 %v5610_v30  ;;  %6395 = vmatprep.subr.bf16.mxu1 %v8400_v24  ;;  %v8406_v35 = vld [vmem:[#allocation6 + $0x304] ss:$8 sps:$4 sm:$0xff]   ;;  %v8407_v30 = vld [vmem:[#allocation6 + $0x310] ss:$8 sps:$4 sm:$0xff]  }
 0xa55   :  { %v9769_v62 = vpop.eup %9768  ;;  %9780 = vtanh.f32 %v5612_v22  ;;  %6810 = vmatprep.subr.bf16.mxu0 %v8406_v35  ;;  %v8412_v10 = vld [vmem:[#allocation6 + $0x324] ss:$8 sps:$4 sm:$0xff]  }
 0xa56   :  { %v9771_v59 = vpop.eup %9770  ;;  %6396 = vmatpush1.bf16.msra.mxu1 %v8398_v16  ;;  %6811 = vmatpush1.bf16.msra.mxu0 %v8404_v41  ;;  %v7667_v22 = vld [vmem:[%s11733_s9 + $0x4] sm:$0x3] }
 0xa57   :  { %v9773_v33 = vpop.eup %9772  ;;  %v5708_v53 = vpack.c.bf16 %v9771_v59, %v9767_v7  ;;  %v5615_v12 = vpop.f32.mrb[116].mxu1  ;;  %6397 = vmatprep.subr.bf16.mxu1 %v8403_v57  ;;  %6812 = vmatprep.subr.bf16.mxu0 %v8409_v58  ;;  %v8410_v7 = vld [vmem:[#allocation6 + $0x320] ss:$8 sps:$4 sm:$0xff]   ;;  %v11451_v59 = vrot.slane %v7667_v22, %v10331_v50  ;;  %v8436_v16 = vld [vmem:[#allocation6 + $0x3a4] ss:$8 sps:$4 sm:$0xff]  }
 0xa58   :  { %v5616_v23 = vadd.f32 %v5615_v12, %v11384_v60  ;;  %v5617_v45 = vpop.f32.mrb[117].mxu1  ;;  %v5709_v13 = vpack.c.bf16 %v9773_v33, %v9769_v62  ;;  %v8415_v62 = vld [vmem:[#allocation6 + $0x334] ss:$8 sps:$4 sm:$0xff]   ;;  %v11454_v33 = vrot.slane %v7667_v22, %v10336_v52  ;;  %v8434_v22 = vld [vmem:[#allocation6 + $0x3a0] ss:$8 sps:$4 sm:$0xff]  }
 0xa59   :  { %v5618_v14 = vadd.f32 %v5617_v45, %v11389_v28  ;;  %v5619_v36 = vpop.f32.mrb[118].mxu1 }
 0xa5a   :  { %9782 = vtanh.f32 %v5616_v23  ;;  %v5620_v15 = vadd.f32 %v5619_v36, %v11384_v60  ;;  %v5621_v61 = vpop.f32.mrb[119].mxu1  ;;  %6036 = vmatprep.mubr.bf16.mxu0 %v5709_v13  ;;  %6398 = vmatpush1.bf16.msra.mxu1 %v8401_v27  ;;  %v8418_v23 = vld [vmem:[#allocation6 + $0x344] ss:$8 sps:$4 sm:$0xff]  }
 0xa5b   :  { %9784 = vtanh.f32 %v5618_v14  ;;  %v5622_v46 = vadd.f32 %v5621_v61, %v11389_v28  ;;  %6037 = vmatmul.mubr.bf16.gmra.mrb[120].mxu0 %v5708_v53  ;;  %v8413_v53 = vld [vmem:[#allocation6 + $0x330] ss:$8 sps:$4 sm:$0xff]  }
 0xa5c   :  { %v9775_v47 = vpop.eup %9774  ;;  %9786 = vtanh.f32 %v5620_v15  ;;  %6813 = vmatpush1.bf16.msra.mxu0 %v8407_v30 }
 0xa5d   :  { %v9777_v34 = vpop.eup %9776  ;;  %9788 = vtanh.f32 %v5622_v46  ;;  %6814 = vmatprep.subr.bf16.mxu0 %v8412_v10  ;;  %v8416_v46 = vld [vmem:[#allocation6 + $0x340] ss:$8 sps:$4 sm:$0xff]  }
 0xa5e   :  { %v9779_v8 = vpop.eup %9778 }
 0xa5f   :  { %v9781_v32 = vpop.eup %9780  ;;  %v5710_v63 = vpack.c.bf16 %v9779_v8, %v9775_v47  ;;  %v5625_v9 = vpop.f32.mrb[120].mxu1  ;;  %v8419_v8 = vld [vmem:[#allocation6 + $0x350] ss:$8 sps:$4 sm:$0xff]  }
 0xa60   :  { %v5626_v18 = vadd.f32 %v5625_v9, %v11384_v60  ;;  %v5627_v56 = vpop.f32.mrb[121].mxu1  ;;  %v5711_v1 = vpack.c.bf16 %v9781_v32, %v9777_v34  ;;  %6815 = vmatpush1.bf16.msra.mxu0 %v8410_v7  ;;  %v8421_v34 = vld [vmem:[#allocation6 + $0x354] ss:$8 sps:$4 sm:$0xff]  }
 0xa61   :  { %v5628_v37 = vadd.f32 %v5627_v56, %v11389_v28  ;;  %v5629_v19 = vpop.f32.mrb[122].mxu1  ;;  %6816 = vmatprep.subr.bf16.mxu0 %v8415_v62  ;;  %v8439_v62 = vld [vmem:[#allocation6 + $0x3b4] ss:$8 sps:$4 sm:$0xff]  }
 0xa62   :  { %9790 = vtanh.f32 %v5626_v18  ;;  %v5630_v2 = vadd.f32 %v5629_v19, %v11384_v60  ;;  %v5631_v20 = vpop.f32.mrb[123].mxu1  ;;  %6046 = vmatprep.mubr.bf16.mxu0 %v5711_v1 }
 0xa63   :  { %9792 = vtanh.f32 %v5628_v37  ;;  %v5632_v49 = vadd.f32 %v5631_v20, %v11389_v28  ;;  %6047 = vmatmul.mubr.bf16.gmra.mrb[124].mxu0 %v5710_v63  ;;  %v8424_v63 = vld [vmem:[#allocation6 + $0x364] ss:$8 sps:$4 sm:$0xff]  }
 0xa64   :  { %v9783_v38 = vpop.eup %9782  ;;  %9794 = vtanh.f32 %v5630_v2  ;;  %6817 = vmatpush1.bf16.msra.mxu0 %v8413_v53  ;;  %v8422_v2 = vld [vmem:[#allocation6 + $0x360] ss:$8 sps:$4 sm:$0xff]  }
 0xa65   :  { %v9785_v48 = vpop.eup %9784  ;;  %9796 = vtanh.f32 %v5632_v49  ;;  %6818 = vmatprep.subr.bf16.mxu0 %v8418_v23  ;;  %v8427_v49 = vld [vmem:[#allocation6 + $0x374] ss:$8 sps:$4 sm:$0xff]  }
 0xa66   :  { %v9787_v31 = vpop.eup %9786 }
 0xa67   :  { %v9789_v42 = vpop.eup %9788  ;;  %v5712_v0 = vpack.c.bf16 %v9787_v31, %v9783_v38  ;;  %v5635_v25 = vpop.f32.mrb[124].mxu1 }
 0xa68   :  { %v5636_v39 = vadd.f32 %v5635_v25, %v11384_v60  ;;  %v5637_v21 = vpop.f32.mrb[125].mxu1  ;;  %v5713_v4 = vpack.c.bf16 %v9789_v42, %v9785_v48  ;;  %6819 = vmatpush1.bf16.msra.mxu0 %v8416_v46  ;;  %v8425_v42 = vld [vmem:[#allocation6 + $0x370] ss:$8 sps:$4 sm:$0xff]  }
 0xa69   :  { %v5638_v26 = vadd.f32 %v5637_v21, %v11389_v28  ;;  %v5639_v44 = vpop.f32.mrb[126].mxu1  ;;  %6820 = vmatprep.subr.bf16.mxu0 %v8421_v34  ;;  %v8430_v21 = vld [vmem:[#allocation6 + $0x384] ss:$8 sps:$4 sm:$0xff]  }
 0xa6a   :  { %9798 = vtanh.f32 %v5636_v39  ;;  %6056 = vmatprep.mubr.bf16.mxu0 %v5713_v4  ;;  %v5640_v17 = vpop.f32.mrb[127].mxu1 }
 0xa6b   :  { %9800 = vtanh.f32 %v5638_v26  ;;  %6057 = vmatmul.mubr.bf16.gmra.mrb[128].mxu0 %v5712_v0 }
 0xa6c   :  { %v9791_v6 = vpop.eup %9790  ;;  %6821 = vmatpush1.bf16.msra.mxu0 %v8419_v8 }
 0xa6d   :  { %v9793_v11 = vpop.eup %9792  ;;  %6822 = vmatprep.subr.bf16.mxu0 %v8424_v63 }
 0xa6e   :  { %v9795_v40 = vpop.eup %9794 }
 0xa6f   :  { %v9797_v55 = vpop.eup %9796  ;;  %v5714_v51 = vpack.c.bf16 %v9795_v40, %v9791_v6 }
 0xa70   :  { %v5715_v29 = vpack.c.bf16 %v9797_v55, %v9793_v11  ;;  %6823 = vmatpush1.bf16.msra.mxu0 %v8422_v2  ;;  %v8428_v55 = vld [vmem:[#allocation6 + $0x380] ss:$8 sps:$4 sm:$0xff]  }
 0xa71   :  { %6824 = vmatprep.subr.bf16.mxu0 %v8427_v49 }
 0xa72   :  { %6066 = vmatprep.mubr.bf16.mxu0 %v5715_v29  ;;  %v8433_v29 = vld [vmem:[#allocation6 + $0x394] ss:$8 sps:$4 sm:$0xff]  }
 0xa73   :  { %6067 = vmatmul.mubr.bf16.gmra.mrb[132].mxu0 %v5714_v51 }
 0xa74   :  { %v9799_v60 = vpop.eup %9798  ;;  %6825 = vmatpush1.bf16.msra.mxu0 %v8425_v42 }
 0xa75   :  { %v9801_v28 = vpop.eup %9800  ;;  %v5716_v5 = vpack.c.bf16 %v9799_v60, %v9799_v60  ;;  %6826 = vmatprep.subr.bf16.mxu0 %v8430_v21 }
 0xa76   :  { %v5717_v43 = vpack.c.bf16 %v9801_v28, %v9801_v28  ;;  %v8431_v28 = vld [vmem:[#allocation6 + $0x390] ss:$8 sps:$4 sm:$0xff]  }
 0xa78   :  { %6076 = vmatprep.mubr.bf16.mxu0 %v5717_v43  ;;  %6827 = vmatpush1.bf16.msra.mxu0 %v8428_v55 }
 0xa79   :  { %6828 = vmatprep.subr.bf16.mxu0 %v8433_v29 }
 0xa7b   :  { %6077 = vmatmul.mubr.bf16.gmra.mrb[136].mxu0 %v5716_v5 }
 0xa7c   :  { %6829 = vmatpush1.bf16.msra.mxu0 %v8431_v28 }
 0xa7d   :  { %6830 = vmatprep.subr.bf16.mxu0 %v8436_v16 }
 0xa80   :  { %6831 = vmatpush1.bf16.msra.mxu0 %v8434_v22 }
 0xa81   :  { %6832 = vmatprep.subr.bf16.mxu0 %v8439_v62 }
 0xaee   :  { %v5958_v12 = vpop.f32.mrb[88].mxu0 }
 0xaef   :  { %v5959_v45 = vadd.f32 %v5958_v12, %v11451_v59  ;;  %v5960_v13 = vpop.f32.mrb[89].mxu0 }
 0xaf0   :  { %v5961_v14 = vadd.f32 %v5960_v13, %v11454_v33  ;;  %v5962_v36 = vpop.f32.mrb[90].mxu0 }
 0xaf1   :  { %9802 = vtanh.f32 %v5959_v45  ;;  %v5963_v15 = vadd.f32 %v5962_v36, %v11451_v59  ;;  %v5964_v61 = vpop.f32.mrb[91].mxu0  ;;  %v8437_v45 = vld [vmem:[#allocation6 + $0x3b0] ss:$8 sps:$4 sm:$0xff]  }
 0xaf2   :  { %9804 = vtanh.f32 %v5961_v14  ;;  %v5965_v47 = vadd.f32 %v5964_v61, %v11454_v33  ;;  %6833 = vmatpush1.bf16.msra.mxu0 %v8437_v45 }
 0xaf3   :  { %9806 = vtanh.f32 %v5963_v15  ;;  %v8442_v15 = vld [vmem:[#allocation6 + $0x3c4] ss:$8 sps:$4 sm:$0xff]  }
 0xaf4   :  { %9808 = vtanh.f32 %v5965_v47  ;;  %6834 = vmatprep.subr.bf16.mxu0 %v8442_v15 }
 0xaf6   :  { %v5968_v32 = vpop.f32.mrb[92].mxu0 }
 0xaf7   :  { %v5969_v9 = vadd.f32 %v5968_v32, %v11451_v59  ;;  %v5970_v18 = vpop.f32.mrb[93].mxu0 }
 0xaf8   :  { %v5971_v56 = vadd.f32 %v5970_v18, %v11454_v33  ;;  %v5972_v1 = vpop.f32.mrb[94].mxu0 }
 0xaf9   :  { %9810 = vtanh.f32 %v5969_v9  ;;  %v5973_v37 = vadd.f32 %v5972_v1, %v11451_v59  ;;  %v5974_v19 = vpop.f32.mrb[95].mxu0  ;;  %v8440_v9 = vld [vmem:[#allocation6 + $0x3c0] ss:$8 sps:$4 sm:$0xff]  }
 0xafa   :  { %9812 = vtanh.f32 %v5971_v56  ;;  %v5975_v20 = vadd.f32 %v5974_v19, %v11454_v33  ;;  %6835 = vmatpush1.bf16.msra.mxu0 %v8440_v9 }
 0xafb   :  { %v9803_v38 = vpop.eup %9802  ;;  %9814 = vtanh.f32 %v5973_v37 }
 0xafc   :  { %v9805_v48 = vpop.eup %9804  ;;  %9816 = vtanh.f32 %v5975_v20 }
 0xafd   :  { %v9807_v31 = vpop.eup %9806 }
 0xafe   :  { %v9809_v0 = vpop.eup %9808  ;;  %v6135_v25 = vpack.c.bf16 %v9807_v31, %v9803_v38  ;;  %v5978_v39 = vpop.f32.mrb[96].mxu0 }
 0xaff   :  { %v5979_v4 = vadd.f32 %v5978_v39, %v11451_v59  ;;  %v5980_v26 = vpop.f32.mrb[97].mxu0  ;;  %v6136_v44 = vpack.c.bf16 %v9809_v0, %v9805_v48 }
 0xb00   :  { %v5981_v17 = vadd.f32 %v5980_v26, %v11454_v33  ;;  %v5982_v6 = vpop.f32.mrb[98].mxu0 }
 0xb01   :  { %9818 = vtanh.f32 %v5979_v4  ;;  %v5983_v11 = vadd.f32 %v5982_v6, %v11451_v59  ;;  %v5984_v40 = vpop.f32.mrb[99].mxu0  ;;  %6399 = vmatprep.mubr.bf16.mxu1 %v6136_v44 }
 0xb02   :  { %9820 = vtanh.f32 %v5981_v17  ;;  %v5985_v51 = vadd.f32 %v5984_v40, %v11454_v33  ;;  %6400 = vmatmul.mubr.bf16.vlgmr.msra.gmra.mrb[128].mxu1 %v6135_v25 }
 0xb03   :  { %v9811_v3 = vpop.eup %9810  ;;  %9822 = vtanh.f32 %v5983_v11 }
 0xb04   :  { %v9813_v54 = vpop.eup %9812  ;;  %9824 = vtanh.f32 %v5985_v51 }
 0xb05   :  { %v9815_v60 = vpop.eup %9814 }
 0xb06   :  { %v9817_v43 = vpop.eup %9816  ;;  %v6137_v5 = vpack.c.bf16 %v9815_v60, %v9811_v3  ;;  %v5988_v24 = vpop.f32.mrb[100].mxu0 }
 0xb07   :  { %v5989_v57 = vadd.f32 %v5988_v24, %v11451_v59  ;;  %v5990_v27 = vpop.f32.mrb[101].mxu0  ;;  %v6138_v41 = vpack.c.bf16 %v9817_v43, %v9813_v54 }
 0xb08   :  { %v5991_v35 = vadd.f32 %v5990_v27, %v11454_v33  ;;  %v5992_v58 = vpop.f32.mrb[102].mxu0 }
 0xb09   :  { %9826 = vtanh.f32 %v5989_v57  ;;  %v5993_v30 = vadd.f32 %v5992_v58, %v11451_v59  ;;  %v5994_v10 = vpop.f32.mrb[103].mxu0  ;;  %6409 = vmatprep.mubr.bf16.mxu1 %v6138_v41 }
 0xb0a   :  { %9828 = vtanh.f32 %v5991_v35  ;;  %v5995_v7 = vadd.f32 %v5994_v10, %v11454_v33  ;;  %6410 = vmatmul.mubr.bf16.gmra.mrb[132].mxu1 %v6137_v5 }
 0xb0b   :  { %v9819_v53 = vpop.eup %9818  ;;  %9830 = vtanh.f32 %v5993_v30 }
 0xb0c   :  { %v9821_v12 = vpop.eup %9820  ;;  %9832 = vtanh.f32 %v5995_v7 }
 0xb0d   :  { %v9823_v23 = vpop.eup %9822 }
 0xb0e   :  { %v9825_v13 = vpop.eup %9824  ;;  %v6139_v14 = vpack.c.bf16 %v9823_v23, %v9819_v53  ;;  %v5998_v36 = vpop.f32.mrb[104].mxu0 }
 0xb0f   :  { %v5999_v61 = vadd.f32 %v5998_v36, %v11451_v59  ;;  %v6000_v46 = vpop.f32.mrb[105].mxu0  ;;  %v6140_v47 = vpack.c.bf16 %v9825_v13, %v9821_v12 }
 0xb10   :  { %v6001_v34 = vadd.f32 %v6000_v46, %v11454_v33  ;;  %v6002_v8 = vpop.f32.mrb[106].mxu0 }
 0xb11   :  { %9834 = vtanh.f32 %v5999_v61  ;;  %v6003_v32 = vadd.f32 %v6002_v8, %v11451_v59  ;;  %v6004_v63 = vpop.f32.mrb[107].mxu0  ;;  %6419 = vmatprep.mubr.bf16.mxu1 %v6140_v47 }
 0xb12   :  { %9836 = vtanh.f32 %v6001_v34  ;;  %v6005_v18 = vadd.f32 %v6004_v63, %v11454_v33  ;;  %6420 = vmatmul.mubr.bf16.gmra.mrb[136].mxu1 %v6139_v14 }
 0xb13   :  { %v9827_v56 = vpop.eup %9826  ;;  %9838 = vtanh.f32 %v6003_v32 }
 0xb14   :  { %v9829_v1 = vpop.eup %9828  ;;  %9840 = vtanh.f32 %v6005_v18 }
 0xb15   :  { %v9831_v37 = vpop.eup %9830 }
 0xb16   :  { %v9833_v19 = vpop.eup %9832  ;;  %v6141_v2 = vpack.c.bf16 %v9831_v37, %v9827_v56  ;;  %v6008_v20 = vpop.f32.mrb[108].mxu0 }
 0xb17   :  { %v6009_v49 = vadd.f32 %v6008_v20, %v11451_v59  ;;  %v6010_v38 = vpop.f32.mrb[109].mxu0  ;;  %v6142_v48 = vpack.c.bf16 %v9833_v19, %v9829_v1 }
 0xb18   :  { %v6011_v31 = vadd.f32 %v6010_v38, %v11454_v33  ;;  %v6012_v42 = vpop.f32.mrb[110].mxu0 }
 0xb19   :  { %9842 = vtanh.f32 %v6009_v49  ;;  %v6013_v0 = vadd.f32 %v6012_v42, %v11451_v59  ;;  %v6014_v25 = vpop.f32.mrb[111].mxu0  ;;  %6429 = vmatprep.mubr.bf16.mxu1 %v6142_v48 }
 0xb1a   :  { %9844 = vtanh.f32 %v6011_v31  ;;  %v6015_v39 = vadd.f32 %v6014_v25, %v11454_v33  ;;  %6430 = vmatmul.mubr.bf16.gmra.mrb[140].mxu1 %v6141_v2 }
 0xb1b   :  { %v9835_v21 = vpop.eup %9834  ;;  %9846 = vtanh.f32 %v6013_v0 }
 0xb1c   :  { %v9837_v4 = vpop.eup %9836  ;;  %9848 = vtanh.f32 %v6015_v39 }
 0xb1d   :  { %v9839_v26 = vpop.eup %9838 }
 0xb1e   :  { %v9841_v44 = vpop.eup %9840  ;;  %v6143_v17 = vpack.c.bf16 %v9839_v26, %v9835_v21  ;;  %v6018_v6 = vpop.f32.mrb[112].mxu0 }
 0xb1f   :  { %v6019_v11 = vadd.f32 %v6018_v6, %v11451_v59  ;;  %v6020_v40 = vpop.f32.mrb[113].mxu0  ;;  %v6144_v55 = vpack.c.bf16 %v9841_v44, %v9837_v4 }
 0xb20   :  { %v6021_v51 = vadd.f32 %v6020_v40, %v11454_v33  ;;  %v6022_v29 = vpop.f32.mrb[114].mxu0 }
 0xb21   :  { %9850 = vtanh.f32 %v6019_v11  ;;  %v6023_v3 = vadd.f32 %v6022_v29, %v11451_v59  ;;  %v6024_v54 = vpop.f32.mrb[115].mxu0  ;;  %6439 = vmatprep.mubr.bf16.mxu1 %v6144_v55 }
 0xb22   :  { %9852 = vtanh.f32 %v6021_v51  ;;  %v6025_v60 = vadd.f32 %v6024_v54, %v11454_v33  ;;  %6440 = vmatmul.mubr.bf16.gmra.mrb[144].mxu1 %v6143_v17 }
 0xb23   :  { %v9843_v28 = vpop.eup %9842  ;;  %9854 = vtanh.f32 %v6023_v3 }
 0xb24   :  { %v9845_v43 = vpop.eup %9844  ;;  %9856 = vtanh.f32 %v6025_v60 }
 0xb25   :  { %v9847_v5 = vpop.eup %9846 }
 0xb26   :  { %v9849_v24 = vpop.eup %9848  ;;  %v6145_v16 = vpack.c.bf16 %v9847_v5, %v9843_v28  ;;  %v6028_v57 = vpop.f32.mrb[116].mxu0 }
 0xb27   :  { %v6029_v27 = vadd.f32 %v6028_v57, %v11451_v59  ;;  %v6030_v41 = vpop.f32.mrb[117].mxu0  ;;  %v6146_v35 = vpack.c.bf16 %v9849_v24, %v9845_v43 }
 0xb28   :  { %v6031_v58 = vadd.f32 %v6030_v41, %v11454_v33  ;;  %v6032_v30 = vpop.f32.mrb[118].mxu0 }
 0xb29   :  { %9858 = vtanh.f32 %v6029_v27  ;;  %v6033_v10 = vadd.f32 %v6032_v30, %v11451_v59  ;;  %v6034_v22 = vpop.f32.mrb[119].mxu0  ;;  %6449 = vmatprep.mubr.bf16.mxu1 %v6146_v35 }
 0xb2a   :  { %9860 = vtanh.f32 %v6031_v58  ;;  %v6035_v7 = vadd.f32 %v6034_v22, %v11454_v33  ;;  %6450 = vmatmul.mubr.bf16.gmra.mrb[148].mxu1 %v6145_v16 }
 0xb2b   :  { %v9851_v62 = vpop.eup %9850  ;;  %9862 = vtanh.f32 %v6033_v10 }
 0xb2c   :  { %v9853_v53 = vpop.eup %9852  ;;  %9864 = vtanh.f32 %v6035_v7 }
 0xb2d   :  { %v9855_v12 = vpop.eup %9854 }
 0xb2e   :  { %v9857_v23 = vpop.eup %9856  ;;  %v6147_v45 = vpack.c.bf16 %v9855_v12, %v9851_v62  ;;  %v6038_v13 = vpop.f32.mrb[120].mxu0 }
 0xb2f   :  { %v6039_v14 = vadd.f32 %v6038_v13, %v11451_v59  ;;  %v6040_v36 = vpop.f32.mrb[121].mxu0  ;;  %v6148_v15 = vpack.c.bf16 %v9857_v23, %v9853_v53 }
 0xb30   :  { %v6041_v61 = vadd.f32 %v6040_v36, %v11454_v33  ;;  %v6042_v46 = vpop.f32.mrb[122].mxu0 }
 0xb31   :  { %9866 = vtanh.f32 %v6039_v14  ;;  %v6043_v47 = vadd.f32 %v6042_v46, %v11451_v59  ;;  %v6044_v34 = vpop.f32.mrb[123].mxu0  ;;  %6459 = vmatprep.mubr.bf16.mxu1 %v6148_v15 }
 0xb32   :  { %9868 = vtanh.f32 %v6041_v61  ;;  %v6045_v8 = vadd.f32 %v6044_v34, %v11454_v33  ;;  %6460 = vmatmul.mubr.bf16.gmra.mrb[152].mxu1 %v6147_v45 }
 0xb33   :  { %v9859_v32 = vpop.eup %9858  ;;  %9870 = vtanh.f32 %v6043_v47 }
 0xb34   :  { %v9861_v63 = vpop.eup %9860  ;;  %9872 = vtanh.f32 %v6045_v8 }
 0xb35   :  { %v9863_v9 = vpop.eup %9862 }
 0xb36   :  { %v9865_v18 = vpop.eup %9864  ;;  %v6149_v56 = vpack.c.bf16 %v9863_v9, %v9859_v32  ;;  %v6048_v1 = vpop.f32.mrb[124].mxu0  ;;  %v8443_v32 = vld [vmem:[#allocation6 + $0x3d0] ss:$8 sps:$4 sm:$0xff]  }
 0xb37   :  { %v6049_v37 = vadd.f32 %v6048_v1, %v11451_v59  ;;  %v6050_v19 = vpop.f32.mrb[125].mxu0  ;;  %v6150_v2 = vpack.c.bf16 %v9865_v18, %v9861_v63  ;;  %v8445_v63 = vld [vmem:[#allocation6 + $0x3d4] ss:$8 sps:$4 sm:$0xff]   ;;  %v8448_v18 = vld [vmem:[#allocation6 + $0x3e4] ss:$8 sps:$4 sm:$0xff]  }
 0xb38   :  { %v6051_v20 = vadd.f32 %v6050_v19, %v11454_v33  ;;  %v6052_v49 = vpop.f32.mrb[126].mxu0  ;;  %6836 = vmatprep.subr.bf16.mxu0 %v8445_v63  ;;  %v8446_v1 = vld [vmem:[#allocation6 + $0x3e0] ss:$8 sps:$4 sm:$0xff]   ;;  %v8449_v19 = vld [vmem:[#allocation6 + $0x3f0] ss:$8 sps:$4 sm:$0xff]  }
 0xb39   :  { %9874 = vtanh.f32 %v6049_v37  ;;  %v6053_v38 = vadd.f32 %v6052_v49, %v11451_v59  ;;  %v6054_v48 = vpop.f32.mrb[127].mxu0  ;;  %6469 = vmatprep.mubr.bf16.mxu1 %v6150_v2  ;;  %6837 = vmatpush1.bf16.msra.mxu0 %v8443_v32  ;;  %v8451_v37 = vld [vmem:[#allocation6 + $0x3f4] ss:$8 sps:$4 sm:$0xff]   ;;  %v7700_v2 = vld [vmem:[%s11733_s9 + $0x6] sm:$0x3] }
 0xb3a   :  { %9876 = vtanh.f32 %v6051_v20  ;;  %v6055_v31 = vadd.f32 %v6054_v48, %v11454_v33  ;;  %6470 = vmatmul.mubr.bf16.gmra.mrb[156].mxu1 %v6149_v56  ;;  %6838 = vmatprep.subr.bf16.mxu0 %v8448_v18  ;;  %v11510_v20 = vrot.slane %v7700_v2, %v10331_v50  ;;  %v11513_v49 = vrot.slane %v7700_v2, %v10336_v52 }
 0xb3b   :  { %v9867_v42 = vpop.eup %9866  ;;  %9878 = vtanh.f32 %v6053_v38 }
 0xb3c   :  { %v9869_v0 = vpop.eup %9868  ;;  %9880 = vtanh.f32 %v6055_v31 }
 0xb3d   :  { %v9871_v25 = vpop.eup %9870  ;;  %6839 = vmatpush1.bf16.msra.mxu0 %v8446_v1 }
 0xb3e   :  { %v9873_v39 = vpop.eup %9872  ;;  %v6151_v21 = vpack.c.bf16 %v9871_v25, %v9867_v42  ;;  %v6058_v4 = vpop.f32.mrb[128].mxu0  ;;  %6840 = vmatprep.subr.bf16.mxu0 %v8451_v37 }
 0xb3f   :  { %v6059_v26 = vadd.f32 %v6058_v4, %v11451_v59  ;;  %v6060_v44 = vpop.f32.mrb[129].mxu0  ;;  %v6152_v17 = vpack.c.bf16 %v9873_v39, %v9869_v0 }
 0xb40   :  { %v6061_v6 = vadd.f32 %v6060_v44, %v11454_v33  ;;  %v6062_v11 = vpop.f32.mrb[130].mxu0 }
 0xb41   :  { %9882 = vtanh.f32 %v6059_v26  ;;  %v6063_v40 = vadd.f32 %v6062_v11, %v11451_v59  ;;  %v6064_v55 = vpop.f32.mrb[131].mxu0  ;;  %6479 = vmatprep.mubr.bf16.mxu1 %v6152_v17  ;;  %6841 = vmatpush1.bf16.msra.mxu0 %v8449_v19 }
 0xb42   :  { %9884 = vtanh.f32 %v6061_v6  ;;  %v6065_v51 = vadd.f32 %v6064_v55, %v11454_v33  ;;  %6480 = vmatmul.mubr.bf16.gmra.mrb[160].mxu1 %v6151_v21 }
 0xb43   :  { %v9875_v29 = vpop.eup %9874  ;;  %9886 = vtanh.f32 %v6063_v40 }
 0xb44   :  { %v9877_v3 = vpop.eup %9876  ;;  %9888 = vtanh.f32 %v6065_v51 }
 0xb45   :  { %v9879_v54 = vpop.eup %9878 }
 0xb46   :  { %v9881_v60 = vpop.eup %9880  ;;  %v6153_v28 = vpack.c.bf16 %v9879_v54, %v9875_v29  ;;  %v6068_v43 = vpop.f32.mrb[132].mxu0 }
 0xb47   :  { %v6069_v5 = vadd.f32 %v6068_v43, %v11451_v59  ;;  %v6070_v24 = vpop.f32.mrb[133].mxu0  ;;  %v6154_v16 = vpack.c.bf16 %v9881_v60, %v9877_v3 }
 0xb48   :  { %v6071_v57 = vadd.f32 %v6070_v24, %v11454_v33  ;;  %v6072_v27 = vpop.f32.mrb[134].mxu0 }
 0xb49   :  { %9890 = vtanh.f32 %v6069_v5  ;;  %v6073_v41 = vadd.f32 %v6072_v27, %v11451_v59  ;;  %v6074_v35 = vpop.f32.mrb[135].mxu0  ;;  %6489 = vmatprep.mubr.bf16.mxu1 %v6154_v16 }
 0xb4a   :  { %9892 = vtanh.f32 %v6071_v57  ;;  %v6075_v58 = vadd.f32 %v6074_v35, %v11454_v33  ;;  %6490 = vmatmul.mubr.bf16.gmra.mrb[164].mxu1 %v6153_v28 }
 0xb4b   :  { %v9883_v30 = vpop.eup %9882  ;;  %9894 = vtanh.f32 %v6073_v41 }
 0xb4c   :  { %v9885_v10 = vpop.eup %9884  ;;  %9896 = vtanh.f32 %v6075_v58 }
 0xb4d   :  { %v9887_v22 = vpop.eup %9886 }
 0xb4e   :  { %v9889_v7 = vpop.eup %9888  ;;  %v6155_v62 = vpack.c.bf16 %v9887_v22, %v9883_v30  ;;  %v6078_v53 = vpop.f32.mrb[136].mxu0 }
 0xb4f   :  { %v6079_v12 = vadd.f32 %v6078_v53, %v11451_v59  ;;  %v6080_v23 = vpop.f32.mrb[137].mxu0  ;;  %v6156_v45 = vpack.c.bf16 %v9889_v7, %v9885_v10 }
 0xb50   :  { %v6081_v13 = vadd.f32 %v6080_v23, %v11454_v33  ;;  %v6082_v14 = vpop.f32.mrb[138].mxu0 }
 0xb51   :  { %v6083_v36 = vpop.f32.mrb[139].mxu0  ;;  %6499 = vmatprep.mubr.bf16.mxu1 %v6156_v45 }
 0xb52   :  { %9898 = vtanh.f32 %v6081_v13  ;;  %6500 = vmatmul.mubr.bf16.gmra.mrb[168].mxu1 %v6155_v62 }
 0xb53   :  { %v9891_v15 = vpop.eup %9890  ;;  %9900 = vtanh.f32 %v6079_v12 }
 0xb54   :  { %v9893_v61 = vpop.eup %9892 }
 0xb55   :  { %v9895_v46 = vpop.eup %9894 }
 0xb56   :  { %v9897_v47 = vpop.eup %9896  ;;  %v6157_v34 = vpack.c.bf16 %v9895_v46, %v9891_v15 }
 0xb57   :  { %v6158_v8 = vpack.c.bf16 %v9897_v47, %v9893_v61 }
 0xb59   :  { %6509 = vmatprep.mubr.bf16.mxu1 %v6158_v8 }
 0xb5a   :  { %6510 = vmatmul.mubr.bf16.gmra.mrb[172].mxu1 %v6157_v34 }
 0xb5c   :  { %v9899_v59 = vpop.eup %9898 }
 0xb5d   :  { %v9901_v33 = vpop.eup %9900  ;;  %v6160_v9 = vpack.c.bf16 %v9899_v59, %v9899_v59 }
 0xb5e   :  { %v6159_v56 = vpack.c.bf16 %v9901_v33, %v9901_v33 }
 0xb5f   :  { %6519 = vmatprep.mubr.bf16.mxu1 %v6160_v9 }
 0xb62   :  { %6520 = vmatmul.mubr.bf16.gmra.mrb[176].mxu1 %v6159_v56 }
 0xbd5   :  { %v6401_v38 = vpop.f32.mrb[128].mxu1 }
 0xbd6   :  { %v6402_v48 = vadd.f32 %v6401_v38, %v11510_v20  ;;  %v6403_v31 = vpop.f32.mrb[129].mxu1 }
 0xbd7   :  { %v6404_v42 = vadd.f32 %v6403_v31, %v11513_v49  ;;  %v6405_v0 = vpop.f32.mrb[130].mxu1 }
 0xbd8   :  { %9902 = vtanh.f32 %v6402_v48  ;;  %v6406_v25 = vadd.f32 %v6405_v0, %v11510_v20  ;;  %v6407_v39 = vpop.f32.mrb[131].mxu1 }
 0xbd9   :  { %9904 = vtanh.f32 %v6404_v42  ;;  %v6408_v21 = vadd.f32 %v6407_v39, %v11513_v49 }
 0xbda   :  { %9906 = vtanh.f32 %v6406_v25 }
 0xbdb   :  { %9908 = vtanh.f32 %v6408_v21 }
 0xbdd   :  { %v6411_v4 = vpop.f32.mrb[132].mxu1 }
 0xbde   :  { %v6412_v26 = vadd.f32 %v6411_v4, %v11510_v20  ;;  %v6413_v44 = vpop.f32.mrb[133].mxu1 }
 0xbdf   :  { %v6414_v17 = vadd.f32 %v6413_v44, %v11513_v49  ;;  %v6415_v6 = vpop.f32.mrb[134].mxu1 }
 0xbe0   :  { %9910 = vtanh.f32 %v6412_v26  ;;  %v6416_v11 = vadd.f32 %v6415_v6, %v11510_v20  ;;  %v6417_v40 = vpop.f32.mrb[135].mxu1 }
 0xbe1   :  { %9912 = vtanh.f32 %v6414_v17  ;;  %v6418_v55 = vadd.f32 %v6417_v40, %v11513_v49 }
 0xbe2   :  { %v9903_v51 = vpop.eup %9902  ;;  %9914 = vtanh.f32 %v6416_v11 }
 0xbe3   :  { %v9905_v29 = vpop.eup %9904  ;;  %9916 = vtanh.f32 %v6418_v55 }
 0xbe4   :  { %v9907_v3 = vpop.eup %9906 }
 0xbe5   :  { %v9909_v54 = vpop.eup %9908  ;;  %v6578_v60 = vpack.c.bf16 %v9907_v3, %v9903_v51  ;;  %v6421_v28 = vpop.f32.mrb[136].mxu1 }
 0xbe6   :  { %v6422_v43 = vadd.f32 %v6421_v28, %v11510_v20  ;;  %v6423_v5 = vpop.f32.mrb[137].mxu1  ;;  %v6579_v24 = vpack.c.bf16 %v9909_v54, %v9905_v29 }
 0xbe7   :  { %v6424_v16 = vadd.f32 %v6423_v5, %v11513_v49  ;;  %v6425_v57 = vpop.f32.mrb[138].mxu1 }
 0xbe8   :  { %9918 = vtanh.f32 %v6422_v43  ;;  %v6426_v27 = vadd.f32 %v6425_v57, %v11510_v20  ;;  %v6427_v41 = vpop.f32.mrb[139].mxu1  ;;  %6842 = vmatprep.mubr.bf16.mxu0 %v6579_v24 }
 0xbe9   :  { %9920 = vtanh.f32 %v6424_v16  ;;  %v6428_v35 = vadd.f32 %v6427_v41, %v11513_v49  ;;  %6843 = vmatmul.mubr.bf16.vlgmr.msra.gmra.mrb[140].mxu0 %v6578_v60 }
 0xbea   :  { %v9911_v58 = vpop.eup %9910  ;;  %9922 = vtanh.f32 %v6426_v27 }
 0xbeb   :  { %v9913_v30 = vpop.eup %9912  ;;  %9924 = vtanh.f32 %v6428_v35 }
 0xbec   :  { %v9915_v10 = vpop.eup %9914 }
 0xbed   :  { %v9917_v22 = vpop.eup %9916  ;;  %v6580_v7 = vpack.c.bf16 %v9915_v10, %v9911_v58  ;;  %v6431_v62 = vpop.f32.mrb[140].mxu1 }
 0xbee   :  { %v6432_v53 = vadd.f32 %v6431_v62, %v11510_v20  ;;  %v6433_v12 = vpop.f32.mrb[141].mxu1  ;;  %v6581_v23 = vpack.c.bf16 %v9917_v22, %v9913_v30 }
 0xbef   :  { %v6434_v45 = vadd.f32 %v6433_v12, %v11513_v49  ;;  %v6435_v13 = vpop.f32.mrb[142].mxu1 }
 0xbf0   :  { %9926 = vtanh.f32 %v6432_v53  ;;  %v6436_v14 = vadd.f32 %v6435_v13, %v11510_v20  ;;  %v6437_v36 = vpop.f32.mrb[143].mxu1  ;;  %6852 = vmatprep.mubr.bf16.mxu0 %v6581_v23 }
 0xbf1   :  { %9928 = vtanh.f32 %v6434_v45  ;;  %v6438_v15 = vadd.f32 %v6437_v36, %v11513_v49  ;;  %6853 = vmatmul.mubr.bf16.gmra.mrb[144].mxu0 %v6580_v7 }
 0xbf2   :  { %v9919_v61 = vpop.eup %9918  ;;  %9930 = vtanh.f32 %v6436_v14 }
 0xbf3   :  { %v9921_v46 = vpop.eup %9920  ;;  %9932 = vtanh.f32 %v6438_v15 }
 0xbf4   :  { %v9923_v47 = vpop.eup %9922 }
 0xbf5   :  { %v9925_v34 = vpop.eup %9924  ;;  %v6582_v8 = vpack.c.bf16 %v9923_v47, %v9919_v61  ;;  %v6441_v32 = vpop.f32.mrb[144].mxu1 }
 0xbf6   :  { %v6442_v63 = vadd.f32 %v6441_v32, %v11510_v20  ;;  %v6443_v59 = vpop.f32.mrb[145].mxu1  ;;  %v6583_v33 = vpack.c.bf16 %v9925_v34, %v9921_v46 }
 0xbf7   :  { %v6444_v9 = vadd.f32 %v6443_v59, %v11513_v49  ;;  %v6445_v18 = vpop.f32.mrb[146].mxu1 }
 0xbf8   :  { %9934 = vtanh.f32 %v6442_v63  ;;  %v6446_v56 = vadd.f32 %v6445_v18, %v11510_v20  ;;  %v6447_v1 = vpop.f32.mrb[147].mxu1  ;;  %6862 = vmatprep.mubr.bf16.mxu0 %v6583_v33 }
 0xbf9   :  { %9936 = vtanh.f32 %v6444_v9  ;;  %v6448_v37 = vadd.f32 %v6447_v1, %v11513_v49  ;;  %6863 = vmatmul.mubr.bf16.gmra.mrb[148].mxu0 %v6582_v8 }
 0xbfa   :  { %v9927_v19 = vpop.eup %9926  ;;  %9938 = vtanh.f32 %v6446_v56 }
 0xbfb   :  { %v9929_v2 = vpop.eup %9928  ;;  %9940 = vtanh.f32 %v6448_v37 }
 0xbfc   :  { %v9931_v38 = vpop.eup %9930 }
 0xbfd   :  { %v9933_v48 = vpop.eup %9932  ;;  %v6584_v31 = vpack.c.bf16 %v9931_v38, %v9927_v19  ;;  %v6451_v42 = vpop.f32.mrb[148].mxu1 }
 0xbfe   :  { %v6452_v0 = vadd.f32 %v6451_v42, %v11510_v20  ;;  %v6453_v25 = vpop.f32.mrb[149].mxu1  ;;  %v6585_v39 = vpack.c.bf16 %v9933_v48, %v9929_v2 }
 0xbff   :  { %v6454_v21 = vadd.f32 %v6453_v25, %v11513_v49  ;;  %v6455_v4 = vpop.f32.mrb[150].mxu1 }
 0xc00   :  { %9942 = vtanh.f32 %v6452_v0  ;;  %v6456_v26 = vadd.f32 %v6455_v4, %v11510_v20  ;;  %v6457_v44 = vpop.f32.mrb[151].mxu1  ;;  %6872 = vmatprep.mubr.bf16.mxu0 %v6585_v39 }
 0xc01   :  { %9944 = vtanh.f32 %v6454_v21  ;;  %v6458_v17 = vadd.f32 %v6457_v44, %v11513_v49  ;;  %6873 = vmatmul.mubr.bf16.gmra.mrb[152].mxu0 %v6584_v31 }
 0xc02   :  { %v9935_v6 = vpop.eup %9934  ;;  %9946 = vtanh.f32 %v6456_v26 }
 0xc03   :  { %v9937_v11 = vpop.eup %9936  ;;  %9948 = vtanh.f32 %v6458_v17 }
 0xc04   :  { %v9939_v40 = vpop.eup %9938 }
 0xc05   :  { %v9941_v55 = vpop.eup %9940  ;;  %v6586_v51 = vpack.c.bf16 %v9939_v40, %v9935_v6  ;;  %v6461_v29 = vpop.f32.mrb[152].mxu1 }
 0xc06   :  { %v6462_v3 = vadd.f32 %v6461_v29, %v11510_v20  ;;  %v6463_v54 = vpop.f32.mrb[153].mxu1  ;;  %v6587_v60 = vpack.c.bf16 %v9941_v55, %v9937_v11 }
 0xc07   :  { %v6464_v28 = vadd.f32 %v6463_v54, %v11513_v49  ;;  %v6465_v43 = vpop.f32.mrb[154].mxu1 }
 0xc08   :  { %9950 = vtanh.f32 %v6462_v3  ;;  %v6466_v5 = vadd.f32 %v6465_v43, %v11510_v20  ;;  %v6467_v24 = vpop.f32.mrb[155].mxu1  ;;  %6882 = vmatprep.mubr.bf16.mxu0 %v6587_v60 }
 0xc09   :  { %9952 = vtanh.f32 %v6464_v28  ;;  %v6468_v16 = vadd.f32 %v6467_v24, %v11513_v49  ;;  %6883 = vmatmul.mubr.bf16.gmra.mrb[156].mxu0 %v6586_v51 }
 0xc0a   :  { %v9943_v57 = vpop.eup %9942  ;;  %9954 = vtanh.f32 %v6466_v5 }
 0xc0b   :  { %v9945_v27 = vpop.eup %9944  ;;  %9956 = vtanh.f32 %v6468_v16 }
 0xc0c   :  { %v9947_v41 = vpop.eup %9946 }
 0xc0d   :  { %v9949_v35 = vpop.eup %9948  ;;  %v6588_v58 = vpack.c.bf16 %v9947_v41, %v9943_v57  ;;  %v6471_v30 = vpop.f32.mrb[156].mxu1 }
 0xc0e   :  { %v6472_v10 = vadd.f32 %v6471_v30, %v11510_v20  ;;  %v6473_v22 = vpop.f32.mrb[157].mxu1  ;;  %v6589_v7 = vpack.c.bf16 %v9949_v35, %v9945_v27 }
 0xc0f   :  { %v6474_v62 = vadd.f32 %v6473_v22, %v11513_v49  ;;  %v6475_v53 = vpop.f32.mrb[158].mxu1 }
 0xc10   :  { %9958 = vtanh.f32 %v6472_v10  ;;  %v6476_v12 = vadd.f32 %v6475_v53, %v11510_v20  ;;  %v6477_v23 = vpop.f32.mrb[159].mxu1  ;;  %6892 = vmatprep.mubr.bf16.mxu0 %v6589_v7 }
 0xc11   :  { %9960 = vtanh.f32 %v6474_v62  ;;  %v6478_v45 = vadd.f32 %v6477_v23, %v11513_v49  ;;  %6893 = vmatmul.mubr.bf16.gmra.mrb[160].mxu0 %v6588_v58 }
 0xc12   :  { %v9951_v13 = vpop.eup %9950  ;;  %9962 = vtanh.f32 %v6476_v12 }
 0xc13   :  { %v9953_v14 = vpop.eup %9952  ;;  %9964 = vtanh.f32 %v6478_v45 }
 0xc14   :  { %v9955_v36 = vpop.eup %9954 }
 0xc15   :  { %v9957_v15 = vpop.eup %9956  ;;  %v6590_v61 = vpack.c.bf16 %v9955_v36, %v9951_v13  ;;  %v6481_v46 = vpop.f32.mrb[160].mxu1 }
 0xc16   :  { %v6482_v47 = vadd.f32 %v6481_v46, %v11510_v20  ;;  %v6483_v34 = vpop.f32.mrb[161].mxu1  ;;  %v6591_v8 = vpack.c.bf16 %v9957_v15, %v9953_v14 }
 0xc17   :  { %v6484_v32 = vadd.f32 %v6483_v34, %v11513_v49  ;;  %v6485_v63 = vpop.f32.mrb[162].mxu1 }
 0xc18   :  { %9966 = vtanh.f32 %v6482_v47  ;;  %v6486_v59 = vadd.f32 %v6485_v63, %v11510_v20  ;;  %v6487_v33 = vpop.f32.mrb[163].mxu1  ;;  %6902 = vmatprep.mubr.bf16.mxu0 %v6591_v8 }
 0xc19   :  { %9968 = vtanh.f32 %v6484_v32  ;;  %v6488_v9 = vadd.f32 %v6487_v33, %v11513_v49  ;;  %6903 = vmatmul.mubr.bf16.gmra.mrb[164].mxu0 %v6590_v61 }
 0xc1a   :  { %v9959_v18 = vpop.eup %9958  ;;  %9970 = vtanh.f32 %v6486_v59 }
 0xc1b   :  { %v9961_v56 = vpop.eup %9960  ;;  %9972 = vtanh.f32 %v6488_v9 }
 0xc1c   :  { %v9963_v1 = vpop.eup %9962 }
 0xc1d   :  { %v9965_v37 = vpop.eup %9964  ;;  %v6592_v19 = vpack.c.bf16 %v9963_v1, %v9959_v18  ;;  %v6491_v2 = vpop.f32.mrb[164].mxu1 }
 0xc1e   :  { %v6492_v38 = vadd.f32 %v6491_v2, %v11510_v20  ;;  %v6493_v48 = vpop.f32.mrb[165].mxu1  ;;  %v6593_v31 = vpack.c.bf16 %v9965_v37, %v9961_v56 }
 0xc1f   :  { %v6494_v42 = vadd.f32 %v6493_v48, %v11513_v49  ;;  %v6495_v0 = vpop.f32.mrb[166].mxu1 }
 0xc20   :  { %9974 = vtanh.f32 %v6492_v38  ;;  %v6496_v25 = vadd.f32 %v6495_v0, %v11510_v20  ;;  %v6497_v39 = vpop.f32.mrb[167].mxu1  ;;  %6912 = vmatprep.mubr.bf16.mxu0 %v6593_v31 }
 0xc21   :  { %9976 = vtanh.f32 %v6494_v42  ;;  %v6498_v21 = vadd.f32 %v6497_v39, %v11513_v49  ;;  %6913 = vmatmul.mubr.bf16.gmra.mrb[168].mxu0 %v6592_v19  ;;  %v7097_v19 = vpop.xlane.xlu0 %7096 }
 0xc22   :  { %v9967_v4 = vpop.eup %9966  ;;  %9978 = vtanh.f32 %v6496_v25 }
 0xc23   :  { %v9969_v26 = vpop.eup %9968  ;;  %9980 = vtanh.f32 %v6498_v21 }
 0xc24   :  { %v9971_v44 = vpop.eup %9970 }
 0xc25   :  { %v9973_v17 = vpop.eup %9972  ;;  %v6594_v6 = vpack.c.bf16 %v9971_v44, %v9967_v4  ;;  %v6501_v11 = vpop.f32.mrb[168].mxu1 }
 0xc26   :  { %v6502_v40 = vadd.f32 %v6501_v11, %v11510_v20  ;;  %v6503_v55 = vpop.f32.mrb[169].mxu1  ;;  %v6595_v51 = vpack.c.bf16 %v9973_v17, %v9969_v26  ;;  %v7099_v4 = vpop.xlane.xlu0 %7098 }
 0xc27   :  { %v6504_v29 = vadd.f32 %v6503_v55, %v11513_v49  ;;  %v6505_v3 = vpop.f32.mrb[170].mxu1  ;;  %v7101_v17 = vpop.xlane.xlu1 %7100 }
 0xc28   :  { %9982 = vtanh.f32 %v6502_v40  ;;  %v6506_v54 = vadd.f32 %v6505_v3, %v11510_v20  ;;  %v6507_v60 = vpop.f32.mrb[171].mxu1  ;;  %6922 = vmatprep.mubr.bf16.mxu0 %v6595_v51 }
 0xc29   :  { %9984 = vtanh.f32 %v6504_v29  ;;  %v6508_v28 = vadd.f32 %v6507_v60, %v11513_v49  ;;  %6923 = vmatmul.mubr.bf16.gmra.mrb[172].mxu0 %v6594_v6 }
 0xc2a   :  { %v9975_v43 = vpop.eup %9974  ;;  %9986 = vtanh.f32 %v6506_v54 }
 0xc2b   :  { %v9977_v5 = vpop.eup %9976  ;;  %9988 = vtanh.f32 %v6508_v28  ;;  %v7103_v60 = vpop.xlane.xlu1 %7102 }
 0xc2c   :  { %v9979_v24 = vpop.eup %9978 }
 0xc2d   :  { %v9981_v16 = vpop.eup %9980  ;;  %v6596_v57 = vpack.c.bf16 %v9979_v24, %v9975_v43  ;;  %v6511_v27 = vpop.f32.mrb[172].mxu1 }
 0xc2e   :  { %v6512_v41 = vadd.f32 %v6511_v27, %v11510_v20  ;;  %v6513_v35 = vpop.f32.mrb[173].mxu1  ;;  %v6597_v58 = vpack.c.bf16 %v9981_v16, %v9977_v5 }
 0xc2f   :  { %v6514_v30 = vadd.f32 %v6513_v35, %v11513_v49  ;;  %v6515_v10 = vpop.f32.mrb[174].mxu1 }
 0xc30   :  { %9990 = vtanh.f32 %v6512_v41  ;;  %v6516_v22 = vadd.f32 %v6515_v10, %v11510_v20  ;;  %v6517_v7 = vpop.f32.mrb[175].mxu1  ;;  %6932 = vmatprep.mubr.bf16.mxu0 %v6597_v58  ;;  %v7105_v41 = vpop.xlane.xlu0 %7104 }
 0xc31   :  { %9992 = vtanh.f32 %v6514_v30  ;;  %v6518_v62 = vadd.f32 %v6517_v7, %v11513_v49  ;;  %6933 = vmatmul.mubr.bf16.gmra.mrb[176].mxu0 %v6596_v57  ;;  %v7107_v7 = vpop.xlane.xlu1 %7106 }
 0xc32   :  { %v9983_v53 = vpop.eup %9982  ;;  %9994 = vtanh.f32 %v6516_v22 }
 0xc33   :  { %v9985_v12 = vpop.eup %9984  ;;  %9996 = vtanh.f32 %v6518_v62 }
 0xc34   :  { %v9987_v23 = vpop.eup %9986 }
 0xc35   :  { %v9989_v45 = vpop.eup %9988  ;;  %v6598_v13 = vpack.c.bf16 %v9987_v23, %v9983_v53  ;;  %v6521_v14 = vpop.f32.mrb[176].mxu1 }
 0xc36   :  { %v6522_v36 = vadd.f32 %v6521_v14, %v11510_v20  ;;  %v6523_v15 = vpop.f32.mrb[177].mxu1  ;;  %v6599_v61 = vpack.c.bf16 %v9989_v45, %v9985_v12 }
 0xc37   :  { %v6524_v46 = vadd.f32 %v6523_v15, %v11513_v49  ;;  %v6525_v47 = vpop.f32.mrb[178].mxu1  ;;  %v7733_v49 = vld [vmem:[%s11733_s9 + $0x8] sm:$0x3] }
 0xc38   :  { %v6526_v34 = vpop.f32.mrb[179].mxu1  ;;  %6942 = vmatprep.mubr.bf16.mxu0 %v6599_v61  ;;  %v11569_v37 = vrot.slane %v7733_v49, %v10331_v50  ;;  %v11572_v2 = vrot.slane %v7733_v49, %v10336_v52 }
 0xc39   :  { %9998 = vtanh.f32 %v6524_v46  ;;  %6943 = vmatmul.mubr.bf16.gmra.mrb[180].mxu0 %v6598_v13 }
 0xc3a   :  { %v9991_v8 = vpop.eup %9990  ;;  %10000 = vtanh.f32 %v6522_v36  ;;  %v7109_v36 = vpop.xlane.xlu0 %7108 }
 0xc3b   :  { %v9993_v32 = vpop.eup %9992 }
 0xc3c   :  { %v9995_v63 = vpop.eup %9994 }
 0xc3d   :  { %v9997_v59 = vpop.eup %9996  ;;  %v6600_v33 = vpack.c.bf16 %v9995_v63, %v9991_v8  ;;  %v7111_v8 = vpop.xlane.xlu1 %7110 }
 0xc3e   :  { %v6601_v9 = vpack.c.bf16 %v9997_v59, %v9993_v32 }
 0xc40   :  { %6952 = vmatprep.mubr.bf16.mxu0 %v6601_v9 }
 0xc41   :  { %6953 = vmatmul.mubr.bf16.gmra.mrb[184].mxu0 %v6600_v33 }
 0xc43   :  { %v9999_v18 = vpop.eup %9998 }
 0xc44   :  { %v10001_v20 = vpop.eup %10000  ;;  %v6603_v56 = vpack.c.bf16 %v9999_v18, %v9999_v18 }
 0xc45   :  { %v6602_v1 = vpack.c.bf16 %v10001_v20, %v10001_v20 }
 0xc46   :  { %6962 = vmatprep.mubr.bf16.mxu0 %v6603_v56  ;;  %v7113_v56 = vpop.xlane.xlu0 %7112 }
 0xc49   :  { %6963 = vmatmul.mubr.bf16.gmra.mrb[188].mxu0 %v6602_v1 }
 0xcbc   :  { %v6844_v38 = vpop.f32.mrb[140].mxu0 }
 0xcbd   :  { %v6845_v48 = vadd.f32 %v6844_v38, %v11569_v37  ;;  %v6846_v31 = vpop.f32.mrb[141].mxu0 }
 0xcbe   :  { %v6847_v42 = vadd.f32 %v6846_v31, %v11572_v2  ;;  %v6848_v0 = vpop.f32.mrb[142].mxu0  ;;  %v7115_v31 = vpop.xlane.xlu1 %7114 }
 0xcbf   :  { %v7146_v25 = vadd.f32 %v7097_v19, %v6845_v48  ;;  %v6849_v39 = vadd.f32 %v6848_v0, %v11569_v37  ;;  %v6850_v21 = vpop.f32.mrb[143].mxu0 }
 0xcc0   :  { %v6851_v50 = vadd.f32 %v6850_v21, %v11572_v2 }
 0xcc1   :  { %v7171_v26 = vadd.f32 %v7146_v25, %v6847_v42  ;;  %v7147_v44 = vadd.f32 %v7099_v4, %v6849_v39 }
 0xcc3   :  { %7197 = vst.msk [vmem:[%s11734_s10] sm:$0xff] %vm7196_vm2, %v7171_v26  ;;  %v7172_v52 = vadd.f32 %v7147_v44, %v6851_v50  ;;  %v7117_v26 = vpop.xlane.xlu0 %7116 }
 0xcc4   :  { %v6854_v6 = vpop.f32.mrb[144].mxu0 }
 0xcc5   :  { %7198 = vst.msk [vmem:[%s11734_s10 + $0x8] sm:$0xff] %vm7196_vm2, %v7172_v52  ;;  %v6855_v11 = vadd.f32 %v6854_v6, %v11569_v37  ;;  %v6856_v40 = vpop.f32.mrb[145].mxu0 }
 0xcc6   :  { %v6857_v55 = vadd.f32 %v6856_v40, %v11572_v2  ;;  %v6858_v51 = vpop.f32.mrb[146].mxu0  ;;  %v7119_v40 = vpop.xlane.xlu1 %7118 }
 0xcc7   :  { %v7148_v29 = vadd.f32 %v7101_v17, %v6855_v11  ;;  %v6859_v3 = vadd.f32 %v6858_v51, %v11569_v37  ;;  %v6860_v54 = vpop.f32.mrb[147].mxu0 }
 0xcc8   :  { %v6861_v28 = vadd.f32 %v6860_v54, %v11572_v2 }
 0xcc9   :  { %v7173_v43 = vadd.f32 %v7148_v29, %v6857_v55  ;;  %v7149_v5 = vadd.f32 %v7103_v60, %v6859_v3 }
 0xccb   :  { %7199 = vst.msk [vmem:[%s11734_s10 + $0x10] sm:$0xff] %vm7196_vm2, %v7173_v43  ;;  %v7174_v24 = vadd.f32 %v7149_v5, %v6861_v28  ;;  %v7121_v43 = vpop.xlane.xlu0 %7120 }
 0xccc   :  { %v6864_v16 = vpop.f32.mrb[148].mxu0 }
 0xccd   :  { %7200 = vst.msk [vmem:[%s11734_s10 + $0x18] sm:$0xff] %vm7196_vm2, %v7174_v24  ;;  %v6865_v57 = vadd.f32 %v6864_v16, %v11569_v37  ;;  %v6866_v27 = vpop.f32.mrb[149].mxu0 }
 0xcce   :  { %v6867_v35 = vadd.f32 %v6866_v27, %v11572_v2  ;;  %v6868_v58 = vpop.f32.mrb[150].mxu0 }
 0xccf   :  { %v7150_v30 = vadd.f32 %v7105_v41, %v6865_v57  ;;  %v6869_v10 = vadd.f32 %v6868_v58, %v11569_v37  ;;  %v6870_v22 = vpop.f32.mrb[151].mxu0  ;;  %v7123_v41 = vpop.xlane.xlu1 %7122 }
 0xcd0   :  { %v6871_v62 = vadd.f32 %v6870_v22, %v11572_v2 }
 0xcd1   :  { %v7175_v53 = vadd.f32 %v7150_v30, %v6867_v35  ;;  %v7151_v12 = vadd.f32 %v7107_v7, %v6869_v10 }
 0xcd3   :  { %7201 = vst.msk [vmem:[%s11734_s10 + $0x20] sm:$0xff] %vm7196_vm2, %v7175_v53  ;;  %v7176_v23 = vadd.f32 %v7151_v12, %v6871_v62  ;;  %v7125_v53 = vpop.xlane.xlu0 %7124 }
 0xcd4   :  { %v6874_v45 = vpop.f32.mrb[152].mxu0 }
 0xcd5   :  { %7202 = vst.msk [vmem:[%s11734_s10 + $0x28] sm:$0xff] %vm7196_vm2, %v7176_v23  ;;  %v6875_v13 = vadd.f32 %v6874_v45, %v11569_v37  ;;  %v6876_v14 = vpop.f32.mrb[153].mxu0 }
 0xcd6   :  { %v6877_v15 = vadd.f32 %v6876_v14, %v11572_v2  ;;  %v6878_v61 = vpop.f32.mrb[154].mxu0 }
 0xcd7   :  { %v7152_v46 = vadd.f32 %v7109_v36, %v6875_v13  ;;  %v6879_v47 = vadd.f32 %v6878_v61, %v11569_v37  ;;  %v6880_v34 = vpop.f32.mrb[155].mxu0  ;;  %v7127_v36 = vpop.xlane.xlu1 %7126 }
 0xcd8   :  { %v6881_v32 = vadd.f32 %v6880_v34, %v11572_v2 }
 0xcd9   :  { %v7177_v63 = vadd.f32 %v7152_v46, %v6877_v15  ;;  %v7153_v59 = vadd.f32 %v7111_v8, %v6879_v47 }
 0xcdb   :  { %7203 = vst.msk [vmem:[%s11734_s10 + $0x30] sm:$0xff] %vm7196_vm2, %v7177_v63  ;;  %v7178_v33 = vadd.f32 %v7153_v59, %v6881_v32  ;;  %v7129_v63 = vpop.xlane.xlu0 %7128 }
 0xcdc   :  { %v6884_v9 = vpop.f32.mrb[156].mxu0 }
 0xcdd   :  { %7204 = vst.msk [vmem:[%s11734_s10 + $0x38] sm:$0xff] %vm7196_vm2, %v7178_v33  ;;  %v6885_v18 = vadd.f32 %v6884_v9, %v11569_v37  ;;  %v6886_v20 = vpop.f32.mrb[157].mxu0 }
 0xcde   :  { %v6887_v1 = vadd.f32 %v6886_v20, %v11572_v2  ;;  %v6888_v49 = vpop.f32.mrb[158].mxu0 }
 0xcdf   :  { %v7154_v19 = vadd.f32 %v7113_v56, %v6885_v18  ;;  %v6889_v38 = vadd.f32 %v6888_v49, %v11569_v37  ;;  %v6890_v48 = vpop.f32.mrb[159].mxu0  ;;  %v7131_v56 = vpop.xlane.xlu1 %7130 }
 0xce0   :  { %v6891_v42 = vadd.f32 %v6890_v48, %v11572_v2 }
 0xce1   :  { %v7179_v0 = vadd.f32 %v7154_v19, %v6887_v1  ;;  %v7155_v25 = vadd.f32 %v7115_v31, %v6889_v38 }
 0xce3   :  { %7205 = vst.msk [vmem:[%s11734_s10 + $0x40] sm:$0xff] %vm7196_vm2, %v7179_v0  ;;  %v7180_v39 = vadd.f32 %v7155_v25, %v6891_v42  ;;  %v7133_v0 = vpop.xlane.xlu0 %7132 }
 0xce4   :  { %v6894_v21 = vpop.f32.mrb[160].mxu0 }
 0xce5   :  { %7206 = vst.msk [vmem:[%s11734_s10 + $0x48] sm:$0xff] %vm7196_vm2, %v7180_v39  ;;  %v6895_v4 = vadd.f32 %v6894_v21, %v11569_v37  ;;  %v6896_v50 = vpop.f32.mrb[161].mxu0 }
 0xce6   :  { %v6897_v44 = vadd.f32 %v6896_v50, %v11572_v2  ;;  %v6898_v17 = vpop.f32.mrb[162].mxu0 }
 0xce7   :  { %v7156_v52 = vadd.f32 %v7117_v26, %v6895_v4  ;;  %v6899_v6 = vadd.f32 %v6898_v17, %v11569_v37  ;;  %v6900_v11 = vpop.f32.mrb[163].mxu0  ;;  %v7135_v26 = vpop.xlane.xlu1 %7134 }
 0xce8   :  { %v6901_v55 = vadd.f32 %v6900_v11, %v11572_v2 }
 0xce9   :  { %v7181_v51 = vadd.f32 %v7156_v52, %v6897_v44  ;;  %v7157_v29 = vadd.f32 %v7119_v40, %v6899_v6 }
 0xceb   :  { %7207 = vst.msk [vmem:[%s11734_s10 + $0x50] sm:$0xff] %vm7196_vm2, %v7181_v51  ;;  %v7182_v3 = vadd.f32 %v7157_v29, %v6901_v55  ;;  %v7137_v51 = vpop.xlane.xlu0 %7136 }
 0xcec   :  { %v6904_v54 = vpop.f32.mrb[164].mxu0 }
 0xced   :  { %7208 = vst.msk [vmem:[%s11734_s10 + $0x58] sm:$0xff] %vm7196_vm2, %v7182_v3  ;;  %v6905_v60 = vadd.f32 %v6904_v54, %v11569_v37  ;;  %v6906_v28 = vpop.f32.mrb[165].mxu0 }
 0xcee   :  { %v6907_v5 = vadd.f32 %v6906_v28, %v11572_v2  ;;  %v6908_v24 = vpop.f32.mrb[166].mxu0 }
 0xcef   :  { %v7158_v16 = vadd.f32 %v7121_v43, %v6905_v60  ;;  %v6909_v57 = vadd.f32 %v6908_v24, %v11569_v37  ;;  %v6910_v27 = vpop.f32.mrb[167].mxu0  ;;  %v7139_v43 = vpop.xlane.xlu1 %7138 }
 0xcf0   :  { %v6911_v35 = vadd.f32 %v6910_v27, %v11572_v2 }
 0xcf1   :  { %v7183_v58 = vadd.f32 %v7158_v16, %v6907_v5  ;;  %v7159_v30 = vadd.f32 %v7123_v41, %v6909_v57 }
 0xcf3   :  { %7209 = vst.msk [vmem:[%s11734_s10 + $0x60] sm:$0xff] %vm7196_vm2, %v7183_v58  ;;  %v7184_v10 = vadd.f32 %v7159_v30, %v6911_v35  ;;  %v7141_v58 = vpop.xlane.xlu0 %7140 }
 0xcf4   :  { %v6914_v22 = vpop.f32.mrb[168].mxu0 }
 0xcf5   :  { %7210 = vst.msk [vmem:[%s11734_s10 + $0x68] sm:$0xff] %vm7196_vm2, %v7184_v10  ;;  %v6915_v7 = vadd.f32 %v6914_v22, %v11569_v37  ;;  %v6916_v62 = vpop.f32.mrb[169].mxu0 }
 0xcf6   :  { %v6917_v12 = vadd.f32 %v6916_v62, %v11572_v2  ;;  %v6918_v23 = vpop.f32.mrb[170].mxu0 }
 0xcf7   :  { %v7160_v45 = vadd.f32 %v7125_v53, %v6915_v7  ;;  %v6919_v13 = vadd.f32 %v6918_v23, %v11569_v37  ;;  %v6920_v14 = vpop.f32.mrb[171].mxu0  ;;  %v7143_v53 = vpop.xlane.xlu1 %7142 }
 0xcf8   :  { %v6921_v15 = vadd.f32 %v6920_v14, %v11572_v2 }
 0xcf9   :  { %v7185_v61 = vadd.f32 %v7160_v45, %v6917_v12  ;;  %v7161_v46 = vadd.f32 %v7127_v36, %v6919_v13 }
 0xcfb   :  { %7211 = vst.msk [vmem:[%s11734_s10 + $0x70] sm:$0xff] %vm7196_vm2, %v7185_v61  ;;  %v7186_v47 = vadd.f32 %v7161_v46, %v6921_v15  ;;  %v7145_v61 = vpop.xlane.xlu0 %7144 }
 0xcfc   :  { %v6924_v34 = vpop.f32.mrb[172].mxu0 }
 0xcfd   :  { %7212 = vst.msk [vmem:[%s11734_s10 + $0x78] sm:$0xff] %vm7196_vm2, %v7186_v47  ;;  %v6925_v8 = vadd.f32 %v6924_v34, %v11569_v37  ;;  %v6926_v32 = vpop.f32.mrb[173].mxu0 }
 0xcfe   :  { %v6927_v59 = vadd.f32 %v6926_v32, %v11572_v2  ;;  %v6928_v33 = vpop.f32.mrb[174].mxu0 }
 0xcff   :  { %v7162_v9 = vadd.f32 %v7129_v63, %v6925_v8  ;;  %v6929_v18 = vadd.f32 %v6928_v33, %v11569_v37  ;;  %v6930_v20 = vpop.f32.mrb[175].mxu0 }
 0xd00   :  { %v6931_v1 = vadd.f32 %v6930_v20, %v11572_v2 }
 0xd01   :  { %v7187_v49 = vadd.f32 %v7162_v9, %v6927_v59  ;;  %v7163_v19 = vadd.f32 %v7131_v56, %v6929_v18 }
 0xd03   :  { %7213 = vst.msk [vmem:[%s11734_s10 + $0x80] sm:$0xff] %vm7196_vm2, %v7187_v49  ;;  %v7188_v38 = vadd.f32 %v7163_v19, %v6931_v1 }
 0xd04   :  { %v6934_v48 = vpop.f32.mrb[176].mxu0 }
 0xd05   :  { %7214 = vst.msk [vmem:[%s11734_s10 + $0x88] sm:$0xff] %vm7196_vm2, %v7188_v38  ;;  %v6935_v31 = vadd.f32 %v6934_v48, %v11569_v37  ;;  %v6936_v42 = vpop.f32.mrb[177].mxu0 }
 0xd06   :  { %v6937_v25 = vadd.f32 %v6936_v42, %v11572_v2  ;;  %v6938_v39 = vpop.f32.mrb[178].mxu0 }
 0xd07   :  { %v7164_v21 = vadd.f32 %v7133_v0, %v6935_v31  ;;  %v6939_v4 = vadd.f32 %v6938_v39, %v11569_v37  ;;  %v6940_v50 = vpop.f32.mrb[179].mxu0 }
 0xd08   :  { %v6941_v44 = vadd.f32 %v6940_v50, %v11572_v2 }
 0xd09   :  { %v7189_v17 = vadd.f32 %v7164_v21, %v6937_v25  ;;  %v7165_v52 = vadd.f32 %v7135_v26, %v6939_v4 }
 0xd0b   :  { %7215 = vst.msk [vmem:[%s11734_s10 + $0x90] sm:$0xff] %vm7196_vm2, %v7189_v17  ;;  %v7190_v6 = vadd.f32 %v7165_v52, %v6941_v44 }
 0xd0c   :  { %v6944_v11 = vpop.f32.mrb[180].mxu0 }
 0xd0d   :  { %7216 = vst.msk [vmem:[%s11734_s10 + $0x98] sm:$0xff] %vm7196_vm2, %v7190_v6  ;;  %v6945_v40 = vadd.f32 %v6944_v11, %v11569_v37  ;;  %v6946_v55 = vpop.f32.mrb[181].mxu0 }
 0xd0e   :  { %v6947_v29 = vadd.f32 %v6946_v55, %v11572_v2  ;;  %v6948_v3 = vpop.f32.mrb[182].mxu0 }
 0xd0f   :  { %v7166_v54 = vadd.f32 %v7137_v51, %v6945_v40  ;;  %v6949_v60 = vadd.f32 %v6948_v3, %v11569_v37  ;;  %v6950_v28 = vpop.f32.mrb[183].mxu0 }
 0xd10   :  { %v6951_v5 = vadd.f32 %v6950_v28, %v11572_v2 }
 0xd11   :  { %v7191_v24 = vadd.f32 %v7166_v54, %v6947_v29  ;;  %v7167_v16 = vadd.f32 %v7139_v43, %v6949_v60 }
 0xd13   :  { %7217 = vst.msk [vmem:[%s11734_s10 + $0xa0] sm:$0xff] %vm7196_vm2, %v7191_v24  ;;  %v7192_v57 = vadd.f32 %v7167_v16, %v6951_v5 }
 0xd14   :  { %v6954_v27 = vpop.f32.mrb[184].mxu0 }
 0xd15   :  { %7218 = vst.msk [vmem:[%s11734_s10 + $0xa8] sm:$0xff] %vm7196_vm2, %v7192_v57  ;;  %v6955_v41 = vadd.f32 %v6954_v27, %v11569_v37  ;;  %v6956_v35 = vpop.f32.mrb[185].mxu0 }
 0xd16   :  { %v6957_v30 = vadd.f32 %v6956_v35, %v11572_v2  ;;  %v6958_v10 = vpop.f32.mrb[186].mxu0 }
 0xd17   :  { %v7168_v22 = vadd.f32 %v7141_v58, %v6955_v41  ;;  %v6959_v7 = vadd.f32 %v6958_v10, %v11569_v37  ;;  %v6960_v62 = vpop.f32.mrb[187].mxu0 }
 0xd18   :  { %v6961_v12 = vadd.f32 %v6960_v62, %v11572_v2 }
 0xd19   :  { %v7193_v23 = vadd.f32 %v7168_v22, %v6957_v30  ;;  %v7169_v45 = vadd.f32 %v7143_v53, %v6959_v7 }
 0xd1b   :  { %7219 = vst.msk [vmem:[%s11734_s10 + $0xb0] sm:$0xff] %vm7196_vm2, %v7193_v23  ;;  %v7194_v13 = vadd.f32 %v7169_v45, %v6961_v12 }
 0xd1c   :  { %v6964_v14 = vpop.f32.mrb[188].mxu0 }
 0xd1d   :  { %7220 = vst.msk [vmem:[%s11734_s10 + $0xb8] sm:$0xff] %vm7196_vm2, %v7194_v13  ;;  %v6965_v36 = vadd.f32 %v6964_v14, %v11569_v37  ;;  %v6966_v15 = vpop.f32.mrb[189].mxu0 }
 0xd1e   :  { %v6967_v46 = vadd.f32 %v6966_v15, %v11572_v2  ;;  %v6968_v47 = vpop.f32.mrb[190].mxu0 }
 0xd1f   :  { %v7170_v34 = vadd.f32 %v7145_v61, %v6965_v36  ;;  %v6969_v8 = vpop.f32.mrb[191].mxu0 }
 0xd21   :  { %v7195_v32 = vadd.f32 %v7170_v34, %v6967_v46 }
 0xd23   :  { %7221 = vst.msk [vmem:[%s11734_s10 + $0xc0] sm:$0xff] %vm7196_vm2, %v7195_v32 }
 0xd24   :  { %7240 = vsyncpa [#allocation3], 1 }
 0xd25   :  { %7241 = vsyncpa [#allocation5], 1 }

</bundles_post_ra>
